<compile_context>
chip_gen: v6e
topology: v6e:2x2x1
jax: 0.10.0
libtpu: 0.0.40
codegen_flags: <defaults>
</compile_context>

<pallas_src>
import functools
import itertools

import numpy as np
import jax
import jax.numpy as jnp
from jax.experimental import pallas as pl
from jax.experimental.pallas import tpu as pltpu


def _round_up(x, m):
    return ((x + m - 1) // m) * m


def _pick_tile_m(m, cap=512):
    """Largest row tile <= cap dividing m (every M in this net is a multiple of 16)."""
    if m <= cap:
        return m
    for d in (512, 256, 128, 64, 32, 16, 8):
        if m % d == 0:
            return d
    return m


# -------------------- Pallas matmul with fused BN statistics -------------------

def _matmul_stats_kernel(a_ref, b_ref, o_ref, sum_ref, sq_ref):
    i = pl.program_id(1)                      # M-tile index (grid is (j, i, k))
    k = pl.program_id(2)                      # K-step index

    @pl.when(k == 0)
    def _():
        o_ref[...] = jnp.zeros_like(o_ref)

    @pl.when((i == 0) & (k == 0))
    def _():
        sum_ref[...] = jnp.zeros_like(sum_ref)
        sq_ref[...] = jnp.zeros_like(sq_ref)

    # f32 accumulation directly into the resident output block.
    o_ref[...] += jnp.dot(a_ref[...], b_ref[...],
                          preferred_element_type=jnp.float32)

    # Per-channel partial sums over the final accumulated values (last K step).
    @pl.when(k == pl.num_programs(2) - 1)
    def _():
        y = o_ref[...]
        sum_ref[...] += jnp.sum(y, axis=0, keepdims=True)
        sq_ref[...] += jnp.sum(y * y, axis=0, keepdims=True)


def pallas_matmul_stats(a, b):
    """(M, K) @ (K, N) -> ((M, 128) f32 slab, (1, 128) sum, (1, 128) sumsq).

    Operands are cast to bf16 (MXU native); accumulation stays in f32.  Columns
    >= N of the slab (and stats) are exactly zero.  Zero-padded rows contribute
    nothing to the statistics.
    """
    a = a.astype(jnp.bfloat16)
    b = b.astype(jnp.bfloat16)
    M, K = a.shape
    K2, N = b.shape
    assert K == K2
    tn = 128                                   # Cout <= 32 here -> one lane tile
    Np = _round_up(N, tn)
    tm = min(512, _round_up(M, 16))            # 16-row multiples (bf16 packing)
    Mp = _round_up(M, tm)
    Kp = _round_up(K, 128)
    tk = Kp if Kp <= 2048 else 2048            # single K step for every conv here
    Kp = _round_up(Kp, tk)
    if (Mp, Kp) != (M, K):                     # no-op in practice: im2col emits K == Kp
        a = jnp.pad(a, ((0, Mp - M), (0, Kp - K)))
    if (Kp, Np) != (K, N):                     # weights are tiny
        b = jnp.pad(b, ((0, Kp - K), (0, Np - N)))
    out, sums, sqs = pl.pallas_call(
        _matmul_stats_kernel,
        out_shape=(jax.ShapeDtypeStruct((Mp, Np), jnp.float32),
                   jax.ShapeDtypeStruct((1, Np), jnp.float32),
                   jax.ShapeDtypeStruct((1, Np), jnp.float32)),
        grid_spec=pltpu.PrefetchScalarGridSpec(
            num_scalar_prefetch=0,
            # j (lane tile) outermost so the stats accumulator block stays
            # resident across all consecutive (i, k) steps.
            grid=(Np // tn, Mp // tm, Kp // tk),
            in_specs=[pl.BlockSpec((tm, tk), lambda j, i, k: (i, k)),
                      pl.BlockSpec((tk, tn), lambda j, i, k: (k, j))],
            out_specs=[pl.BlockSpec((tm, tn), lambda j, i, k: (i, j)),
                       pl.BlockSpec((1, tn), lambda j, i, k: (0, j)),
                       pl.BlockSpec((1, tn), lambda j, i, k: (0, j))]),
        compiler_params=pltpu.CompilerParams(
            dimension_semantics=("parallel", "arbitrary", "arbitrary"),
            vmem_limit_bytes=32 * 1024 * 1024),
    )(a, b)
    if Mp != M:
        out = out[:M]
    return out, sums, sqs


# ----------------------------- Pallas BatchNorm apply --------------------------

def _bn_apply_kernel(x_ref, sum_ref, sq_ref, g_ref, b_ref, *rest, inv_m, eps, relu):
    if len(rest) == 2:
        r_ref, o_ref = rest
    else:
        r_ref, o_ref = None, rest[0]
    mean = sum_ref[...] * inv_m
    var = jnp.maximum(sq_ref[...] * inv_m - mean * mean, 0.0)
    scale = g_ref[...] * jax.lax.rsqrt(var + eps)
    shift = b_ref[...] - mean * scale
    y = x_ref[...] * scale + shift
    if relu:
        y = jnp.maximum(y, 0.0)
    if r_ref is not None:
        y = y + r_ref[...]
    o_ref[...] = y


def _row_param(vec, np_cols):
    return jnp.zeros((1, np_cols), jnp.float32).at[0, :vec.shape[0]].set(
        vec.astype(jnp.float32))


def batchnorm_apply(slab, sums, sqs, count, gamma, beta, *,
                    relu=False, residual=None, eps=1e-5):
    """Training-mode BatchNorm apply over the rows of a lane-dense (M, 128) slab.

    `sums` / `sqs` are the per-channel totals over `count` rows (possibly
    accumulated across several slabs, e.g. the 8 sub-pixel parity slabs).
    """
    M, Np = slab.shape
    tm = _pick_tile_m(M)
    g = _row_param(gamma, Np)
    b = _row_param(beta, Np)
    row_spec = pl.BlockSpec((1, Np), lambda i: (0, 0))
    tile_spec = pl.BlockSpec((tm, Np), lambda i: (i, 0))
    args = [slab, sums, sqs, g, b]
    in_specs = [tile_spec, row_spec, row_spec, row_spec, row_spec]
    if residual is not None:
        args.append(residual)
        in_specs.append(tile_spec)
    return pl.pallas_call(
        functools.partial(_bn_apply_kernel, inv_m=1.0 / count, eps=eps, relu=relu),
        out_shape=jax.ShapeDtypeStruct((M, Np), jnp.float32),
        grid=(M // tm,),
        in_specs=in_specs,
        out_specs=tile_spec,
        compiler_params=pltpu.CompilerParams(dimension_semantics=("parallel",)),
    )(*args)


# ------------------------------ conv glue (im2col) ----------------------------

def im2col(x, ksize, stride, kp):
    """x: (N, *spatial, C) -> (M, kp); the lane (K) padding is fused into the concat."""
    n = x.shape[0]
    spatial = x.shape[1:-1]
    c = x.shape[-1]
    nd = len(spatial)
    out_sp = tuple((spatial[d] - ksize[d]) // stride + 1 for d in range(nd))
    cols = []
    for offs in itertools.product(*[range(k) for k in ksize]):
        sl = tuple(slice(offs[d], offs[d] + (out_sp[d] - 1) * stride + 1, stride)
                   for d in range(nd))
        cols.append(x[(slice(None),) + sl + (slice(None),)])
    K = len(cols) * c
    if kp > K:                                   # fused K padding, no extra repad pass
        cols.append(jnp.zeros(cols[0].shape[:-1] + (kp - K,), x.dtype))
    patches = jnp.concatenate(cols, axis=-1)     # offset-major, channel-minor
    M = n * int(np.prod(out_sp))
    return patches.reshape(M, kp), out_sp


# TODO(synk): im2col remains XLA glue; fully fusing it into the matmul's A-tile fetch
# was evaluated but the tiny channel counts (Cin <= 32) make per-offset in-kernel
# slicing lane-starved, so patch traffic is instead cut via bf16 operands, sub-pixel
# transposed convs, depth-factoring of the final 7^3 conv and fused K padding.
def conv_nd_stats(x, w, *, stride=1, pad=0, pad_mode='zero'):
    """x: (N, *spatial, Cin); w: (*kernel, Cin, Cout), correlation convention.

    Returns (slab, sums, sqs, out_sp): slab is (M, 128) f32 with real channels in
    the first Cout columns; sums/sqs are per-channel totals over the M rows.
    """
    nd = x.ndim - 2
    k = w.shape[:nd]
    cin, cout = w.shape[-2], w.shape[-1]
    if pad > 0:
        widths = ((0, 0),) + ((pad, pad),) * nd + ((0, 0),)
        x = jnp.pad(x, widths,
                    mode='reflect' if pad_mode == 'reflect' else 'constant')
    x = x.astype(jnp.bfloat16)                   # halves im2col/patch HBM bytes
    K = int(np.prod(k)) * cin
    Kp = _round_up(K, 128)
    patches, out_sp = im2col(x, k, stride, Kp)
    wm = w.reshape(K, cout).astype(jnp.bfloat16)
    if Kp > K:
        wm = jnp.pad(wm, ((0, Kp - K), (0, 0)))
    slab, sums, sqs = pallas_matmul_stats(patches, wm)
    return slab, sums, sqs, out_sp


def conv_bn_layer(x, w, gamma, beta, *, stride, pad, pad_mode,
                  relu=True, residual=None):
    """Conv (no bias) + BatchNorm (training stats) [+ ReLU] [+ residual slab]."""
    slab, sums, sqs, sp = conv_nd_stats(x, w, stride=stride, pad=pad,
                                        pad_mode=pad_mode)
    slab = batchnorm_apply(slab, sums, sqs, slab.shape[0], gamma, beta,
                           relu=relu, residual=residual)
    return slab, sp


def slab_to_act(slab, n, out_sp, c):
    return slab[:, :c].reshape((n,) + tuple(out_sp) + (c,))


# ---------------- ConvTranspose3d via sub-pixel (parity) decomposition --------

def conv_transpose3d_subpixel(x, wt):
    """ConvTranspose3d(k=3, s=2, p=1, output_padding=1) as 8 sub-pixel stride-1 convs.

    x:  (N, D, H, W, Cin); wt: (3, 3, 3, Cin, Cout) with PyTorch ConvTranspose
    semantics out[o] += x[i] * wt[k] where o = 2*i - 1 + k (per spatial dim).
    Returns 8 (slab, sums, sqs) triples in parity-major order (pd, ph, pw); the
    slab rows cover out[:, 2d+pd, 2h+ph, 2w+pw, :].
    """
    parts = []
    for parity in itertools.product((0, 1), repeat=3):
        # taps per dim: even outputs use wt[1]; odd outputs use (wt[2], wt[0])
        # applied to (x[j], x[j+1]) with a single trailing zero row of padding.
        idx = [np.array([1]) if p == 0 else np.array([2, 0]) for p in parity]
        w_sub = wt[np.ix_(idx[0], idx[1], idx[2])]          # (kd,kh,kw,Cin,Cout)
        widths = ((0, 0),) + tuple((0, 1) if p else (0, 0) for p in parity) + ((0, 0),)
        xp = jnp.pad(x, widths) if any(parity) else x
        slab, sums, sqs, _ = conv_nd_stats(xp, w_sub, stride=1, pad=0)
        parts.append((slab, sums, sqs))
    return parts


def upsample_layer(x, wt, gamma, beta):
    """ConvTranspose3d (sub-pixel) + BatchNorm3d + ReLU; returns an NDHWC activation."""
    n, d, h, w = x.shape[:4]
    cout = wt.shape[-1]
    parts = conv_transpose3d_subpixel(x, wt)
    # Combine per-parity partial statistics (statistics over the union of all
    # output positions) without materializing the 8x concatenated slab.
    sums = sum(p[1] for p in parts)
    sqs = sum(p[2] for p in parts)
    count = 8 * n * d * h * w
    normed = [batchnorm_apply(p[0], sums, sqs, count, gamma, beta,
                              relu=True)[:, :cout] for p in parts]
    y = jnp.stack(normed, axis=0).reshape(2, 2, 2, n, d, h, w, cout)
    y = jnp.transpose(y, (3, 4, 0, 5, 1, 6, 2, 7))           # (n, d, pd, h, ph, w, pw, c)
    return y.reshape(n, 2 * d, 2 * h, 2 * w, cout)


# --------------- final ReflectionPad3d + Conv3d(7^3, bias) + Sigmoid ----------

def _final_conv_kernel(p_ref, w_ref, b_ref, o_ref):
    t = pl.program_id(2)                      # depth-tap (reduction) index

    @pl.when(t == 0)
    def _():
        o_ref[...] = jnp.zeros_like(o_ref)

    o_ref[...] += jnp.dot(p_ref[...], w_ref[...],
                          preferred_element_type=jnp.float32)

    # Fused bias + sigmoid epilogue once the depth reduction is complete.
    @pl.when(t == pl.num_programs(2) - 1)
    def _():
        y = jnp.clip(o_ref[...] + b_ref[...], -60.0, 60.0)
        s = pl.reciprocal(1.0 + jnp.exp(-y), approx=True)   # EUP, off the VPU
        o_ref[...] = jnp.clip(s, 0.0, 1.0)


def final_conv3d_sigmoid(x, w, bias):
    """ReflectionPad3d(3) + Conv3d(k=7, bias=True) + Sigmoid, depth-factored.

    A single 2-D (7x7) im2col is built per padded depth slice; the 7 depth taps
    are a reduction grid axis whose A index_map shifts the depth slice, so the
    patch matrix is ~7x smaller than full 3-D im2col.
    x: (N, D, H, W, Cin); w: (7, 7, 7, Cin, Cout). Returns (N, D, H, W, Cout).
    """
    n, d, h, wd = x.shape[:4]
    kd, kh, kw, cin, cout = w.shape
    pad = 3
    xp = jnp.pad(x, ((0, 0), (pad, pad), (pad, pad), (pad, pad), (0, 0)),
                 mode='reflect').astype(jnp.bfloat16)
    dp, hp, wp = d + 2 * pad, h + 2 * pad, wd + 2 * pad
    do, ho, wo = d, h, wd
    K2 = kh * kw * cin
    Kp = _round_up(K2, 128)
    # 2-D im2col over (kh, kw) for every padded depth slice.
    patches, _ = im2col(xp.reshape(n * dp, hp, wp, cin), (kh, kw), 1, Kp)
    P = patches.reshape(n, dp, ho * wo, Kp)                  # bf16
    # Per-depth-tap weight matrices, lane-padded to 128 output columns.
    wk = w.reshape(kd, K2, cout).astype(jnp.bfloat16)
    wk = jnp.pad(wk, ((0, 0), (0, Kp - K2), (0, 128 - cout)))
    brow = _row_param(bias, 128)
    mrows = ho * wo

    out = pl.pallas_call(
        _final_conv_kernel,
        out_shape=jax.ShapeDtypeStruct((n, do, mrows, 128), jnp.float32),
        grid_spec=pltpu.PrefetchScalarGridSpec(
            num_scalar_prefetch=0,
            grid=(n, do, kd),
            in_specs=[pl.BlockSpec((None, None, mrows, Kp),
                                   lambda b, z, t: (b, z + t, 0, 0)),
                      pl.BlockSpec((None, Kp, 128),
                                   lambda b, z, t: (t, 0, 0)),
                      pl.BlockSpec((1, 128),
                                   lambda b, z, t: (0, 0))],
            out_specs=pl.BlockSpec((None, None, mrows, 128),
                                   lambda b, z, t: (b, z, 0, 0))),
        compiler_params=pltpu.CompilerParams(
            dimension_semantics=("parallel", "parallel", "arbitrary"),
            vmem_limit_bytes=32 * 1024 * 1024),
    )(P, wk, brow)
    return out[..., :cout].reshape(n, do, ho, wo, cout)


# ------------------------------ ResnetGenerator -------------------------------

def resnet_generator_forward(x_nchw, params, *, n_blocks=2, depth=6):
    N = x_nchw.shape[0]
    x = jnp.transpose(x_nchw, (0, 2, 3, 1)).astype(jnp.float32)      # NHWC

    # ReflectionPad2d(3) + Conv2d(k=7, no bias) + BatchNorm2d + ReLU
    c = params['w0'].shape[-1]
    slab, sp = conv_bn_layer(x, params['w0'], params['g0'], params['b0'],
                             stride=1, pad=3, pad_mode='reflect')
    x = slab_to_act(slab, N, sp, c)

    # 2x downsampling: Conv2d(k=3, s=2, p=1, no bias) + BN + ReLU
    for i in range(2):
        w = params[f'wd{i}']
        c = w.shape[-1]
        slab, sp = conv_bn_layer(x, w, params[f'gd{i}'], params[f'bd{i}'],
                                 stride=2, pad=1, pad_mode='zero')
        x = slab_to_act(slab, N, sp, c)

    # Resnet blocks: reflect pad, conv3, BN, ReLU, reflect pad, conv3, BN, + skip
    res_slab = slab
    for i in range(n_blocks):
        s1, sp = conv_bn_layer(x, params[f'wb{i}_0'], params[f'gb{i}_0'],
                               params[f'bb{i}_0'], stride=1, pad=1,
                               pad_mode='reflect')
        h = slab_to_act(s1, N, sp, c)
        s2, sp = conv_bn_layer(h, params[f'wb{i}_1'], params[f'gb{i}_1'],
                               params[f'bb{i}_1'], stride=1, pad=1,
                               pad_mode='reflect', relu=False, residual=res_slab)
        res_slab = s2
        x = slab_to_act(s2, N, sp, c)

    # TODO(synk): DimensionUpscale is not defined in the reference source; modeled as
    # replicating the 2D feature map along a new depth axis of size 24//4 = 6 (NDHWC).
    x = jnp.broadcast_to(x[:, None], (N, depth) + x.shape[1:])

    # 2x upsampling: ConvTranspose3d(k=3, s=2, p=1, op=1, no bias) + BatchNorm3d + ReLU
    for i in range(2):
        x = upsample_layer(x, params[f'wu{i}'], params[f'gu{i}'], params[f'bu{i}'])

    # ReflectionPad3d(3) + Conv3d(k=7, bias) + Sigmoid (fused Pallas kernel)
    out = final_conv3d_sigmoid(x, params['wf'], params['bf'])
    return jnp.transpose(out, (0, 4, 1, 2, 3))                       # NCDHW


def init_params(key, input_nc=3, output_nc=3, ngf=8, n_blocks=2):
    keys = iter(jax.random.split(key, 64))
    nrm = lambda k, s: 0.05 * jax.random.normal(k, s, jnp.float32)
    gam = lambda k, c: 1.0 + 0.1 * jax.random.normal(k, (c,), jnp.float32)
    bet = lambda k, c: 0.1 * jax.random.normal(k, (c,), jnp.float32)
    p = {}
    p['w0'] = nrm(next(keys), (7, 7, input_nc, ngf))
    p['g0'], p['b0'] = gam(next(keys), ngf), bet(next(keys), ngf)
    cin = ngf
    for i in range(2):                       # downsampling convs
        cout = cin * 2
        p[f'wd{i}'] = nrm(next(keys), (3, 3, cin, cout))
        p[f'gd{i}'], p[f'bd{i}'] = gam(next(keys), cout), bet(next(keys), cout)
        cin = cout
    for i in range(n_blocks):                # resnet blocks (2 convs each)
        for j in range(2):
            p[f'wb{i}_{j}'] = nrm(next(keys), (3, 3, cin, cin))
            p[f'gb{i}_{j}'], p[f'bb{i}_{j}'] = gam(next(keys), cin), bet(next(keys), cin)
    for i in range(2):                       # ConvTranspose3d weights, (kD,kH,kW,Cin,Cout)
        cout = cin // 2
        p[f'wu{i}'] = nrm(next(keys), (3, 3, 3, cin, cout))
        p[f'gu{i}'], p[f'bu{i}'] = gam(next(keys), cout), bet(next(keys), cout)
        cin = cout
    p['wf'] = nrm(next(keys), (7, 7, 7, ngf, output_nc))
    p['bf'] = bet(next(keys), output_nc)
    return p


if __name__ == "__main__":
    key = jax.random.PRNGKey(0)
    kparam, kx = jax.random.split(key)
    params = init_params(kparam, input_nc=3, output_nc=3, ngf=8, n_blocks=2)
    x = jax.random.normal(kx, (2, 3, 16, 16), jnp.float32)   # NCHW like PyTorch

    fwd = jax.jit(functools.partial(resnet_generator_forward, n_blocks=2, depth=6))
    out = fwd(x, params)
    out = jax.block_until_ready(out)

    assert out.shape == (2, 3, 24, 16, 16), out.shape
    assert bool(jnp.all(jnp.isfinite(out)))
    assert bool(jnp.all((out >= 0.0) & (out <= 1.0)))   # sigmoid output range
    print("KERNEL_OK")
</pallas_src>

<mosaic_0001>
module attributes {stable_mosaic.version = 11 : i64} {
  func.func @_bn_apply_kernel(%arg0: i32, %arg1: memref<512x128xf32, #tpu.memory_space<vmem>>, %arg2: memref<1x128xf32, #tpu.memory_space<vmem>>, %arg3: memref<1x128xf32, #tpu.memory_space<vmem>>, %arg4: memref<1x128xf32, #tpu.memory_space<vmem>>, %arg5: memref<1x128xf32, #tpu.memory_space<vmem>>, %arg6: memref<512x128xf32, #tpu.memory_space<vmem>>) attributes {dimension_semantics = [#tpu.dimension_semantics<parallel>], iteration_bounds = array<i64: 1>, scalar_prefetch = 0 : i64, scratch_operands = 0 : i64, tpu.core_type = #tpu.core_type<tc>, window_params = [{transform_indices = @transform_0, window_bounds = array<i64: 512, 128>}, {pipeline_mode = #tpu.pipeline_mode<synchronous>, transform_indices = @transform_1, window_bounds = array<i64: 1, 128>}, {pipeline_mode = #tpu.pipeline_mode<synchronous>, transform_indices = @transform_2, window_bounds = array<i64: 1, 128>}, {pipeline_mode = #tpu.pipeline_mode<synchronous>, transform_indices = @transform_3, window_bounds = array<i64: 1, 128>}, {pipeline_mode = #tpu.pipeline_mode<synchronous>, transform_indices = @transform_4, window_bounds = array<i64: 1, 128>}, {transform_indices = @transform_5, window_bounds = array<i64: 512, 128>}]} {
    %c0 = arith.constant 0 : index
    %c0_0 = arith.constant 0 : index
    %0 = vector.load %arg2[%c0, %c0_0] : memref<1x128xf32, #tpu.memory_space<vmem>>, vector<1x128xf32>
    %cst = arith.constant 0.001953125 : f32
    %1 = vector.broadcast %cst : f32 to vector<1x128xf32>
    %2 = arith.mulf %0, %1 : vector<1x128xf32>
    %c0_1 = arith.constant 0 : index
    %c0_2 = arith.constant 0 : index
    %3 = vector.load %arg3[%c0_1, %c0_2] : memref<1x128xf32, #tpu.memory_space<vmem>>, vector<1x128xf32>
    %cst_3 = arith.constant 0.001953125 : f32
    %4 = vector.broadcast %cst_3 : f32 to vector<1x128xf32>
    %5 = arith.mulf %3, %4 : vector<1x128xf32>
    %6 = arith.mulf %2, %2 : vector<1x128xf32>
    %7 = arith.subf %5, %6 : vector<1x128xf32>
    %cst_4 = arith.constant 0.000000e+00 : f32
    %8 = vector.broadcast %cst_4 : f32 to vector<1x128xf32>
    %9 = arith.maximumf %7, %8 : vector<1x128xf32>
    %c0_5 = arith.constant 0 : index
    %c0_6 = arith.constant 0 : index
    %10 = vector.load %arg4[%c0_5, %c0_6] : memref<1x128xf32, #tpu.memory_space<vmem>>, vector<1x128xf32>
    %cst_7 = arith.constant 9.99999974E-6 : f32
    %11 = vector.broadcast %cst_7 : f32 to vector<1x128xf32>
    %12 = arith.addf %9, %11 : vector<1x128xf32>
    %13 = math.rsqrt %12 : vector<1x128xf32>
    %14 = arith.mulf %10, %13 : vector<1x128xf32>
    %c0_8 = arith.constant 0 : index
    %c0_9 = arith.constant 0 : index
    %15 = vector.load %arg5[%c0_8, %c0_9] : memref<1x128xf32, #tpu.memory_space<vmem>>, vector<1x128xf32>
    %16 = arith.mulf %2, %14 : vector<1x128xf32>
    %17 = arith.subf %15, %16 : vector<1x128xf32>
    %c0_10 = arith.constant 0 : index
    %c0_11 = arith.constant 0 : index
    %18 = vector.load %arg1[%c0_10, %c0_11] : memref<512x128xf32, #tpu.memory_space<vmem>>, vector<512x128xf32>
    %19 = vector.broadcast %14 : vector<1x128xf32> to vector<512x128xf32>
    %20 = arith.mulf %18, %19 : vector<512x128xf32>
    %21 = vector.broadcast %17 : vector<1x128xf32> to vector<512x128xf32>
    %22 = arith.addf %20, %21 : vector<512x128xf32>
    %cst_12 = arith.constant 0.000000e+00 : f32
    %23 = vector.broadcast %cst_12 : f32 to vector<512x128xf32>
    %24 = arith.maximumf %22, %23 : vector<512x128xf32>
    %c0_13 = arith.constant 0 : index
    %c0_14 = arith.constant 0 : index
    %25 = vector.load %arg6[%c0_13, %c0_14] : memref<512x128xf32, #tpu.memory_space<vmem>>, vector<512x128xf32>
    tpu.vector_store %arg6[%c0_13, %c0_14], %24 {strides = array<i32>} : memref<512x128xf32, #tpu.memory_space<vmem>>, vector<512x128xf32>,
    return
  }
  func.func @transform_0(%arg0: i32) -> (i32, i32) {
    %c0_i32 = arith.constant 0 : i32
    %c0_i32_0 = arith.constant 0 : i32
    return %arg0, %c0_i32 : i32, i32
  }
  func.func @transform_1(%arg0: i32) -> (i32, i32) {
    %c0_i32 = arith.constant 0 : i32
    %c0_i32_0 = arith.constant 0 : i32
    %c0_i32_1 = arith.constant 0 : i32
    return %c0_i32, %c0_i32_0 : i32, i32
  }
  func.func @transform_2(%arg0: i32) -> (i32, i32) {
    %c0_i32 = arith.constant 0 : i32
    %c0_i32_0 = arith.constant 0 : i32
    %c0_i32_1 = arith.constant 0 : i32
    return %c0_i32, %c0_i32_0 : i32, i32
  }
  func.func @transform_3(%arg0: i32) -> (i32, i32) {
    %c0_i32 = arith.constant 0 : i32
    %c0_i32_0 = arith.constant 0 : i32
    %c0_i32_1 = arith.constant 0 : i32
    return %c0_i32, %c0_i32_0 : i32, i32
  }
  func.func @transform_4(%arg0: i32) -> (i32, i32) {
    %c0_i32 = arith.constant 0 : i32
    %c0_i32_0 = arith.constant 0 : i32
    %c0_i32_1 = arith.constant 0 : i32
    return %c0_i32, %c0_i32_0 : i32, i32
  }
  func.func @transform_5(%arg0: i32) -> (i32, i32) {
    %c0_i32 = arith.constant 0 : i32
    %c0_i32_0 = arith.constant 0 : i32
    return %arg0, %c0_i32 : i32, i32
  }
}

module attributes {stable_mosaic.version = 11 : i64} {
  func.func @_matmul_stats_kernel(%arg0: i32, %arg1: i32, %arg2: i32, %arg3: memref<512x256xbf16, #tpu.memory_space<vmem>>, %arg4: memref<256x128xbf16, #tpu.memory_space<vmem>>, %arg5: memref<512x128xf32, #tpu.memory_space<vmem>>, %arg6: memref<1x128xf32, #tpu.memory_space<vmem>>, %arg7: memref<1x128xf32, #tpu.memory_space<vmem>>) attributes {dimension_semantics = [#tpu.dimension_semantics<parallel>, #tpu.dimension_semantics<arbitrary>, #tpu.dimension_semantics<arbitrary>], iteration_bounds = array<i64: 1, 1, 1>, scalar_prefetch = 0 : i64, scratch_operands = 0 : i64, tpu.core_type = #tpu.core_type<tc>, window_params = [{transform_indices = @transform_0, window_bounds = array<i64: 512, 256>}, {transform_indices = @transform_1, window_bounds = array<i64: 256, 128>}, {transform_indices = @transform_2, window_bounds = array<i64: 512, 128>}, {transform_indices = @transform_3, window_bounds = array<i64: 1, 128>}, {transform_indices = @transform_4, window_bounds = array<i64: 1, 128>}]} {
    %c0_i32 = arith.constant 0 : i32
    %0 = arith.cmpi eq, %arg2, %c0_i32 : i32
    %1 = arith.extui %0 : i1 to i32
    %c0_i32_0 = arith.constant 0 : i32
    %2 = arith.cmpi ne, %1, %c0_i32_0 : i32
    scf.if %2 {
      %cst_13 = arith.constant 0.000000e+00 : f32
      %17 = vector.broadcast %cst_13 : f32 to vector<512x128xf32>
      %c0_14 = arith.constant 0 : index
      %c0_15 = arith.constant 0 : index
      %18 = vector.load %arg5[%c0_14, %c0_15] : memref<512x128xf32, #tpu.memory_space<vmem>>, vector<512x128xf32>
      tpu.vector_store %arg5[%c0_14, %c0_15], %17 {strides = array<i32>} : memref<512x128xf32, #tpu.memory_space<vmem>>, vector<512x128xf32>,
    } else {
    }
    %c0_i32_1 = arith.constant 0 : i32
    %3 = arith.cmpi eq, %arg1, %c0_i32_1 : i32
    %c0_i32_2 = arith.constant 0 : i32
    %4 = arith.cmpi eq, %arg2, %c0_i32_2 : i32
    %5 = arith.andi %3, %4 : i1
    %6 = arith.extui %5 : i1 to i32
    %c0_i32_3 = arith.constant 0 : i32
    %7 = arith.cmpi ne, %6, %c0_i32_3 : i32
    scf.if %7 {
      %cst_13 = arith.constant 0.000000e+00 : f32
      %17 = vector.broadcast %cst_13 : f32 to vector<1x128xf32>
      %c0_14 = arith.constant 0 : index
      %c0_15 = arith.constant 0 : index
      %18 = vector.load %arg6[%c0_14, %c0_15] : memref<1x128xf32, #tpu.memory_space<vmem>>, vector<1x128xf32>
      tpu.vector_store %arg6[%c0_14, %c0_15], %17 {strides = array<i32>} : memref<1x128xf32, #tpu.memory_space<vmem>>, vector<1x128xf32>,
      %cst_16 = arith.constant 0.000000e+00 : f32
      %19 = vector.broadcast %cst_16 : f32 to vector<1x128xf32>
      %c0_17 = arith.constant 0 : index
      %c0_18 = arith.constant 0 : index
      %20 = vector.load %arg7[%c0_17, %c0_18] : memref<1x128xf32, #tpu.memory_space<vmem>>, vector<1x128xf32>
      tpu.vector_store %arg7[%c0_17, %c0_18], %19 {strides = array<i32>} : memref<1x128xf32, #tpu.memory_space<vmem>>, vector<1x128xf32>,
    } else {
    }
    %c0 = arith.constant 0 : index
    %c0_4 = arith.constant 0 : index
    %8 = vector.load %arg5[%c0, %c0_4] : memref<512x128xf32, #tpu.memory_space<vmem>>, vector<512x128xf32>
    %c0_5 = arith.constant 0 : index
    %c0_6 = arith.constant 0 : index
    %9 = vector.load %arg3[%c0_5, %c0_6] : memref<512x256xbf16, #tpu.memory_space<vmem>>, vector<512x256xbf16>
    %c0_7 = arith.constant 0 : index
    %c0_8 = arith.constant 0 : index
    %10 = vector.load %arg4[%c0_7, %c0_8] : memref<256x128xbf16, #tpu.memory_space<vmem>>, vector<256x128xbf16>
    %cst = arith.constant dense<0.000000e+00> : vector<512x128xf32>
    %11 = tpu.matmul %9, %10, %cst {dimension_numbers = #tpu.dot_dimension_numbers<[1], [0], [0], [1], [0, 0, 1, 1], [], []>} : vector<512x256xbf16>, vector<256x128xbf16>, vector<512x128xf32> -> vector<512x128xf32>
    %12 = arith.addf %8, %11 : vector<512x128xf32>
    %c0_9 = arith.constant 0 : index
    %c0_10 = arith.constant 0 : index
    %13 = vector.load %arg5[%c0_9, %c0_10] : memref<512x128xf32, #tpu.memory_space<vmem>>, vector<512x128xf32>
    tpu.vector_store %arg5[%c0_9, %c0_10], %12 {strides = array<i32>} : memref<512x128xf32, #tpu.memory_space<vmem>>, vector<512x128xf32>,
    %c0_i32_11 = arith.constant 0 : i32
    %14 = arith.cmpi eq, %arg2, %c0_i32_11 : i32
    %15 = arith.extui %14 : i1 to i32
    %c0_i32_12 = arith.constant 0 : i32
    %16 = arith.cmpi ne, %15, %c0_i32_12 : i32
    scf.if %16 {
      %c0_13 = arith.constant 0 : index
      %c0_14 = arith.constant 0 : index
      %17 = vector.load %arg5[%c0_13, %c0_14] : memref<512x128xf32, #tpu.memory_space<vmem>>, vector<512x128xf32>
      %c0_15 = arith.constant 0 : index
      %c0_16 = arith.constant 0 : index
      %18 = vector.load %arg6[%c0_15, %c0_16] : memref<1x128xf32, #tpu.memory_space<vmem>>, vector<1x128xf32>
      %cst_17 = arith.constant dense<0.000000e+00> : vector<128xf32>
      %19 = vector.multi_reduction <add>, %17, %cst_17 [0] : vector<512x128xf32> to vector<128xf32>
      %20 = vector.shape_cast %19 : vector<128xf32> to vector<1x128xf32>
      %21 = arith.addf %18, %20 : vector<1x128xf32>
      %c0_18 = arith.constant 0 : index
      %c0_19 = arith.constant 0 : index
      %22 = vector.load %arg6[%c0_18, %c0_19] : memref<1x128xf32, #tpu.memory_space<vmem>>, vector<1x128xf32>
      tpu.vector_store %arg6[%c0_18, %c0_19], %21 {strides = array<i32>} : memref<1x128xf32, #tpu.memory_space<vmem>>, vector<1x128xf32>,
      %c0_20 = arith.constant 0 : index
      %c0_21 = arith.constant 0 : index
      %23 = vector.load %arg7[%c0_20, %c0_21] : memref<1x128xf32, #tpu.memory_space<vmem>>, vector<1x128xf32>
      %24 = arith.mulf %17, %17 : vector<512x128xf32>
      %cst_22 = arith.constant dense<0.000000e+00> : vector<128xf32>
      %25 = vector.multi_reduction <add>, %24, %cst_22 [0] : vector<512x128xf32> to vector<128xf32>
      %26 = vector.shape_cast %25 : vector<128xf32> to vector<1x128xf32>
      %27 = arith.addf %23, %26 : vector<1x128xf32>
      %c0_23 = arith.constant 0 : index
      %c0_24 = arith.constant 0 : index
      %28 = vector.load %arg7[%c0_23, %c0_24] : memref<1x128xf32, #tpu.memory_space<vmem>>, vector<1x128xf32>
      tpu.vector_store %arg7[%c0_23, %c0_24], %27 {strides = array<i32>} : memref<1x128xf32, #tpu.memory_space<vmem>>, vector<1x128xf32>,
    } else {
    }
    return
  }
  func.func @transform_0(%arg0: i32, %arg1: i32, %arg2: i32) -> (i32, i32) {
    %c0_i32 = arith.constant 0 : i32
    return %arg1, %arg2 : i32, i32
  }
  func.func @transform_1(%arg0: i32, %arg1: i32, %arg2: i32) -> (i32, i32) {
    %c0_i32 = arith.constant 0 : i32
    return %arg2, %arg0 : i32, i32
  }
  func.func @transform_2(%arg0: i32, %arg1: i32, %arg2: i32) -> (i32, i32) {
    %c0_i32 = arith.constant 0 : i32
    return %arg1, %arg0 : i32, i32
  }
  func.func @transform_3(%arg0: i32, %arg1: i32, %arg2: i32) -> (i32, i32) {
    %c0_i32 = arith.constant 0 : i32
    %c0_i32_0 = arith.constant 0 : i32
    return %c0_i32, %arg0 : i32, i32
  }
  func.func @transform_4(%arg0: i32, %arg1: i32, %arg2: i32) -> (i32, i32) {
    %c0_i32 = arith.constant 0 : i32
    %c0_i32_0 = arith.constant 0 : i32
    return %c0_i32, %arg0 : i32, i32
  }
}

module attributes {stable_mosaic.version = 11 : i64} {
  func.func @_matmul_stats_kernel(%arg0: i32, %arg1: i32, %arg2: i32, %arg3: memref<128x128xbf16, #tpu.memory_space<vmem>>, %arg4: memref<128x128xbf16, #tpu.memory_space<vmem>>, %arg5: memref<128x128xf32, #tpu.memory_space<vmem>>, %arg6: memref<1x128xf32, #tpu.memory_space<vmem>>, %arg7: memref<1x128xf32, #tpu.memory_space<vmem>>) attributes {dimension_semantics = [#tpu.dimension_semantics<parallel>, #tpu.dimension_semantics<arbitrary>, #tpu.dimension_semantics<arbitrary>], iteration_bounds = array<i64: 1, 1, 1>, scalar_prefetch = 0 : i64, scratch_operands = 0 : i64, tpu.core_type = #tpu.core_type<tc>, window_params = [{transform_indices = @transform_0, window_bounds = array<i64: 128, 128>}, {transform_indices = @transform_1, window_bounds = array<i64: 128, 128>}, {transform_indices = @transform_2, window_bounds = array<i64: 128, 128>}, {transform_indices = @transform_3, window_bounds = array<i64: 1, 128>}, {transform_indices = @transform_4, window_bounds = array<i64: 1, 128>}]} {
    %c0_i32 = arith.constant 0 : i32
    %0 = arith.cmpi eq, %arg2, %c0_i32 : i32
    %1 = arith.extui %0 : i1 to i32
    %c0_i32_0 = arith.constant 0 : i32
    %2 = arith.cmpi ne, %1, %c0_i32_0 : i32
    scf.if %2 {
      %cst_13 = arith.constant 0.000000e+00 : f32
      %17 = vector.broadcast %cst_13 : f32 to vector<128x128xf32>
      %c0_14 = arith.constant 0 : index
      %c0_15 = arith.constant 0 : index
      %18 = vector.load %arg5[%c0_14, %c0_15] : memref<128x128xf32, #tpu.memory_space<vmem>>, vector<128x128xf32>
      tpu.vector_store %arg5[%c0_14, %c0_15], %17 {strides = array<i32>} : memref<128x128xf32, #tpu.memory_space<vmem>>, vector<128x128xf32>,
    } else {
    }
    %c0_i32_1 = arith.constant 0 : i32
    %3 = arith.cmpi eq, %arg1, %c0_i32_1 : i32
    %c0_i32_2 = arith.constant 0 : i32
    %4 = arith.cmpi eq, %arg2, %c0_i32_2 : i32
    %5 = arith.andi %3, %4 : i1
    %6 = arith.extui %5 : i1 to i32
    %c0_i32_3 = arith.constant 0 : i32
    %7 = arith.cmpi ne, %6, %c0_i32_3 : i32
    scf.if %7 {
      %cst_13 = arith.constant 0.000000e+00 : f32
      %17 = vector.broadcast %cst_13 : f32 to vector<1x128xf32>
      %c0_14 = arith.constant 0 : index
      %c0_15 = arith.constant 0 : index
      %18 = vector.load %arg6[%c0_14, %c0_15] : memref<1x128xf32, #tpu.memory_space<vmem>>, vector<1x128xf32>
      tpu.vector_store %arg6[%c0_14, %c0_15], %17 {strides = array<i32>} : memref<1x128xf32, #tpu.memory_space<vmem>>, vector<1x128xf32>,
      %cst_16 = arith.constant 0.000000e+00 : f32
      %19 = vector.broadcast %cst_16 : f32 to vector<1x128xf32>
      %c0_17 = arith.constant 0 : index
      %c0_18 = arith.constant 0 : index
      %20 = vector.load %arg7[%c0_17, %c0_18] : memref<1x128xf32, #tpu.memory_space<vmem>>, vector<1x128xf32>
      tpu.vector_store %arg7[%c0_17, %c0_18], %19 {strides = array<i32>} : memref<1x128xf32, #tpu.memory_space<vmem>>, vector<1x128xf32>,
    } else {
    }
    %c0 = arith.constant 0 : index
    %c0_4 = arith.constant 0 : index
    %8 = vector.load %arg5[%c0, %c0_4] : memref<128x128xf32, #tpu.memory_space<vmem>>, vector<128x128xf32>
    %c0_5 = arith.constant 0 : index
    %c0_6 = arith.constant 0 : index
    %9 = vector.load %arg3[%c0_5, %c0_6] : memref<128x128xbf16, #tpu.memory_space<vmem>>, vector<128x128xbf16>
    %c0_7 = arith.constant 0 : index
    %c0_8 = arith.constant 0 : index
    %10 = vector.load %arg4[%c0_7, %c0_8] : memref<128x128xbf16, #tpu.memory_space<vmem>>, vector<128x128xbf16>
    %cst = arith.constant dense<0.000000e+00> : vector<128x128xf32>
    %11 = tpu.matmul %9, %10, %cst {dimension_numbers = #tpu.dot_dimension_numbers<[1], [0], [0], [1], [0, 0, 1, 1], [], []>} : vector<128x128xbf16>, vector<128x128xbf16>, vector<128x128xf32> -> vector<128x128xf32>
    %12 = arith.addf %8, %11 : vector<128x128xf32>
    %c0_9 = arith.constant 0 : index
    %c0_10 = arith.constant 0 : index
    %13 = vector.load %arg5[%c0_9, %c0_10] : memref<128x128xf32, #tpu.memory_space<vmem>>, vector<128x128xf32>
    tpu.vector_store %arg5[%c0_9, %c0_10], %12 {strides = array<i32>} : memref<128x128xf32, #tpu.memory_space<vmem>>, vector<128x128xf32>,
    %c0_i32_11 = arith.constant 0 : i32
    %14 = arith.cmpi eq, %arg2, %c0_i32_11 : i32
    %15 = arith.extui %14 : i1 to i32
    %c0_i32_12 = arith.constant 0 : i32
    %16 = arith.cmpi ne, %15, %c0_i32_12 : i32
    scf.if %16 {
      %c0_13 = arith.constant 0 : index
      %c0_14 = arith.constant 0 : index
      %17 = vector.load %arg5[%c0_13, %c0_14] : memref<128x128xf32, #tpu.memory_space<vmem>>, vector<128x128xf32>
      %c0_15 = arith.constant 0 : index
      %c0_16 = arith.constant 0 : index
      %18 = vector.load %arg6[%c0_15, %c0_16] : memref<1x128xf32, #tpu.memory_space<vmem>>, vector<1x128xf32>
      %cst_17 = arith.constant dense<0.000000e+00> : vector<128xf32>
      %19 = vector.multi_reduction <add>, %17, %cst_17 [0] : vector<128x128xf32> to vector<128xf32>
      %20 = vector.shape_cast %19 : vector<128xf32> to vector<1x128xf32>
      %21 = arith.addf %18, %20 : vector<1x128xf32>
      %c0_18 = arith.constant 0 : index
      %c0_19 = arith.constant 0 : index
      %22 = vector.load %arg6[%c0_18, %c0_19] : memref<1x128xf32, #tpu.memory_space<vmem>>, vector<1x128xf32>
      tpu.vector_store %arg6[%c0_18, %c0_19], %21 {strides = array<i32>} : memref<1x128xf32, #tpu.memory_space<vmem>>, vector<1x128xf32>,
      %c0_20 = arith.constant 0 : index
      %c0_21 = arith.constant 0 : index
      %23 = vector.load %arg7[%c0_20, %c0_21] : memref<1x128xf32, #tpu.memory_space<vmem>>, vector<1x128xf32>
      %24 = arith.mulf %17, %17 : vector<128x128xf32>
      %cst_22 = arith.constant dense<0.000000e+00> : vector<128xf32>
      %25 = vector.multi_reduction <add>, %24, %cst_22 [0] : vector<128x128xf32> to vector<128xf32>
      %26 = vector.shape_cast %25 : vector<128xf32> to vector<1x128xf32>
      %27 = arith.addf %23, %26 : vector<1x128xf32>
      %c0_23 = arith.constant 0 : index
      %c0_24 = arith.constant 0 : index
      %28 = vector.load %arg7[%c0_23, %c0_24] : memref<1x128xf32, #tpu.memory_space<vmem>>, vector<1x128xf32>
      tpu.vector_store %arg7[%c0_23, %c0_24], %27 {strides = array<i32>} : memref<1x128xf32, #tpu.memory_space<vmem>>, vector<1x128xf32>,
    } else {
    }
    return
  }
  func.func @transform_0(%arg0: i32, %arg1: i32, %arg2: i32) -> (i32, i32) {
    %c0_i32 = arith.constant 0 : i32
    return %arg1, %arg2 : i32, i32
  }
  func.func @transform_1(%arg0: i32, %arg1: i32, %arg2: i32) -> (i32, i32) {
    %c0_i32 = arith.constant 0 : i32
    return %arg2, %arg0 : i32, i32
  }
  func.func @transform_2(%arg0: i32, %arg1: i32, %arg2: i32) -> (i32, i32) {
    %c0_i32 = arith.constant 0 : i32
    return %arg1, %arg0 : i32, i32
  }
  func.func @transform_3(%arg0: i32, %arg1: i32, %arg2: i32) -> (i32, i32) {
    %c0_i32 = arith.constant 0 : i32
    %c0_i32_0 = arith.constant 0 : i32
    return %c0_i32, %arg0 : i32, i32
  }
  func.func @transform_4(%arg0: i32, %arg1: i32, %arg2: i32) -> (i32, i32) {
    %c0_i32 = arith.constant 0 : i32
    %c0_i32_0 = arith.constant 0 : i32
    return %c0_i32, %arg0 : i32, i32
  }
}

module attributes {stable_mosaic.version = 11 : i64} {
  func.func @_bn_apply_kernel(%arg0: i32, %arg1: memref<128x128xf32, #tpu.memory_space<vmem>>, %arg2: memref<1x128xf32, #tpu.memory_space<vmem>>, %arg3: memref<1x128xf32, #tpu.memory_space<vmem>>, %arg4: memref<1x128xf32, #tpu.memory_space<vmem>>, %arg5: memref<1x128xf32, #tpu.memory_space<vmem>>, %arg6: memref<128x128xf32, #tpu.memory_space<vmem>>) attributes {dimension_semantics = [#tpu.dimension_semantics<parallel>], iteration_bounds = array<i64: 1>, scalar_prefetch = 0 : i64, scratch_operands = 0 : i64, tpu.core_type = #tpu.core_type<tc>, window_params = [{transform_indices = @transform_0, window_bounds = array<i64: 128, 128>}, {pipeline_mode = #tpu.pipeline_mode<synchronous>, transform_indices = @transform_1, window_bounds = array<i64: 1, 128>}, {pipeline_mode = #tpu.pipeline_mode<synchronous>, transform_indices = @transform_2, window_bounds = array<i64: 1, 128>}, {pipeline_mode = #tpu.pipeline_mode<synchronous>, transform_indices = @transform_3, window_bounds = array<i64: 1, 128>}, {pipeline_mode = #tpu.pipeline_mode<synchronous>, transform_indices = @transform_4, window_bounds = array<i64: 1, 128>}, {transform_indices = @transform_5, window_bounds = array<i64: 128, 128>}]} {
    %c0 = arith.constant 0 : index
    %c0_0 = arith.constant 0 : index
    %0 = vector.load %arg2[%c0, %c0_0] : memref<1x128xf32, #tpu.memory_space<vmem>>, vector<1x128xf32>
    %cst = arith.constant 7.812500e-03 : f32
    %1 = vector.broadcast %cst : f32 to vector<1x128xf32>
    %2 = arith.mulf %0, %1 : vector<1x128xf32>
    %c0_1 = arith.constant 0 : index
    %c0_2 = arith.constant 0 : index
    %3 = vector.load %arg3[%c0_1, %c0_2] : memref<1x128xf32, #tpu.memory_space<vmem>>, vector<1x128xf32>
    %cst_3 = arith.constant 7.812500e-03 : f32
    %4 = vector.broadcast %cst_3 : f32 to vector<1x128xf32>
    %5 = arith.mulf %3, %4 : vector<1x128xf32>
    %6 = arith.mulf %2, %2 : vector<1x128xf32>
    %7 = arith.subf %5, %6 : vector<1x128xf32>
    %cst_4 = arith.constant 0.000000e+00 : f32
    %8 = vector.broadcast %cst_4 : f32 to vector<1x128xf32>
    %9 = arith.maximumf %7, %8 : vector<1x128xf32>
    %c0_5 = arith.constant 0 : index
    %c0_6 = arith.constant 0 : index
    %10 = vector.load %arg4[%c0_5, %c0_6] : memref<1x128xf32, #tpu.memory_space<vmem>>, vector<1x128xf32>
    %cst_7 = arith.constant 9.99999974E-6 : f32
    %11 = vector.broadcast %cst_7 : f32 to vector<1x128xf32>
    %12 = arith.addf %9, %11 : vector<1x128xf32>
    %13 = math.rsqrt %12 : vector<1x128xf32>
    %14 = arith.mulf %10, %13 : vector<1x128xf32>
    %c0_8 = arith.constant 0 : index
    %c0_9 = arith.constant 0 : index
    %15 = vector.load %arg5[%c0_8, %c0_9] : memref<1x128xf32, #tpu.memory_space<vmem>>, vector<1x128xf32>
    %16 = arith.mulf %2, %14 : vector<1x128xf32>
    %17 = arith.subf %15, %16 : vector<1x128xf32>
    %c0_10 = arith.constant 0 : index
    %c0_11 = arith.constant 0 : index
    %18 = vector.load %arg1[%c0_10, %c0_11] : memref<128x128xf32, #tpu.memory_space<vmem>>, vector<128x128xf32>
    %19 = vector.broadcast %14 : vector<1x128xf32> to vector<128x128xf32>
    %20 = arith.mulf %18, %19 : vector<128x128xf32>
    %21 = vector.broadcast %17 : vector<1x128xf32> to vector<128x128xf32>
    %22 = arith.addf %20, %21 : vector<128x128xf32>
    %cst_12 = arith.constant 0.000000e+00 : f32
    %23 = vector.broadcast %cst_12 : f32 to vector<128x128xf32>
    %24 = arith.maximumf %22, %23 : vector<128x128xf32>
    %c0_13 = arith.constant 0 : index
    %c0_14 = arith.constant 0 : index
    %25 = vector.load %arg6[%c0_13, %c0_14] : memref<128x128xf32, #tpu.memory_space<vmem>>, vector<128x128xf32>
    tpu.vector_store %arg6[%c0_13, %c0_14], %24 {strides = array<i32>} : memref<128x128xf32, #tpu.memory_space<vmem>>, vector<128x128xf32>,
    return
  }
  func.func @transform_0(%arg0: i32) -> (i32, i32) {
    %c0_i32 = arith.constant 0 : i32
    %c0_i32_0 = arith.constant 0 : i32
    return %arg0, %c0_i32 : i32, i32
  }
  func.func @transform_1(%arg0: i32) -> (i32, i32) {
    %c0_i32 = arith.constant 0 : i32
    %c0_i32_0 = arith.constant 0 : i32
    %c0_i32_1 = arith.constant 0 : i32
    return %c0_i32, %c0_i32_0 : i32, i32
  }
  func.func @transform_2(%arg0: i32) -> (i32, i32) {
    %c0_i32 = arith.constant 0 : i32
    %c0_i32_0 = arith.constant 0 : i32
    %c0_i32_1 = arith.constant 0 : i32
    return %c0_i32, %c0_i32_0 : i32, i32
  }
  func.func @transform_3(%arg0: i32) -> (i32, i32) {
    %c0_i32 = arith.constant 0 : i32
    %c0_i32_0 = arith.constant 0 : i32
    %c0_i32_1 = arith.constant 0 : i32
    return %c0_i32, %c0_i32_0 : i32, i32
  }
  func.func @transform_4(%arg0: i32) -> (i32, i32) {
    %c0_i32 = arith.constant 0 : i32
    %c0_i32_0 = arith.constant 0 : i32
    %c0_i32_1 = arith.constant 0 : i32
    return %c0_i32, %c0_i32_0 : i32, i32
  }
  func.func @transform_5(%arg0: i32) -> (i32, i32) {
    %c0_i32 = arith.constant 0 : i32
    %c0_i32_0 = arith.constant 0 : i32
    return %arg0, %c0_i32 : i32, i32
  }
}

module attributes {stable_mosaic.version = 11 : i64} {
  func.func @_bn_apply_kernel(%arg0: i32, %arg1: memref<32x128xf32, #tpu.memory_space<vmem>>, %arg2: memref<1x128xf32, #tpu.memory_space<vmem>>, %arg3: memref<1x128xf32, #tpu.memory_space<vmem>>, %arg4: memref<1x128xf32, #tpu.memory_space<vmem>>, %arg5: memref<1x128xf32, #tpu.memory_space<vmem>>, %arg6: memref<32x128xf32, #tpu.memory_space<vmem>>) attributes {dimension_semantics = [#tpu.dimension_semantics<parallel>], iteration_bounds = array<i64: 1>, scalar_prefetch = 0 : i64, scratch_operands = 0 : i64, tpu.core_type = #tpu.core_type<tc>, window_params = [{transform_indices = @transform_0, window_bounds = array<i64: 32, 128>}, {pipeline_mode = #tpu.pipeline_mode<synchronous>, transform_indices = @transform_1, window_bounds = array<i64: 1, 128>}, {pipeline_mode = #tpu.pipeline_mode<synchronous>, transform_indices = @transform_2, window_bounds = array<i64: 1, 128>}, {pipeline_mode = #tpu.pipeline_mode<synchronous>, transform_indices = @transform_3, window_bounds = array<i64: 1, 128>}, {pipeline_mode = #tpu.pipeline_mode<synchronous>, transform_indices = @transform_4, window_bounds = array<i64: 1, 128>}, {transform_indices = @transform_5, window_bounds = array<i64: 32, 128>}]} {
    %c0 = arith.constant 0 : index
    %c0_0 = arith.constant 0 : index
    %0 = vector.load %arg2[%c0, %c0_0] : memref<1x128xf32, #tpu.memory_space<vmem>>, vector<1x128xf32>
    %cst = arith.constant 3.125000e-02 : f32
    %1 = vector.broadcast %cst : f32 to vector<1x128xf32>
    %2 = arith.mulf %0, %1 : vector<1x128xf32>
    %c0_1 = arith.constant 0 : index
    %c0_2 = arith.constant 0 : index
    %3 = vector.load %arg3[%c0_1, %c0_2] : memref<1x128xf32, #tpu.memory_space<vmem>>, vector<1x128xf32>
    %cst_3 = arith.constant 3.125000e-02 : f32
    %4 = vector.broadcast %cst_3 : f32 to vector<1x128xf32>
    %5 = arith.mulf %3, %4 : vector<1x128xf32>
    %6 = arith.mulf %2, %2 : vector<1x128xf32>
    %7 = arith.subf %5, %6 : vector<1x128xf32>
    %cst_4 = arith.constant 0.000000e+00 : f32
    %8 = vector.broadcast %cst_4 : f32 to vector<1x128xf32>
    %9 = arith.maximumf %7, %8 : vector<1x128xf32>
    %c0_5 = arith.constant 0 : index
    %c0_6 = arith.constant 0 : index
    %10 = vector.load %arg4[%c0_5, %c0_6] : memref<1x128xf32, #tpu.memory_space<vmem>>, vector<1x128xf32>
    %cst_7 = arith.constant 9.99999974E-6 : f32
    %11 = vector.broadcast %cst_7 : f32 to vector<1x128xf32>
    %12 = arith.addf %9, %11 : vector<1x128xf32>
    %13 = math.rsqrt %12 : vector<1x128xf32>
    %14 = arith.mulf %10, %13 : vector<1x128xf32>
    %c0_8 = arith.constant 0 : index
    %c0_9 = arith.constant 0 : index
    %15 = vector.load %arg5[%c0_8, %c0_9] : memref<1x128xf32, #tpu.memory_space<vmem>>, vector<1x128xf32>
    %16 = arith.mulf %2, %14 : vector<1x128xf32>
    %17 = arith.subf %15, %16 : vector<1x128xf32>
    %c0_10 = arith.constant 0 : index
    %c0_11 = arith.constant 0 : index
    %18 = vector.load %arg1[%c0_10, %c0_11] : memref<32x128xf32, #tpu.memory_space<vmem>>, vector<32x128xf32>
    %19 = vector.broadcast %14 : vector<1x128xf32> to vector<32x128xf32>
    %20 = arith.mulf %18, %19 : vector<32x128xf32>
    %21 = vector.broadcast %17 : vector<1x128xf32> to vector<32x128xf32>
    %22 = arith.addf %20, %21 : vector<32x128xf32>
    %cst_12 = arith.constant 0.000000e+00 : f32
    %23 = vector.broadcast %cst_12 : f32 to vector<32x128xf32>
    %24 = arith.maximumf %22, %23 : vector<32x128xf32>
    %c0_13 = arith.constant 0 : index
    %c0_14 = arith.constant 0 : index
    %25 = vector.load %arg6[%c0_13, %c0_14] : memref<32x128xf32, #tpu.memory_space<vmem>>, vector<32x128xf32>
    tpu.vector_store %arg6[%c0_13, %c0_14], %24 {strides = array<i32>} : memref<32x128xf32, #tpu.memory_space<vmem>>, vector<32x128xf32>,
    return
  }
  func.func @transform_0(%arg0: i32) -> (i32, i32) {
    %c0_i32 = arith.constant 0 : i32
    %c0_i32_0 = arith.constant 0 : i32
    return %arg0, %c0_i32 : i32, i32
  }
  func.func @transform_1(%arg0: i32) -> (i32, i32) {
    %c0_i32 = arith.constant 0 : i32
    %c0_i32_0 = arith.constant 0 : i32
    %c0_i32_1 = arith.constant 0 : i32
    return %c0_i32, %c0_i32_0 : i32, i32
  }
  func.func @transform_2(%arg0: i32) -> (i32, i32) {
    %c0_i32 = arith.constant 0 : i32
    %c0_i32_0 = arith.constant 0 : i32
    %c0_i32_1 = arith.constant 0 : i32
    return %c0_i32, %c0_i32_0 : i32, i32
  }
  func.func @transform_3(%arg0: i32) -> (i32, i32) {
    %c0_i32 = arith.constant 0 : i32
    %c0_i32_0 = arith.constant 0 : i32
    %c0_i32_1 = arith.constant 0 : i32
    return %c0_i32, %c0_i32_0 : i32, i32
  }
  func.func @transform_4(%arg0: i32) -> (i32, i32) {
    %c0_i32 = arith.constant 0 : i32
    %c0_i32_0 = arith.constant 0 : i32
    %c0_i32_1 = arith.constant 0 : i32
    return %c0_i32, %c0_i32_0 : i32, i32
  }
  func.func @transform_5(%arg0: i32) -> (i32, i32) {
    %c0_i32 = arith.constant 0 : i32
    %c0_i32_0 = arith.constant 0 : i32
    return %arg0, %c0_i32 : i32, i32
  }
}

module attributes {stable_mosaic.version = 11 : i64} {
  func.func @_matmul_stats_kernel(%arg0: i32, %arg1: i32, %arg2: i32, %arg3: memref<32x256xbf16, #tpu.memory_space<vmem>>, %arg4: memref<256x128xbf16, #tpu.memory_space<vmem>>, %arg5: memref<32x128xf32, #tpu.memory_space<vmem>>, %arg6: memref<1x128xf32, #tpu.memory_space<vmem>>, %arg7: memref<1x128xf32, #tpu.memory_space<vmem>>) attributes {dimension_semantics = [#tpu.dimension_semantics<parallel>, #tpu.dimension_semantics<arbitrary>, #tpu.dimension_semantics<arbitrary>], iteration_bounds = array<i64: 1, 1, 1>, scalar_prefetch = 0 : i64, scratch_operands = 0 : i64, tpu.core_type = #tpu.core_type<tc>, window_params = [{transform_indices = @transform_0, window_bounds = array<i64: 32, 256>}, {transform_indices = @transform_1, window_bounds = array<i64: 256, 128>}, {transform_indices = @transform_2, window_bounds = array<i64: 32, 128>}, {transform_indices = @transform_3, window_bounds = array<i64: 1, 128>}, {transform_indices = @transform_4, window_bounds = array<i64: 1, 128>}]} {
    %c0_i32 = arith.constant 0 : i32
    %0 = arith.cmpi eq, %arg2, %c0_i32 : i32
    %1 = arith.extui %0 : i1 to i32
    %c0_i32_0 = arith.constant 0 : i32
    %2 = arith.cmpi ne, %1, %c0_i32_0 : i32
    scf.if %2 {
      %cst_13 = arith.constant 0.000000e+00 : f32
      %17 = vector.broadcast %cst_13 : f32 to vector<32x128xf32>
      %c0_14 = arith.constant 0 : index
      %c0_15 = arith.constant 0 : index
      %18 = vector.load %arg5[%c0_14, %c0_15] : memref<32x128xf32, #tpu.memory_space<vmem>>, vector<32x128xf32>
      tpu.vector_store %arg5[%c0_14, %c0_15], %17 {strides = array<i32>} : memref<32x128xf32, #tpu.memory_space<vmem>>, vector<32x128xf32>,
    } else {
    }
    %c0_i32_1 = arith.constant 0 : i32
    %3 = arith.cmpi eq, %arg1, %c0_i32_1 : i32
    %c0_i32_2 = arith.constant 0 : i32
    %4 = arith.cmpi eq, %arg2, %c0_i32_2 : i32
    %5 = arith.andi %3, %4 : i1
    %6 = arith.extui %5 : i1 to i32
    %c0_i32_3 = arith.constant 0 : i32
    %7 = arith.cmpi ne, %6, %c0_i32_3 : i32
    scf.if %7 {
      %cst_13 = arith.constant 0.000000e+00 : f32
      %17 = vector.broadcast %cst_13 : f32 to vector<1x128xf32>
      %c0_14 = arith.constant 0 : index
      %c0_15 = arith.constant 0 : index
      %18 = vector.load %arg6[%c0_14, %c0_15] : memref<1x128xf32, #tpu.memory_space<vmem>>, vector<1x128xf32>
      tpu.vector_store %arg6[%c0_14, %c0_15], %17 {strides = array<i32>} : memref<1x128xf32, #tpu.memory_space<vmem>>, vector<1x128xf32>,
      %cst_16 = arith.constant 0.000000e+00 : f32
      %19 = vector.broadcast %cst_16 : f32 to vector<1x128xf32>
      %c0_17 = arith.constant 0 : index
      %c0_18 = arith.constant 0 : index
      %20 = vector.load %arg7[%c0_17, %c0_18] : memref<1x128xf32, #tpu.memory_space<vmem>>, vector<1x128xf32>
      tpu.vector_store %arg7[%c0_17, %c0_18], %19 {strides = array<i32>} : memref<1x128xf32, #tpu.memory_space<vmem>>, vector<1x128xf32>,
    } else {
    }
    %c0 = arith.constant 0 : index
    %c0_4 = arith.constant 0 : index
    %8 = vector.load %arg5[%c0, %c0_4] : memref<32x128xf32, #tpu.memory_space<vmem>>, vector<32x128xf32>
    %c0_5 = arith.constant 0 : index
    %c0_6 = arith.constant 0 : index
    %9 = vector.load %arg3[%c0_5, %c0_6] : memref<32x256xbf16, #tpu.memory_space<vmem>>, vector<32x256xbf16>
    %c0_7 = arith.constant 0 : index
    %c0_8 = arith.constant 0 : index
    %10 = vector.load %arg4[%c0_7, %c0_8] : memref<256x128xbf16, #tpu.memory_space<vmem>>, vector<256x128xbf16>
    %cst = arith.constant dense<0.000000e+00> : vector<32x128xf32>
    %11 = tpu.matmul %9, %10, %cst {dimension_numbers = #tpu.dot_dimension_numbers<[1], [0], [0], [1], [0, 0, 1, 1], [], []>} : vector<32x256xbf16>, vector<256x128xbf16>, vector<32x128xf32> -> vector<32x128xf32>
    %12 = arith.addf %8, %11 : vector<32x128xf32>
    %c0_9 = arith.constant 0 : index
    %c0_10 = arith.constant 0 : index
    %13 = vector.load %arg5[%c0_9, %c0_10] : memref<32x128xf32, #tpu.memory_space<vmem>>, vector<32x128xf32>
    tpu.vector_store %arg5[%c0_9, %c0_10], %12 {strides = array<i32>} : memref<32x128xf32, #tpu.memory_space<vmem>>, vector<32x128xf32>,
    %c0_i32_11 = arith.constant 0 : i32
    %14 = arith.cmpi eq, %arg2, %c0_i32_11 : i32
    %15 = arith.extui %14 : i1 to i32
    %c0_i32_12 = arith.constant 0 : i32
    %16 = arith.cmpi ne, %15, %c0_i32_12 : i32
    scf.if %16 {
      %c0_13 = arith.constant 0 : index
      %c0_14 = arith.constant 0 : index
      %17 = vector.load %arg5[%c0_13, %c0_14] : memref<32x128xf32, #tpu.memory_space<vmem>>, vector<32x128xf32>
      %c0_15 = arith.constant 0 : index
      %c0_16 = arith.constant 0 : index
      %18 = vector.load %arg6[%c0_15, %c0_16] : memref<1x128xf32, #tpu.memory_space<vmem>>, vector<1x128xf32>
      %cst_17 = arith.constant dense<0.000000e+00> : vector<128xf32>
      %19 = vector.multi_reduction <add>, %17, %cst_17 [0] : vector<32x128xf32> to vector<128xf32>
      %20 = vector.shape_cast %19 : vector<128xf32> to vector<1x128xf32>
      %21 = arith.addf %18, %20 : vector<1x128xf32>
      %c0_18 = arith.constant 0 : index
      %c0_19 = arith.constant 0 : index
      %22 = vector.load %arg6[%c0_18, %c0_19] : memref<1x128xf32, #tpu.memory_space<vmem>>, vector<1x128xf32>
      tpu.vector_store %arg6[%c0_18, %c0_19], %21 {strides = array<i32>} : memref<1x128xf32, #tpu.memory_space<vmem>>, vector<1x128xf32>,
      %c0_20 = arith.constant 0 : index
      %c0_21 = arith.constant 0 : index
      %23 = vector.load %arg7[%c0_20, %c0_21] : memref<1x128xf32, #tpu.memory_space<vmem>>, vector<1x128xf32>
      %24 = arith.mulf %17, %17 : vector<32x128xf32>
      %cst_22 = arith.constant dense<0.000000e+00> : vector<128xf32>
      %25 = vector.multi_reduction <add>, %24, %cst_22 [0] : vector<32x128xf32> to vector<128xf32>
      %26 = vector.shape_cast %25 : vector<128xf32> to vector<1x128xf32>
      %27 = arith.addf %23, %26 : vector<1x128xf32>
      %c0_23 = arith.constant 0 : index
      %c0_24 = arith.constant 0 : index
      %28 = vector.load %arg7[%c0_23, %c0_24] : memref<1x128xf32, #tpu.memory_space<vmem>>, vector<1x128xf32>
      tpu.vector_store %arg7[%c0_23, %c0_24], %27 {strides = array<i32>} : memref<1x128xf32, #tpu.memory_space<vmem>>, vector<1x128xf32>,
    } else {
    }
    return
  }
  func.func @transform_0(%arg0: i32, %arg1: i32, %arg2: i32) -> (i32, i32) {
    %c0_i32 = arith.constant 0 : i32
    return %arg1, %arg2 : i32, i32
  }
  func.func @transform_1(%arg0: i32, %arg1: i32, %arg2: i32) -> (i32, i32) {
    %c0_i32 = arith.constant 0 : i32
    return %arg2, %arg0 : i32, i32
  }
  func.func @transform_2(%arg0: i32, %arg1: i32, %arg2: i32) -> (i32, i32) {
    %c0_i32 = arith.constant 0 : i32
    return %arg1, %arg0 : i32, i32
  }
  func.func @transform_3(%arg0: i32, %arg1: i32, %arg2: i32) -> (i32, i32) {
    %c0_i32 = arith.constant 0 : i32
    %c0_i32_0 = arith.constant 0 : i32
    return %c0_i32, %arg0 : i32, i32
  }
  func.func @transform_4(%arg0: i32, %arg1: i32, %arg2: i32) -> (i32, i32) {
    %c0_i32 = arith.constant 0 : i32
    %c0_i32_0 = arith.constant 0 : i32
    return %c0_i32, %arg0 : i32, i32
  }
}

module attributes {stable_mosaic.version = 11 : i64} {
  func.func @_matmul_stats_kernel(%arg0: i32, %arg1: i32, %arg2: i32, %arg3: memref<32x384xbf16, #tpu.memory_space<vmem>>, %arg4: memref<384x128xbf16, #tpu.memory_space<vmem>>, %arg5: memref<32x128xf32, #tpu.memory_space<vmem>>, %arg6: memref<1x128xf32, #tpu.memory_space<vmem>>, %arg7: memref<1x128xf32, #tpu.memory_space<vmem>>) attributes {dimension_semantics = [#tpu.dimension_semantics<parallel>, #tpu.dimension_semantics<arbitrary>, #tpu.dimension_semantics<arbitrary>], iteration_bounds = array<i64: 1, 1, 1>, scalar_prefetch = 0 : i64, scratch_operands = 0 : i64, tpu.core_type = #tpu.core_type<tc>, window_params = [{transform_indices = @transform_0, window_bounds = array<i64: 32, 384>}, {transform_indices = @transform_1, window_bounds = array<i64: 384, 128>}, {transform_indices = @transform_2, window_bounds = array<i64: 32, 128>}, {transform_indices = @transform_3, window_bounds = array<i64: 1, 128>}, {transform_indices = @transform_4, window_bounds = array<i64: 1, 128>}]} {
    %c0_i32 = arith.constant 0 : i32
    %0 = arith.cmpi eq, %arg2, %c0_i32 : i32
    %1 = arith.extui %0 : i1 to i32
    %c0_i32_0 = arith.constant 0 : i32
    %2 = arith.cmpi ne, %1, %c0_i32_0 : i32
    scf.if %2 {
      %cst_13 = arith.constant 0.000000e+00 : f32
      %17 = vector.broadcast %cst_13 : f32 to vector<32x128xf32>
      %c0_14 = arith.constant 0 : index
      %c0_15 = arith.constant 0 : index
      %18 = vector.load %arg5[%c0_14, %c0_15] : memref<32x128xf32, #tpu.memory_space<vmem>>, vector<32x128xf32>
      tpu.vector_store %arg5[%c0_14, %c0_15], %17 {strides = array<i32>} : memref<32x128xf32, #tpu.memory_space<vmem>>, vector<32x128xf32>,
    } else {
    }
    %c0_i32_1 = arith.constant 0 : i32
    %3 = arith.cmpi eq, %arg1, %c0_i32_1 : i32
    %c0_i32_2 = arith.constant 0 : i32
    %4 = arith.cmpi eq, %arg2, %c0_i32_2 : i32
    %5 = arith.andi %3, %4 : i1
    %6 = arith.extui %5 : i1 to i32
    %c0_i32_3 = arith.constant 0 : i32
    %7 = arith.cmpi ne, %6, %c0_i32_3 : i32
    scf.if %7 {
      %cst_13 = arith.constant 0.000000e+00 : f32
      %17 = vector.broadcast %cst_13 : f32 to vector<1x128xf32>
      %c0_14 = arith.constant 0 : index
      %c0_15 = arith.constant 0 : index
      %18 = vector.load %arg6[%c0_14, %c0_15] : memref<1x128xf32, #tpu.memory_space<vmem>>, vector<1x128xf32>
      tpu.vector_store %arg6[%c0_14, %c0_15], %17 {strides = array<i32>} : memref<1x128xf32, #tpu.memory_space<vmem>>, vector<1x128xf32>,
      %cst_16 = arith.constant 0.000000e+00 : f32
      %19 = vector.broadcast %cst_16 : f32 to vector<1x128xf32>
      %c0_17 = arith.constant 0 : index
      %c0_18 = arith.constant 0 : index
      %20 = vector.load %arg7[%c0_17, %c0_18] : memref<1x128xf32, #tpu.memory_space<vmem>>, vector<1x128xf32>
      tpu.vector_store %arg7[%c0_17, %c0_18], %19 {strides = array<i32>} : memref<1x128xf32, #tpu.memory_space<vmem>>, vector<1x128xf32>,
    } else {
    }
    %c0 = arith.constant 0 : index
    %c0_4 = arith.constant 0 : index
    %8 = vector.load %arg5[%c0, %c0_4] : memref<32x128xf32, #tpu.memory_space<vmem>>, vector<32x128xf32>
    %c0_5 = arith.constant 0 : index
    %c0_6 = arith.constant 0 : index
    %9 = vector.load %arg3[%c0_5, %c0_6] : memref<32x384xbf16, #tpu.memory_space<vmem>>, vector<32x384xbf16>
    %c0_7 = arith.constant 0 : index
    %c0_8 = arith.constant 0 : index
    %10 = vector.load %arg4[%c0_7, %c0_8] : memref<384x128xbf16, #tpu.memory_space<vmem>>, vector<384x128xbf16>
    %cst = arith.constant dense<0.000000e+00> : vector<32x128xf32>
    %11 = tpu.matmul %9, %10, %cst {dimension_numbers = #tpu.dot_dimension_numbers<[1], [0], [0], [1], [0, 0, 1, 1], [], []>} : vector<32x384xbf16>, vector<384x128xbf16>, vector<32x128xf32> -> vector<32x128xf32>
    %12 = arith.addf %8, %11 : vector<32x128xf32>
    %c0_9 = arith.constant 0 : index
    %c0_10 = arith.constant 0 : index
    %13 = vector.load %arg5[%c0_9, %c0_10] : memref<32x128xf32, #tpu.memory_space<vmem>>, vector<32x128xf32>
    tpu.vector_store %arg5[%c0_9, %c0_10], %12 {strides = array<i32>} : memref<32x128xf32, #tpu.memory_space<vmem>>, vector<32x128xf32>,
    %c0_i32_11 = arith.constant 0 : i32
    %14 = arith.cmpi eq, %arg2, %c0_i32_11 : i32
    %15 = arith.extui %14 : i1 to i32
    %c0_i32_12 = arith.constant 0 : i32
    %16 = arith.cmpi ne, %15, %c0_i32_12 : i32
    scf.if %16 {
      %c0_13 = arith.constant 0 : index
      %c0_14 = arith.constant 0 : index
      %17 = vector.load %arg5[%c0_13, %c0_14] : memref<32x128xf32, #tpu.memory_space<vmem>>, vector<32x128xf32>
      %c0_15 = arith.constant 0 : index
      %c0_16 = arith.constant 0 : index
      %18 = vector.load %arg6[%c0_15, %c0_16] : memref<1x128xf32, #tpu.memory_space<vmem>>, vector<1x128xf32>
      %cst_17 = arith.constant dense<0.000000e+00> : vector<128xf32>
      %19 = vector.multi_reduction <add>, %17, %cst_17 [0] : vector<32x128xf32> to vector<128xf32>
      %20 = vector.shape_cast %19 : vector<128xf32> to vector<1x128xf32>
      %21 = arith.addf %18, %20 : vector<1x128xf32>
      %c0_18 = arith.constant 0 : index
      %c0_19 = arith.constant 0 : index
      %22 = vector.load %arg6[%c0_18, %c0_19] : memref<1x128xf32, #tpu.memory_space<vmem>>, vector<1x128xf32>
      tpu.vector_store %arg6[%c0_18, %c0_19], %21 {strides = array<i32>} : memref<1x128xf32, #tpu.memory_space<vmem>>, vector<1x128xf32>,
      %c0_20 = arith.constant 0 : index
      %c0_21 = arith.constant 0 : index
      %23 = vector.load %arg7[%c0_20, %c0_21] : memref<1x128xf32, #tpu.memory_space<vmem>>, vector<1x128xf32>
      %24 = arith.mulf %17, %17 : vector<32x128xf32>
      %cst_22 = arith.constant dense<0.000000e+00> : vector<128xf32>
      %25 = vector.multi_reduction <add>, %24, %cst_22 [0] : vector<32x128xf32> to vector<128xf32>
      %26 = vector.shape_cast %25 : vector<128xf32> to vector<1x128xf32>
      %27 = arith.addf %23, %26 : vector<1x128xf32>
      %c0_23 = arith.constant 0 : index
      %c0_24 = arith.constant 0 : index
      %28 = vector.load %arg7[%c0_23, %c0_24] : memref<1x128xf32, #tpu.memory_space<vmem>>, vector<1x128xf32>
      tpu.vector_store %arg7[%c0_23, %c0_24], %27 {strides = array<i32>} : memref<1x128xf32, #tpu.memory_space<vmem>>, vector<1x128xf32>,
    } else {
    }
    return
  }
  func.func @transform_0(%arg0: i32, %arg1: i32, %arg2: i32) -> (i32, i32) {
    %c0_i32 = arith.constant 0 : i32
    return %arg1, %arg2 : i32, i32
  }
  func.func @transform_1(%arg0: i32, %arg1: i32, %arg2: i32) -> (i32, i32) {
    %c0_i32 = arith.constant 0 : i32
    return %arg2, %arg0 : i32, i32
  }
  func.func @transform_2(%arg0: i32, %arg1: i32, %arg2: i32) -> (i32, i32) {
    %c0_i32 = arith.constant 0 : i32
    return %arg1, %arg0 : i32, i32
  }
  func.func @transform_3(%arg0: i32, %arg1: i32, %arg2: i32) -> (i32, i32) {
    %c0_i32 = arith.constant 0 : i32
    %c0_i32_0 = arith.constant 0 : i32
    return %c0_i32, %arg0 : i32, i32
  }
  func.func @transform_4(%arg0: i32, %arg1: i32, %arg2: i32) -> (i32, i32) {
    %c0_i32 = arith.constant 0 : i32
    %c0_i32_0 = arith.constant 0 : i32
    return %c0_i32, %arg0 : i32, i32
  }
}

module attributes {stable_mosaic.version = 11 : i64} {
  func.func @_bn_apply_kernel(%arg0: i32, %arg1: memref<32x128xf32, #tpu.memory_space<vmem>>, %arg2: memref<1x128xf32, #tpu.memory_space<vmem>>, %arg3: memref<1x128xf32, #tpu.memory_space<vmem>>, %arg4: memref<1x128xf32, #tpu.memory_space<vmem>>, %arg5: memref<1x128xf32, #tpu.memory_space<vmem>>, %arg6: memref<32x128xf32, #tpu.memory_space<vmem>>, %arg7: memref<32x128xf32, #tpu.memory_space<vmem>>) attributes {dimension_semantics = [#tpu.dimension_semantics<parallel>], iteration_bounds = array<i64: 1>, scalar_prefetch = 0 : i64, scratch_operands = 0 : i64, tpu.core_type = #tpu.core_type<tc>, window_params = [{transform_indices = @transform_0, window_bounds = array<i64: 32, 128>}, {pipeline_mode = #tpu.pipeline_mode<synchronous>, transform_indices = @transform_1, window_bounds = array<i64: 1, 128>}, {pipeline_mode = #tpu.pipeline_mode<synchronous>, transform_indices = @transform_2, window_bounds = array<i64: 1, 128>}, {pipeline_mode = #tpu.pipeline_mode<synchronous>, transform_indices = @transform_3, window_bounds = array<i64: 1, 128>}, {pipeline_mode = #tpu.pipeline_mode<synchronous>, transform_indices = @transform_4, window_bounds = array<i64: 1, 128>}, {transform_indices = @transform_5, window_bounds = array<i64: 32, 128>}, {transform_indices = @transform_6, window_bounds = array<i64: 32, 128>}]} {
    %c0 = arith.constant 0 : index
    %c0_0 = arith.constant 0 : index
    %0 = vector.load %arg2[%c0, %c0_0] : memref<1x128xf32, #tpu.memory_space<vmem>>, vector<1x128xf32>
    %cst = arith.constant 3.125000e-02 : f32
    %1 = vector.broadcast %cst : f32 to vector<1x128xf32>
    %2 = arith.mulf %0, %1 : vector<1x128xf32>
    %c0_1 = arith.constant 0 : index
    %c0_2 = arith.constant 0 : index
    %3 = vector.load %arg3[%c0_1, %c0_2] : memref<1x128xf32, #tpu.memory_space<vmem>>, vector<1x128xf32>
    %cst_3 = arith.constant 3.125000e-02 : f32
    %4 = vector.broadcast %cst_3 : f32 to vector<1x128xf32>
    %5 = arith.mulf %3, %4 : vector<1x128xf32>
    %6 = arith.mulf %2, %2 : vector<1x128xf32>
    %7 = arith.subf %5, %6 : vector<1x128xf32>
    %cst_4 = arith.constant 0.000000e+00 : f32
    %8 = vector.broadcast %cst_4 : f32 to vector<1x128xf32>
    %9 = arith.maximumf %7, %8 : vector<1x128xf32>
    %c0_5 = arith.constant 0 : index
    %c0_6 = arith.constant 0 : index
    %10 = vector.load %arg4[%c0_5, %c0_6] : memref<1x128xf32, #tpu.memory_space<vmem>>, vector<1x128xf32>
    %cst_7 = arith.constant 9.99999974E-6 : f32
    %11 = vector.broadcast %cst_7 : f32 to vector<1x128xf32>
    %12 = arith.addf %9, %11 : vector<1x128xf32>
    %13 = math.rsqrt %12 : vector<1x128xf32>
    %14 = arith.mulf %10, %13 : vector<1x128xf32>
    %c0_8 = arith.constant 0 : index
    %c0_9 = arith.constant 0 : index
    %15 = vector.load %arg5[%c0_8, %c0_9] : memref<1x128xf32, #tpu.memory_space<vmem>>, vector<1x128xf32>
    %16 = arith.mulf %2, %14 : vector<1x128xf32>
    %17 = arith.subf %15, %16 : vector<1x128xf32>
    %c0_10 = arith.constant 0 : index
    %c0_11 = arith.constant 0 : index
    %18 = vector.load %arg1[%c0_10, %c0_11] : memref<32x128xf32, #tpu.memory_space<vmem>>, vector<32x128xf32>
    %19 = vector.broadcast %14 : vector<1x128xf32> to vector<32x128xf32>
    %20 = arith.mulf %18, %19 : vector<32x128xf32>
    %21 = vector.broadcast %17 : vector<1x128xf32> to vector<32x128xf32>
    %22 = arith.addf %20, %21 : vector<32x128xf32>
    %c0_12 = arith.constant 0 : index
    %c0_13 = arith.constant 0 : index
    %23 = vector.load %arg6[%c0_12, %c0_13] : memref<32x128xf32, #tpu.memory_space<vmem>>, vector<32x128xf32>
    %24 = arith.addf %22, %23 : vector<32x128xf32>
    %c0_14 = arith.constant 0 : index
    %c0_15 = arith.constant 0 : index
    %25 = vector.load %arg7[%c0_14, %c0_15] : memref<32x128xf32, #tpu.memory_space<vmem>>, vector<32x128xf32>
    tpu.vector_store %arg7[%c0_14, %c0_15], %24 {strides = array<i32>} : memref<32x128xf32, #tpu.memory_space<vmem>>, vector<32x128xf32>,
    return
  }
  func.func @transform_0(%arg0: i32) -> (i32, i32) {
    %c0_i32 = arith.constant 0 : i32
    %c0_i32_0 = arith.constant 0 : i32
    return %arg0, %c0_i32 : i32, i32
  }
  func.func @transform_1(%arg0: i32) -> (i32, i32) {
    %c0_i32 = arith.constant 0 : i32
    %c0_i32_0 = arith.constant 0 : i32
    %c0_i32_1 = arith.constant 0 : i32
    return %c0_i32, %c0_i32_0 : i32, i32
  }
  func.func @transform_2(%arg0: i32) -> (i32, i32) {
    %c0_i32 = arith.constant 0 : i32
    %c0_i32_0 = arith.constant 0 : i32
    %c0_i32_1 = arith.constant 0 : i32
    return %c0_i32, %c0_i32_0 : i32, i32
  }
  func.func @transform_3(%arg0: i32) -> (i32, i32) {
    %c0_i32 = arith.constant 0 : i32
    %c0_i32_0 = arith.constant 0 : i32
    %c0_i32_1 = arith.constant 0 : i32
    return %c0_i32, %c0_i32_0 : i32, i32
  }
  func.func @transform_4(%arg0: i32) -> (i32, i32) {
    %c0_i32 = arith.constant 0 : i32
    %c0_i32_0 = arith.constant 0 : i32
    %c0_i32_1 = arith.constant 0 : i32
    return %c0_i32, %c0_i32_0 : i32, i32
  }
  func.func @transform_5(%arg0: i32) -> (i32, i32) {
    %c0_i32 = arith.constant 0 : i32
    %c0_i32_0 = arith.constant 0 : i32
    return %arg0, %c0_i32 : i32, i32
  }
  func.func @transform_6(%arg0: i32) -> (i32, i32) {
    %c0_i32 = arith.constant 0 : i32
    %c0_i32_0 = arith.constant 0 : i32
    return %arg0, %c0_i32 : i32, i32
  }
}

module attributes {stable_mosaic.version = 11 : i64} {
  func.func @_matmul_stats_kernel(%arg0: i32, %arg1: i32, %arg2: i32, %arg3: memref<192x128xbf16, #tpu.memory_space<vmem>>, %arg4: memref<128x128xbf16, #tpu.memory_space<vmem>>, %arg5: memref<192x128xf32, #tpu.memory_space<vmem>>, %arg6: memref<1x128xf32, #tpu.memory_space<vmem>>, %arg7: memref<1x128xf32, #tpu.memory_space<vmem>>) attributes {dimension_semantics = [#tpu.dimension_semantics<parallel>, #tpu.dimension_semantics<arbitrary>, #tpu.dimension_semantics<arbitrary>], iteration_bounds = array<i64: 1, 1, 1>, scalar_prefetch = 0 : i64, scratch_operands = 0 : i64, tpu.core_type = #tpu.core_type<tc>, window_params = [{transform_indices = @transform_0, window_bounds = array<i64: 192, 128>}, {transform_indices = @transform_1, window_bounds = array<i64: 128, 128>}, {transform_indices = @transform_2, window_bounds = array<i64: 192, 128>}, {transform_indices = @transform_3, window_bounds = array<i64: 1, 128>}, {transform_indices = @transform_4, window_bounds = array<i64: 1, 128>}]} {
    %c0_i32 = arith.constant 0 : i32
    %0 = arith.cmpi eq, %arg2, %c0_i32 : i32
    %1 = arith.extui %0 : i1 to i32
    %c0_i32_0 = arith.constant 0 : i32
    %2 = arith.cmpi ne, %1, %c0_i32_0 : i32
    scf.if %2 {
      %cst_13 = arith.constant 0.000000e+00 : f32
      %17 = vector.broadcast %cst_13 : f32 to vector<192x128xf32>
      %c0_14 = arith.constant 0 : index
      %c0_15 = arith.constant 0 : index
      %18 = vector.load %arg5[%c0_14, %c0_15] : memref<192x128xf32, #tpu.memory_space<vmem>>, vector<192x128xf32>
      tpu.vector_store %arg5[%c0_14, %c0_15], %17 {strides = array<i32>} : memref<192x128xf32, #tpu.memory_space<vmem>>, vector<192x128xf32>,
    } else {
    }
    %c0_i32_1 = arith.constant 0 : i32
    %3 = arith.cmpi eq, %arg1, %c0_i32_1 : i32
    %c0_i32_2 = arith.constant 0 : i32
    %4 = arith.cmpi eq, %arg2, %c0_i32_2 : i32
    %5 = arith.andi %3, %4 : i1
    %6 = arith.extui %5 : i1 to i32
    %c0_i32_3 = arith.constant 0 : i32
    %7 = arith.cmpi ne, %6, %c0_i32_3 : i32
    scf.if %7 {
      %cst_13 = arith.constant 0.000000e+00 : f32
      %17 = vector.broadcast %cst_13 : f32 to vector<1x128xf32>
      %c0_14 = arith.constant 0 : index
      %c0_15 = arith.constant 0 : index
      %18 = vector.load %arg6[%c0_14, %c0_15] : memref<1x128xf32, #tpu.memory_space<vmem>>, vector<1x128xf32>
      tpu.vector_store %arg6[%c0_14, %c0_15], %17 {strides = array<i32>} : memref<1x128xf32, #tpu.memory_space<vmem>>, vector<1x128xf32>,
      %cst_16 = arith.constant 0.000000e+00 : f32
      %19 = vector.broadcast %cst_16 : f32 to vector<1x128xf32>
      %c0_17 = arith.constant 0 : index
      %c0_18 = arith.constant 0 : index
      %20 = vector.load %arg7[%c0_17, %c0_18] : memref<1x128xf32, #tpu.memory_space<vmem>>, vector<1x128xf32>
      tpu.vector_store %arg7[%c0_17, %c0_18], %19 {strides = array<i32>} : memref<1x128xf32, #tpu.memory_space<vmem>>, vector<1x128xf32>,
    } else {
    }
    %c0 = arith.constant 0 : index
    %c0_4 = arith.constant 0 : index
    %8 = vector.load %arg5[%c0, %c0_4] : memref<192x128xf32, #tpu.memory_space<vmem>>, vector<192x128xf32>
    %c0_5 = arith.constant 0 : index
    %c0_6 = arith.constant 0 : index
    %9 = vector.load %arg3[%c0_5, %c0_6] : memref<192x128xbf16, #tpu.memory_space<vmem>>, vector<192x128xbf16>
    %c0_7 = arith.constant 0 : index
    %c0_8 = arith.constant 0 : index
    %10 = vector.load %arg4[%c0_7, %c0_8] : memref<128x128xbf16, #tpu.memory_space<vmem>>, vector<128x128xbf16>
    %cst = arith.constant dense<0.000000e+00> : vector<192x128xf32>
    %11 = tpu.matmul %9, %10, %cst {dimension_numbers = #tpu.dot_dimension_numbers<[1], [0], [0], [1], [0, 0, 1, 1], [], []>} : vector<192x128xbf16>, vector<128x128xbf16>, vector<192x128xf32> -> vector<192x128xf32>
    %12 = arith.addf %8, %11 : vector<192x128xf32>
    %c0_9 = arith.constant 0 : index
    %c0_10 = arith.constant 0 : index
    %13 = vector.load %arg5[%c0_9, %c0_10] : memref<192x128xf32, #tpu.memory_space<vmem>>, vector<192x128xf32>
    tpu.vector_store %arg5[%c0_9, %c0_10], %12 {strides = array<i32>} : memref<192x128xf32, #tpu.memory_space<vmem>>, vector<192x128xf32>,
    %c0_i32_11 = arith.constant 0 : i32
    %14 = arith.cmpi eq, %arg2, %c0_i32_11 : i32
    %15 = arith.extui %14 : i1 to i32
    %c0_i32_12 = arith.constant 0 : i32
    %16 = arith.cmpi ne, %15, %c0_i32_12 : i32
    scf.if %16 {
      %c0_13 = arith.constant 0 : index
      %c0_14 = arith.constant 0 : index
      %17 = vector.load %arg5[%c0_13, %c0_14] : memref<192x128xf32, #tpu.memory_space<vmem>>, vector<192x128xf32>
      %c0_15 = arith.constant 0 : index
      %c0_16 = arith.constant 0 : index
      %18 = vector.load %arg6[%c0_15, %c0_16] : memref<1x128xf32, #tpu.memory_space<vmem>>, vector<1x128xf32>
      %cst_17 = arith.constant dense<0.000000e+00> : vector<128xf32>
      %19 = vector.multi_reduction <add>, %17, %cst_17 [0] : vector<192x128xf32> to vector<128xf32>
      %20 = vector.shape_cast %19 : vector<128xf32> to vector<1x128xf32>
      %21 = arith.addf %18, %20 : vector<1x128xf32>
      %c0_18 = arith.constant 0 : index
      %c0_19 = arith.constant 0 : index
      %22 = vector.load %arg6[%c0_18, %c0_19] : memref<1x128xf32, #tpu.memory_space<vmem>>, vector<1x128xf32>
      tpu.vector_store %arg6[%c0_18, %c0_19], %21 {strides = array<i32>} : memref<1x128xf32, #tpu.memory_space<vmem>>, vector<1x128xf32>,
      %c0_20 = arith.constant 0 : index
      %c0_21 = arith.constant 0 : index
      %23 = vector.load %arg7[%c0_20, %c0_21] : memref<1x128xf32, #tpu.memory_space<vmem>>, vector<1x128xf32>
      %24 = arith.mulf %17, %17 : vector<192x128xf32>
      %cst_22 = arith.constant dense<0.000000e+00> : vector<128xf32>
      %25 = vector.multi_reduction <add>, %24, %cst_22 [0] : vector<192x128xf32> to vector<128xf32>
      %26 = vector.shape_cast %25 : vector<128xf32> to vector<1x128xf32>
      %27 = arith.addf %23, %26 : vector<1x128xf32>
      %c0_23 = arith.constant 0 : index
      %c0_24 = arith.constant 0 : index
      %28 = vector.load %arg7[%c0_23, %c0_24] : memref<1x128xf32, #tpu.memory_space<vmem>>, vector<1x128xf32>
      tpu.vector_store %arg7[%c0_23, %c0_24], %27 {strides = array<i32>} : memref<1x128xf32, #tpu.memory_space<vmem>>, vector<1x128xf32>,
    } else {
    }
    return
  }
  func.func @transform_0(%arg0: i32, %arg1: i32, %arg2: i32) -> (i32, i32) {
    %c0_i32 = arith.constant 0 : i32
    return %arg1, %arg2 : i32, i32
  }
  func.func @transform_1(%arg0: i32, %arg1: i32, %arg2: i32) -> (i32, i32) {
    %c0_i32 = arith.constant 0 : i32
    return %arg2, %arg0 : i32, i32
  }
  func.func @transform_2(%arg0: i32, %arg1: i32, %arg2: i32) -> (i32, i32) {
    %c0_i32 = arith.constant 0 : i32
    return %arg1, %arg0 : i32, i32
  }
  func.func @transform_3(%arg0: i32, %arg1: i32, %arg2: i32) -> (i32, i32) {
    %c0_i32 = arith.constant 0 : i32
    %c0_i32_0 = arith.constant 0 : i32
    return %c0_i32, %arg0 : i32, i32
  }
  func.func @transform_4(%arg0: i32, %arg1: i32, %arg2: i32) -> (i32, i32) {
    %c0_i32 = arith.constant 0 : i32
    %c0_i32_0 = arith.constant 0 : i32
    return %c0_i32, %arg0 : i32, i32
  }
}

module attributes {stable_mosaic.version = 11 : i64} {
  func.func @_matmul_stats_kernel(%arg0: i32, %arg1: i32, %arg2: i32, %arg3: memref<192x256xbf16, #tpu.memory_space<vmem>>, %arg4: memref<256x128xbf16, #tpu.memory_space<vmem>>, %arg5: memref<192x128xf32, #tpu.memory_space<vmem>>, %arg6: memref<1x128xf32, #tpu.memory_space<vmem>>, %arg7: memref<1x128xf32, #tpu.memory_space<vmem>>) attributes {dimension_semantics = [#tpu.dimension_semantics<parallel>, #tpu.dimension_semantics<arbitrary>, #tpu.dimension_semantics<arbitrary>], iteration_bounds = array<i64: 1, 1, 1>, scalar_prefetch = 0 : i64, scratch_operands = 0 : i64, tpu.core_type = #tpu.core_type<tc>, window_params = [{transform_indices = @transform_0, window_bounds = array<i64: 192, 256>}, {transform_indices = @transform_1, window_bounds = array<i64: 256, 128>}, {transform_indices = @transform_2, window_bounds = array<i64: 192, 128>}, {transform_indices = @transform_3, window_bounds = array<i64: 1, 128>}, {transform_indices = @transform_4, window_bounds = array<i64: 1, 128>}]} {
    %c0_i32 = arith.constant 0 : i32
    %0 = arith.cmpi eq, %arg2, %c0_i32 : i32
    %1 = arith.extui %0 : i1 to i32
    %c0_i32_0 = arith.constant 0 : i32
    %2 = arith.cmpi ne, %1, %c0_i32_0 : i32
    scf.if %2 {
      %cst_13 = arith.constant 0.000000e+00 : f32
      %17 = vector.broadcast %cst_13 : f32 to vector<192x128xf32>
      %c0_14 = arith.constant 0 : index
      %c0_15 = arith.constant 0 : index
      %18 = vector.load %arg5[%c0_14, %c0_15] : memref<192x128xf32, #tpu.memory_space<vmem>>, vector<192x128xf32>
      tpu.vector_store %arg5[%c0_14, %c0_15], %17 {strides = array<i32>} : memref<192x128xf32, #tpu.memory_space<vmem>>, vector<192x128xf32>,
    } else {
    }
    %c0_i32_1 = arith.constant 0 : i32
    %3 = arith.cmpi eq, %arg1, %c0_i32_1 : i32
    %c0_i32_2 = arith.constant 0 : i32
    %4 = arith.cmpi eq, %arg2, %c0_i32_2 : i32
    %5 = arith.andi %3, %4 : i1
    %6 = arith.extui %5 : i1 to i32
    %c0_i32_3 = arith.constant 0 : i32
    %7 = arith.cmpi ne, %6, %c0_i32_3 : i32
    scf.if %7 {
      %cst_13 = arith.constant 0.000000e+00 : f32
      %17 = vector.broadcast %cst_13 : f32 to vector<1x128xf32>
      %c0_14 = arith.constant 0 : index
      %c0_15 = arith.constant 0 : index
      %18 = vector.load %arg6[%c0_14, %c0_15] : memref<1x128xf32, #tpu.memory_space<vmem>>, vector<1x128xf32>
      tpu.vector_store %arg6[%c0_14, %c0_15], %17 {strides = array<i32>} : memref<1x128xf32, #tpu.memory_space<vmem>>, vector<1x128xf32>,
      %cst_16 = arith.constant 0.000000e+00 : f32
      %19 = vector.broadcast %cst_16 : f32 to vector<1x128xf32>
      %c0_17 = arith.constant 0 : index
      %c0_18 = arith.constant 0 : index
      %20 = vector.load %arg7[%c0_17, %c0_18] : memref<1x128xf32, #tpu.memory_space<vmem>>, vector<1x128xf32>
      tpu.vector_store %arg7[%c0_17, %c0_18], %19 {strides = array<i32>} : memref<1x128xf32, #tpu.memory_space<vmem>>, vector<1x128xf32>,
    } else {
    }
    %c0 = arith.constant 0 : index
    %c0_4 = arith.constant 0 : index
    %8 = vector.load %arg5[%c0, %c0_4] : memref<192x128xf32, #tpu.memory_space<vmem>>, vector<192x128xf32>
    %c0_5 = arith.constant 0 : index
    %c0_6 = arith.constant 0 : index
    %9 = vector.load %arg3[%c0_5, %c0_6] : memref<192x256xbf16, #tpu.memory_space<vmem>>, vector<192x256xbf16>
    %c0_7 = arith.constant 0 : index
    %c0_8 = arith.constant 0 : index
    %10 = vector.load %arg4[%c0_7, %c0_8] : memref<256x128xbf16, #tpu.memory_space<vmem>>, vector<256x128xbf16>
    %cst = arith.constant dense<0.000000e+00> : vector<192x128xf32>
    %11 = tpu.matmul %9, %10, %cst {dimension_numbers = #tpu.dot_dimension_numbers<[1], [0], [0], [1], [0, 0, 1, 1], [], []>} : vector<192x256xbf16>, vector<256x128xbf16>, vector<192x128xf32> -> vector<192x128xf32>
    %12 = arith.addf %8, %11 : vector<192x128xf32>
    %c0_9 = arith.constant 0 : index
    %c0_10 = arith.constant 0 : index
    %13 = vector.load %arg5[%c0_9, %c0_10] : memref<192x128xf32, #tpu.memory_space<vmem>>, vector<192x128xf32>
    tpu.vector_store %arg5[%c0_9, %c0_10], %12 {strides = array<i32>} : memref<192x128xf32, #tpu.memory_space<vmem>>, vector<192x128xf32>,
    %c0_i32_11 = arith.constant 0 : i32
    %14 = arith.cmpi eq, %arg2, %c0_i32_11 : i32
    %15 = arith.extui %14 : i1 to i32
    %c0_i32_12 = arith.constant 0 : i32
    %16 = arith.cmpi ne, %15, %c0_i32_12 : i32
    scf.if %16 {
      %c0_13 = arith.constant 0 : index
      %c0_14 = arith.constant 0 : index
      %17 = vector.load %arg5[%c0_13, %c0_14] : memref<192x128xf32, #tpu.memory_space<vmem>>, vector<192x128xf32>
      %c0_15 = arith.constant 0 : index
      %c0_16 = arith.constant 0 : index
      %18 = vector.load %arg6[%c0_15, %c0_16] : memref<1x128xf32, #tpu.memory_space<vmem>>, vector<1x128xf32>
      %cst_17 = arith.constant dense<0.000000e+00> : vector<128xf32>
      %19 = vector.multi_reduction <add>, %17, %cst_17 [0] : vector<192x128xf32> to vector<128xf32>
      %20 = vector.shape_cast %19 : vector<128xf32> to vector<1x128xf32>
      %21 = arith.addf %18, %20 : vector<1x128xf32>
      %c0_18 = arith.constant 0 : index
      %c0_19 = arith.constant 0 : index
      %22 = vector.load %arg6[%c0_18, %c0_19] : memref<1x128xf32, #tpu.memory_space<vmem>>, vector<1x128xf32>
      tpu.vector_store %arg6[%c0_18, %c0_19], %21 {strides = array<i32>} : memref<1x128xf32, #tpu.memory_space<vmem>>, vector<1x128xf32>,
      %c0_20 = arith.constant 0 : index
      %c0_21 = arith.constant 0 : index
      %23 = vector.load %arg7[%c0_20, %c0_21] : memref<1x128xf32, #tpu.memory_space<vmem>>, vector<1x128xf32>
      %24 = arith.mulf %17, %17 : vector<192x128xf32>
      %cst_22 = arith.constant dense<0.000000e+00> : vector<128xf32>
      %25 = vector.multi_reduction <add>, %24, %cst_22 [0] : vector<192x128xf32> to vector<128xf32>
      %26 = vector.shape_cast %25 : vector<128xf32> to vector<1x128xf32>
      %27 = arith.addf %23, %26 : vector<1x128xf32>
      %c0_23 = arith.constant 0 : index
      %c0_24 = arith.constant 0 : index
      %28 = vector.load %arg7[%c0_23, %c0_24] : memref<1x128xf32, #tpu.memory_space<vmem>>, vector<1x128xf32>
      tpu.vector_store %arg7[%c0_23, %c0_24], %27 {strides = array<i32>} : memref<1x128xf32, #tpu.memory_space<vmem>>, vector<1x128xf32>,
    } else {
    }
    return
  }
  func.func @transform_0(%arg0: i32, %arg1: i32, %arg2: i32) -> (i32, i32) {
    %c0_i32 = arith.constant 0 : i32
    return %arg1, %arg2 : i32, i32
  }
  func.func @transform_1(%arg0: i32, %arg1: i32, %arg2: i32) -> (i32, i32) {
    %c0_i32 = arith.constant 0 : i32
    return %arg2, %arg0 : i32, i32
  }
  func.func @transform_2(%arg0: i32, %arg1: i32, %arg2: i32) -> (i32, i32) {
    %c0_i32 = arith.constant 0 : i32
    return %arg1, %arg0 : i32, i32
  }
  func.func @transform_3(%arg0: i32, %arg1: i32, %arg2: i32) -> (i32, i32) {
    %c0_i32 = arith.constant 0 : i32
    %c0_i32_0 = arith.constant 0 : i32
    return %c0_i32, %arg0 : i32, i32
  }
  func.func @transform_4(%arg0: i32, %arg1: i32, %arg2: i32) -> (i32, i32) {
    %c0_i32 = arith.constant 0 : i32
    %c0_i32_0 = arith.constant 0 : i32
    return %c0_i32, %arg0 : i32, i32
  }
}

module attributes {stable_mosaic.version = 11 : i64} {
  func.func @_bn_apply_kernel(%arg0: i32, %arg1: memref<192x128xf32, #tpu.memory_space<vmem>>, %arg2: memref<1x128xf32, #tpu.memory_space<vmem>>, %arg3: memref<1x128xf32, #tpu.memory_space<vmem>>, %arg4: memref<1x128xf32, #tpu.memory_space<vmem>>, %arg5: memref<1x128xf32, #tpu.memory_space<vmem>>, %arg6: memref<192x128xf32, #tpu.memory_space<vmem>>) attributes {dimension_semantics = [#tpu.dimension_semantics<parallel>], iteration_bounds = array<i64: 1>, scalar_prefetch = 0 : i64, scratch_operands = 0 : i64, tpu.core_type = #tpu.core_type<tc>, window_params = [{transform_indices = @transform_0, window_bounds = array<i64: 192, 128>}, {pipeline_mode = #tpu.pipeline_mode<synchronous>, transform_indices = @transform_1, window_bounds = array<i64: 1, 128>}, {pipeline_mode = #tpu.pipeline_mode<synchronous>, transform_indices = @transform_2, window_bounds = array<i64: 1, 128>}, {pipeline_mode = #tpu.pipeline_mode<synchronous>, transform_indices = @transform_3, window_bounds = array<i64: 1, 128>}, {pipeline_mode = #tpu.pipeline_mode<synchronous>, transform_indices = @transform_4, window_bounds = array<i64: 1, 128>}, {transform_indices = @transform_5, window_bounds = array<i64: 192, 128>}]} {
    %c0 = arith.constant 0 : index
    %c0_0 = arith.constant 0 : index
    %0 = vector.load %arg2[%c0, %c0_0] : memref<1x128xf32, #tpu.memory_space<vmem>>, vector<1x128xf32>
    %cst = arith.constant 6.51041686E-4 : f32
    %1 = vector.broadcast %cst : f32 to vector<1x128xf32>
    %2 = arith.mulf %0, %1 : vector<1x128xf32>
    %c0_1 = arith.constant 0 : index
    %c0_2 = arith.constant 0 : index
    %3 = vector.load %arg3[%c0_1, %c0_2] : memref<1x128xf32, #tpu.memory_space<vmem>>, vector<1x128xf32>
    %cst_3 = arith.constant 6.51041686E-4 : f32
    %4 = vector.broadcast %cst_3 : f32 to vector<1x128xf32>
    %5 = arith.mulf %3, %4 : vector<1x128xf32>
    %6 = arith.mulf %2, %2 : vector<1x128xf32>
    %7 = arith.subf %5, %6 : vector<1x128xf32>
    %cst_4 = arith.constant 0.000000e+00 : f32
    %8 = vector.broadcast %cst_4 : f32 to vector<1x128xf32>
    %9 = arith.maximumf %7, %8 : vector<1x128xf32>
    %c0_5 = arith.constant 0 : index
    %c0_6 = arith.constant 0 : index
    %10 = vector.load %arg4[%c0_5, %c0_6] : memref<1x128xf32, #tpu.memory_space<vmem>>, vector<1x128xf32>
    %cst_7 = arith.constant 9.99999974E-6 : f32
    %11 = vector.broadcast %cst_7 : f32 to vector<1x128xf32>
    %12 = arith.addf %9, %11 : vector<1x128xf32>
    %13 = math.rsqrt %12 : vector<1x128xf32>
    %14 = arith.mulf %10, %13 : vector<1x128xf32>
    %c0_8 = arith.constant 0 : index
    %c0_9 = arith.constant 0 : index
    %15 = vector.load %arg5[%c0_8, %c0_9] : memref<1x128xf32, #tpu.memory_space<vmem>>, vector<1x128xf32>
    %16 = arith.mulf %2, %14 : vector<1x128xf32>
    %17 = arith.subf %15, %16 : vector<1x128xf32>
    %c0_10 = arith.constant 0 : index
    %c0_11 = arith.constant 0 : index
    %18 = vector.load %arg1[%c0_10, %c0_11] : memref<192x128xf32, #tpu.memory_space<vmem>>, vector<192x128xf32>
    %19 = vector.broadcast %14 : vector<1x128xf32> to vector<192x128xf32>
    %20 = arith.mulf %18, %19 : vector<192x128xf32>
    %21 = vector.broadcast %17 : vector<1x128xf32> to vector<192x128xf32>
    %22 = arith.addf %20, %21 : vector<192x128xf32>
    %cst_12 = arith.constant 0.000000e+00 : f32
    %23 = vector.broadcast %cst_12 : f32 to vector<192x128xf32>
    %24 = arith.maximumf %22, %23 : vector<192x128xf32>
    %c0_13 = arith.constant 0 : index
    %c0_14 = arith.constant 0 : index
    %25 = vector.load %arg6[%c0_13, %c0_14] : memref<192x128xf32, #tpu.memory_space<vmem>>, vector<192x128xf32>
    tpu.vector_store %arg6[%c0_13, %c0_14], %24 {strides = array<i32>} : memref<192x128xf32, #tpu.memory_space<vmem>>, vector<192x128xf32>,
    return
  }
  func.func @transform_0(%arg0: i32) -> (i32, i32) {
    %c0_i32 = arith.constant 0 : i32
    %c0_i32_0 = arith.constant 0 : i32
    return %arg0, %c0_i32 : i32, i32
  }
  func.func @transform_1(%arg0: i32) -> (i32, i32) {
    %c0_i32 = arith.constant 0 : i32
    %c0_i32_0 = arith.constant 0 : i32
    %c0_i32_1 = arith.constant 0 : i32
    return %c0_i32, %c0_i32_0 : i32, i32
  }
  func.func @transform_2(%arg0: i32) -> (i32, i32) {
    %c0_i32 = arith.constant 0 : i32
    %c0_i32_0 = arith.constant 0 : i32
    %c0_i32_1 = arith.constant 0 : i32
    return %c0_i32, %c0_i32_0 : i32, i32
  }
  func.func @transform_3(%arg0: i32) -> (i32, i32) {
    %c0_i32 = arith.constant 0 : i32
    %c0_i32_0 = arith.constant 0 : i32
    %c0_i32_1 = arith.constant 0 : i32
    return %c0_i32, %c0_i32_0 : i32, i32
  }
  func.func @transform_4(%arg0: i32) -> (i32, i32) {
    %c0_i32 = arith.constant 0 : i32
    %c0_i32_0 = arith.constant 0 : i32
    %c0_i32_1 = arith.constant 0 : i32
    return %c0_i32, %c0_i32_0 : i32, i32
  }
  func.func @transform_5(%arg0: i32) -> (i32, i32) {
    %c0_i32 = arith.constant 0 : i32
    %c0_i32_0 = arith.constant 0 : i32
    return %arg0, %c0_i32 : i32, i32
  }
}

module attributes {stable_mosaic.version = 11 : i64} {
  func.func @_matmul_stats_kernel(%arg0: i32, %arg1: i32, %arg2: i32, %arg3: memref<512x128xbf16, #tpu.memory_space<vmem>>, %arg4: memref<128x128xbf16, #tpu.memory_space<vmem>>, %arg5: memref<512x128xf32, #tpu.memory_space<vmem>>, %arg6: memref<1x128xf32, #tpu.memory_space<vmem>>, %arg7: memref<1x128xf32, #tpu.memory_space<vmem>>) attributes {dimension_semantics = [#tpu.dimension_semantics<parallel>, #tpu.dimension_semantics<arbitrary>, #tpu.dimension_semantics<arbitrary>], iteration_bounds = array<i64: 1, 3, 1>, scalar_prefetch = 0 : i64, scratch_operands = 0 : i64, tpu.core_type = #tpu.core_type<tc>, window_params = [{transform_indices = @transform_0, window_bounds = array<i64: 512, 128>}, {transform_indices = @transform_1, window_bounds = array<i64: 128, 128>}, {transform_indices = @transform_2, window_bounds = array<i64: 512, 128>}, {transform_indices = @transform_3, window_bounds = array<i64: 1, 128>}, {transform_indices = @transform_4, window_bounds = array<i64: 1, 128>}]} {
    %c0_i32 = arith.constant 0 : i32
    %0 = arith.cmpi eq, %arg2, %c0_i32 : i32
    %1 = arith.extui %0 : i1 to i32
    %c0_i32_0 = arith.constant 0 : i32
    %2 = arith.cmpi ne, %1, %c0_i32_0 : i32
    scf.if %2 {
      %cst_13 = arith.constant 0.000000e+00 : f32
      %17 = vector.broadcast %cst_13 : f32 to vector<512x128xf32>
      %c0_14 = arith.constant 0 : index
      %c0_15 = arith.constant 0 : index
      %18 = vector.load %arg5[%c0_14, %c0_15] : memref<512x128xf32, #tpu.memory_space<vmem>>, vector<512x128xf32>
      tpu.vector_store %arg5[%c0_14, %c0_15], %17 {strides = array<i32>} : memref<512x128xf32, #tpu.memory_space<vmem>>, vector<512x128xf32>,
    } else {
    }
    %c0_i32_1 = arith.constant 0 : i32
    %3 = arith.cmpi eq, %arg1, %c0_i32_1 : i32
    %c0_i32_2 = arith.constant 0 : i32
    %4 = arith.cmpi eq, %arg2, %c0_i32_2 : i32
    %5 = arith.andi %3, %4 : i1
    %6 = arith.extui %5 : i1 to i32
    %c0_i32_3 = arith.constant 0 : i32
    %7 = arith.cmpi ne, %6, %c0_i32_3 : i32
    scf.if %7 {
      %cst_13 = arith.constant 0.000000e+00 : f32
      %17 = vector.broadcast %cst_13 : f32 to vector<1x128xf32>
      %c0_14 = arith.constant 0 : index
      %c0_15 = arith.constant 0 : index
      %18 = vector.load %arg6[%c0_14, %c0_15] : memref<1x128xf32, #tpu.memory_space<vmem>>, vector<1x128xf32>
      tpu.vector_store %arg6[%c0_14, %c0_15], %17 {strides = array<i32>} : memref<1x128xf32, #tpu.memory_space<vmem>>, vector<1x128xf32>,
      %cst_16 = arith.constant 0.000000e+00 : f32
      %19 = vector.broadcast %cst_16 : f32 to vector<1x128xf32>
      %c0_17 = arith.constant 0 : index
      %c0_18 = arith.constant 0 : index
      %20 = vector.load %arg7[%c0_17, %c0_18] : memref<1x128xf32, #tpu.memory_space<vmem>>, vector<1x128xf32>
      tpu.vector_store %arg7[%c0_17, %c0_18], %19 {strides = array<i32>} : memref<1x128xf32, #tpu.memory_space<vmem>>, vector<1x128xf32>,
    } else {
    }
    %c0 = arith.constant 0 : index
    %c0_4 = arith.constant 0 : index
    %8 = vector.load %arg5[%c0, %c0_4] : memref<512x128xf32, #tpu.memory_space<vmem>>, vector<512x128xf32>
    %c0_5 = arith.constant 0 : index
    %c0_6 = arith.constant 0 : index
    %9 = vector.load %arg3[%c0_5, %c0_6] : memref<512x128xbf16, #tpu.memory_space<vmem>>, vector<512x128xbf16>
    %c0_7 = arith.constant 0 : index
    %c0_8 = arith.constant 0 : index
    %10 = vector.load %arg4[%c0_7, %c0_8] : memref<128x128xbf16, #tpu.memory_space<vmem>>, vector<128x128xbf16>
    %cst = arith.constant dense<0.000000e+00> : vector<512x128xf32>
    %11 = tpu.matmul %9, %10, %cst {dimension_numbers = #tpu.dot_dimension_numbers<[1], [0], [0], [1], [0, 0, 1, 1], [], []>} : vector<512x128xbf16>, vector<128x128xbf16>, vector<512x128xf32> -> vector<512x128xf32>
    %12 = arith.addf %8, %11 : vector<512x128xf32>
    %c0_9 = arith.constant 0 : index
    %c0_10 = arith.constant 0 : index
    %13 = vector.load %arg5[%c0_9, %c0_10] : memref<512x128xf32, #tpu.memory_space<vmem>>, vector<512x128xf32>
    tpu.vector_store %arg5[%c0_9, %c0_10], %12 {strides = array<i32>} : memref<512x128xf32, #tpu.memory_space<vmem>>, vector<512x128xf32>,
    %c0_i32_11 = arith.constant 0 : i32
    %14 = arith.cmpi eq, %arg2, %c0_i32_11 : i32
    %15 = arith.extui %14 : i1 to i32
    %c0_i32_12 = arith.constant 0 : i32
    %16 = arith.cmpi ne, %15, %c0_i32_12 : i32
    scf.if %16 {
      %c0_13 = arith.constant 0 : index
      %c0_14 = arith.constant 0 : index
      %17 = vector.load %arg5[%c0_13, %c0_14] : memref<512x128xf32, #tpu.memory_space<vmem>>, vector<512x128xf32>
      %c0_15 = arith.constant 0 : index
      %c0_16 = arith.constant 0 : index
      %18 = vector.load %arg6[%c0_15, %c0_16] : memref<1x128xf32, #tpu.memory_space<vmem>>, vector<1x128xf32>
      %cst_17 = arith.constant dense<0.000000e+00> : vector<128xf32>
      %19 = vector.multi_reduction <add>, %17, %cst_17 [0] : vector<512x128xf32> to vector<128xf32>
      %20 = vector.shape_cast %19 : vector<128xf32> to vector<1x128xf32>
      %21 = arith.addf %18, %20 : vector<1x128xf32>
      %c0_18 = arith.constant 0 : index
      %c0_19 = arith.constant 0 : index
      %22 = vector.load %arg6[%c0_18, %c0_19] : memref<1x128xf32, #tpu.memory_space<vmem>>, vector<1x128xf32>
      tpu.vector_store %arg6[%c0_18, %c0_19], %21 {strides = array<i32>} : memref<1x128xf32, #tpu.memory_space<vmem>>, vector<1x128xf32>,
      %c0_20 = arith.constant 0 : index
      %c0_21 = arith.constant 0 : index
      %23 = vector.load %arg7[%c0_20, %c0_21] : memref<1x128xf32, #tpu.memory_space<vmem>>, vector<1x128xf32>
      %24 = arith.mulf %17, %17 : vector<512x128xf32>
      %cst_22 = arith.constant dense<0.000000e+00> : vector<128xf32>
      %25 = vector.multi_reduction <add>, %24, %cst_22 [0] : vector<512x128xf32> to vector<128xf32>
      %26 = vector.shape_cast %25 : vector<128xf32> to vector<1x128xf32>
      %27 = arith.addf %23, %26 : vector<1x128xf32>
      %c0_23 = arith.constant 0 : index
      %c0_24 = arith.constant 0 : index
      %28 = vector.load %arg7[%c0_23, %c0_24] : memref<1x128xf32, #tpu.memory_space<vmem>>, vector<1x128xf32>
      tpu.vector_store %arg7[%c0_23, %c0_24], %27 {strides = array<i32>} : memref<1x128xf32, #tpu.memory_space<vmem>>, vector<1x128xf32>,
    } else {
    }
    return
  }
  func.func @transform_0(%arg0: i32, %arg1: i32, %arg2: i32) -> (i32, i32) {
    %c0_i32 = arith.constant 0 : i32
    return %arg1, %arg2 : i32, i32
  }
  func.func @transform_1(%arg0: i32, %arg1: i32, %arg2: i32) -> (i32, i32) {
    %c0_i32 = arith.constant 0 : i32
    return %arg2, %arg0 : i32, i32
  }
  func.func @transform_2(%arg0: i32, %arg1: i32, %arg2: i32) -> (i32, i32) {
    %c0_i32 = arith.constant 0 : i32
    return %arg1, %arg0 : i32, i32
  }
  func.func @transform_3(%arg0: i32, %arg1: i32, %arg2: i32) -> (i32, i32) {
    %c0_i32 = arith.constant 0 : i32
    %c0_i32_0 = arith.constant 0 : i32
    return %c0_i32, %arg0 : i32, i32
  }
  func.func @transform_4(%arg0: i32, %arg1: i32, %arg2: i32) -> (i32, i32) {
    %c0_i32 = arith.constant 0 : i32
    %c0_i32_0 = arith.constant 0 : i32
    return %c0_i32, %arg0 : i32, i32
  }
}

module attributes {stable_mosaic.version = 11 : i64} {
  func.func @_bn_apply_kernel(%arg0: i32, %arg1: memref<512x128xf32, #tpu.memory_space<vmem>>, %arg2: memref<1x128xf32, #tpu.memory_space<vmem>>, %arg3: memref<1x128xf32, #tpu.memory_space<vmem>>, %arg4: memref<1x128xf32, #tpu.memory_space<vmem>>, %arg5: memref<1x128xf32, #tpu.memory_space<vmem>>, %arg6: memref<512x128xf32, #tpu.memory_space<vmem>>) attributes {dimension_semantics = [#tpu.dimension_semantics<parallel>], iteration_bounds = array<i64: 3>, scalar_prefetch = 0 : i64, scratch_operands = 0 : i64, tpu.core_type = #tpu.core_type<tc>, window_params = [{transform_indices = @transform_0, window_bounds = array<i64: 512, 128>}, {pipeline_mode = #tpu.pipeline_mode<synchronous>, transform_indices = @transform_1, window_bounds = array<i64: 1, 128>}, {pipeline_mode = #tpu.pipeline_mode<synchronous>, transform_indices = @transform_2, window_bounds = array<i64: 1, 128>}, {pipeline_mode = #tpu.pipeline_mode<synchronous>, transform_indices = @transform_3, window_bounds = array<i64: 1, 128>}, {pipeline_mode = #tpu.pipeline_mode<synchronous>, transform_indices = @transform_4, window_bounds = array<i64: 1, 128>}, {transform_indices = @transform_5, window_bounds = array<i64: 512, 128>}]} {
    %c0 = arith.constant 0 : index
    %c0_0 = arith.constant 0 : index
    %0 = vector.load %arg2[%c0, %c0_0] : memref<1x128xf32, #tpu.memory_space<vmem>>, vector<1x128xf32>
    %cst = arith.constant 8.13802107E-5 : f32
    %1 = vector.broadcast %cst : f32 to vector<1x128xf32>
    %2 = arith.mulf %0, %1 : vector<1x128xf32>
    %c0_1 = arith.constant 0 : index
    %c0_2 = arith.constant 0 : index
    %3 = vector.load %arg3[%c0_1, %c0_2] : memref<1x128xf32, #tpu.memory_space<vmem>>, vector<1x128xf32>
    %cst_3 = arith.constant 8.13802107E-5 : f32
    %4 = vector.broadcast %cst_3 : f32 to vector<1x128xf32>
    %5 = arith.mulf %3, %4 : vector<1x128xf32>
    %6 = arith.mulf %2, %2 : vector<1x128xf32>
    %7 = arith.subf %5, %6 : vector<1x128xf32>
    %cst_4 = arith.constant 0.000000e+00 : f32
    %8 = vector.broadcast %cst_4 : f32 to vector<1x128xf32>
    %9 = arith.maximumf %7, %8 : vector<1x128xf32>
    %c0_5 = arith.constant 0 : index
    %c0_6 = arith.constant 0 : index
    %10 = vector.load %arg4[%c0_5, %c0_6] : memref<1x128xf32, #tpu.memory_space<vmem>>, vector<1x128xf32>
    %cst_7 = arith.constant 9.99999974E-6 : f32
    %11 = vector.broadcast %cst_7 : f32 to vector<1x128xf32>
    %12 = arith.addf %9, %11 : vector<1x128xf32>
    %13 = math.rsqrt %12 : vector<1x128xf32>
    %14 = arith.mulf %10, %13 : vector<1x128xf32>
    %c0_8 = arith.constant 0 : index
    %c0_9 = arith.constant 0 : index
    %15 = vector.load %arg5[%c0_8, %c0_9] : memref<1x128xf32, #tpu.memory_space<vmem>>, vector<1x128xf32>
    %16 = arith.mulf %2, %14 : vector<1x128xf32>
    %17 = arith.subf %15, %16 : vector<1x128xf32>
    %c0_10 = arith.constant 0 : index
    %c0_11 = arith.constant 0 : index
    %18 = vector.load %arg1[%c0_10, %c0_11] : memref<512x128xf32, #tpu.memory_space<vmem>>, vector<512x128xf32>
    %19 = vector.broadcast %14 : vector<1x128xf32> to vector<512x128xf32>
    %20 = arith.mulf %18, %19 : vector<512x128xf32>
    %21 = vector.broadcast %17 : vector<1x128xf32> to vector<512x128xf32>
    %22 = arith.addf %20, %21 : vector<512x128xf32>
    %cst_12 = arith.constant 0.000000e+00 : f32
    %23 = vector.broadcast %cst_12 : f32 to vector<512x128xf32>
    %24 = arith.maximumf %22, %23 : vector<512x128xf32>
    %c0_13 = arith.constant 0 : index
    %c0_14 = arith.constant 0 : index
    %25 = vector.load %arg6[%c0_13, %c0_14] : memref<512x128xf32, #tpu.memory_space<vmem>>, vector<512x128xf32>
    tpu.vector_store %arg6[%c0_13, %c0_14], %24 {strides = array<i32>} : memref<512x128xf32, #tpu.memory_space<vmem>>, vector<512x128xf32>,
    return
  }
  func.func @transform_0(%arg0: i32) -> (i32, i32) {
    %c0_i32 = arith.constant 0 : i32
    %c0_i32_0 = arith.constant 0 : i32
    return %arg0, %c0_i32 : i32, i32
  }
  func.func @transform_1(%arg0: i32) -> (i32, i32) {
    %c0_i32 = arith.constant 0 : i32
    %c0_i32_0 = arith.constant 0 : i32
    %c0_i32_1 = arith.constant 0 : i32
    return %c0_i32, %c0_i32_0 : i32, i32
  }
  func.func @transform_2(%arg0: i32) -> (i32, i32) {
    %c0_i32 = arith.constant 0 : i32
    %c0_i32_0 = arith.constant 0 : i32
    %c0_i32_1 = arith.constant 0 : i32
    return %c0_i32, %c0_i32_0 : i32, i32
  }
  func.func @transform_3(%arg0: i32) -> (i32, i32) {
    %c0_i32 = arith.constant 0 : i32
    %c0_i32_0 = arith.constant 0 : i32
    %c0_i32_1 = arith.constant 0 : i32
    return %c0_i32, %c0_i32_0 : i32, i32
  }
  func.func @transform_4(%arg0: i32) -> (i32, i32) {
    %c0_i32 = arith.constant 0 : i32
    %c0_i32_0 = arith.constant 0 : i32
    %c0_i32_1 = arith.constant 0 : i32
    return %c0_i32, %c0_i32_0 : i32, i32
  }
  func.func @transform_5(%arg0: i32) -> (i32, i32) {
    %c0_i32 = arith.constant 0 : i32
    %c0_i32_0 = arith.constant 0 : i32
    return %arg0, %c0_i32 : i32, i32
  }
}

module attributes {stable_mosaic.version = 11 : i64} {
  func.func @_final_conv_kernel(%arg0: i32, %arg1: i32, %arg2: i32, %arg3: memref<1x1x256x512xbf16, #tpu.memory_space<vmem>>, %arg4: memref<1x512x128xbf16, #tpu.memory_space<vmem>>, %arg5: memref<1x128xf32, #tpu.memory_space<vmem>>, %arg6: memref<1x1x256x128xf32, #tpu.memory_space<vmem>>) attributes {dimension_semantics = [#tpu.dimension_semantics<parallel>, #tpu.dimension_semantics<parallel>, #tpu.dimension_semantics<arbitrary>], iteration_bounds = array<i64: 2, 24, 7>, scalar_prefetch = 0 : i64, scratch_operands = 0 : i64, tpu.core_type = #tpu.core_type<tc>, window_params = [{transform_indices = @transform_0, window_bounds = array<i64: 1, 1, 256, 512>}, {transform_indices = @transform_1, window_bounds = array<i64: 1, 512, 128>}, {pipeline_mode = #tpu.pipeline_mode<synchronous>, transform_indices = @transform_2, window_bounds = array<i64: 1, 128>}, {transform_indices = @transform_3, window_bounds = array<i64: 1, 1, 256, 128>}]} {
    %c0_i32 = arith.constant 0 : i32
    %0 = arith.cmpi eq, %arg2, %c0_i32 : i32
    %1 = arith.extui %0 : i1 to i32
    %c0_i32_0 = arith.constant 0 : i32
    %2 = arith.cmpi ne, %1, %c0_i32_0 : i32
    scf.if %2 {
      %cst_16 = arith.constant 0.000000e+00 : f32
      %17 = vector.broadcast %cst_16 : f32 to vector<256x128xf32>
      %c0_17 = arith.constant 0 : index
      %c0_18 = arith.constant 0 : index
      %c0_19 = arith.constant 0 : index
      %c0_20 = arith.constant 0 : index
      %18 = vector.load %arg6[%c0_17, %c0_18, %c0_19, %c0_20] : memref<1x1x256x128xf32, #tpu.memory_space<vmem>>, vector<1x1x256x128xf32>
      %19 = vector.shape_cast %18 : vector<1x1x256x128xf32> to vector<256x128xf32>
      %20 = vector.shape_cast %17 : vector<256x128xf32> to vector<1x1x256x128xf32>
      tpu.vector_store %arg6[%c0_17, %c0_18, %c0_19, %c0_20], %20 {strides = array<i32>} : memref<1x1x256x128xf32, #tpu.memory_space<vmem>>, vector<1x1x256x128xf32>,
    } else {
    }
    %c0 = arith.constant 0 : index
    %c0_1 = arith.constant 0 : index
    %c0_2 = arith.constant 0 : index
    %c0_3 = arith.constant 0 : index
    %3 = vector.load %arg6[%c0, %c0_1, %c0_2, %c0_3] : memref<1x1x256x128xf32, #tpu.memory_space<vmem>>, vector<1x1x256x128xf32>
    %4 = vector.shape_cast %3 : vector<1x1x256x128xf32> to vector<256x128xf32>
    %c0_4 = arith.constant 0 : index
    %c0_5 = arith.constant 0 : index
    %c0_6 = arith.constant 0 : index
    %c0_7 = arith.constant 0 : index
    %5 = vector.load %arg3[%c0_4, %c0_5, %c0_6, %c0_7] : memref<1x1x256x512xbf16, #tpu.memory_space<vmem>>, vector<1x1x256x512xbf16>
    %6 = vector.shape_cast %5 : vector<1x1x256x512xbf16> to vector<256x512xbf16>
    %c0_8 = arith.constant 0 : index
    %c0_9 = arith.constant 0 : index
    %c0_10 = arith.constant 0 : index
    %7 = vector.load %arg4[%c0_8, %c0_9, %c0_10] : memref<1x512x128xbf16, #tpu.memory_space<vmem>>, vector<1x512x128xbf16>
    %8 = vector.shape_cast %7 : vector<1x512x128xbf16> to vector<512x128xbf16>
    %cst = arith.constant dense<0.000000e+00> : vector<256x128xf32>
    %9 = tpu.matmul %6, %8, %cst {dimension_numbers = #tpu.dot_dimension_numbers<[1], [0], [0], [1], [0, 0, 1, 1], [], []>} : vector<256x512xbf16>, vector<512x128xbf16>, vector<256x128xf32> -> vector<256x128xf32>
    %10 = arith.addf %4, %9 : vector<256x128xf32>
    %c0_11 = arith.constant 0 : index
    %c0_12 = arith.constant 0 : index
    %c0_13 = arith.constant 0 : index
    %c0_14 = arith.constant 0 : index
    %11 = vector.load %arg6[%c0_11, %c0_12, %c0_13, %c0_14] : memref<1x1x256x128xf32, #tpu.memory_space<vmem>>, vector<1x1x256x128xf32>
    %12 = vector.shape_cast %11 : vector<1x1x256x128xf32> to vector<256x128xf32>
    %13 = vector.shape_cast %10 : vector<256x128xf32> to vector<1x1x256x128xf32>
    tpu.vector_store %arg6[%c0_11, %c0_12, %c0_13, %c0_14], %13 {strides = array<i32>} : memref<1x1x256x128xf32, #tpu.memory_space<vmem>>, vector<1x1x256x128xf32>,
    %c6_i32 = arith.constant 6 : i32
    %14 = arith.cmpi eq, %arg2, %c6_i32 : i32
    %15 = arith.extui %14 : i1 to i32
    %c0_i32_15 = arith.constant 0 : i32
    %16 = arith.cmpi ne, %15, %c0_i32_15 : i32
    scf.if %16 {
      %c0_16 = arith.constant 0 : index
      %c0_17 = arith.constant 0 : index
      %c0_18 = arith.constant 0 : index
      %c0_19 = arith.constant 0 : index
      %17 = vector.load %arg6[%c0_16, %c0_17, %c0_18, %c0_19] : memref<1x1x256x128xf32, #tpu.memory_space<vmem>>, vector<1x1x256x128xf32>
      %18 = vector.shape_cast %17 : vector<1x1x256x128xf32> to vector<256x128xf32>
      %c0_20 = arith.constant 0 : index
      %c0_21 = arith.constant 0 : index
      %19 = vector.load %arg5[%c0_20, %c0_21] : memref<1x128xf32, #tpu.memory_space<vmem>>, vector<1x128xf32>
      %20 = vector.broadcast %19 : vector<1x128xf32> to vector<256x128xf32>
      %21 = arith.addf %18, %20 : vector<256x128xf32>
      %cst_22 = arith.constant -6.000000e+01 : f32
      %cst_23 = arith.constant 6.000000e+01 : f32
      %22 = vector.broadcast %cst_22 : f32 to vector<256x128xf32>
      %23 = arith.maximumf %22, %21 : vector<256x128xf32>
      %24 = vector.broadcast %cst_23 : f32 to vector<256x128xf32>
      %25 = arith.minimumf %24, %23 : vector<256x128xf32>
      %cst_24 = arith.constant 0.000000e+00 : f32
      %26 = vector.broadcast %cst_24 : f32 to vector<256x128xf32>
      %27 = arith.subf %26, %25 : vector<256x128xf32>
      %28 = math.exp %27 : vector<256x128xf32>
      %cst_25 = arith.constant 1.000000e+00 : f32
      %29 = vector.broadcast %cst_25 : f32 to vector<256x128xf32>
      %30 = arith.addf %29, %28 : vector<256x128xf32>
      %31 = tpu.reciprocal %30 {approx = true} : vector<256x128xf32> -> vector<256x128xf32>
      %cst_26 = arith.constant 0.000000e+00 : f32
      %cst_27 = arith.constant 1.000000e+00 : f32
      %32 = vector.broadcast %cst_26 : f32 to vector<256x128xf32>
      %33 = arith.maximumf %32, %31 : vector<256x128xf32>
      %34 = vector.broadcast %cst_27 : f32 to vector<256x128xf32>
      %35 = arith.minimumf %34, %33 : vector<256x128xf32>
      %c0_28 = arith.constant 0 : index
      %c0_29 = arith.constant 0 : index
      %c0_30 = arith.constant 0 : index
      %c0_31 = arith.constant 0 : index
      %36 = vector.load %arg6[%c0_28, %c0_29, %c0_30, %c0_31] : memref<1x1x256x128xf32, #tpu.memory_space<vmem>>, vector<1x1x256x128xf32>
      %37 = vector.shape_cast %36 : vector<1x1x256x128xf32> to vector<256x128xf32>
      %38 = vector.shape_cast %35 : vector<256x128xf32> to vector<1x1x256x128xf32>
      tpu.vector_store %arg6[%c0_28, %c0_29, %c0_30, %c0_31], %38 {strides = array<i32>} : memref<1x1x256x128xf32, #tpu.memory_space<vmem>>, vector<1x1x256x128xf32>,
    } else {
    }
    return
  }
  func.func @transform_0(%arg0: i32, %arg1: i32, %arg2: i32) -> (i32, i32, i32, i32) {
    %0 = arith.addi %arg1, %arg2 : i32
    %c0_i32 = arith.constant 0 : i32
    %c0_i32_0 = arith.constant 0 : i32
    %c0_i32_1 = arith.constant 0 : i32
    return %arg0, %0, %c0_i32, %c0_i32_0 : i32, i32, i32, i32
  }
  func.func @transform_1(%arg0: i32, %arg1: i32, %arg2: i32) -> (i32, i32, i32) {
    %c0_i32 = arith.constant 0 : i32
    %c0_i32_0 = arith.constant 0 : i32
    %c0_i32_1 = arith.constant 0 : i32
    return %arg2, %c0_i32, %c0_i32_0 : i32, i32, i32
  }
  func.func @transform_2(%arg0: i32, %arg1: i32, %arg2: i32) -> (i32, i32) {
    %c0_i32 = arith.constant 0 : i32
    %c0_i32_0 = arith.constant 0 : i32
    %c0_i32_1 = arith.constant 0 : i32
    return %c0_i32, %c0_i32_0 : i32, i32
  }
  func.func @transform_3(%arg0: i32, %arg1: i32, %arg2: i32) -> (i32, i32, i32, i32) {
    %c0_i32 = arith.constant 0 : i32
    %c0_i32_0 = arith.constant 0 : i32
    %c0_i32_1 = arith.constant 0 : i32
    return %arg0, %arg1, %c0_i32, %c0_i32_0 : i32, i32, i32, i32
  }
}

</mosaic_0001>

<bundles_post_ra>
// kernel: resnet_generator_forward.48
= control target key start
LH: loop header
LB: loop body
LE: loop exit
PB: predicated region body
PF: predicated region fallthrough
CT: control target
= control target key end

     0   :  { %v99_v8 = vlaneseq  ;;  %s930_s1 = inlined_call_operand.vmem [shape: f32[1,128], index: 1, kind: input, shape index: {}]   ;;  %s931_s2 = inlined_call_operand.vmem [shape: f32[1,128], index: 2, kind: input, shape index: {}]   ;;  %s932_s3 = inlined_call_operand.vmem [shape: f32[1,128], index: 3, kind: input, shape index: {}]   ;;  %s933_s0 = inlined_call_operand.vmem [shape: f32[512,128], index: 0, kind: input, shape index: {}]   ;;  %s934_s4 = inlined_call_operand.vmem [shape: f32[1,128], index: 4, kind: input, shape index: {}]   ;;  %s935_s5 = inlined_call_operand.vmem [shape: f32[512,128], index: 5, kind: output, shape index: {}]  }
   0x1   :  { %v20_v0 = vld [vmem:[%s930_s1] sm:$0x1]  ;;  %v35_v16 = vld [vmem:[%s933_s0 + $0x8] sm:$0xff]  ;;  %v36_v17 = vld [vmem:[%s933_s0 + $0x10] sm:$0xff] }
   0x2   :  { %v22_v1 = vld [vmem:[%s931_s2] sm:$0x1]  ;;  %v21_v2 = vmul.f32 0.001953125, %v20_v0  ;;  %v100_v9 = vshrl.u32 %v99_v8, 7  ;;  %v37_v18 = vld [vmem:[%s933_s0 + $0x18] sm:$0xff]  ;;  %v39_v22 = vld [vmem:[%s933_s0 + $0x28] sm:$0xff] }
   0x3   :  { %v23_v3 = vmul.f32 0.001953125, %v22_v1  ;;  %v27_v10 = vld [vmem:[%s932_s3] sm:$0x1]  ;;  %v40_v23 = vld [vmem:[%s933_s0 + $0x30] sm:$0xff]  ;;  %v41_v24 = vld [vmem:[%s933_s0 + $0x38] sm:$0xff] }
   0x4   :  { %v24_v4 = vmul.f32 %v21_v2, %v21_v2  ;;  %v101_v11 = vsub.s32 0, %v100_v9  ;;  %v31_v14 = vld [vmem:[%s934_s4] sm:$0x1]  ;;  %v43_v26 = vld [vmem:[%s933_s0 + $0x48] sm:$0xff]  ;;  %v44_v27 = vld [vmem:[%s933_s0 + $0x50] sm:$0xff] }
   0x5   :  { %v34_v15 = vld [vmem:[%s933_s0] sm:$0xff]  ;;  %v45_v32 = vld [vmem:[%s933_s0 + $0x58] sm:$0xff]  ;;  %v47_v34 = vld [vmem:[%s933_s0 + $0x68] sm:$0xff] }
   0x6   :  { %v25_v5 = vsub.f32 %v23_v3, %v24_v4  ;;  %v38_v19 = vld [vmem:[%s933_s0 + $0x20] sm:$0xff]  ;;  %v48_v59 = vld [vmem:[%s933_s0 + $0x70] sm:$0xff]  ;;  %v49_v60 = vld [vmem:[%s933_s0 + $0x78] sm:$0xff] }
   0x7   :  { %v42_v25 = vld [vmem:[%s933_s0 + $0x40] sm:$0xff] }
   0x8   :  { %v26_v6 = vmax.f32 %v25_v5, 0.0  ;;  %v46_v33 = vld [vmem:[%s933_s0 + $0x60] sm:$0xff] }
   0x9   :  { %v50_v5 = vld [vmem:[%s933_s0 + $0x80] sm:$0xff] }
   0xa   :  { %v28_v7 = vadd.f32 1e-05, %v26_v6 }
   0xc   :  { %370 = vrsqrt.f32 %v28_v7 }
  0x19   :  { %v371_v12 = vpop.eup %370 }
  0x1a   :  { %v30_v13 = vmul.f32 %v371_v12, %v27_v10  ;;  %v51_v10 = vld [vmem:[%s933_s0 + $0x88] sm:$0xff]  ;;  %v53_v12 = vld [vmem:[%s933_s0 + $0x98] sm:$0xff] }
  0x1c   :  { %v32_v20 = vmul.f32 %v30_v13, %v21_v2  ;;  %v429_v21 = vrot.slane %v30_v13, %v101_v11 }
  0x1e   :  { %v33_v28 = vsub.f32 %v31_v14, %v32_v20  ;;  %v104_v29 = vmul.f32 %v429_v21, %v34_v15  ;;  %v105_v30 = vmul.f32 %v429_v21, %v35_v16  ;;  %v106_v31 = vmul.f32 %v429_v21, %v36_v17  ;;  %v54_v17 = vld [vmem:[%s933_s0 + $0xa0] sm:$0xff] }
  0x1f   :  { %v107_v35 = vmul.f32 %v429_v21, %v37_v18  ;;  %v108_v36 = vmul.f32 %v429_v21, %v38_v19  ;;  %v109_v37 = vmul.f32 %v429_v21, %v39_v22  ;;  %v110_v38 = vmul.f32 %v429_v21, %v40_v23  ;;  %v55_v18 = vld [vmem:[%s933_s0 + $0xa8] sm:$0xff] }
  0x20   :  { %v465_v39 = vrot.slane %v33_v28, %v101_v11  ;;  %v111_v40 = vmul.f32 %v429_v21, %v41_v24  ;;  %v112_v41 = vmul.f32 %v429_v21, %v42_v25  ;;  %v113_v42 = vmul.f32 %v429_v21, %v43_v26  ;;  %v52_v11 = vld [vmem:[%s933_s0 + $0x90] sm:$0xff] }
  0x21   :  { %v114_v43 = vmul.f32 %v429_v21, %v44_v27  ;;  %v115_v44 = vmul.f32 %v429_v21, %v45_v32  ;;  %v116_v45 = vmul.f32 %v429_v21, %v46_v33  ;;  %v117_v46 = vmul.f32 %v429_v21, %v47_v34  ;;  %v56_v28 = vld [vmem:[%s933_s0 + $0xb0] sm:$0xff] }
  0x22   :  { %v174_v47 = vadd.f32 %v465_v39, %v104_v29  ;;  %v175_v48 = vadd.f32 %v465_v39, %v105_v30  ;;  %v176_v49 = vadd.f32 %v465_v39, %v106_v31  ;;  %v177_v50 = vadd.f32 %v465_v39, %v107_v35  ;;  %v57_v29 = vld [vmem:[%s933_s0 + $0xb8] sm:$0xff] }
  0x23   :  { %v178_v51 = vadd.f32 %v465_v39, %v108_v36  ;;  %v179_v52 = vadd.f32 %v465_v39, %v109_v37  ;;  %v180_v53 = vadd.f32 %v465_v39, %v110_v38  ;;  %v181_v54 = vadd.f32 %v465_v39, %v111_v40  ;;  %v58_v38 = vld [vmem:[%s933_s0 + $0xc0] sm:$0xff] }
  0x24   :  { %v238_v55 = vmax.f32 %v174_v47, 0.0  ;;  %v239_v56 = vmax.f32 %v175_v48, 0.0  ;;  %v240_v57 = vmax.f32 %v176_v49, 0.0  ;;  %v241_v58 = vmax.f32 %v177_v50, 0.0 }
  0x25   :  { %v242_v61 = vmax.f32 %v178_v51, 0.0  ;;  %v243_v62 = vmax.f32 %v179_v52, 0.0  ;;  %v244_v63 = vmax.f32 %v180_v53, 0.0  ;;  %v245_v0 = vmax.f32 %v181_v54, 0.0  ;;  %v62_v51 = vld [vmem:[%s933_s0 + $0xe0] sm:$0xff]  ;;  %v63_v52 = vld [vmem:[%s933_s0 + $0xe8] sm:$0xff] }
  0x26   :  { %302 = vst [vmem:[%s935_s5] sm:$0xff] %v238_v55  ;;  %303 = vst [vmem:[%s935_s5 + $0x8] sm:$0xff] %v239_v56  ;;  %v182_v1 = vadd.f32 %v465_v39, %v112_v41  ;;  %v183_v2 = vadd.f32 %v465_v39, %v113_v42  ;;  %v184_v3 = vadd.f32 %v465_v39, %v114_v43 }
  0x27   :  { %304 = vst [vmem:[%s935_s5 + $0x10] sm:$0xff] %v240_v57  ;;  %305 = vst [vmem:[%s935_s5 + $0x18] sm:$0xff] %v241_v58  ;;  %v185_v4 = vadd.f32 %v465_v39, %v115_v44  ;;  %v186_v6 = vadd.f32 %v465_v39, %v116_v45  ;;  %v187_v7 = vadd.f32 %v465_v39, %v117_v46  ;;  %v59_v44 = vld [vmem:[%s933_s0 + $0xc8] sm:$0xff]  ;;  %v60_v45 = vld [vmem:[%s933_s0 + $0xd0] sm:$0xff] }
  0x28   :  { %306 = vst [vmem:[%s935_s5 + $0x20] sm:$0xff] %v242_v61  ;;  %307 = vst [vmem:[%s935_s5 + $0x28] sm:$0xff] %v243_v62  ;;  %v118_v8 = vmul.f32 %v429_v21, %v48_v59  ;;  %v119_v9 = vmul.f32 %v429_v21, %v49_v60  ;;  %v246_v13 = vmax.f32 %v182_v1, 0.0  ;;  %v247_v14 = vmax.f32 %v183_v2, 0.0  ;;  %v61_v46 = vld [vmem:[%s933_s0 + $0xd8] sm:$0xff]  ;;  %v64_v61 = vld [vmem:[%s933_s0 + $0xf0] sm:$0xff] }
  0x29   :  { %308 = vst [vmem:[%s935_s5 + $0x30] sm:$0xff] %v244_v63  ;;  %309 = vst [vmem:[%s935_s5 + $0x38] sm:$0xff] %v245_v0  ;;  %v248_v15 = vmax.f32 %v184_v3, 0.0  ;;  %v249_v16 = vmax.f32 %v185_v4, 0.0  ;;  %v250_v19 = vmax.f32 %v186_v6, 0.0  ;;  %v251_v20 = vmax.f32 %v187_v7, 0.0 }
  0x2a   :  { %v188_v22 = vadd.f32 %v465_v39, %v118_v8  ;;  %v189_v23 = vadd.f32 %v465_v39, %v119_v9  ;;  %310 = vst [vmem:[%s935_s5 + $0x40] sm:$0xff] %v246_v13  ;;  %311 = vst [vmem:[%s935_s5 + $0x48] sm:$0xff] %v247_v14  ;;  %v120_v24 = vmul.f32 %v429_v21, %v50_v5  ;;  %v65_v62 = vld [vmem:[%s933_s0 + $0xf8] sm:$0xff]  ;;  %v66_v7 = vld [vmem:[%s933_s0 + $0x100] sm:$0xff] }
  0x2b   :  { %312 = vst [vmem:[%s935_s5 + $0x50] sm:$0xff] %v248_v15  ;;  %313 = vst [vmem:[%s935_s5 + $0x58] sm:$0xff] %v249_v16  ;;  %v121_v25 = vmul.f32 %v429_v21, %v51_v10  ;;  %v122_v26 = vmul.f32 %v429_v21, %v52_v11  ;;  %v123_v27 = vmul.f32 %v429_v21, %v53_v12  ;;  %v67_v12 = vld [vmem:[%s933_s0 + $0x108] sm:$0xff]  ;;  %v68_v13 = vld [vmem:[%s933_s0 + $0x110] sm:$0xff] }
  0x2c   :  { %314 = vst [vmem:[%s935_s5 + $0x60] sm:$0xff] %v250_v19  ;;  %315 = vst [vmem:[%s935_s5 + $0x68] sm:$0xff] %v251_v20  ;;  %v252_v30 = vmax.f32 %v188_v22, 0.0  ;;  %v253_v31 = vmax.f32 %v189_v23, 0.0  ;;  %v124_v32 = vmul.f32 %v429_v21, %v54_v17  ;;  %v125_v33 = vmul.f32 %v429_v21, %v55_v18  ;;  %v69_v14 = vld [vmem:[%s933_s0 + $0x118] sm:$0xff]  ;;  %v70_v19 = vld [vmem:[%s933_s0 + $0x120] sm:$0xff] }
  0x2d   :  { %v190_v34 = vadd.f32 %v465_v39, %v120_v24  ;;  %v191_v35 = vadd.f32 %v465_v39, %v121_v25  ;;  %v192_v36 = vadd.f32 %v465_v39, %v122_v26  ;;  %v193_v37 = vadd.f32 %v465_v39, %v123_v27  ;;  %v71_v20 = vld [vmem:[%s933_s0 + $0x128] sm:$0xff] }
  0x2e   :  { %316 = vst [vmem:[%s935_s5 + $0x70] sm:$0xff] %v252_v30  ;;  %317 = vst [vmem:[%s935_s5 + $0x78] sm:$0xff] %v253_v31  ;;  %v194_v40 = vadd.f32 %v465_v39, %v124_v32  ;;  %v195_v41 = vadd.f32 %v465_v39, %v125_v33  ;;  %v126_v42 = vmul.f32 %v429_v21, %v56_v28  ;;  %v72_v30 = vld [vmem:[%s933_s0 + $0x130] sm:$0xff]  ;;  %v73_v31 = vld [vmem:[%s933_s0 + $0x138] sm:$0xff] }
  0x2f   :  { %v127_v43 = vmul.f32 %v429_v21, %v57_v29  ;;  %v254_v47 = vmax.f32 %v190_v34, 0.0  ;;  %v255_v48 = vmax.f32 %v191_v35, 0.0  ;;  %v256_v49 = vmax.f32 %v192_v36, 0.0 }
  0x30   :  { %v257_v50 = vmax.f32 %v193_v37, 0.0  ;;  %v258_v53 = vmax.f32 %v194_v40, 0.0  ;;  %v259_v54 = vmax.f32 %v195_v41, 0.0  ;;  %v196_v55 = vadd.f32 %v465_v39, %v126_v42  ;;  %v74_v41 = vld [vmem:[%s933_s0 + $0x140] sm:$0xff] }
  0x31   :  { %v197_v56 = vadd.f32 %v465_v39, %v127_v43  ;;  %318 = vst [vmem:[%s935_s5 + $0x80] sm:$0xff] %v254_v47  ;;  %319 = vst [vmem:[%s935_s5 + $0x88] sm:$0xff] %v255_v48  ;;  %v128_v57 = vmul.f32 %v429_v21, %v58_v38  ;;  %v129_v58 = vmul.f32 %v429_v21, %v59_v44  ;;  %v76_v47 = vld [vmem:[%s933_s0 + $0x150] sm:$0xff]  ;;  %v77_v48 = vld [vmem:[%s933_s0 + $0x158] sm:$0xff] }
  0x32   :  { %320 = vst [vmem:[%s935_s5 + $0x90] sm:$0xff] %v256_v49  ;;  %321 = vst [vmem:[%s935_s5 + $0x98] sm:$0xff] %v257_v50  ;;  %v130_v59 = vmul.f32 %v429_v21, %v60_v45  ;;  %v131_v60 = vmul.f32 %v429_v21, %v61_v46  ;;  %v260_v63 = vmax.f32 %v196_v55, 0.0  ;;  %v132_v1 = vmul.f32 %v429_v21, %v62_v51  ;;  %v75_v46 = vld [vmem:[%s933_s0 + $0x148] sm:$0xff] }
  0x33   :  { %322 = vst [vmem:[%s935_s5 + $0xa0] sm:$0xff] %v258_v53  ;;  %323 = vst [vmem:[%s935_s5 + $0xa8] sm:$0xff] %v259_v54  ;;  %v261_v0 = vmax.f32 %v197_v56, 0.0  ;;  %v133_v2 = vmul.f32 %v429_v21, %v63_v52  ;;  %v198_v3 = vadd.f32 %v465_v39, %v128_v57  ;;  %v199_v4 = vadd.f32 %v465_v39, %v129_v58  ;;  %v78_v53 = vld [vmem:[%s933_s0 + $0x160] sm:$0xff]  ;;  %v79_v54 = vld [vmem:[%s933_s0 + $0x168] sm:$0xff] }
  0x34   :  { %v200_v5 = vadd.f32 %v465_v39, %v130_v59  ;;  %v201_v6 = vadd.f32 %v465_v39, %v131_v60  ;;  %324 = vst [vmem:[%s935_s5 + $0xb0] sm:$0xff] %v260_v63  ;;  %v202_v8 = vadd.f32 %v465_v39, %v132_v1  ;;  %v134_v10 = vmul.f32 %v429_v21, %v64_v61  ;;  %v80_v63 = vld [vmem:[%s933_s0 + $0x170] sm:$0xff] }
  0x35   :  { %325 = vst [vmem:[%s935_s5 + $0xb8] sm:$0xff] %v261_v0  ;;  %v203_v9 = vadd.f32 %v465_v39, %v133_v2  ;;  %v135_v11 = vmul.f32 %v429_v21, %v65_v62  ;;  %v262_v15 = vmax.f32 %v198_v3, 0.0  ;;  %v263_v16 = vmax.f32 %v199_v4, 0.0  ;;  %v81_v0 = vld [vmem:[%s933_s0 + $0x178] sm:$0xff] }
  0x36   :  { %v264_v17 = vmax.f32 %v200_v5, 0.0  ;;  %v265_v18 = vmax.f32 %v201_v6, 0.0  ;;  %v266_v22 = vmax.f32 %v202_v8, 0.0  ;;  %v204_v24 = vadd.f32 %v465_v39, %v134_v10 }
  0x37   :  { %v267_v23 = vmax.f32 %v203_v9, 0.0  ;;  %v205_v25 = vadd.f32 %v465_v39, %v135_v11  ;;  %326 = vst [vmem:[%s935_s5 + $0xc0] sm:$0xff] %v262_v15  ;;  %327 = vst [vmem:[%s935_s5 + $0xc8] sm:$0xff] %v263_v16  ;;  %v136_v26 = vmul.f32 %v429_v21, %v66_v7  ;;  %v137_v27 = vmul.f32 %v429_v21, %v67_v12  ;;  %v82_v9 = vld [vmem:[%s933_s0 + $0x180] sm:$0xff]  ;;  %v84_v15 = vld [vmem:[%s933_s0 + $0x190] sm:$0xff] }
  0x38   :  { %328 = vst [vmem:[%s935_s5 + $0xd0] sm:$0xff] %v264_v17  ;;  %329 = vst [vmem:[%s935_s5 + $0xd8] sm:$0xff] %v265_v18  ;;  %v138_v28 = vmul.f32 %v429_v21, %v68_v13  ;;  %v139_v29 = vmul.f32 %v429_v21, %v69_v14  ;;  %v268_v32 = vmax.f32 %v204_v24, 0.0  ;;  %v140_v34 = vmul.f32 %v429_v21, %v70_v19  ;;  %v83_v14 = vld [vmem:[%s933_s0 + $0x188] sm:$0xff]  ;;  %v85_v16 = vld [vmem:[%s933_s0 + $0x198] sm:$0xff] }
  0x39   :  { %330 = vst [vmem:[%s935_s5 + $0xe0] sm:$0xff] %v266_v22  ;;  %331 = vst [vmem:[%s935_s5 + $0xe8] sm:$0xff] %v267_v23  ;;  %v269_v33 = vmax.f32 %v205_v25, 0.0  ;;  %v141_v35 = vmul.f32 %v429_v21, %v71_v20  ;;  %v206_v36 = vadd.f32 %v465_v39, %v136_v26  ;;  %v207_v37 = vadd.f32 %v465_v39, %v137_v27  ;;  %v86_v22 = vld [vmem:[%s933_s0 + $0x1a0] sm:$0xff]  ;;  %v87_v23 = vld [vmem:[%s933_s0 + $0x1a8] sm:$0xff] }
  0x3a   :  { %v208_v38 = vadd.f32 %v465_v39, %v138_v28  ;;  %v209_v40 = vadd.f32 %v465_v39, %v139_v29  ;;  %332 = vst [vmem:[%s935_s5 + $0xf0] sm:$0xff] %v268_v32  ;;  %v210_v42 = vadd.f32 %v465_v39, %v140_v34  ;;  %v142_v44 = vmul.f32 %v429_v21, %v72_v30  ;;  %v88_v32 = vld [vmem:[%s933_s0 + $0x1b0] sm:$0xff] }
  0x3b   :  { %333 = vst [vmem:[%s935_s5 + $0xf8] sm:$0xff] %v269_v33  ;;  %v211_v43 = vadd.f32 %v465_v39, %v141_v35  ;;  %v143_v45 = vmul.f32 %v429_v21, %v73_v31  ;;  %v270_v49 = vmax.f32 %v206_v36, 0.0  ;;  %v271_v50 = vmax.f32 %v207_v37, 0.0  ;;  %v89_v33 = vld [vmem:[%s933_s0 + $0x1b8] sm:$0xff] }
  0x3c   :  { %v272_v51 = vmax.f32 %v208_v38, 0.0  ;;  %v273_v52 = vmax.f32 %v209_v40, 0.0  ;;  %v274_v55 = vmax.f32 %v210_v42, 0.0  ;;  %v212_v57 = vadd.f32 %v465_v39, %v142_v44 }
  0x3d   :  { %v275_v56 = vmax.f32 %v211_v43, 0.0  ;;  %v213_v58 = vadd.f32 %v465_v39, %v143_v45  ;;  %334 = vst [vmem:[%s935_s5 + $0x100] sm:$0xff] %v270_v49  ;;  %335 = vst [vmem:[%s935_s5 + $0x108] sm:$0xff] %v271_v50  ;;  %v144_v59 = vmul.f32 %v429_v21, %v74_v41  ;;  %v145_v60 = vmul.f32 %v429_v21, %v75_v46  ;;  %v90_v43 = vld [vmem:[%s933_s0 + $0x1c0] sm:$0xff]  ;;  %v92_v49 = vld [vmem:[%s933_s0 + $0x1d0] sm:$0xff] }
  0x3e   :  { %336 = vst [vmem:[%s935_s5 + $0x110] sm:$0xff] %v272_v51  ;;  %337 = vst [vmem:[%s935_s5 + $0x118] sm:$0xff] %v273_v52  ;;  %v146_v61 = vmul.f32 %v429_v21, %v76_v47  ;;  %v147_v62 = vmul.f32 %v429_v21, %v77_v48  ;;  %v276_v1 = vmax.f32 %v212_v57, 0.0  ;;  %v148_v3 = vmul.f32 %v429_v21, %v78_v53  ;;  %v91_v48 = vld [vmem:[%s933_s0 + $0x1c8] sm:$0xff]  ;;  %v93_v50 = vld [vmem:[%s933_s0 + $0x1d8] sm:$0xff] }
  0x3f   :  { %338 = vst [vmem:[%s935_s5 + $0x120] sm:$0xff] %v274_v55  ;;  %339 = vst [vmem:[%s935_s5 + $0x128] sm:$0xff] %v275_v56  ;;  %v277_v2 = vmax.f32 %v213_v58, 0.0  ;;  %v149_v4 = vmul.f32 %v429_v21, %v79_v54  ;;  %v214_v5 = vadd.f32 %v465_v39, %v144_v59  ;;  %v215_v6 = vadd.f32 %v465_v39, %v145_v60  ;;  %v94_v55 = vld [vmem:[%s933_s0 + $0x1e0] sm:$0xff]  ;;  %v95_v56 = vld [vmem:[%s933_s0 + $0x1e8] sm:$0xff] }
  0x40   :  { %v216_v7 = vadd.f32 %v465_v39, %v146_v61  ;;  %v217_v8 = vadd.f32 %v465_v39, %v147_v62  ;;  %340 = vst [vmem:[%s935_s5 + $0x130] sm:$0xff] %v276_v1  ;;  %v218_v10 = vadd.f32 %v465_v39, %v148_v3  ;;  %v150_v12 = vmul.f32 %v429_v21, %v80_v63  ;;  %v96_v1 = vld [vmem:[%s933_s0 + $0x1f0] sm:$0xff] }
  0x41   :  { %341 = vst [vmem:[%s935_s5 + $0x138] sm:$0xff] %v277_v2  ;;  %v219_v11 = vadd.f32 %v465_v39, %v149_v4  ;;  %v151_v13 = vmul.f32 %v429_v21, %v81_v0  ;;  %v278_v17 = vmax.f32 %v214_v5, 0.0  ;;  %v279_v18 = vmax.f32 %v215_v6, 0.0  ;;  %v97_v2 = vld [vmem:[%s933_s0 + $0x1f8] sm:$0xff] }
  0x42   :  { %v280_v19 = vmax.f32 %v216_v7, 0.0  ;;  %v281_v20 = vmax.f32 %v217_v8, 0.0  ;;  %v282_v24 = vmax.f32 %v218_v10, 0.0  ;;  %v220_v26 = vadd.f32 %v465_v39, %v150_v12 }
  0x43   :  { %v283_v25 = vmax.f32 %v219_v11, 0.0  ;;  %v221_v27 = vadd.f32 %v465_v39, %v151_v13  ;;  %342 = vst [vmem:[%s935_s5 + $0x140] sm:$0xff] %v278_v17  ;;  %343 = vst [vmem:[%s935_s5 + $0x148] sm:$0xff] %v279_v18  ;;  %v152_v28 = vmul.f32 %v429_v21, %v82_v9  ;;  %v153_v29 = vmul.f32 %v429_v21, %v83_v14 }
  0x44   :  { %344 = vst [vmem:[%s935_s5 + $0x150] sm:$0xff] %v280_v19  ;;  %345 = vst [vmem:[%s935_s5 + $0x158] sm:$0xff] %v281_v20  ;;  %v154_v30 = vmul.f32 %v429_v21, %v84_v15  ;;  %v155_v31 = vmul.f32 %v429_v21, %v85_v16  ;;  %v284_v34 = vmax.f32 %v220_v26, 0.0  ;;  %v156_v36 = vmul.f32 %v429_v21, %v86_v22 }
  0x45   :  { %346 = vst [vmem:[%s935_s5 + $0x160] sm:$0xff] %v282_v24  ;;  %347 = vst [vmem:[%s935_s5 + $0x168] sm:$0xff] %v283_v25  ;;  %v285_v35 = vmax.f32 %v221_v27, 0.0  ;;  %v157_v37 = vmul.f32 %v429_v21, %v87_v23  ;;  %v222_v38 = vadd.f32 %v465_v39, %v152_v28  ;;  %v223_v40 = vadd.f32 %v465_v39, %v153_v29 }
  0x46   :  { %v224_v41 = vadd.f32 %v465_v39, %v154_v30  ;;  %v225_v42 = vadd.f32 %v465_v39, %v155_v31  ;;  %348 = vst [vmem:[%s935_s5 + $0x170] sm:$0xff] %v284_v34  ;;  %v226_v44 = vadd.f32 %v465_v39, %v156_v36  ;;  %v158_v46 = vmul.f32 %v429_v21, %v88_v32 }
  0x47   :  { %349 = vst [vmem:[%s935_s5 + $0x178] sm:$0xff] %v285_v35  ;;  %v227_v45 = vadd.f32 %v465_v39, %v157_v37  ;;  %v159_v47 = vmul.f32 %v429_v21, %v89_v33  ;;  %v286_v51 = vmax.f32 %v222_v38, 0.0  ;;  %v287_v52 = vmax.f32 %v223_v40, 0.0 }
  0x48   :  { %v288_v53 = vmax.f32 %v224_v41, 0.0  ;;  %v289_v54 = vmax.f32 %v225_v42, 0.0  ;;  %v290_v57 = vmax.f32 %v226_v44, 0.0  ;;  %v228_v59 = vadd.f32 %v465_v39, %v158_v46 }
  0x49   :  { %v291_v58 = vmax.f32 %v227_v45, 0.0  ;;  %v229_v60 = vadd.f32 %v465_v39, %v159_v47  ;;  %350 = vst [vmem:[%s935_s5 + $0x180] sm:$0xff] %v286_v51  ;;  %351 = vst [vmem:[%s935_s5 + $0x188] sm:$0xff] %v287_v52  ;;  %v160_v61 = vmul.f32 %v429_v21, %v90_v43  ;;  %v161_v62 = vmul.f32 %v429_v21, %v91_v48 }
  0x4a   :  { %352 = vst [vmem:[%s935_s5 + $0x190] sm:$0xff] %v288_v53  ;;  %353 = vst [vmem:[%s935_s5 + $0x198] sm:$0xff] %v289_v54  ;;  %v162_v63 = vmul.f32 %v429_v21, %v92_v49  ;;  %v163_v0 = vmul.f32 %v429_v21, %v93_v50  ;;  %v292_v3 = vmax.f32 %v228_v59, 0.0  ;;  %v164_v5 = vmul.f32 %v429_v21, %v94_v55 }
  0x4b   :  { %354 = vst [vmem:[%s935_s5 + $0x1a0] sm:$0xff] %v290_v57  ;;  %355 = vst [vmem:[%s935_s5 + $0x1a8] sm:$0xff] %v291_v58  ;;  %v293_v4 = vmax.f32 %v229_v60, 0.0  ;;  %v165_v6 = vmul.f32 %v429_v21, %v95_v56  ;;  %v230_v7 = vadd.f32 %v465_v39, %v160_v61  ;;  %v231_v8 = vadd.f32 %v465_v39, %v161_v62 }
  0x4c   :  { %v232_v9 = vadd.f32 %v465_v39, %v162_v63  ;;  %v233_v10 = vadd.f32 %v465_v39, %v163_v0  ;;  %356 = vst [vmem:[%s935_s5 + $0x1b0] sm:$0xff] %v292_v3  ;;  %v234_v11 = vadd.f32 %v465_v39, %v164_v5  ;;  %v166_v13 = vmul.f32 %v429_v21, %v96_v1 }
  0x4d   :  { %357 = vst [vmem:[%s935_s5 + $0x1b8] sm:$0xff] %v293_v4  ;;  %v235_v12 = vadd.f32 %v465_v39, %v165_v6  ;;  %v167_v14 = vmul.f32 %v429_v21, %v97_v2  ;;  %v294_v15 = vmax.f32 %v230_v7, 0.0  ;;  %v295_v16 = vmax.f32 %v231_v8, 0.0 }
  0x4e   :  { %v296_v17 = vmax.f32 %v232_v9, 0.0  ;;  %v297_v18 = vmax.f32 %v233_v10, 0.0  ;;  %v298_v19 = vmax.f32 %v234_v11, 0.0  ;;  %v236_v22 = vadd.f32 %v465_v39, %v166_v13 }
  0x4f   :  { %v299_v20 = vmax.f32 %v235_v12, 0.0  ;;  %v237_v23 = vadd.f32 %v465_v39, %v167_v14  ;;  %358 = vst [vmem:[%s935_s5 + $0x1c0] sm:$0xff] %v294_v15  ;;  %359 = vst [vmem:[%s935_s5 + $0x1c8] sm:$0xff] %v295_v16 }
  0x50   :  { %360 = vst [vmem:[%s935_s5 + $0x1d0] sm:$0xff] %v296_v17  ;;  %361 = vst [vmem:[%s935_s5 + $0x1d8] sm:$0xff] %v297_v18  ;;  %v300_v21 = vmax.f32 %v236_v22, 0.0 }
  0x51   :  { %362 = vst [vmem:[%s935_s5 + $0x1e0] sm:$0xff] %v298_v19  ;;  %363 = vst [vmem:[%s935_s5 + $0x1e8] sm:$0xff] %v299_v20  ;;  %v301_v39 = vmax.f32 %v237_v23, 0.0 }
  0x52   :  { %364 = vst [vmem:[%s935_s5 + $0x1f0] sm:$0xff] %v300_v21 }
  0x53   :  { %365 = vst [vmem:[%s935_s5 + $0x1f8] sm:$0xff] %v301_v39 }

// kernel: resnet_generator_forward.47
= control target key start
LH: loop header
LB: loop body
LE: loop exit
PB: predicated region body
PF: predicated region fallthrough
CT: control target
= control target key end

     0   :  { %v1596_v0 = vmov 0   ;;  %s2429_s1 = inlined_call_operand.vmem [shape: bf16[256,128], index: 1, kind: input, shape index: {}]   ;;  %s2430_s0 = inlined_call_operand.vmem [shape: bf16[512,256], index: 0, kind: input, shape index: {}]   ;;  %s2431_s2 = inlined_call_operand.vmem [shape: f32[512,128], index: 2, kind: output, shape index: {0}]   ;;  %s2432_s3 = inlined_call_operand.vmem [shape: f32[1,128], index: 3, kind: output, shape index: {1}]   ;;  %s2433_s4 = inlined_call_operand.vmem [shape: f32[1,128], index: 4, kind: output, shape index: {2}]  }
   0x1   :  { %666 = vmatprep.subr.bf16.mxu0 %v1596_v0  ;;  %v1484_v1 = vld [vmem:[%s2429_s1 + $0x38] sm:$0xff]   ;;  %1450 = vmatprep.subr.bf16.mxu1 %v1596_v0  ;;  %v1485_v2 = vld [vmem:[%s2429_s1 + $0x30] sm:$0xff]   ;;  %v1486_v3 = vld [vmem:[%s2429_s1 + $0x28] sm:$0xff]  }
   0x2   :  { %667 = vmatpush1.bf16.msra.mxu0 %v1484_v1  ;;  %1466 = vmatpush1.bf16.msra.mxu1 %v1484_v1  ;;  %v1487_v4 = vld [vmem:[%s2429_s1 + $0x20] sm:$0xff]   ;;  %v1488_v5 = vld [vmem:[%s2429_s1 + $0x18] sm:$0xff]   ;;  %v1489_v7 = vld [vmem:[%s2429_s1 + $0x10] sm:$0xff]  }
   0x3   :  { %668 = vmatprep.subr.bf16.mxu0 %v1596_v0  ;;  %1451 = vmatprep.subr.bf16.mxu1 %v1596_v0  ;;  %v1502_v6 = vld [vmem:[%s2430_s0 + $0x4] ss:$8 sps:$4 sm:$0xff]   ;;  %v1492_v11 = vld [vmem:[%s2429_s1 + $0x78] sm:$0xff]   ;;  %v1493_v12 = vld [vmem:[%s2429_s1 + $0x70] sm:$0xff]  }
   0x4   :  { %698 = vmatprep.mubr.bf16.mxu0 %v1502_v6  ;;  %v1490_v8 = vld [vmem:[%s2429_s1 + $0x8] sm:$0xff]   ;;  %v1491_v9 = vld [vmem:[%s2429_s1] sm:$0xff]   ;;  %v1496_v15 = vld [vmem:[%s2429_s1 + $0x58] sm:$0xff]  }
   0x5   :  { %v1526_v10 = vld [vmem:[%s2430_s0 + $0x104] ss:$8 sps:$4 sm:$0xff]   ;;  %v1497_v16 = vld [vmem:[%s2429_s1 + $0x50] sm:$0xff]   ;;  %v1500_v19 = vld [vmem:[%s2430_s0] ss:$8 sps:$4 sm:$0xff]  }
   0x6   :  { %669 = vmatpush1.bf16.msra.mxu0 %v1485_v2  ;;  %1467 = vmatpush1.bf16.msra.mxu1 %v1485_v2  ;;  %v1494_v13 = vld [vmem:[%s2429_s1 + $0x68] sm:$0xff]   ;;  %v1495_v14 = vld [vmem:[%s2429_s1 + $0x60] sm:$0xff]   ;;  %v1503_v21 = vld [vmem:[%s2430_s0 + $0x14] ss:$8 sps:$4 sm:$0xff]  }
   0x7   :  { %670 = vmatprep.subr.bf16.mxu0 %v1596_v0  ;;  %1452 = vmatprep.subr.bf16.mxu1 %v1596_v0  ;;  %v1498_v17 = vld [vmem:[%s2429_s1 + $0x48] sm:$0xff]   ;;  %v1499_v18 = vld [vmem:[%s2429_s1 + $0x40] sm:$0xff]   ;;  %v1530_v22 = vld [vmem:[%s2430_s0 + $0x114] ss:$8 sps:$4 sm:$0xff]  }
   0x8   :  { %826 = vmatprep.mubr.bf16.mxu1 %v1526_v10  ;;  %v1524_v20 = vld [vmem:[%s2430_s0 + $0x100] ss:$8 sps:$4 sm:$0xff]   ;;  %v1505_v23 = vld [vmem:[%s2430_s0 + $0x10] ss:$8 sps:$4 sm:$0xff]   ;;  %v1506_v25 = vld [vmem:[%s2430_s0 + $0x24] ss:$8 sps:$4 sm:$0xff]  }
   0x9   :  { %v1532_v24 = vld [vmem:[%s2430_s0 + $0x110] ss:$8 sps:$4 sm:$0xff]   ;;  %v1536_v26 = vld [vmem:[%s2430_s0 + $0x124] ss:$8 sps:$4 sm:$0xff]   ;;  %v1508_v27 = vld [vmem:[%s2430_s0 + $0x20] ss:$8 sps:$4 sm:$0xff]  }
   0xa   :  { %671 = vmatpush1.bf16.msra.mxu0 %v1486_v3  ;;  %1468 = vmatpush1.bf16.msra.mxu1 %v1486_v3  ;;  %v1538_v28 = vld [vmem:[%s2430_s0 + $0x120] ss:$8 sps:$4 sm:$0xff]   ;;  %v1509_v29 = vld [vmem:[%s2430_s0 + $0x34] ss:$8 sps:$4 sm:$0xff]   ;;  %v1511_v31 = vld [vmem:[%s2430_s0 + $0x30] ss:$8 sps:$4 sm:$0xff]  }
   0xb   :  { %672 = vmatprep.subr.bf16.mxu0 %v1596_v0  ;;  %1453 = vmatprep.subr.bf16.mxu1 %v1596_v0  ;;  %v1542_v30 = vld [vmem:[%s2430_s0 + $0x134] ss:$8 sps:$4 sm:$0xff]   ;;  %v1544_v32 = vld [vmem:[%s2430_s0 + $0x130] ss:$8 sps:$4 sm:$0xff]   ;;  %v1512_v33 = vld [vmem:[%s2430_s0 + $0x44] ss:$8 sps:$4 sm:$0xff]  }
   0xc   :  { %v1548_v34 = vld [vmem:[%s2430_s0 + $0x144] ss:$8 sps:$4 sm:$0xff]   ;;  %v1514_v35 = vld [vmem:[%s2430_s0 + $0x40] ss:$8 sps:$4 sm:$0xff]   ;;  %v1515_v37 = vld [vmem:[%s2430_s0 + $0x54] ss:$8 sps:$4 sm:$0xff]  }
   0xd   :  { %v1550_v36 = vld [vmem:[%s2430_s0 + $0x140] ss:$8 sps:$4 sm:$0xff]   ;;  %v1554_v38 = vld [vmem:[%s2430_s0 + $0x154] ss:$8 sps:$4 sm:$0xff]   ;;  %v1517_v39 = vld [vmem:[%s2430_s0 + $0x50] ss:$8 sps:$4 sm:$0xff]  }
   0xe   :  { %673 = vmatpush1.bf16.msra.mxu0 %v1487_v4  ;;  %1469 = vmatpush1.bf16.msra.mxu1 %v1487_v4  ;;  %v1556_v40 = vld [vmem:[%s2430_s0 + $0x150] ss:$8 sps:$4 sm:$0xff]   ;;  %v1518_v41 = vld [vmem:[%s2430_s0 + $0x64] ss:$8 sps:$4 sm:$0xff]   ;;  %v1520_v43 = vld [vmem:[%s2430_s0 + $0x60] ss:$8 sps:$4 sm:$0xff]  }
   0xf   :  { %674 = vmatprep.subr.bf16.mxu0 %v1596_v0  ;;  %1454 = vmatprep.subr.bf16.mxu1 %v1596_v0  ;;  %v1560_v42 = vld [vmem:[%s2430_s0 + $0x164] ss:$8 sps:$4 sm:$0xff]   ;;  %v1562_v44 = vld [vmem:[%s2430_s0 + $0x160] ss:$8 sps:$4 sm:$0xff]   ;;  %v1521_v45 = vld [vmem:[%s2430_s0 + $0x74] ss:$8 sps:$4 sm:$0xff]  }
  0x10   :  { %v1566_v46 = vld [vmem:[%s2430_s0 + $0x174] ss:$8 sps:$4 sm:$0xff]   ;;  %v1523_v47 = vld [vmem:[%s2430_s0 + $0x70] ss:$8 sps:$4 sm:$0xff]   ;;  %v1527_v49 = vld [vmem:[%s2430_s0 + $0x84] ss:$8 sps:$4 sm:$0xff]  }
  0x11   :  { %v1568_v48 = vld [vmem:[%s2430_s0 + $0x170] ss:$8 sps:$4 sm:$0xff]   ;;  %v1572_v50 = vld [vmem:[%s2430_s0 + $0x184] ss:$8 sps:$4 sm:$0xff]   ;;  %v1529_v51 = vld [vmem:[%s2430_s0 + $0x80] ss:$8 sps:$4 sm:$0xff]  }
  0x12   :  { %675 = vmatpush1.bf16.msra.mxu0 %v1488_v5  ;;  %1470 = vmatpush1.bf16.msra.mxu1 %v1488_v5  ;;  %v1574_v52 = vld [vmem:[%s2430_s0 + $0x180] ss:$8 sps:$4 sm:$0xff]   ;;  %v1533_v53 = vld [vmem:[%s2430_s0 + $0x94] ss:$8 sps:$4 sm:$0xff]   ;;  %v1535_v55 = vld [vmem:[%s2430_s0 + $0x90] ss:$8 sps:$4 sm:$0xff]  }
  0x13   :  { %676 = vmatprep.subr.bf16.mxu0 %v1596_v0  ;;  %1455 = vmatprep.subr.bf16.mxu1 %v1596_v0  ;;  %v1575_v54 = vld [vmem:[%s2430_s0 + $0x194] ss:$8 sps:$4 sm:$0xff]   ;;  %v1577_v56 = vld [vmem:[%s2430_s0 + $0x190] ss:$8 sps:$4 sm:$0xff]   ;;  %v1539_v57 = vld [vmem:[%s2430_s0 + $0xa4] ss:$8 sps:$4 sm:$0xff]  }
  0x14   :  { %v1578_v58 = vld [vmem:[%s2430_s0 + $0x1a4] ss:$8 sps:$4 sm:$0xff]   ;;  %v1541_v59 = vld [vmem:[%s2430_s0 + $0xa0] ss:$8 sps:$4 sm:$0xff]   ;;  %v1545_v61 = vld [vmem:[%s2430_s0 + $0xb4] ss:$8 sps:$4 sm:$0xff]  }
  0x15   :  { %v1580_v60 = vld [vmem:[%s2430_s0 + $0x1a0] ss:$8 sps:$4 sm:$0xff]   ;;  %v1581_v62 = vld [vmem:[%s2430_s0 + $0x1b4] ss:$8 sps:$4 sm:$0xff]   ;;  %v1547_v63 = vld [vmem:[%s2430_s0 + $0xb0] ss:$8 sps:$4 sm:$0xff]  }
  0x16   :  { %677 = vmatpush1.bf16.msra.mxu0 %v1489_v7  ;;  %1471 = vmatpush1.bf16.msra.mxu1 %v1489_v7  ;;  %v1551_v1 = vld [vmem:[%s2430_s0 + $0xc4] ss:$8 sps:$4 sm:$0xff]   ;;  %v1553_v3 = vld [vmem:[%s2430_s0 + $0xc0] ss:$8 sps:$4 sm:$0xff]   ;;  %v1557_v5 = vld [vmem:[%s2430_s0 + $0xd4] ss:$8 sps:$4 sm:$0xff]  }
  0x17   :  { %678 = vmatprep.subr.bf16.mxu0 %v1596_v0  ;;  %1456 = vmatprep.subr.bf16.mxu1 %v1596_v0  ;;  %v1584_v2 = vld [vmem:[%s2430_s0 + $0x1c4] ss:$8 sps:$4 sm:$0xff]   ;;  %v1586_v4 = vld [vmem:[%s2430_s0 + $0x1c0] ss:$8 sps:$4 sm:$0xff]   ;;  %v1587_v6 = vld [vmem:[%s2430_s0 + $0x1d4] ss:$8 sps:$4 sm:$0xff]  }
  0x18   :  { %v1559_v7 = vld [vmem:[%s2430_s0 + $0xd0] ss:$8 sps:$4 sm:$0xff]   ;;  %v1590_v10 = vld [vmem:[%s2430_s0 + $0x1e4] ss:$8 sps:$4 sm:$0xff]  }
  0x1a   :  { %679 = vmatpush1.bf16.msra.mxu0 %v1490_v8  ;;  %1472 = vmatpush1.bf16.msra.mxu1 %v1490_v8  ;;  %v1589_v8 = vld [vmem:[%s2430_s0 + $0x1d0] ss:$8 sps:$4 sm:$0xff]  }
  0x1b   :  { %680 = vmatprep.subr.bf16.mxu0 %v1596_v0  ;;  %1457 = vmatprep.subr.bf16.mxu1 %v1596_v0 }
  0x1e   :  { %681 = vmatpush1.bf16.msra.mxu0 %v1491_v9  ;;  %1473 = vmatpush1.bf16.msra.mxu1 %v1491_v9  ;;  %v1563_v9 = vld [vmem:[%s2430_s0 + $0xe4] ss:$8 sps:$4 sm:$0xff]  }
  0x1f   :  { %682 = vmatprep.subr.bf16.mxu0 %v1596_v0  ;;  %1458 = vmatprep.subr.bf16.mxu1 %v1596_v0 }
  0x22   :  { %683 = vmatpush2.bf16.msra.mxu0 %v1492_v11  ;;  %1474 = vmatpush2.bf16.msra.mxu1 %v1492_v11  ;;  %v1565_v11 = vld [vmem:[%s2430_s0 + $0xe0] ss:$8 sps:$4 sm:$0xff]  }
  0x23   :  { %684 = vmatprep.subr.bf16.mxu0 %v1596_v0  ;;  %1459 = vmatprep.subr.bf16.mxu1 %v1596_v0 }
  0x26   :  { %685 = vmatpush2.bf16.msra.mxu0 %v1493_v12  ;;  %1475 = vmatpush2.bf16.msra.mxu1 %v1493_v12  ;;  %v1592_v12 = vld [vmem:[%s2430_s0 + $0x1e0] ss:$8 sps:$4 sm:$0xff]  }
  0x27   :  { %686 = vmatprep.subr.bf16.mxu0 %v1596_v0  ;;  %1460 = vmatprep.subr.bf16.mxu1 %v1596_v0 }
  0x2a   :  { %687 = vmatpush2.bf16.msra.mxu0 %v1494_v13  ;;  %1476 = vmatpush2.bf16.msra.mxu1 %v1494_v13  ;;  %v1569_v13 = vld [vmem:[%s2430_s0 + $0xf4] ss:$8 sps:$4 sm:$0xff]  }
  0x2b   :  { %688 = vmatprep.subr.bf16.mxu0 %v1596_v0  ;;  %1461 = vmatprep.subr.bf16.mxu1 %v1596_v0 }
  0x2e   :  { %689 = vmatpush2.bf16.msra.mxu0 %v1495_v14  ;;  %1477 = vmatpush2.bf16.msra.mxu1 %v1495_v14  ;;  %v1593_v14 = vld [vmem:[%s2430_s0 + $0x1f4] ss:$8 sps:$4 sm:$0xff]  }
  0x2f   :  { %690 = vmatprep.subr.bf16.mxu0 %v1596_v0  ;;  %1462 = vmatprep.subr.bf16.mxu1 %v1596_v0 }
  0x32   :  { %691 = vmatpush2.bf16.msra.mxu0 %v1496_v15  ;;  %1478 = vmatpush2.bf16.msra.mxu1 %v1496_v15  ;;  %v1571_v15 = vld [vmem:[%s2430_s0 + $0xf0] ss:$8 sps:$4 sm:$0xff]  }
  0x33   :  { %692 = vmatprep.subr.bf16.mxu0 %v1596_v0  ;;  %1463 = vmatprep.subr.bf16.mxu1 %v1596_v0 }
  0x36   :  { %693 = vmatpush2.bf16.msra.mxu0 %v1497_v16  ;;  %1479 = vmatpush2.bf16.msra.mxu1 %v1497_v16  ;;  %v1595_v16 = vld [vmem:[%s2430_s0 + $0x1f0] ss:$8 sps:$4 sm:$0xff]  }
  0x37   :  { %694 = vmatprep.subr.bf16.mxu0 %v1596_v0  ;;  %1464 = vmatprep.subr.bf16.mxu1 %v1596_v0 }
  0x3a   :  { %695 = vmatpush2.bf16.msra.mxu0 %v1498_v17  ;;  %1480 = vmatpush2.bf16.msra.mxu1 %v1498_v17 }
  0x3b   :  { %696 = vmatprep.subr.bf16.mxu0 %v1596_v0  ;;  %1465 = vmatprep.subr.bf16.mxu1 %v1596_v0  ;;  %v1583_v0 = vld [vmem:[%s2430_s0 + $0x1b0] ss:$8 sps:$4 sm:$0xff]  }
  0x3e   :  { %697 = vmatpush2.bf16.msra.mxu0 %v1499_v18  ;;  %1481 = vmatpush2.bf16.msra.mxu1 %v1499_v18 }
  0x41   :  { %699 = vmatmul.mubr.bf16.vlgmr.msra.gmra.mxu0 %v1500_v19  ;;  %827 = vmatmul.mubr.bf16.vlgmr.msra.gmra.mxu1 %v1524_v20 }
  0x42   :  { %706 = vmatprep.mubr.bf16.mxu0 %v1503_v21  ;;  %834 = vmatprep.mubr.bf16.mxu1 %v1530_v22 }
  0x49   :  { %707 = vmatmul.mubr.bf16.gmra.mxu0 %v1505_v23  ;;  %835 = vmatmul.mubr.bf16.gmra.mxu1 %v1532_v24 }
  0x4a   :  { %714 = vmatprep.mubr.bf16.mxu0 %v1506_v25  ;;  %842 = vmatprep.mubr.bf16.mxu1 %v1536_v26 }
  0x51   :  { %715 = vmatmul.mubr.bf16.gmra.mxu0 %v1508_v27  ;;  %843 = vmatmul.mubr.bf16.gmra.mxu1 %v1538_v28 }
  0x52   :  { %722 = vmatprep.mubr.bf16.mxu0 %v1509_v29  ;;  %850 = vmatprep.mubr.bf16.mxu1 %v1542_v30 }
  0x59   :  { %723 = vmatmul.mubr.bf16.gmra.mxu0 %v1511_v31  ;;  %851 = vmatmul.mubr.bf16.gmra.mxu1 %v1544_v32 }
  0x5a   :  { %730 = vmatprep.mubr.bf16.mxu0 %v1512_v33  ;;  %858 = vmatprep.mubr.bf16.mxu1 %v1548_v34 }
  0x61   :  { %731 = vmatmul.mubr.bf16.gmra.mxu0 %v1514_v35  ;;  %859 = vmatmul.mubr.bf16.gmra.mxu1 %v1550_v36 }
  0x62   :  { %738 = vmatprep.mubr.bf16.mxu0 %v1515_v37  ;;  %866 = vmatprep.mubr.bf16.mxu1 %v1554_v38 }
  0x69   :  { %739 = vmatmul.mubr.bf16.gmra.mxu0 %v1517_v39  ;;  %867 = vmatmul.mubr.bf16.gmra.mxu1 %v1556_v40 }
  0x6a   :  { %746 = vmatprep.mubr.bf16.mxu0 %v1518_v41  ;;  %874 = vmatprep.mubr.bf16.mxu1 %v1560_v42 }
  0x71   :  { %747 = vmatmul.mubr.bf16.gmra.mxu0 %v1520_v43  ;;  %875 = vmatmul.mubr.bf16.gmra.mxu1 %v1562_v44 }
  0x72   :  { %754 = vmatprep.mubr.bf16.mxu0 %v1521_v45  ;;  %882 = vmatprep.mubr.bf16.mxu1 %v1566_v46 }
  0x79   :  { %755 = vmatmul.mubr.bf16.gmra.mxu0 %v1523_v47  ;;  %883 = vmatmul.mubr.bf16.gmra.mxu1 %v1568_v48 }
  0x7a   :  { %762 = vmatprep.mubr.bf16.mxu0 %v1527_v49  ;;  %890 = vmatprep.mubr.bf16.mxu1 %v1572_v50 }
  0x81   :  { %763 = vmatmul.mubr.bf16.gmra.mxu0 %v1529_v51  ;;  %891 = vmatmul.mubr.bf16.gmra.mxu1 %v1574_v52 }
  0x82   :  { %770 = vmatprep.mubr.bf16.mxu0 %v1533_v53  ;;  %898 = vmatprep.mubr.bf16.mxu1 %v1575_v54 }
  0x89   :  { %771 = vmatmul.mubr.bf16.gmra.mxu0 %v1535_v55  ;;  %899 = vmatmul.mubr.bf16.gmra.mxu1 %v1577_v56 }
  0x8a   :  { %778 = vmatprep.mubr.bf16.mxu0 %v1539_v57  ;;  %906 = vmatprep.mubr.bf16.mxu1 %v1578_v58 }
  0x91   :  { %779 = vmatmul.mubr.bf16.gmra.mxu0 %v1541_v59  ;;  %907 = vmatmul.mubr.bf16.gmra.mxu1 %v1580_v60 }
  0x92   :  { %786 = vmatprep.mubr.bf16.mxu0 %v1545_v61  ;;  %914 = vmatprep.mubr.bf16.mxu1 %v1581_v62 }
  0x99   :  { %787 = vmatmul.mubr.bf16.gmra.mxu0 %v1547_v63  ;;  %915 = vmatmul.mubr.bf16.gmra.mxu1 %v1583_v0 }
  0x9a   :  { %794 = vmatprep.mubr.bf16.mxu0 %v1551_v1  ;;  %922 = vmatprep.mubr.bf16.mxu1 %v1584_v2 }
  0xa1   :  { %795 = vmatmul.mubr.bf16.gmra.mxu0 %v1553_v3  ;;  %923 = vmatmul.mubr.bf16.gmra.mxu1 %v1586_v4 }
  0xa2   :  { %802 = vmatprep.mubr.bf16.mxu0 %v1557_v5  ;;  %930 = vmatprep.mubr.bf16.mxu1 %v1587_v6 }
  0xa9   :  { %803 = vmatmul.mubr.bf16.gmra.mxu0 %v1559_v7  ;;  %931 = vmatmul.mubr.bf16.gmra.mxu1 %v1589_v8 }
  0xaa   :  { %810 = vmatprep.mubr.bf16.mxu0 %v1563_v9  ;;  %938 = vmatprep.mubr.bf16.mxu1 %v1590_v10 }
  0xb1   :  { %811 = vmatmul.mubr.bf16.gmra.mxu0 %v1565_v11  ;;  %939 = vmatmul.mubr.bf16.gmra.mxu1 %v1592_v12 }
  0xb2   :  { %818 = vmatprep.mubr.bf16.mxu0 %v1569_v13  ;;  %946 = vmatprep.mubr.bf16.mxu1 %v1593_v14 }
  0xb9   :  { %819 = vmatmul.mubr.bf16.gmra.mxu0 %v1571_v15  ;;  %947 = vmatmul.mubr.bf16.gmra.mxu1 %v1595_v16 }
 0x101   :  { %v1895_v17 = vpop.f32.mrf.mxu0  ;;  %v1897_v18 = vpop.f32.mrf.mxu1 }
 0x102   :  { %1019 = vst [vmem:[%s2431_s2] sm:$0xff] %v1895_v17  ;;  %1051 = vst [vmem:[%s2431_s2 + $0x100] sm:$0xff] %v1897_v18 }
 0x103   :  { %v702_v19 = vpop.f32.mrf.mxu0  ;;  %v830_v20 = vpop.f32.mrf.mxu1 }
 0x105   :  { %v1907_v21 = vpop.f32.mrf.mxu0  ;;  %v1909_v22 = vpop.f32.mrf.mxu1 }
 0x106   :  { %1020 = vst [vmem:[%s2431_s2 + $0x8] sm:$0xff] %v1907_v21  ;;  %1052 = vst [vmem:[%s2431_s2 + $0x108] sm:$0xff] %v1909_v22  ;;  %v1224_v19 = vmul.f32 %v1907_v21, %v1907_v21 }
 0x107   :  { %v705_v23 = vpop.f32.mrf.mxu0  ;;  %v833_v24 = vpop.f32.mrf.mxu1 }
 0x108   :  { %v1597_v24 = vmov 0.0  }
 0x109   :  { %v1919_v25 = vpop.f32.mrf.mxu0  ;;  %v1921_v26 = vpop.f32.mrf.mxu1  ;;  %88 = vst [vmem:[%s2432_s3] sm:$0x1] %v1597_v24  ;;  %89 = vst [vmem:[%s2433_s4] sm:$0x1] %v1597_v24 }
 0x10a   :  { %1021 = vst [vmem:[%s2431_s2 + $0x10] sm:$0xff] %v1919_v25  ;;  %1053 = vst [vmem:[%s2431_s2 + $0x110] sm:$0xff] %v1921_v26 }
 0x10b   :  { %v710_v27 = vpop.f32.mrf.mxu0  ;;  %v838_v28 = vpop.f32.mrf.mxu1 }
 0x10c   :  { %v1223_v27 = vmul.f32 %v1895_v17, %v1895_v17  ;;  %v1225_v28 = vmul.f32 %v1919_v25, %v1919_v25 }
 0x10d   :  { %v1931_v29 = vpop.f32.mrf.mxu0  ;;  %v1933_v30 = vpop.f32.mrf.mxu1 }
 0x10e   :  { %1022 = vst [vmem:[%s2431_s2 + $0x18] sm:$0xff] %v1931_v29  ;;  %1054 = vst [vmem:[%s2431_s2 + $0x118] sm:$0xff] %v1933_v30 }
 0x10f   :  { %v713_v31 = vpop.f32.mrf.mxu0  ;;  %v841_v32 = vpop.f32.mrf.mxu1 }
 0x111   :  { %v1943_v33 = vpop.f32.mrf.mxu0  ;;  %v1945_v34 = vpop.f32.mrf.mxu1 }
 0x112   :  { %1023 = vst [vmem:[%s2431_s2 + $0x20] sm:$0xff] %v1943_v33  ;;  %1055 = vst [vmem:[%s2431_s2 + $0x120] sm:$0xff] %v1945_v34 }
 0x113   :  { %v718_v35 = vpop.f32.mrf.mxu0  ;;  %v846_v36 = vpop.f32.mrf.mxu1 }
 0x114   :  { %v1151_v35 = vadd.f32 %v1907_v21, %v1895_v17  ;;  %v1287_v36 = vadd.f32 %v1224_v19, %v1223_v27 }
 0x115   :  { %v1955_v37 = vpop.f32.mrf.mxu0  ;;  %v1957_v38 = vpop.f32.mrf.mxu1 }
 0x116   :  { %1024 = vst [vmem:[%s2431_s2 + $0x28] sm:$0xff] %v1955_v37  ;;  %1056 = vst [vmem:[%s2431_s2 + $0x128] sm:$0xff] %v1957_v38  ;;  %v1152_v17 = vadd.f32 %v1151_v35, %v1919_v25  ;;  %v1288_v21 = vadd.f32 %v1287_v36, %v1225_v28  ;;  %v1228_v25 = vmul.f32 %v1955_v37, %v1955_v37 }
 0x117   :  { %v721_v39 = vpop.f32.mrf.mxu0  ;;  %v849_v40 = vpop.f32.mrf.mxu1 }
 0x118   :  { %v1226_v39 = vmul.f32 %v1931_v29, %v1931_v29 }
 0x119   :  { %v1967_v41 = vpop.f32.mrf.mxu0  ;;  %v1969_v42 = vpop.f32.mrf.mxu1 }
 0x11a   :  { %1025 = vst [vmem:[%s2431_s2 + $0x30] sm:$0xff] %v1967_v41  ;;  %1057 = vst [vmem:[%s2431_s2 + $0x130] sm:$0xff] %v1969_v42 }
 0x11b   :  { %v726_v43 = vpop.f32.mrf.mxu0  ;;  %v854_v44 = vpop.f32.mrf.mxu1 }
 0x11c   :  { %v1227_v44 = vmul.f32 %v1943_v33, %v1943_v33 }
 0x11d   :  { %v1979_v45 = vpop.f32.mrf.mxu0  ;;  %v1981_v46 = vpop.f32.mrf.mxu1 }
 0x11e   :  { %1026 = vst [vmem:[%s2431_s2 + $0x38] sm:$0xff] %v1979_v45  ;;  %1058 = vst [vmem:[%s2431_s2 + $0x138] sm:$0xff] %v1981_v46 }
 0x11f   :  { %v729_v47 = vpop.f32.mrf.mxu0  ;;  %v857_v48 = vpop.f32.mrf.mxu1 }
 0x121   :  { %v1991_v49 = vpop.f32.mrf.mxu0  ;;  %v1993_v50 = vpop.f32.mrf.mxu1 }
 0x122   :  { %1027 = vst [vmem:[%s2431_s2 + $0x40] sm:$0xff] %v1991_v49  ;;  %1059 = vst [vmem:[%s2431_s2 + $0x140] sm:$0xff] %v1993_v50 }
 0x123   :  { %v734_v51 = vpop.f32.mrf.mxu0  ;;  %v862_v52 = vpop.f32.mrf.mxu1 }
 0x124   :  { %v1153_v51 = vadd.f32 %v1152_v17, %v1931_v29  ;;  %v1289_v52 = vadd.f32 %v1288_v21, %v1226_v39 }
 0x125   :  { %v2003_v53 = vpop.f32.mrf.mxu0  ;;  %v2005_v54 = vpop.f32.mrf.mxu1 }
 0x126   :  { %1028 = vst [vmem:[%s2431_s2 + $0x48] sm:$0xff] %v2003_v53  ;;  %1060 = vst [vmem:[%s2431_s2 + $0x148] sm:$0xff] %v2005_v54  ;;  %v1154_v29 = vadd.f32 %v1153_v51, %v1943_v33  ;;  %v1230_v33 = vmul.f32 %v1979_v45, %v1979_v45 }
 0x127   :  { %v737_v55 = vpop.f32.mrf.mxu0  ;;  %v865_v56 = vpop.f32.mrf.mxu1 }
 0x129   :  { %v2015_v57 = vpop.f32.mrf.mxu0  ;;  %v2017_v58 = vpop.f32.mrf.mxu1 }
 0x12a   :  { %1029 = vst [vmem:[%s2431_s2 + $0x50] sm:$0xff] %v2015_v57  ;;  %1061 = vst [vmem:[%s2431_s2 + $0x150] sm:$0xff] %v2017_v58 }
 0x12b   :  { %v742_v59 = vpop.f32.mrf.mxu0  ;;  %v870_v60 = vpop.f32.mrf.mxu1 }
 0x12c   :  { %v1290_v59 = vadd.f32 %v1289_v52, %v1227_v44  ;;  %v1229_v60 = vmul.f32 %v1967_v41, %v1967_v41 }
 0x12d   :  { %v2027_v61 = vpop.f32.mrf.mxu0  ;;  %v2029_v62 = vpop.f32.mrf.mxu1 }
 0x12e   :  { %1030 = vst [vmem:[%s2431_s2 + $0x58] sm:$0xff] %v2027_v61  ;;  %1062 = vst [vmem:[%s2431_s2 + $0x158] sm:$0xff] %v2029_v62 }
 0x12f   :  { %v745_v63 = vpop.f32.mrf.mxu0  ;;  %v873_v0 = vpop.f32.mrf.mxu1 }
 0x131   :  { %v2039_v1 = vpop.f32.mrf.mxu0  ;;  %v2041_v2 = vpop.f32.mrf.mxu1 }
 0x132   :  { %1031 = vst [vmem:[%s2431_s2 + $0x60] sm:$0xff] %v2039_v1  ;;  %1063 = vst [vmem:[%s2431_s2 + $0x160] sm:$0xff] %v2041_v2 }
 0x133   :  { %v750_v3 = vpop.f32.mrf.mxu0  ;;  %v878_v4 = vpop.f32.mrf.mxu1 }
 0x134   :  { %v1155_v3 = vadd.f32 %v1154_v29, %v1955_v37  ;;  %v1291_v4 = vadd.f32 %v1290_v59, %v1228_v25 }
 0x135   :  { %v2051_v5 = vpop.f32.mrf.mxu0  ;;  %v2053_v6 = vpop.f32.mrf.mxu1 }
 0x136   :  { %1032 = vst [vmem:[%s2431_s2 + $0x68] sm:$0xff] %v2051_v5  ;;  %1064 = vst [vmem:[%s2431_s2 + $0x168] sm:$0xff] %v2053_v6  ;;  %v1156_v37 = vadd.f32 %v1155_v3, %v1967_v41  ;;  %v1232_v41 = vmul.f32 %v2003_v53, %v2003_v53 }
 0x137   :  { %v753_v7 = vpop.f32.mrf.mxu0  ;;  %v881_v8 = vpop.f32.mrf.mxu1 }
 0x138   :  { %v1157_v19 = vadd.f32 %v1156_v37, %v1979_v45 }
 0x139   :  { %v2063_v9 = vpop.f32.mrf.mxu0  ;;  %v2065_v10 = vpop.f32.mrf.mxu1 }
 0x13a   :  { %1033 = vst [vmem:[%s2431_s2 + $0x70] sm:$0xff] %v2063_v9  ;;  %1065 = vst [vmem:[%s2431_s2 + $0x170] sm:$0xff] %v2065_v10  ;;  %v1158_v45 = vadd.f32 %v1157_v19, %v1991_v49 }
 0x13b   :  { %v758_v11 = vpop.f32.mrf.mxu0  ;;  %v886_v12 = vpop.f32.mrf.mxu1 }
 0x13c   :  { %v1292_v11 = vadd.f32 %v1291_v4, %v1229_v60  ;;  %v1231_v12 = vmul.f32 %v1991_v49, %v1991_v49  ;;  %v1159_v39 = vadd.f32 %v1158_v45, %v2003_v53  ;;  %v1234_v49 = vmul.f32 %v2027_v61, %v2027_v61 }
 0x13d   :  { %v2075_v13 = vpop.f32.mrf.mxu0  ;;  %v2077_v14 = vpop.f32.mrf.mxu1 }
 0x13e   :  { %1034 = vst [vmem:[%s2431_s2 + $0x78] sm:$0xff] %v2075_v13  ;;  %1066 = vst [vmem:[%s2431_s2 + $0x178] sm:$0xff] %v2077_v14  ;;  %v1293_v24 = vadd.f32 %v1292_v11, %v1230_v33  ;;  %v1160_v53 = vadd.f32 %v1159_v39, %v2015_v57 }
 0x13f   :  { %v761_v15 = vpop.f32.mrf.mxu0  ;;  %v889_v16 = vpop.f32.mrf.mxu1 }
 0x140   :  { %v1161_v25 = vadd.f32 %v1160_v53, %v2027_v61 }
 0x141   :  { %v2089_v20 = vpop.f32.mrf.mxu0  ;;  %v2091_v23 = vpop.f32.mrf.mxu1 }
 0x142   :  { %1035 = vst [vmem:[%s2431_s2 + $0x80] sm:$0xff] %v2089_v20  ;;  %1067 = vst [vmem:[%s2431_s2 + $0x180] sm:$0xff] %v2091_v23 }
 0x143   :  { %v766_v31 = vpop.f32.mrf.mxu0  ;;  %v894_v32 = vpop.f32.mrf.mxu1 }
 0x144   :  { %v1294_v31 = vadd.f32 %v1293_v24, %v1231_v12  ;;  %v1233_v32 = vmul.f32 %v2015_v57, %v2015_v57  ;;  %v1236_v57 = vmul.f32 %v2051_v5, %v2051_v5 }
 0x145   :  { %v2115_v40 = vpop.f32.mrf.mxu0  ;;  %v2117_v43 = vpop.f32.mrf.mxu1 }
 0x146   :  { %1036 = vst [vmem:[%s2431_s2 + $0x88] sm:$0xff] %v2115_v40  ;;  %1068 = vst [vmem:[%s2431_s2 + $0x188] sm:$0xff] %v2117_v43  ;;  %v1295_v17 = vadd.f32 %v1294_v31, %v1232_v41 }
 0x147   :  { %v769_v47 = vpop.f32.mrf.mxu0  ;;  %v897_v48 = vpop.f32.mrf.mxu1 }
 0x148   :  { %v1296_v47 = vadd.f32 %v1295_v17, %v1233_v32  ;;  %v1235_v48 = vmul.f32 %v2039_v1, %v2039_v1 }
 0x149   :  { %v2133_v55 = vpop.f32.mrf.mxu0  ;;  %v2135_v56 = vpop.f32.mrf.mxu1 }
 0x14a   :  { %1037 = vst [vmem:[%s2431_s2 + $0x90] sm:$0xff] %v2133_v55  ;;  %1069 = vst [vmem:[%s2431_s2 + $0x190] sm:$0xff] %v2135_v56  ;;  %v1297_v29 = vadd.f32 %v1296_v47, %v1234_v49 }
 0x14b   :  { %v774_v63 = vpop.f32.mrf.mxu0  ;;  %v902_v0 = vpop.f32.mrf.mxu1 }
 0x14c   :  { %v1162_v63 = vadd.f32 %v1161_v25, %v2039_v1  ;;  %v1298_v61 = vadd.f32 %v1297_v29, %v1235_v48  ;;  %v1237_v0 = vmul.f32 %v2063_v9, %v2063_v9  ;;  %v1238_v1 = vmul.f32 %v2075_v13, %v2075_v13 }
 0x14d   :  { %v2151_v7 = vpop.f32.mrf.mxu0  ;;  %v2153_v8 = vpop.f32.mrf.mxu1 }
 0x14e   :  { %1038 = vst [vmem:[%s2431_s2 + $0x98] sm:$0xff] %v2151_v7  ;;  %1070 = vst [vmem:[%s2431_s2 + $0x198] sm:$0xff] %v2153_v8  ;;  %v1163_v33 = vadd.f32 %v1162_v63, %v2051_v5  ;;  %v1299_v37 = vadd.f32 %v1298_v61, %v1236_v57  ;;  %v1239_v5 = vmul.f32 %v2089_v20, %v2089_v20 }
 0x14f   :  { %v777_v15 = vpop.f32.mrf.mxu0  ;;  %v905_v16 = vpop.f32.mrf.mxu1 }
 0x150   :  { %v1164_v15 = vadd.f32 %v1163_v33, %v2063_v9  ;;  %v1300_v16 = vadd.f32 %v1299_v37, %v1237_v0  ;;  %v1240_v9 = vmul.f32 %v2115_v40, %v2115_v40 }
 0x151   :  { %v2169_v27 = vpop.f32.mrf.mxu0  ;;  %v2171_v28 = vpop.f32.mrf.mxu1 }
 0x152   :  { %1039 = vst [vmem:[%s2431_s2 + $0xa0] sm:$0xff] %v2169_v27  ;;  %1071 = vst [vmem:[%s2431_s2 + $0x1a0] sm:$0xff] %v2171_v28  ;;  %v1165_v41 = vadd.f32 %v1164_v15, %v2075_v13  ;;  %v1301_v45 = vadd.f32 %v1300_v16, %v1238_v1  ;;  %v1241_v13 = vmul.f32 %v2133_v55, %v2133_v55 }
 0x153   :  { %v782_v35 = vpop.f32.mrf.mxu0  ;;  %v910_v36 = vpop.f32.mrf.mxu1 }
 0x154   :  { %v1166_v35 = vadd.f32 %v1165_v41, %v2089_v20  ;;  %v1302_v36 = vadd.f32 %v1301_v45, %v1239_v5  ;;  %v1242_v20 = vmul.f32 %v2151_v7, %v2151_v7 }
 0x155   :  { %v2187_v21 = vpop.f32.mrf.mxu0  ;;  %v2189_v44 = vpop.f32.mrf.mxu1 }
 0x156   :  { %1040 = vst [vmem:[%s2431_s2 + $0xa8] sm:$0xff] %v2187_v21  ;;  %1072 = vst [vmem:[%s2431_s2 + $0x1a8] sm:$0xff] %v2189_v44  ;;  %v1167_v49 = vadd.f32 %v1166_v35, %v2115_v40  ;;  %v1303_v53 = vadd.f32 %v1302_v36, %v1240_v9  ;;  %v1243_v40 = vmul.f32 %v2169_v27, %v2169_v27 }
 0x157   :  { %v785_v51 = vpop.f32.mrf.mxu0  ;;  %v913_v52 = vpop.f32.mrf.mxu1 }
 0x158   :  { %v1168_v51 = vadd.f32 %v1167_v49, %v2133_v55  ;;  %v1304_v52 = vadd.f32 %v1303_v53, %v1241_v13  ;;  %v1244_v55 = vmul.f32 %v2187_v21, %v2187_v21 }
 0x159   :  { %v788_v59 = vpop.f32.mrf.mxu0  ;;  %v2205_v60 = vpop.f32.mrf.mxu1 }
 0x15a   :  { %1041 = vst [vmem:[%s2431_s2 + $0xb0] sm:$0xff] %v788_v59  ;;  %1073 = vst [vmem:[%s2431_s2 + $0x1b0] sm:$0xff] %v2205_v60  ;;  %v1169_v57 = vadd.f32 %v1168_v51, %v2151_v7  ;;  %v1305_v63 = vadd.f32 %v1304_v52, %v1242_v20  ;;  %v1245_v7 = vmul.f32 %v788_v59, %v788_v59 }
 0x15b   :  { %v790_v3 = vpop.f32.mrf.mxu0  ;;  %v918_v4 = vpop.f32.mrf.mxu1 }
 0x15c   :  { %v1170_v3 = vadd.f32 %v1169_v57, %v2169_v27  ;;  %v1306_v4 = vadd.f32 %v1305_v63, %v1243_v40 }
 0x15d   :  { %v791_v11 = vpop.f32.mrf.mxu0  ;;  %v2220_v12 = vpop.f32.mrf.mxu1 }
 0x15e   :  { %1042 = vst [vmem:[%s2431_s2 + $0xb8] sm:$0xff] %v791_v11  ;;  %1074 = vst [vmem:[%s2431_s2 + $0x1b8] sm:$0xff] %v2220_v12  ;;  %v1171_v1 = vadd.f32 %v1170_v3, %v2187_v21  ;;  %v1307_v15 = vadd.f32 %v1306_v4, %v1244_v55  ;;  %v1246_v16 = vmul.f32 %v791_v11, %v791_v11 }
 0x15f   :  { %v793_v19 = vpop.f32.mrf.mxu0  ;;  %v921_v24 = vpop.f32.mrf.mxu1 }
 0x160   :  { %v1172_v27 = vadd.f32 %v1171_v1, %v788_v59  ;;  %v1308_v24 = vadd.f32 %v1307_v15, %v1245_v7 }
 0x161   :  { %v796_v31 = vpop.f32.mrf.mxu0  ;;  %v2235_v32 = vpop.f32.mrf.mxu1 }
 0x162   :  { %1043 = vst [vmem:[%s2431_s2 + $0xc0] sm:$0xff] %v796_v31  ;;  %1075 = vst [vmem:[%s2431_s2 + $0x1c0] sm:$0xff] %v2235_v32  ;;  %v1247_v41 = vmul.f32 %v796_v31, %v796_v31  ;;  %v1173_v21 = vadd.f32 %v1172_v27, %v791_v11  ;;  %v1309_v35 = vadd.f32 %v1308_v24, %v1246_v16 }
 0x163   :  { %v798_v39 = vpop.f32.mrf.mxu0  ;;  %v926_v17 = vpop.f32.mrf.mxu1 }
 0x164   :  { %v1174_v59 = vadd.f32 %v1173_v21, %v796_v31  ;;  %v1310_v17 = vadd.f32 %v1309_v35, %v1247_v41 }
 0x165   :  { %v799_v47 = vpop.f32.mrf.mxu0  ;;  %v2250_v48 = vpop.f32.mrf.mxu1 }
 0x166   :  { %1044 = vst [vmem:[%s2431_s2 + $0xc8] sm:$0xff] %v799_v47  ;;  %1076 = vst [vmem:[%s2431_s2 + $0x1c8] sm:$0xff] %v2250_v48  ;;  %v1248_v36 = vmul.f32 %v799_v47, %v799_v47  ;;  %v1175_v11 = vadd.f32 %v1174_v59, %v799_v47  ;;  %v1255_v59 = vmul.f32 %v1897_v18, %v1897_v18 }
 0x167   :  { %v801_v25 = vpop.f32.mrf.mxu0  ;;  %v929_v29 = vpop.f32.mrf.mxu1 }
 0x168   :  { %v1311_v51 = vadd.f32 %v1310_v17, %v1248_v36 }
 0x169   :  { %v804_v61 = vpop.f32.mrf.mxu0  ;;  %v2265_v0 = vpop.f32.mrf.mxu1 }
 0x16a   :  { %1045 = vst [vmem:[%s2431_s2 + $0xd0] sm:$0xff] %v804_v61  ;;  %1077 = vst [vmem:[%s2431_s2 + $0x1d0] sm:$0xff] %v2265_v0  ;;  %v1249_v49 = vmul.f32 %v804_v61, %v804_v61  ;;  %v1176_v31 = vadd.f32 %v1175_v11, %v804_v61 }
 0x16b   :  { %v806_v33 = vpop.f32.mrf.mxu0  ;;  %v934_v37 = vpop.f32.mrf.mxu1 }
 0x16c   :  { %v1312_v29 = vadd.f32 %v1311_v51, %v1249_v49  ;;  %v1257_v51 = vmul.f32 %v1921_v26, %v1921_v26 }
 0x16d   :  { %v807_v5 = vpop.f32.mrf.mxu0  ;;  %v2276_v19 = vpop.f32.mrf.mxu1 }
 0x16e   :  { %1046 = vst [vmem:[%s2431_s2 + $0xd8] sm:$0xff] %v807_v5  ;;  %1078 = vst [vmem:[%s2431_s2 + $0x1d8] sm:$0xff] %v2276_v19  ;;  %v1250_v52 = vmul.f32 %v807_v5, %v807_v5  ;;  %v1177_v55 = vadd.f32 %v1176_v31, %v807_v5  ;;  %v1258_v31 = vmul.f32 %v1933_v30, %v1933_v30 }
 0x16f   :  { %v809_v45 = vpop.f32.mrf.mxu0  ;;  %v937_v9 = vpop.f32.mrf.mxu1 }
 0x170   :  { %v1313_v3 = vadd.f32 %v1312_v29, %v1250_v52 }
 0x171   :  { %v812_v13 = vpop.f32.mrf.mxu0  ;;  %v2285_v39 = vpop.f32.mrf.mxu1 }
 0x172   :  { %1047 = vst [vmem:[%s2431_s2 + $0xe0] sm:$0xff] %v812_v13  ;;  %1079 = vst [vmem:[%s2431_s2 + $0x1e0] sm:$0xff] %v2285_v39  ;;  %v1251_v47 = vmul.f32 %v812_v13, %v812_v13  ;;  %v1178_v33 = vadd.f32 %v1177_v55, %v812_v13 }
 0x173   :  { %v814_v53 = vpop.f32.mrf.mxu0  ;;  %v942_v20 = vpop.f32.mrf.mxu1 }
 0x174   :  { %v1314_v15 = vadd.f32 %v1313_v3, %v1251_v47  ;;  %v1256_v53 = vmul.f32 %v1909_v22, %v1909_v22 }
 0x175   :  { %v815_v40 = vpop.f32.mrf.mxu0  ;;  %v2294_v25 = vpop.f32.mrf.mxu1 }
 0x176   :  { %1048 = vst [vmem:[%s2431_s2 + $0xe8] sm:$0xff] %v815_v40  ;;  %1080 = vst [vmem:[%s2431_s2 + $0x1e8] sm:$0xff] %v2294_v25  ;;  %v1252_v61 = vmul.f32 %v815_v40, %v815_v40  ;;  %v1179_v16 = vadd.f32 %v1178_v33, %v815_v40 }
 0x177   :  { %v817_v57 = vpop.f32.mrf.mxu0  ;;  %v945_v63 = vpop.f32.mrf.mxu1 }
 0x178   :  { %v1315_v41 = vadd.f32 %v1314_v15, %v1252_v61 }
 0x179   :  { %v820_v4 = vpop.f32.mrf.mxu0  ;;  %v2303_v7 = vpop.f32.mrf.mxu1 }
 0x17a   :  { %1049 = vst [vmem:[%s2431_s2 + $0xf0] sm:$0xff] %v820_v4  ;;  %v1253_v5 = vmul.f32 %v820_v4, %v820_v4  ;;  %1081 = vst [vmem:[%s2431_s2 + $0x1f0] sm:$0xff] %v2303_v7  ;;  %v1180_v45 = vadd.f32 %v1179_v16, %v820_v4 }
 0x17b   :  { %v822_v37 = vpop.f32.mrf.mxu0  ;;  %v950_v1 = vpop.f32.mrf.mxu1 }
 0x17c   :  { %v1316_v35 = vadd.f32 %v1315_v41, %v1253_v5 }
 0x17d   :  { %v823_v27 = vpop.f32.mrf.mxu0  ;;  %v2312_v24 = vpop.f32.mrf.mxu1 }
 0x17e   :  { %1050 = vst [vmem:[%s2431_s2 + $0xf8] sm:$0xff] %v823_v27  ;;  %v1181_v36 = vadd.f32 %v1180_v45, %v823_v27  ;;  %v1254_v13 = vmul.f32 %v823_v27, %v823_v27  ;;  %1082 = vst [vmem:[%s2431_s2 + $0x1f8] sm:$0xff] %v2312_v24 }
 0x17f   :  { %v825_v9 = vpop.f32.mrf.mxu0  ;;  %v953_v21 = vpop.f32.mrf.mxu1 }
 0x180   :  { %v1182_v17 = vadd.f32 %v1181_v36, %v1897_v18  ;;  %v1317_v49 = vadd.f32 %v1316_v35, %v1254_v13  ;;  %v1259_v18 = vmul.f32 %v1945_v34, %v1945_v34 }
 0x182   :  { %v1183_v20 = vadd.f32 %v1182_v17, %v1909_v22  ;;  %v1318_v11 = vadd.f32 %v1317_v49, %v1255_v59  ;;  %v1260_v22 = vmul.f32 %v1957_v38, %v1957_v38 }
 0x184   :  { %v1184_v52 = vadd.f32 %v1183_v20, %v1921_v26  ;;  %v1319_v40 = vadd.f32 %v1318_v11, %v1256_v53  ;;  %v1261_v26 = vmul.f32 %v1969_v42, %v1969_v42 }
 0x186   :  { %v1185_v29 = vadd.f32 %v1184_v52, %v1933_v30  ;;  %v1320_v57 = vadd.f32 %v1319_v40, %v1257_v51  ;;  %v1262_v30 = vmul.f32 %v1981_v46, %v1981_v46  ;;  %v1272_v51 = vmul.f32 %v2117_v43, %v2117_v43 }
 0x188   :  { %v1186_v63 = vadd.f32 %v1185_v29, %v1945_v34  ;;  %v1321_v55 = vadd.f32 %v1320_v57, %v1258_v31  ;;  %v1263_v34 = vmul.f32 %v1993_v50, %v1993_v50  ;;  %v1273_v31 = vmul.f32 %v2135_v56, %v2135_v56 }
 0x189   :  { %v1274_v57 = vmul.f32 %v2153_v8, %v2153_v8 }
 0x18a   :  { %v1187_v47 = vadd.f32 %v1186_v63, %v1957_v38  ;;  %v1322_v3 = vadd.f32 %v1321_v55, %v1259_v18  ;;  %v1264_v38 = vmul.f32 %v2005_v54, %v2005_v54  ;;  %v1275_v63 = vmul.f32 %v2171_v28, %v2171_v28 }
 0x18c   :  { %v1188_v4 = vadd.f32 %v1187_v47, %v1969_v42  ;;  %v1323_v33 = vadd.f32 %v1322_v3, %v1260_v22  ;;  %v1265_v42 = vmul.f32 %v2017_v58, %v2017_v58  ;;  %v1276_v22 = vmul.f32 %v2189_v44, %v2189_v44 }
 0x18d   :  { %v1277_v3 = vmul.f32 %v2205_v60, %v2205_v60 }
 0x18e   :  { %v1189_v61 = vadd.f32 %v1188_v4, %v1981_v46  ;;  %v1324_v37 = vadd.f32 %v1323_v33, %v1261_v26  ;;  %v1266_v46 = vmul.f32 %v2029_v62, %v2029_v62  ;;  %v1278_v4 = vmul.f32 %v2220_v12, %v2220_v12 }
 0x190   :  { %v1325_v1 = vadd.f32 %v1324_v37, %v1262_v30  ;;  %v1190_v15 = vadd.f32 %v1189_v61, %v1993_v50  ;;  %v1267_v50 = vmul.f32 %v2041_v2, %v2041_v2  ;;  %v1279_v30 = vmul.f32 %v2235_v32, %v2235_v32 }
 0x191   :  { %v1280_v37 = vmul.f32 %v2250_v48, %v2250_v48 }
 0x192   :  { %v1191_v16 = vadd.f32 %v1190_v15, %v2005_v54  ;;  %v1326_v5 = vadd.f32 %v1325_v1, %v1263_v34  ;;  %v1268_v54 = vmul.f32 %v2053_v6, %v2053_v6  ;;  %v1281_v1 = vmul.f32 %v2265_v0, %v2265_v0 }
 0x194   :  { %v1192_v27 = vadd.f32 %v1191_v16, %v2017_v58  ;;  %v1327_v41 = vadd.f32 %v1326_v5, %v1264_v38  ;;  %v1269_v58 = vmul.f32 %v2065_v10, %v2065_v10  ;;  %v1282_v38 = vmul.f32 %v2276_v19, %v2276_v19 }
 0x195   :  { %v1283_v5 = vmul.f32 %v2285_v39, %v2285_v39 }
 0x196   :  { %v1193_v45 = vadd.f32 %v1192_v27, %v2029_v62  ;;  %v1328_v9 = vadd.f32 %v1327_v41, %v1265_v42  ;;  %v1270_v62 = vmul.f32 %v2077_v14, %v2077_v14  ;;  %v1284_v27 = vmul.f32 %v2294_v25, %v2294_v25 }
 0x198   :  { %v1194_v21 = vadd.f32 %v1193_v45, %v2041_v2  ;;  %v1329_v35 = vadd.f32 %v1328_v9, %v1266_v46  ;;  %v1271_v2 = vmul.f32 %v2091_v23, %v2091_v23  ;;  %v1285_v46 = vmul.f32 %v2303_v7, %v2303_v7 }
 0x199   :  { %v1286_v9 = vmul.f32 %v2312_v24, %v2312_v24 }
 0x19a   :  { %v1195_v36 = vadd.f32 %v1194_v21, %v2053_v6  ;;  %v1330_v13 = vadd.f32 %v1329_v35, %v1267_v50 }
 0x19c   :  { %v1196_v59 = vadd.f32 %v1195_v36, %v2065_v10  ;;  %v1331_v17 = vadd.f32 %v1330_v13, %v1268_v54 }
 0x19e   :  { %v1197_v49 = vadd.f32 %v1196_v59, %v2077_v14  ;;  %v1332_v53 = vadd.f32 %v1331_v17, %v1269_v58 }
 0x1a0   :  { %v1198_v20 = vadd.f32 %v1197_v49, %v2091_v23  ;;  %v1333_v11 = vadd.f32 %v1332_v53, %v1270_v62 }
 0x1a2   :  { %v1199_v6 = vadd.f32 %v1198_v20, %v2117_v43  ;;  %v1334_v52 = vadd.f32 %v1333_v11, %v1271_v2 }
 0x1a4   :  { %v1335_v10 = vadd.f32 %v1334_v52, %v1272_v51  ;;  %v1200_v40 = vadd.f32 %v1199_v6, %v2135_v56 }
 0x1a6   :  { %v1336_v14 = vadd.f32 %v1335_v10, %v1273_v31  ;;  %v1201_v29 = vadd.f32 %v1200_v40, %v2153_v8 }
 0x1a8   :  { %v1337_v23 = vadd.f32 %v1336_v14, %v1274_v57  ;;  %v1202_v18 = vadd.f32 %v1201_v29, %v2171_v28 }
 0x1aa   :  { %v1338_v43 = vadd.f32 %v1337_v23, %v1275_v63  ;;  %v1203_v55 = vadd.f32 %v1202_v18, %v2189_v44 }
 0x1ac   :  { %v1339_v47 = vadd.f32 %v1338_v43, %v1276_v22  ;;  %v1204_v56 = vadd.f32 %v1203_v55, %v2205_v60 }
 0x1ae   :  { %v1340_v26 = vadd.f32 %v1339_v47, %v1277_v3  ;;  %v1205_v8 = vadd.f32 %v1204_v56, %v2220_v12 }
 0x1b0   :  { %v1341_v33 = vadd.f32 %v1340_v26, %v1278_v4  ;;  %v1206_v28 = vadd.f32 %v1205_v8, %v2235_v32 }
 0x1b2   :  { %v1342_v61 = vadd.f32 %v1341_v33, %v1279_v30  ;;  %v1207_v44 = vadd.f32 %v1206_v28, %v2250_v48 }
 0x1b4   :  { %v1343_v34 = vadd.f32 %v1342_v61, %v1280_v37  ;;  %v1208_v60 = vadd.f32 %v1207_v44, %v2265_v0 }
 0x1b6   :  { %v1344_v15 = vadd.f32 %v1343_v34, %v1281_v1  ;;  %v1209_v12 = vadd.f32 %v1208_v60, %v2276_v19 }
 0x1b8   :  { %v1345_v16 = vadd.f32 %v1344_v15, %v1282_v38  ;;  %v1210_v32 = vadd.f32 %v1209_v12, %v2285_v39 }
 0x1ba   :  { %v1346_v42 = vadd.f32 %v1345_v16, %v1283_v5  ;;  %v1211_v48 = vadd.f32 %v1210_v32, %v2294_v25 }
 0x1bc   :  { %v1347_v41 = vadd.f32 %v1346_v42, %v1284_v27  ;;  %v1212_v0 = vadd.f32 %v1211_v48, %v2303_v7  ;;  %v1150_v7 = vld [vmem:[%s2432_s3] sm:$0x1] }
 0x1be   :  { %v1348_v45 = vadd.f32 %v1347_v41, %v1285_v46  ;;  %v1213_v19 = vadd.f32 %v1212_v0, %v2312_v24  ;;  %v1222_v24 = vld [vmem:[%s2433_s4] sm:$0x1] }
 0x1c0   :  { %v1214_v50 = vrot.slane %v1213_v19, 4  ;;  %v1349_v39 = vadd.f32 %v1348_v45, %v1286_v9 }
 0x1c2   :  { %v1215_v21 = vadd.f32 %v1214_v50, %v1213_v19  ;;  %v1350_v35 = vrot.slane %v1349_v39, 4 }
 0x1c4   :  { %v1216_v54 = vrot.slane %v1215_v21, 2  ;;  %v1351_v36 = vadd.f32 %v1350_v35, %v1349_v39 }
 0x1c6   :  { %v1217_v13 = vadd.f32 %v1216_v54, %v1215_v21  ;;  %v1352_v25 = vrot.slane %v1351_v36, 2 }
 0x1c8   :  { %v1218_v58 = vrot.slane %v1217_v13, 1  ;;  %v1353_v59 = vadd.f32 %v1352_v25, %v1351_v36 }
 0x1ca   :  { %v1219_v17 = vadd.f32 %v1218_v58, %v1217_v13  ;;  %v1354_v62 = vrot.slane %v1353_v59, 1 }
 0x1cc   :  { %v1220_v49 = vadd.f32 %v1219_v17, %v1150_v7  ;;  %v1355_v53 = vadd.f32 %v1354_v62, %v1353_v59 }
 0x1ce   :  { %1221 = vst [vmem:[%s2432_s3] sm:$0x1] %v1220_v49  ;;  %v1356_v2 = vadd.f32 %v1355_v53, %v1222_v24 }
 0x1d0   :  { %1357 = vst [vmem:[%s2433_s4] sm:$0x1] %v1356_v2 }

// kernel: resnet_generator_forward.49
= control target key start
LH: loop header
LB: loop body
LE: loop exit
PB: predicated region body
PF: predicated region fallthrough
CT: control target
= control target key end

     0   :  { %v507_v16 = vmov 0.0   ;;  %s647_s1 = inlined_call_operand.vmem [shape: bf16[128,128], index: 1, kind: input, shape index: {}]   ;;  %s648_s0 = inlined_call_operand.vmem [shape: bf16[128,128], index: 0, kind: input, shape index: {}]   ;;  %s649_s3 = inlined_call_operand.vmem [shape: f32[1,128], index: 3, kind: output, shape index: {1}]   ;;  %s650_s4 = inlined_call_operand.vmem [shape: f32[1,128], index: 4, kind: output, shape index: {2}]   ;;  %s651_s2 = inlined_call_operand.vmem [shape: f32[128,128], index: 2, kind: output, shape index: {0}]  }
   0x1   :  { %v491_v0 = vld [vmem:[%s647_s1 + $0x38] sm:$0xff]   ;;  %v492_v1 = vld [vmem:[%s647_s1 + $0x30] sm:$0xff]   ;;  %v493_v2 = vld [vmem:[%s647_s1 + $0x28] sm:$0xff]   ;;  %40 = vst [vmem:[%s649_s3] sm:$0x1] %v507_v16 }
   0x2   :  { %442 = vmatprep.subr.bf16.mxu0 %v491_v0  ;;  %474 = vmatprep.subr.bf16.mxu1 %v491_v0  ;;  %v494_v3 = vld [vmem:[%s647_s1 + $0x20] sm:$0xff]   ;;  %v495_v5 = vld [vmem:[%s647_s1 + $0x18] sm:$0xff]   ;;  %v496_v7 = vld [vmem:[%s647_s1 + $0x10] sm:$0xff]   ;;  %41 = vst [vmem:[%s650_s4] sm:$0x1] %v507_v16 }
   0x3   :  { %443 = vmatpush3.bf16.msra.mxu0 %v491_v0  ;;  %482 = vmatpush3.bf16.msra.mxu1 %v491_v0  ;;  %v499_v4 = vld [vmem:[%s648_s0] sm:$0xff]   ;;  %v497_v8 = vld [vmem:[%s647_s1 + $0x8] sm:$0xff]   ;;  %v501_v12 = vld [vmem:[%s648_s0 + $0x10] sm:$0xff]  }
   0x4   :  { %444 = vmatprep.subr.bf16.mxu0 %v492_v1  ;;  %475 = vmatprep.subr.bf16.mxu1 %v492_v1  ;;  %v503_v6 = vld [vmem:[%s648_s0 + $0x20] sm:$0xff]   ;;  %v500_v10 = vld [vmem:[%s648_s0 + $0x8] sm:$0xff]   ;;  %v505_v13 = vld [vmem:[%s648_s0 + $0x30] sm:$0xff]  }
   0x5   :  { %458 = vmatprep.mubr.bf16.mxu0 %v499_v4  ;;  %466 = vmatprep.mubr.bf16.mxu1 %v503_v6  ;;  %v498_v9 = vld [vmem:[%s647_s1] sm:$0xff]   ;;  %v504_v11 = vld [vmem:[%s648_s0 + $0x28] sm:$0xff]   ;;  %v502_v14 = vld [vmem:[%s648_s0 + $0x18] sm:$0xff]  }
   0x6   :  { %v506_v15 = vld [vmem:[%s648_s0 + $0x38] sm:$0xff]  }
   0x7   :  { %445 = vmatpush3.bf16.msra.mxu0 %v492_v1  ;;  %483 = vmatpush3.bf16.msra.mxu1 %v492_v1 }
   0x8   :  { %446 = vmatprep.subr.bf16.mxu0 %v493_v2  ;;  %476 = vmatprep.subr.bf16.mxu1 %v493_v2 }
   0xb   :  { %447 = vmatpush3.bf16.msra.mxu0 %v493_v2  ;;  %484 = vmatpush3.bf16.msra.mxu1 %v493_v2 }
   0xc   :  { %448 = vmatprep.subr.bf16.mxu0 %v494_v3  ;;  %477 = vmatprep.subr.bf16.mxu1 %v494_v3 }
   0xf   :  { %449 = vmatpush3.bf16.msra.mxu0 %v494_v3  ;;  %485 = vmatpush3.bf16.msra.mxu1 %v494_v3 }
  0x10   :  { %450 = vmatprep.subr.bf16.mxu0 %v495_v5  ;;  %478 = vmatprep.subr.bf16.mxu1 %v495_v5 }
  0x13   :  { %451 = vmatpush3.bf16.msra.mxu0 %v495_v5  ;;  %486 = vmatpush3.bf16.msra.mxu1 %v495_v5 }
  0x14   :  { %452 = vmatprep.subr.bf16.mxu0 %v496_v7  ;;  %479 = vmatprep.subr.bf16.mxu1 %v496_v7 }
  0x17   :  { %453 = vmatpush3.bf16.msra.mxu0 %v496_v7  ;;  %487 = vmatpush3.bf16.msra.mxu1 %v496_v7 }
  0x18   :  { %454 = vmatprep.subr.bf16.mxu0 %v497_v8  ;;  %480 = vmatprep.subr.bf16.mxu1 %v497_v8 }
  0x1b   :  { %455 = vmatpush3.bf16.msra.mxu0 %v497_v8  ;;  %488 = vmatpush3.bf16.msra.mxu1 %v497_v8 }
  0x1c   :  { %456 = vmatprep.subr.bf16.mxu0 %v498_v9  ;;  %481 = vmatprep.subr.bf16.mxu1 %v498_v9 }
  0x1f   :  { %457 = vmatpush3.bf16.msra.mxu0 %v498_v9  ;;  %489 = vmatpush3.bf16.msra.mxu1 %v498_v9 }
  0x22   :  { %459 = vmatmul.mubr.bf16.vlgmr.msra.gmra.mxu0 %v500_v10  ;;  %467 = vmatmul.mubr.bf16.vlgmr.msra.gmra.mxu1 %v504_v11 }
  0x23   :  { %462 = vmatprep.mubr.bf16.mxu0 %v501_v12  ;;  %470 = vmatprep.mubr.bf16.mxu1 %v505_v13 }
  0x2a   :  { %463 = vmatmul.mubr.bf16.gmra.mxu0 %v502_v14  ;;  %471 = vmatmul.mubr.bf16.gmra.mxu1 %v506_v15 }
  0xe2   :  { %v460_v17 = vpop.f32.mrf.mxu0  ;;  %v468_v18 = vpop.f32.mrf.mxu1 }
  0xe3   :  { %301 = vst [vmem:[%s651_s2 + $0x10] sm:$0xff] %v460_v17  ;;  %309 = vst [vmem:[%s651_s2 + $0x50] sm:$0xff] %v468_v18  ;;  %v361_v32 = vmul.f32 %v460_v17, %v460_v17  ;;  %v369_v60 = vmul.f32 %v468_v18, %v468_v18 }
  0xe4   :  { %v220_v19 = vpop.f32.mrf.mxu0  ;;  %v252_v20 = vpop.f32.mrf.mxu1 }
  0xe5   :  { %299 = vst [vmem:[%s651_s2] sm:$0xff] %v220_v19  ;;  %307 = vst [vmem:[%s651_s2 + $0x40] sm:$0xff] %v252_v20  ;;  %v359_v27 = vmul.f32 %v220_v19, %v220_v19  ;;  %v367_v54 = vmul.f32 %v252_v20, %v252_v20 }
  0xe6   :  { %v461_v21 = vpop.f32.mrf.mxu0  ;;  %v469_v22 = vpop.f32.mrf.mxu1 }
  0xe7   :  { %302 = vst [vmem:[%s651_s2 + $0x18] sm:$0xff] %v461_v21  ;;  %310 = vst [vmem:[%s651_s2 + $0x58] sm:$0xff] %v469_v22  ;;  %v362_v37 = vmul.f32 %v461_v21, %v461_v21  ;;  %v370_v63 = vmul.f32 %v469_v22, %v469_v22 }
  0xe8   :  { %v223_v23 = vpop.f32.mrf.mxu0  ;;  %v255_v24 = vpop.f32.mrf.mxu1 }
  0xe9   :  { %300 = vst [vmem:[%s651_s2 + $0x8] sm:$0xff] %v223_v23  ;;  %v335_v28 = vadd.f32 %v223_v23, %v220_v19  ;;  %v360_v29 = vmul.f32 %v223_v23, %v223_v23  ;;  %308 = vst [vmem:[%s651_s2 + $0x48] sm:$0xff] %v255_v24  ;;  %v368_v58 = vmul.f32 %v255_v24, %v255_v24 }
  0xea   :  { %v464_v25 = vpop.f32.mrf.mxu0  ;;  %v472_v26 = vpop.f32.mrf.mxu1 }
  0xeb   :  { %v336_v33 = vadd.f32 %v460_v17, %v335_v28  ;;  %v375_v34 = vadd.f32 %v360_v29, %v359_v27  ;;  %305 = vst [vmem:[%s651_s2 + $0x30] sm:$0xff] %v464_v25  ;;  %313 = vst [vmem:[%s651_s2 + $0x70] sm:$0xff] %v472_v26  ;;  %v365_v48 = vmul.f32 %v464_v25, %v464_v25  ;;  %v358_v27 = vld [vmem:[%s650_s4] sm:$0x1] }
  0xec   :  { %v236_v30 = vpop.f32.mrf.mxu0  ;;  %v268_v31 = vpop.f32.mrf.mxu1  ;;  %v373_v8 = vmul.f32 %v472_v26, %v472_v26 }
  0xed   :  { %v376_v38 = vadd.f32 %v375_v34, %v361_v32  ;;  %303 = vst [vmem:[%s651_s2 + $0x20] sm:$0xff] %v236_v30  ;;  %v337_v39 = vadd.f32 %v461_v21, %v336_v33  ;;  %311 = vst [vmem:[%s651_s2 + $0x60] sm:$0xff] %v268_v31  ;;  %v363_v43 = vmul.f32 %v236_v30, %v236_v30 }
  0xee   :  { %v465_v35 = vpop.f32.mrf.mxu0  ;;  %v473_v36 = vpop.f32.mrf.mxu1  ;;  %v371_v3 = vmul.f32 %v268_v31, %v268_v31 }
  0xef   :  { %v338_v42 = vadd.f32 %v337_v39, %v236_v30  ;;  %v377_v44 = vadd.f32 %v376_v38, %v362_v37  ;;  %306 = vst [vmem:[%s651_s2 + $0x38] sm:$0xff] %v465_v35  ;;  %314 = vst [vmem:[%s651_s2 + $0x78] sm:$0xff] %v473_v36  ;;  %v366_v51 = vmul.f32 %v465_v35, %v465_v35 }
  0xf0   :  { %v239_v40 = vpop.f32.mrf.mxu0  ;;  %v271_v41 = vpop.f32.mrf.mxu1  ;;  %v374_v11 = vmul.f32 %v473_v36, %v473_v36 }
  0xf1   :  { %v378_v45 = vadd.f32 %v377_v44, %v363_v43  ;;  %304 = vst [vmem:[%s651_s2 + $0x28] sm:$0xff] %v239_v40  ;;  %v339_v46 = vadd.f32 %v338_v42, %v239_v40  ;;  %v364_v47 = vmul.f32 %v239_v40, %v239_v40  ;;  %312 = vst [vmem:[%s651_s2 + $0x68] sm:$0xff] %v271_v41 }
  0xf2   :  { %v372_v7 = vmul.f32 %v271_v41, %v271_v41 }
  0xf3   :  { %v340_v49 = vadd.f32 %v464_v25, %v339_v46  ;;  %v379_v50 = vadd.f32 %v378_v45, %v364_v47 }
  0xf5   :  { %v380_v52 = vadd.f32 %v379_v50, %v365_v48  ;;  %v341_v53 = vadd.f32 %v465_v35, %v340_v49 }
  0xf7   :  { %v342_v55 = vadd.f32 %v341_v53, %v252_v20  ;;  %v381_v56 = vadd.f32 %v380_v52, %v366_v51 }
  0xf9   :  { %v343_v57 = vadd.f32 %v342_v55, %v255_v24  ;;  %v382_v59 = vadd.f32 %v381_v56, %v367_v54  ;;  %v334_v24 = vld [vmem:[%s649_s3] sm:$0x1] }
  0xfb   :  { %v344_v61 = vadd.f32 %v468_v18, %v343_v57  ;;  %v383_v62 = vadd.f32 %v382_v59, %v368_v58 }
  0xfd   :  { %v384_v0 = vadd.f32 %v383_v62, %v369_v60  ;;  %v345_v1 = vadd.f32 %v469_v22, %v344_v61 }
  0xff   :  { %v346_v2 = vadd.f32 %v345_v1, %v268_v31  ;;  %v385_v4 = vadd.f32 %v384_v0, %v370_v63 }
 0x101   :  { %v386_v5 = vadd.f32 %v385_v4, %v371_v3  ;;  %v347_v6 = vadd.f32 %v346_v2, %v271_v41 }
 0x103   :  { %v348_v9 = vadd.f32 %v472_v26, %v347_v6  ;;  %v387_v10 = vadd.f32 %v386_v5, %v372_v7 }
 0x105   :  { %v349_v12 = vadd.f32 %v473_v36, %v348_v9  ;;  %v388_v13 = vadd.f32 %v387_v10, %v373_v8 }
 0x107   :  { %v350_v14 = vrot.slane %v349_v12, 4  ;;  %v389_v15 = vadd.f32 %v388_v13, %v374_v11 }
 0x109   :  { %v351_v16 = vadd.f32 %v350_v14, %v349_v12  ;;  %v390_v17 = vrot.slane %v389_v15, 4 }
 0x10b   :  { %v352_v18 = vrot.slane %v351_v16, 2  ;;  %v391_v19 = vadd.f32 %v390_v17, %v389_v15 }
 0x10d   :  { %v353_v20 = vadd.f32 %v352_v18, %v351_v16  ;;  %v392_v21 = vrot.slane %v391_v19, 2 }
 0x10f   :  { %v354_v22 = vrot.slane %v353_v20, 1  ;;  %v393_v23 = vadd.f32 %v392_v21, %v391_v19 }
 0x111   :  { %v355_v25 = vadd.f32 %v354_v22, %v353_v20  ;;  %v394_v26 = vrot.slane %v393_v23, 1 }
 0x113   :  { %v356_v28 = vadd.f32 %v355_v25, %v334_v24  ;;  %v395_v29 = vadd.f32 %v394_v26, %v393_v23 }
 0x115   :  { %357 = vst [vmem:[%s649_s3] sm:$0x1] %v356_v28  ;;  %v396_v30 = vadd.f32 %v395_v29, %v358_v27 }
 0x117   :  { %397 = vst [vmem:[%s650_s4] sm:$0x1] %v396_v30 }

// kernel: resnet_generator_forward.50
= control target key start
LH: loop header
LB: loop body
LE: loop exit
PB: predicated region body
PF: predicated region fallthrough
CT: control target
= control target key end

     0   :  { %v51_v8 = vlaneseq  ;;  %s270_s1 = inlined_call_operand.vmem [shape: f32[1,128], index: 1, kind: input, shape index: {}]   ;;  %s271_s2 = inlined_call_operand.vmem [shape: f32[1,128], index: 2, kind: input, shape index: {}]   ;;  %s272_s3 = inlined_call_operand.vmem [shape: f32[1,128], index: 3, kind: input, shape index: {}]   ;;  %s273_s0 = inlined_call_operand.vmem [shape: f32[128,128], index: 0, kind: input, shape index: {}]   ;;  %s274_s4 = inlined_call_operand.vmem [shape: f32[1,128], index: 4, kind: input, shape index: {}]   ;;  %s275_s5 = inlined_call_operand.vmem [shape: f32[128,128], index: 5, kind: output, shape index: {}]  }
   0x1   :  { %v20_v0 = vld [vmem:[%s270_s1] sm:$0x1]  ;;  %v35_v16 = vld [vmem:[%s273_s0 + $0x8] sm:$0xff]  ;;  %v36_v17 = vld [vmem:[%s273_s0 + $0x10] sm:$0xff] }
   0x2   :  { %v22_v1 = vld [vmem:[%s271_s2] sm:$0x1]  ;;  %v21_v2 = vmul.f32 0.0078125, %v20_v0  ;;  %v52_v9 = vshrl.u32 %v51_v8, 7  ;;  %v37_v18 = vld [vmem:[%s273_s0 + $0x18] sm:$0xff]  ;;  %v39_v22 = vld [vmem:[%s273_s0 + $0x28] sm:$0xff] }
   0x3   :  { %v23_v3 = vmul.f32 0.0078125, %v22_v1  ;;  %v27_v10 = vld [vmem:[%s272_s3] sm:$0x1]  ;;  %v40_v23 = vld [vmem:[%s273_s0 + $0x30] sm:$0xff]  ;;  %v41_v24 = vld [vmem:[%s273_s0 + $0x38] sm:$0xff] }
   0x4   :  { %v24_v4 = vmul.f32 %v21_v2, %v21_v2  ;;  %v53_v11 = vsub.s32 0, %v52_v9  ;;  %v31_v14 = vld [vmem:[%s274_s4] sm:$0x1]  ;;  %v43_v26 = vld [vmem:[%s273_s0 + $0x48] sm:$0xff]  ;;  %v44_v27 = vld [vmem:[%s273_s0 + $0x50] sm:$0xff] }
   0x5   :  { %v34_v15 = vld [vmem:[%s273_s0] sm:$0xff]  ;;  %v45_v32 = vld [vmem:[%s273_s0 + $0x58] sm:$0xff]  ;;  %v47_v34 = vld [vmem:[%s273_s0 + $0x68] sm:$0xff] }
   0x6   :  { %v25_v5 = vsub.f32 %v23_v3, %v24_v4  ;;  %v38_v19 = vld [vmem:[%s273_s0 + $0x20] sm:$0xff]  ;;  %v48_v59 = vld [vmem:[%s273_s0 + $0x70] sm:$0xff]  ;;  %v49_v60 = vld [vmem:[%s273_s0 + $0x78] sm:$0xff] }
   0x7   :  { %v42_v25 = vld [vmem:[%s273_s0 + $0x40] sm:$0xff] }
   0x8   :  { %v26_v6 = vmax.f32 %v25_v5, 0.0  ;;  %v46_v33 = vld [vmem:[%s273_s0 + $0x60] sm:$0xff] }
   0xa   :  { %v28_v7 = vadd.f32 1e-05, %v26_v6 }
   0xc   :  { %130 = vrsqrt.f32 %v28_v7 }
  0x19   :  { %v131_v12 = vpop.eup %130 }
  0x1a   :  { %v30_v13 = vmul.f32 %v131_v12, %v27_v10 }
  0x1c   :  { %v32_v20 = vmul.f32 %v30_v13, %v21_v2  ;;  %v54_v21 = vrot.slane %v30_v13, %v53_v11 }
  0x1e   :  { %v33_v28 = vsub.f32 %v31_v14, %v32_v20  ;;  %v56_v29 = vmul.f32 %v54_v21, %v34_v15  ;;  %v57_v30 = vmul.f32 %v54_v21, %v35_v16  ;;  %v58_v31 = vmul.f32 %v54_v21, %v36_v17 }
  0x1f   :  { %v59_v35 = vmul.f32 %v54_v21, %v37_v18  ;;  %v60_v36 = vmul.f32 %v54_v21, %v38_v19  ;;  %v61_v37 = vmul.f32 %v54_v21, %v39_v22  ;;  %v62_v38 = vmul.f32 %v54_v21, %v40_v23 }
  0x20   :  { %v76_v39 = vrot.slane %v33_v28, %v53_v11  ;;  %v63_v40 = vmul.f32 %v54_v21, %v41_v24  ;;  %v64_v41 = vmul.f32 %v54_v21, %v42_v25  ;;  %v65_v42 = vmul.f32 %v54_v21, %v43_v26 }
  0x21   :  { %v66_v43 = vmul.f32 %v54_v21, %v44_v27  ;;  %v67_v44 = vmul.f32 %v54_v21, %v45_v32  ;;  %v68_v45 = vmul.f32 %v54_v21, %v46_v33  ;;  %v69_v46 = vmul.f32 %v54_v21, %v47_v34 }
  0x22   :  { %v78_v47 = vadd.f32 %v76_v39, %v56_v29  ;;  %v79_v48 = vadd.f32 %v76_v39, %v57_v30  ;;  %v80_v49 = vadd.f32 %v76_v39, %v58_v31  ;;  %v81_v50 = vadd.f32 %v76_v39, %v59_v35 }
  0x23   :  { %v82_v51 = vadd.f32 %v76_v39, %v60_v36  ;;  %v83_v52 = vadd.f32 %v76_v39, %v61_v37  ;;  %v84_v53 = vadd.f32 %v76_v39, %v62_v38  ;;  %v85_v54 = vadd.f32 %v76_v39, %v63_v40 }
  0x24   :  { %v94_v55 = vmax.f32 %v78_v47, 0.0  ;;  %v95_v56 = vmax.f32 %v79_v48, 0.0  ;;  %v96_v57 = vmax.f32 %v80_v49, 0.0  ;;  %v97_v58 = vmax.f32 %v81_v50, 0.0 }
  0x25   :  { %v98_v61 = vmax.f32 %v82_v51, 0.0  ;;  %v99_v62 = vmax.f32 %v83_v52, 0.0  ;;  %v100_v63 = vmax.f32 %v84_v53, 0.0  ;;  %v101_v0 = vmax.f32 %v85_v54, 0.0 }
  0x26   :  { %110 = vst [vmem:[%s275_s5] sm:$0xff] %v94_v55  ;;  %111 = vst [vmem:[%s275_s5 + $0x8] sm:$0xff] %v95_v56  ;;  %v86_v1 = vadd.f32 %v76_v39, %v64_v41  ;;  %v87_v2 = vadd.f32 %v76_v39, %v65_v42  ;;  %v88_v3 = vadd.f32 %v76_v39, %v66_v43 }
  0x27   :  { %112 = vst [vmem:[%s275_s5 + $0x10] sm:$0xff] %v96_v57  ;;  %113 = vst [vmem:[%s275_s5 + $0x18] sm:$0xff] %v97_v58  ;;  %v89_v4 = vadd.f32 %v76_v39, %v67_v44  ;;  %v90_v5 = vadd.f32 %v76_v39, %v68_v45  ;;  %v91_v6 = vadd.f32 %v76_v39, %v69_v46 }
  0x28   :  { %114 = vst [vmem:[%s275_s5 + $0x20] sm:$0xff] %v98_v61  ;;  %115 = vst [vmem:[%s275_s5 + $0x28] sm:$0xff] %v99_v62  ;;  %v70_v7 = vmul.f32 %v54_v21, %v48_v59  ;;  %v71_v8 = vmul.f32 %v54_v21, %v49_v60  ;;  %v102_v9 = vmax.f32 %v86_v1, 0.0  ;;  %v103_v10 = vmax.f32 %v87_v2, 0.0 }
  0x29   :  { %116 = vst [vmem:[%s275_s5 + $0x30] sm:$0xff] %v100_v63  ;;  %117 = vst [vmem:[%s275_s5 + $0x38] sm:$0xff] %v101_v0  ;;  %v104_v11 = vmax.f32 %v88_v3, 0.0  ;;  %v105_v12 = vmax.f32 %v89_v4, 0.0  ;;  %v106_v13 = vmax.f32 %v90_v5, 0.0  ;;  %v107_v14 = vmax.f32 %v91_v6, 0.0 }
  0x2a   :  { %v92_v15 = vadd.f32 %v76_v39, %v70_v7  ;;  %v93_v16 = vadd.f32 %v76_v39, %v71_v8  ;;  %118 = vst [vmem:[%s275_s5 + $0x40] sm:$0xff] %v102_v9  ;;  %119 = vst [vmem:[%s275_s5 + $0x48] sm:$0xff] %v103_v10 }
  0x2b   :  { %120 = vst [vmem:[%s275_s5 + $0x50] sm:$0xff] %v104_v11  ;;  %121 = vst [vmem:[%s275_s5 + $0x58] sm:$0xff] %v105_v12 }
  0x2c   :  { %122 = vst [vmem:[%s275_s5 + $0x60] sm:$0xff] %v106_v13  ;;  %123 = vst [vmem:[%s275_s5 + $0x68] sm:$0xff] %v107_v14  ;;  %v108_v17 = vmax.f32 %v92_v15, 0.0  ;;  %v109_v18 = vmax.f32 %v93_v16, 0.0 }
  0x2e   :  { %124 = vst [vmem:[%s275_s5 + $0x70] sm:$0xff] %v108_v17  ;;  %125 = vst [vmem:[%s275_s5 + $0x78] sm:$0xff] %v109_v18 }

// kernel: resnet_generator_forward.52
= control target key start
LH: loop header
LB: loop body
LE: loop exit
PB: predicated region body
PF: predicated region fallthrough
CT: control target
= control target key end

     0   :  { %v39_v8 = vlaneseq  ;;  %s138_s1 = inlined_call_operand.vmem [shape: f32[1,128], index: 1, kind: input, shape index: {}]   ;;  %s139_s2 = inlined_call_operand.vmem [shape: f32[1,128], index: 2, kind: input, shape index: {}]   ;;  %s140_s3 = inlined_call_operand.vmem [shape: f32[1,128], index: 3, kind: input, shape index: {}]   ;;  %s141_s4 = inlined_call_operand.vmem [shape: f32[1,128], index: 4, kind: input, shape index: {}]   ;;  %s142_s0 = inlined_call_operand.vmem [shape: f32[32,128], index: 0, kind: input, shape index: {}]   ;;  %s143_s5 = inlined_call_operand.vmem [shape: f32[32,128], index: 5, kind: output, shape index: {}]  }
   0x1   :  { %v20_v0 = vld [vmem:[%s138_s1] sm:$0x1]  ;;  %v35_v16 = vld [vmem:[%s142_s0 + $0x8] sm:$0xff]  ;;  %v36_v17 = vld [vmem:[%s142_s0 + $0x10] sm:$0xff] }
   0x2   :  { %v22_v1 = vld [vmem:[%s139_s2] sm:$0x1]  ;;  %v21_v2 = vmul.f32 0.03125, %v20_v0  ;;  %v40_v9 = vshrl.u32 %v39_v8, 7  ;;  %v37_v20 = vld [vmem:[%s142_s0 + $0x18] sm:$0xff] }
   0x3   :  { %v23_v3 = vmul.f32 0.03125, %v22_v1  ;;  %v27_v10 = vld [vmem:[%s140_s3] sm:$0x1] }
   0x4   :  { %v24_v4 = vmul.f32 %v21_v2, %v21_v2  ;;  %v41_v11 = vsub.s32 0, %v40_v9  ;;  %v31_v14 = vld [vmem:[%s141_s4] sm:$0x1] }
   0x5   :  { %v34_v15 = vld [vmem:[%s142_s0] sm:$0xff] }
   0x6   :  { %v25_v5 = vsub.f32 %v23_v3, %v24_v4 }
   0x8   :  { %v26_v6 = vmax.f32 %v25_v5, 0.0 }
   0xa   :  { %v28_v7 = vadd.f32 1e-05, %v26_v6 }
   0xc   :  { %70 = vrsqrt.f32 %v28_v7 }
  0x19   :  { %v71_v12 = vpop.eup %70 }
  0x1a   :  { %v30_v13 = vmul.f32 %v71_v12, %v27_v10 }
  0x1c   :  { %v32_v18 = vmul.f32 %v30_v13, %v21_v2  ;;  %v42_v19 = vrot.slane %v30_v13, %v41_v11 }
  0x1e   :  { %v33_v21 = vsub.f32 %v31_v14, %v32_v18  ;;  %v44_v22 = vmul.f32 %v42_v19, %v34_v15  ;;  %v45_v23 = vmul.f32 %v42_v19, %v35_v16  ;;  %v46_v24 = vmul.f32 %v42_v19, %v36_v17 }
  0x1f   :  { %v47_v25 = vmul.f32 %v42_v19, %v37_v20 }
  0x20   :  { %v52_v26 = vrot.slane %v33_v21, %v41_v11 }
  0x22   :  { %v54_v27 = vadd.f32 %v52_v26, %v44_v22  ;;  %v55_v28 = vadd.f32 %v52_v26, %v45_v23  ;;  %v56_v29 = vadd.f32 %v52_v26, %v46_v24  ;;  %v57_v30 = vadd.f32 %v52_v26, %v47_v25 }
  0x24   :  { %v58_v31 = vmax.f32 %v54_v27, 0.0  ;;  %v59_v32 = vmax.f32 %v55_v28, 0.0  ;;  %v60_v33 = vmax.f32 %v56_v29, 0.0  ;;  %v61_v34 = vmax.f32 %v57_v30, 0.0 }
  0x26   :  { %62 = vst [vmem:[%s143_s5] sm:$0xff] %v58_v31  ;;  %63 = vst [vmem:[%s143_s5 + $0x8] sm:$0xff] %v59_v32 }
  0x27   :  { %64 = vst [vmem:[%s143_s5 + $0x10] sm:$0xff] %v60_v33  ;;  %65 = vst [vmem:[%s143_s5 + $0x18] sm:$0xff] %v61_v34 }

// kernel: resnet_generator_forward.51
= control target key start
LH: loop header
LB: loop body
LE: loop exit
PB: predicated region body
PF: predicated region fallthrough
CT: control target
= control target key end

     0   :  { %v377_v20 = vmov 0.0   ;;  %s493_s1 = inlined_call_operand.vmem [shape: bf16[256,128], index: 1, kind: input, shape index: {}]   ;;  %s494_s0 = inlined_call_operand.vmem [shape: bf16[32,256], index: 0, kind: input, shape index: {}]   ;;  %s495_s3 = inlined_call_operand.vmem [shape: f32[1,128], index: 3, kind: output, shape index: {1}]   ;;  %s496_s4 = inlined_call_operand.vmem [shape: f32[1,128], index: 4, kind: output, shape index: {2}]   ;;  %s497_s2 = inlined_call_operand.vmem [shape: f32[32,128], index: 2, kind: output, shape index: {0}]  }
   0x1   :  { %v355_v0 = vld [vmem:[%s493_s1 + $0x78] sm:$0xff]   ;;  %v357_v2 = vld [vmem:[%s493_s1 + $0x70] sm:$0xff]   ;;  %v359_v4 = vld [vmem:[%s493_s1 + $0x68] sm:$0xff]   ;;  %28 = vst [vmem:[%s495_s3] sm:$0x1] %v377_v20 }
   0x2   :  { %v356_v1 = vld [vmem:[%s493_s1 + $0x38] sm:$0xff]   ;;  %310 = vmatprep.subr.bf16.mxu0 %v355_v0  ;;  %338 = vmatprep.subr.bf16.mxu1 %v355_v0  ;;  %v358_v3 = vld [vmem:[%s493_s1 + $0x30] sm:$0xff]   ;;  %v360_v5 = vld [vmem:[%s493_s1 + $0x28] sm:$0xff]   ;;  %29 = vst [vmem:[%s496_s4] sm:$0x1] %v377_v20 }
   0x3   :  { %311 = vmatpush3.bf16.msra.mxu0 %v356_v1  ;;  %346 = vmatpush3.bf16.msra.mxu1 %v356_v1  ;;  %v361_v6 = vld [vmem:[%s493_s1 + $0x60] sm:$0xff]   ;;  %v363_v8 = vld [vmem:[%s493_s1 + $0x58] sm:$0xff]   ;;  %v365_v10 = vld [vmem:[%s493_s1 + $0x50] sm:$0xff]  }
   0x4   :  { %312 = vmatprep.subr.bf16.mxu0 %v357_v2  ;;  %339 = vmatprep.subr.bf16.mxu1 %v357_v2  ;;  %v362_v7 = vld [vmem:[%s493_s1 + $0x20] sm:$0xff]   ;;  %v364_v9 = vld [vmem:[%s493_s1 + $0x18] sm:$0xff]   ;;  %v366_v13 = vld [vmem:[%s493_s1 + $0x10] sm:$0xff]  }
   0x5   :  { %v373_v11 = vld [vmem:[%s494_s0 + $0x4] ss:$8 sps:$4 sm:$0xff]   ;;  %v376_v12 = vld [vmem:[%s494_s0 + $0x14] ss:$8 sps:$4 sm:$0xff]   ;;  %v371_v18 = vld [vmem:[%s494_s0] ss:$8 sps:$4 sm:$0xff]  }
   0x6   :  { %v367_v14 = vld [vmem:[%s493_s1 + $0x48] sm:$0xff]   ;;  %218 = vmatprep.mubr.bf16.mxu0 %v373_v11  ;;  %226 = vmatprep.mubr.bf16.mxu1 %v376_v12  ;;  %v369_v16 = vld [vmem:[%s493_s1 + $0x40] sm:$0xff]   ;;  %v374_v19 = vld [vmem:[%s494_s0 + $0x10] ss:$8 sps:$4 sm:$0xff]  }
   0x7   :  { %313 = vmatpush3.bf16.msra.mxu0 %v358_v3  ;;  %347 = vmatpush3.bf16.msra.mxu1 %v358_v3  ;;  %v368_v15 = vld [vmem:[%s493_s1 + $0x8] sm:$0xff]   ;;  %v370_v17 = vld [vmem:[%s493_s1] sm:$0xff]  }
   0x8   :  { %314 = vmatprep.subr.bf16.mxu0 %v359_v4  ;;  %340 = vmatprep.subr.bf16.mxu1 %v359_v4  ;;  %v250_v52 = vld [vmem:[%s495_s3] sm:$0x1] }
   0x9   :  { %v262_v55 = vld [vmem:[%s496_s4] sm:$0x1] }
   0xb   :  { %315 = vmatpush3.bf16.msra.mxu0 %v360_v5  ;;  %348 = vmatpush3.bf16.msra.mxu1 %v360_v5 }
   0xc   :  { %316 = vmatprep.subr.bf16.mxu0 %v361_v6  ;;  %341 = vmatprep.subr.bf16.mxu1 %v361_v6 }
   0xf   :  { %317 = vmatpush3.bf16.msra.mxu0 %v362_v7  ;;  %349 = vmatpush3.bf16.msra.mxu1 %v362_v7 }
  0x10   :  { %318 = vmatprep.subr.bf16.mxu0 %v363_v8  ;;  %342 = vmatprep.subr.bf16.mxu1 %v363_v8 }
  0x13   :  { %319 = vmatpush3.bf16.msra.mxu0 %v364_v9  ;;  %350 = vmatpush3.bf16.msra.mxu1 %v364_v9 }
  0x14   :  { %320 = vmatprep.subr.bf16.mxu0 %v365_v10  ;;  %343 = vmatprep.subr.bf16.mxu1 %v365_v10 }
  0x17   :  { %321 = vmatpush3.bf16.msra.mxu0 %v366_v13  ;;  %351 = vmatpush3.bf16.msra.mxu1 %v366_v13 }
  0x18   :  { %322 = vmatprep.subr.bf16.mxu0 %v367_v14  ;;  %344 = vmatprep.subr.bf16.mxu1 %v367_v14 }
  0x1b   :  { %323 = vmatpush3.bf16.msra.mxu0 %v368_v15  ;;  %352 = vmatpush3.bf16.msra.mxu1 %v368_v15 }
  0x1c   :  { %324 = vmatprep.subr.bf16.mxu0 %v369_v16  ;;  %345 = vmatprep.subr.bf16.mxu1 %v369_v16 }
  0x1f   :  { %325 = vmatpush3.bf16.msra.mxu0 %v370_v17  ;;  %353 = vmatpush3.bf16.msra.mxu1 %v370_v17 }
  0x22   :  { %219 = vmatmul.mubr.bf16.vlgmr.msra.gmra.mxu0 %v371_v18  ;;  %227 = vmatmul.mubr.bf16.vlgmr.msra.gmra.mxu1 %v374_v19 }
  0xe2   :  { %v326_v21 = vpop.f32.mrf.mxu0  ;;  %v332_v22 = vpop.f32.mrf.mxu1 }
  0xe4   :  { %v327_v23 = vpop.f32.mrf.mxu0  ;;  %v333_v24 = vpop.f32.mrf.mxu1 }
  0xe5   :  { %v328_v25 = vadd.f32 %v327_v23, %v326_v21  ;;  %v334_v26 = vadd.f32 %v333_v24, %v332_v22 }
  0xe6   :  { %v329_v27 = vpop.f32.mrf.mxu0  ;;  %v335_v28 = vpop.f32.mrf.mxu1 }
  0xe7   :  { %239 = vst [vmem:[%s497_s2] sm:$0xff] %v328_v25  ;;  %241 = vst [vmem:[%s497_s2 + $0x10] sm:$0xff] %v334_v26  ;;  %v263_v33 = vmul.f32 %v328_v25, %v328_v25  ;;  %v265_v36 = vmul.f32 %v334_v26, %v334_v26 }
  0xe8   :  { %v330_v29 = vpop.f32.mrf.mxu0  ;;  %v336_v30 = vpop.f32.mrf.mxu1 }
  0xe9   :  { %v331_v31 = vadd.f32 %v330_v29, %v329_v27  ;;  %v337_v32 = vadd.f32 %v336_v30, %v335_v28 }
  0xeb   :  { %240 = vst [vmem:[%s497_s2 + $0x8] sm:$0xff] %v331_v31  ;;  %v251_v34 = vadd.f32 %v331_v31, %v328_v25  ;;  %v264_v35 = vmul.f32 %v331_v31, %v331_v31  ;;  %242 = vst [vmem:[%s497_s2 + $0x18] sm:$0xff] %v337_v32  ;;  %v266_v40 = vmul.f32 %v337_v32, %v337_v32 }
  0xed   :  { %v267_v37 = vadd.f32 %v264_v35, %v263_v33  ;;  %v252_v38 = vadd.f32 %v334_v26, %v251_v34 }
  0xef   :  { %v253_v39 = vadd.f32 %v337_v32, %v252_v38  ;;  %v268_v41 = vadd.f32 %v267_v37, %v265_v36 }
  0xf1   :  { %v254_v42 = vrot.slane %v253_v39, 4  ;;  %v269_v43 = vadd.f32 %v268_v41, %v266_v40 }
  0xf3   :  { %v255_v44 = vadd.f32 %v254_v42, %v253_v39  ;;  %v270_v45 = vrot.slane %v269_v43, 4 }
  0xf5   :  { %v256_v46 = vrot.slane %v255_v44, 2  ;;  %v271_v47 = vadd.f32 %v270_v45, %v269_v43 }
  0xf7   :  { %v257_v48 = vadd.f32 %v256_v46, %v255_v44  ;;  %v272_v49 = vrot.slane %v271_v47, 2 }
  0xf9   :  { %v258_v50 = vrot.slane %v257_v48, 1  ;;  %v273_v51 = vadd.f32 %v272_v49, %v271_v47 }
  0xfb   :  { %v259_v53 = vadd.f32 %v258_v50, %v257_v48  ;;  %v274_v54 = vrot.slane %v273_v51, 1 }
  0xfd   :  { %v260_v56 = vadd.f32 %v259_v53, %v250_v52  ;;  %v275_v57 = vadd.f32 %v274_v54, %v273_v51 }
  0xff   :  { %261 = vst [vmem:[%s495_s3] sm:$0x1] %v260_v56  ;;  %v276_v58 = vadd.f32 %v275_v57, %v262_v55 }
 0x101   :  { %277 = vst [vmem:[%s496_s4] sm:$0x1] %v276_v58 }

// kernel: resnet_generator_forward.56
= control target key start
LH: loop header
LB: loop body
LE: loop exit
PB: predicated region body
PF: predicated region fallthrough
CT: control target
= control target key end

     0   :  { %v42_v8 = vlaneseq  ;;  %s162_s1 = inlined_call_operand.vmem [shape: f32[1,128], index: 1, kind: input, shape index: {}]   ;;  %s163_s2 = inlined_call_operand.vmem [shape: f32[1,128], index: 2, kind: input, shape index: {}]   ;;  %s164_s3 = inlined_call_operand.vmem [shape: f32[1,128], index: 3, kind: input, shape index: {}]   ;;  %s165_s4 = inlined_call_operand.vmem [shape: f32[1,128], index: 4, kind: input, shape index: {}]   ;;  %s166_s0 = inlined_call_operand.vmem [shape: f32[32,128], index: 0, kind: input, shape index: {}]   ;;  %s167_s5 = inlined_call_operand.vmem [shape: f32[32,128], index: 5, kind: input, shape index: {}]   ;;  %s168_s6 = inlined_call_operand.vmem [shape: f32[32,128], index: 6, kind: output, shape index: {}]  }
   0x1   :  { %v23_v0 = vld [vmem:[%s162_s1] sm:$0x1]  ;;  %v38_v16 = vld [vmem:[%s166_s0 + $0x8] sm:$0xff]  ;;  %v39_v17 = vld [vmem:[%s166_s0 + $0x10] sm:$0xff] }
   0x2   :  { %v25_v1 = vld [vmem:[%s163_s2] sm:$0x1]  ;;  %v24_v2 = vmul.f32 0.03125, %v23_v0  ;;  %v43_v9 = vshrl.u32 %v42_v8, 7  ;;  %v40_v20 = vld [vmem:[%s166_s0 + $0x18] sm:$0xff]  ;;  %v62_v28 = vld [vmem:[%s167_s5 + $0x8] sm:$0xff] }
   0x3   :  { %v26_v3 = vmul.f32 0.03125, %v25_v1  ;;  %v30_v10 = vld [vmem:[%s164_s3] sm:$0x1]  ;;  %v63_v29 = vld [vmem:[%s167_s5 + $0x10] sm:$0xff]  ;;  %v64_v30 = vld [vmem:[%s167_s5 + $0x18] sm:$0xff] }
   0x4   :  { %v27_v4 = vmul.f32 %v24_v2, %v24_v2  ;;  %v44_v11 = vsub.s32 0, %v43_v9  ;;  %v34_v14 = vld [vmem:[%s165_s4] sm:$0x1] }
   0x5   :  { %v37_v15 = vld [vmem:[%s166_s0] sm:$0xff] }
   0x6   :  { %v28_v5 = vsub.f32 %v26_v3, %v27_v4  ;;  %v61_v27 = vld [vmem:[%s167_s5] sm:$0xff] }
   0x8   :  { %v29_v6 = vmax.f32 %v28_v5, 0.0 }
   0xa   :  { %v31_v7 = vadd.f32 1e-05, %v29_v6 }
   0xc   :  { %77 = vrsqrt.f32 %v31_v7 }
  0x19   :  { %v78_v12 = vpop.eup %77 }
  0x1a   :  { %v33_v13 = vmul.f32 %v78_v12, %v30_v10 }
  0x1c   :  { %v35_v18 = vmul.f32 %v33_v13, %v24_v2  ;;  %v45_v19 = vrot.slane %v33_v13, %v44_v11 }
  0x1e   :  { %v36_v21 = vsub.f32 %v34_v14, %v35_v18  ;;  %v47_v22 = vmul.f32 %v45_v19, %v37_v15  ;;  %v48_v23 = vmul.f32 %v45_v19, %v38_v16  ;;  %v49_v24 = vmul.f32 %v45_v19, %v39_v17 }
  0x1f   :  { %v50_v25 = vmul.f32 %v45_v19, %v40_v20 }
  0x20   :  { %v55_v26 = vrot.slane %v36_v21, %v44_v11 }
  0x22   :  { %v57_v31 = vadd.f32 %v55_v26, %v47_v22  ;;  %v58_v32 = vadd.f32 %v55_v26, %v48_v23  ;;  %v59_v33 = vadd.f32 %v55_v26, %v49_v24  ;;  %v60_v34 = vadd.f32 %v55_v26, %v50_v25 }
  0x24   :  { %v65_v35 = vadd.f32 %v61_v27, %v57_v31  ;;  %v66_v36 = vadd.f32 %v62_v28, %v58_v32  ;;  %v67_v37 = vadd.f32 %v63_v29, %v59_v33  ;;  %v68_v38 = vadd.f32 %v64_v30, %v60_v34 }
  0x26   :  { %69 = vst [vmem:[%s168_s6] sm:$0xff] %v65_v35  ;;  %70 = vst [vmem:[%s168_s6 + $0x8] sm:$0xff] %v66_v36 }
  0x27   :  { %71 = vst [vmem:[%s168_s6 + $0x10] sm:$0xff] %v67_v37  ;;  %72 = vst [vmem:[%s168_s6 + $0x18] sm:$0xff] %v68_v38 }

// kernel: resnet_generator_forward.53
= control target key start
LH: loop header
LB: loop body
LE: loop exit
PB: predicated region body
PF: predicated region fallthrough
CT: control target
= control target key end

     0   :  { %v540_v30 = vmov 0.0   ;;  %s686_s1 = inlined_call_operand.vmem [shape: bf16[384,128], index: 1, kind: input, shape index: {}]   ;;  %s687_s0 = inlined_call_operand.vmem [shape: bf16[32,384], index: 0, kind: input, shape index: {}]   ;;  %s688_s3 = inlined_call_operand.vmem [shape: f32[1,128], index: 3, kind: output, shape index: {1}]   ;;  %s689_s4 = inlined_call_operand.vmem [shape: f32[1,128], index: 4, kind: output, shape index: {2}]   ;;  %s690_s2 = inlined_call_operand.vmem [shape: f32[32,128], index: 2, kind: output, shape index: {0}]  }
   0x1   :  { %v508_v0 = vld [vmem:[%s686_s1 + $0x78] sm:$0xff]   ;;  %v511_v3 = vld [vmem:[%s686_s1 + $0x70] sm:$0xff]   ;;  %v514_v6 = vld [vmem:[%s686_s1 + $0x68] sm:$0xff]   ;;  %28 = vst [vmem:[%s688_s3] sm:$0x1] %v540_v30 }
   0x2   :  { %v509_v1 = vld [vmem:[%s686_s1 + $0xb8] sm:$0xff]   ;;  %449 = vmatprep.subr.bf16.mxu0 %v508_v0  ;;  %v512_v4 = vld [vmem:[%s686_s1 + $0xb0] sm:$0xff]   ;;  %v515_v7 = vld [vmem:[%s686_s1 + $0xa8] sm:$0xff]   ;;  %29 = vst [vmem:[%s689_s4] sm:$0x1] %v540_v30 }
   0x3   :  { %v510_v2 = vld [vmem:[%s686_s1 + $0x38] sm:$0xff]   ;;  %487 = vmatprep.subr.bf16.mxu1 %v509_v1  ;;  %v513_v5 = vld [vmem:[%s686_s1 + $0x30] sm:$0xff]   ;;  %v516_v8 = vld [vmem:[%s686_s1 + $0x28] sm:$0xff]  }
   0x4   :  { %450 = vmatpush3.bf16.msra.mxu0 %v510_v2  ;;  %488 = vmatpush3.bf16.msra.mxu1 %v509_v1  ;;  %v517_v9 = vld [vmem:[%s686_s1 + $0x60] sm:$0xff]   ;;  %v520_v12 = vld [vmem:[%s686_s1 + $0x58] sm:$0xff]   ;;  %v523_v15 = vld [vmem:[%s686_s1 + $0x50] sm:$0xff]  }
   0x5   :  { %451 = vmatprep.subr.bf16.mxu0 %v511_v3  ;;  %489 = vmatprep.subr.bf16.mxu1 %v512_v4  ;;  %v518_v10 = vld [vmem:[%s686_s1 + $0xa0] sm:$0xff]   ;;  %v521_v13 = vld [vmem:[%s686_s1 + $0x98] sm:$0xff]   ;;  %v524_v16 = vld [vmem:[%s686_s1 + $0x90] sm:$0xff]  }
   0x6   :  { %v519_v11 = vld [vmem:[%s686_s1 + $0x20] sm:$0xff]   ;;  %v522_v14 = vld [vmem:[%s686_s1 + $0x18] sm:$0xff]   ;;  %v525_v17 = vld [vmem:[%s686_s1 + $0x10] sm:$0xff]  }
   0x7   :  { %v526_v18 = vld [vmem:[%s686_s1 + $0x48] sm:$0xff]   ;;  %v529_v21 = vld [vmem:[%s686_s1 + $0x40] sm:$0xff]  }
   0x8   :  { %452 = vmatpush3.bf16.msra.mxu0 %v513_v5  ;;  %490 = vmatpush3.bf16.msra.mxu1 %v512_v4  ;;  %v527_v19 = vld [vmem:[%s686_s1 + $0x88] sm:$0xff]   ;;  %v530_v22 = vld [vmem:[%s686_s1 + $0x80] sm:$0xff]  }
   0x9   :  { %453 = vmatprep.subr.bf16.mxu0 %v514_v6  ;;  %491 = vmatprep.subr.bf16.mxu1 %v515_v7  ;;  %v528_v20 = vld [vmem:[%s686_s1 + $0x8] sm:$0xff]   ;;  %v534_v23 = vld [vmem:[%s687_s0 + $0x4] ss:$12 sps:$4 sm:$0xff]   ;;  %v379_v6 = vld [vmem:[%s688_s3] sm:$0x1] }
   0xa   :  { %v535_v24 = vld [vmem:[%s687_s0 + $0x8] ss:$12 sps:$4 sm:$0xff]   ;;  %298 = vmatprep.mubr.bf16.mxu0 %v534_v23  ;;  %v531_v25 = vld [vmem:[%s686_s1] sm:$0xff]  }
   0xb   :  { %503 = vmatprep.mubr.bf16.mxu1 %v535_v24  ;;  %v532_v26 = vld [vmem:[%s687_s0] ss:$12 sps:$4 sm:$0xff]   ;;  %v537_v28 = vld [vmem:[%s687_s0 + $0x1c] ss:$12 sps:$4 sm:$0xff]   ;;  %v539_v29 = vld [vmem:[%s687_s0 + $0x18] ss:$12 sps:$4 sm:$0xff]  }
   0xc   :  { %454 = vmatpush3.bf16.msra.mxu0 %v516_v8  ;;  %492 = vmatpush3.bf16.msra.mxu1 %v515_v7  ;;  %v536_v27 = vld [vmem:[%s687_s0 + $0x20] ss:$12 sps:$4 sm:$0xff]  }
   0xd   :  { %455 = vmatprep.subr.bf16.mxu0 %v517_v9  ;;  %493 = vmatprep.subr.bf16.mxu1 %v518_v10  ;;  %v391_v9 = vld [vmem:[%s689_s4] sm:$0x1] }
  0x10   :  { %456 = vmatpush3.bf16.msra.mxu0 %v519_v11  ;;  %494 = vmatpush3.bf16.msra.mxu1 %v518_v10 }
  0x11   :  { %457 = vmatprep.subr.bf16.mxu0 %v520_v12  ;;  %495 = vmatprep.subr.bf16.mxu1 %v521_v13 }
  0x14   :  { %458 = vmatpush3.bf16.msra.mxu0 %v522_v14  ;;  %496 = vmatpush3.bf16.msra.mxu1 %v521_v13 }
  0x15   :  { %459 = vmatprep.subr.bf16.mxu0 %v523_v15  ;;  %497 = vmatprep.subr.bf16.mxu1 %v524_v16 }
  0x18   :  { %460 = vmatpush3.bf16.msra.mxu0 %v525_v17  ;;  %498 = vmatpush3.bf16.msra.mxu1 %v524_v16 }
  0x19   :  { %461 = vmatprep.subr.bf16.mxu0 %v526_v18  ;;  %499 = vmatprep.subr.bf16.mxu1 %v527_v19 }
  0x1c   :  { %462 = vmatpush3.bf16.msra.mxu0 %v528_v20  ;;  %500 = vmatpush3.bf16.msra.mxu1 %v527_v19 }
  0x1d   :  { %463 = vmatprep.subr.bf16.mxu0 %v529_v21  ;;  %501 = vmatprep.subr.bf16.mxu1 %v530_v22 }
  0x20   :  { %464 = vmatpush3.bf16.msra.mxu0 %v531_v25  ;;  %502 = vmatpush3.bf16.msra.mxu1 %v530_v22 }
  0x23   :  { %299 = vmatmul.mubr.bf16.vlgmr.msra.gmra.mxu0 %v532_v26  ;;  %504 = vmatmul.mubr.bf16.vlgmr.msra.gmra.mxu1 %v536_v27 }
  0x24   :  { %306 = vmatprep.mubr.bf16.mxu0 %v537_v28 }
  0x2b   :  { %307 = vmatmul.mubr.bf16.gmra.mxu0 %v539_v29 }
  0xe3   :  { %v465_v31 = vpop.f32.mrf.mxu0  ;;  %v505_v32 = vpop.f32.mrf.mxu1 }
  0xe5   :  { %v466_v33 = vpop.f32.mrf.mxu0  ;;  %v349_v34 = vpop.f32.mrf.mxu1 }
  0xe6   :  { %v467_v35 = vadd.f32 %v466_v33, %v465_v31 }
  0xe7   :  { %v468_v36 = vpop.f32.mrf.mxu0  ;;  %v506_v37 = vpop.f32.mrf.mxu1 }
  0xe8   :  { %v350_v38 = vadd.f32 %v467_v35, %v349_v34 }
  0xe9   :  { %v469_v39 = vpop.f32.mrf.mxu0  ;;  %v352_v41 = vpop.f32.mrf.mxu1 }
  0xea   :  { %v470_v40 = vadd.f32 %v469_v39, %v468_v36  ;;  %368 = vst [vmem:[%s690_s2] sm:$0xff] %v350_v38  ;;  %v392_v51 = vmul.f32 %v350_v38, %v350_v38 }
  0xeb   :  { %v471_v42 = vpop.f32.mrf.mxu0 }
  0xec   :  { %v353_v43 = vadd.f32 %v470_v40, %v352_v41 }
  0xed   :  { %v472_v44 = vpop.f32.mrf.mxu0 }
  0xee   :  { %v473_v45 = vadd.f32 %v472_v44, %v471_v42  ;;  %369 = vst [vmem:[%s690_s2 + $0x8] sm:$0xff] %v353_v43  ;;  %v393_v49 = vmul.f32 %v353_v43, %v353_v43  ;;  %v380_v52 = vadd.f32 %v353_v43, %v350_v38 }
  0xef   :  { %v474_v46 = vpop.f32.mrf.mxu0 }
  0xf0   :  { %v358_v47 = vadd.f32 %v505_v32, %v473_v45  ;;  %v396_v55 = vadd.f32 %v393_v49, %v392_v51 }
  0xf1   :  { %v475_v48 = vpop.f32.mrf.mxu0 }
  0xf2   :  { %v476_v50 = vadd.f32 %v475_v48, %v474_v46  ;;  %370 = vst [vmem:[%s690_s2 + $0x10] sm:$0xff] %v358_v47  ;;  %v394_v53 = vmul.f32 %v358_v47, %v358_v47  ;;  %v381_v56 = vadd.f32 %v380_v52, %v358_v47 }
  0xf4   :  { %v361_v54 = vadd.f32 %v506_v37, %v476_v50  ;;  %v397_v57 = vadd.f32 %v396_v55, %v394_v53 }
  0xf6   :  { %371 = vst [vmem:[%s690_s2 + $0x18] sm:$0xff] %v361_v54  ;;  %v382_v58 = vadd.f32 %v381_v56, %v361_v54  ;;  %v395_v59 = vmul.f32 %v361_v54, %v361_v54 }
  0xf8   :  { %v383_v60 = vrot.slane %v382_v58, 4  ;;  %v398_v61 = vadd.f32 %v397_v57, %v395_v59 }
  0xfa   :  { %v384_v62 = vadd.f32 %v383_v60, %v382_v58  ;;  %v399_v63 = vrot.slane %v398_v61, 4 }
  0xfc   :  { %v385_v0 = vrot.slane %v384_v62, 2  ;;  %v400_v1 = vadd.f32 %v399_v63, %v398_v61 }
  0xfe   :  { %v386_v2 = vadd.f32 %v385_v0, %v384_v62  ;;  %v401_v3 = vrot.slane %v400_v1, 2 }
 0x100   :  { %v387_v4 = vrot.slane %v386_v2, 1  ;;  %v402_v5 = vadd.f32 %v401_v3, %v400_v1 }
 0x102   :  { %v388_v7 = vadd.f32 %v387_v4, %v386_v2  ;;  %v403_v8 = vrot.slane %v402_v5, 1 }
 0x104   :  { %v389_v10 = vadd.f32 %v388_v7, %v379_v6  ;;  %v404_v11 = vadd.f32 %v403_v8, %v402_v5 }
 0x106   :  { %390 = vst [vmem:[%s688_s3] sm:$0x1] %v389_v10  ;;  %v405_v12 = vadd.f32 %v404_v11, %v391_v9 }
 0x108   :  { %406 = vst [vmem:[%s689_s4] sm:$0x1] %v405_v12 }

// kernel: resnet_generator_forward.64
= control target key start
LH: loop header
LB: loop body
LE: loop exit
PB: predicated region body
PF: predicated region fallthrough
CT: control target
= control target key end

     0   :  { %v655_v20 = vmov 0.0   ;;  %s879_s1 = inlined_call_operand.vmem [shape: bf16[128,128], index: 1, kind: input, shape index: {}]   ;;  %s880_s0 = inlined_call_operand.vmem [shape: bf16[192,128], index: 0, kind: input, shape index: {}]   ;;  %s881_s3 = inlined_call_operand.vmem [shape: f32[1,128], index: 3, kind: output, shape index: {1}]   ;;  %s882_s4 = inlined_call_operand.vmem [shape: f32[1,128], index: 4, kind: output, shape index: {2}]   ;;  %s883_s2 = inlined_call_operand.vmem [shape: f32[192,128], index: 2, kind: output, shape index: {0}]  }
   0x1   :  { %v635_v0 = vld [vmem:[%s879_s1 + $0x38] sm:$0xff]   ;;  %v636_v1 = vld [vmem:[%s879_s1 + $0x30] sm:$0xff]   ;;  %v637_v2 = vld [vmem:[%s879_s1 + $0x28] sm:$0xff]   ;;  %48 = vst [vmem:[%s881_s3] sm:$0x1] %v655_v20 }
   0x2   :  { %578 = vmatprep.subr.bf16.mxu0 %v635_v0  ;;  %618 = vmatprep.subr.bf16.mxu1 %v635_v0  ;;  %v638_v3 = vld [vmem:[%s879_s1 + $0x20] sm:$0xff]   ;;  %v639_v5 = vld [vmem:[%s879_s1 + $0x18] sm:$0xff]   ;;  %v649_v6 = vld [vmem:[%s880_s0 + $0x30] sm:$0xff]   ;;  %49 = vst [vmem:[%s882_s4] sm:$0x1] %v655_v20 }
   0x3   :  { %579 = vmatpush3.bf16.msra.mxu0 %v635_v0  ;;  %626 = vmatpush3.bf16.msra.mxu1 %v635_v0  ;;  %v643_v4 = vld [vmem:[%s880_s0] sm:$0xff]   ;;  %v640_v7 = vld [vmem:[%s879_s1 + $0x10] sm:$0xff]   ;;  %v641_v8 = vld [vmem:[%s879_s1 + $0x8] sm:$0xff]  }
   0x4   :  { %580 = vmatprep.subr.bf16.mxu0 %v636_v1  ;;  %619 = vmatprep.subr.bf16.mxu1 %v636_v1  ;;  %v642_v9 = vld [vmem:[%s879_s1] sm:$0xff]   ;;  %v644_v10 = vld [vmem:[%s880_s0 + $0x8] sm:$0xff]   ;;  %v650_v11 = vld [vmem:[%s880_s0 + $0x38] sm:$0xff]  }
   0x5   :  { %594 = vmatprep.mubr.bf16.mxu0 %v643_v4  ;;  %606 = vmatprep.mubr.bf16.mxu1 %v649_v6  ;;  %v645_v12 = vld [vmem:[%s880_s0 + $0x10] sm:$0xff]   ;;  %v651_v13 = vld [vmem:[%s880_s0 + $0x40] sm:$0xff]   ;;  %v646_v14 = vld [vmem:[%s880_s0 + $0x18] sm:$0xff]  }
   0x6   :  { %v652_v15 = vld [vmem:[%s880_s0 + $0x48] sm:$0xff]   ;;  %v647_v16 = vld [vmem:[%s880_s0 + $0x20] sm:$0xff]   ;;  %v653_v17 = vld [vmem:[%s880_s0 + $0x50] sm:$0xff]  }
   0x7   :  { %581 = vmatpush3.bf16.msra.mxu0 %v636_v1  ;;  %627 = vmatpush3.bf16.msra.mxu1 %v636_v1  ;;  %v648_v18 = vld [vmem:[%s880_s0 + $0x28] sm:$0xff]   ;;  %v654_v19 = vld [vmem:[%s880_s0 + $0x58] sm:$0xff]  }
   0x8   :  { %582 = vmatprep.subr.bf16.mxu0 %v637_v2  ;;  %620 = vmatprep.subr.bf16.mxu1 %v637_v2 }
   0xb   :  { %583 = vmatpush3.bf16.msra.mxu0 %v637_v2  ;;  %628 = vmatpush3.bf16.msra.mxu1 %v637_v2 }
   0xc   :  { %584 = vmatprep.subr.bf16.mxu0 %v638_v3  ;;  %621 = vmatprep.subr.bf16.mxu1 %v638_v3 }
   0xf   :  { %585 = vmatpush3.bf16.msra.mxu0 %v638_v3  ;;  %629 = vmatpush3.bf16.msra.mxu1 %v638_v3 }
  0x10   :  { %586 = vmatprep.subr.bf16.mxu0 %v639_v5  ;;  %622 = vmatprep.subr.bf16.mxu1 %v639_v5 }
  0x13   :  { %587 = vmatpush3.bf16.msra.mxu0 %v639_v5  ;;  %630 = vmatpush3.bf16.msra.mxu1 %v639_v5 }
  0x14   :  { %588 = vmatprep.subr.bf16.mxu0 %v640_v7  ;;  %623 = vmatprep.subr.bf16.mxu1 %v640_v7 }
  0x17   :  { %589 = vmatpush3.bf16.msra.mxu0 %v640_v7  ;;  %631 = vmatpush3.bf16.msra.mxu1 %v640_v7 }
  0x18   :  { %590 = vmatprep.subr.bf16.mxu0 %v641_v8  ;;  %624 = vmatprep.subr.bf16.mxu1 %v641_v8 }
  0x1b   :  { %591 = vmatpush3.bf16.msra.mxu0 %v641_v8  ;;  %632 = vmatpush3.bf16.msra.mxu1 %v641_v8 }
  0x1c   :  { %592 = vmatprep.subr.bf16.mxu0 %v642_v9  ;;  %625 = vmatprep.subr.bf16.mxu1 %v642_v9 }
  0x1f   :  { %593 = vmatpush3.bf16.msra.mxu0 %v642_v9  ;;  %633 = vmatpush3.bf16.msra.mxu1 %v642_v9 }
  0x22   :  { %595 = vmatmul.mubr.bf16.vlgmr.msra.gmra.mxu0 %v644_v10  ;;  %607 = vmatmul.mubr.bf16.vlgmr.msra.gmra.mxu1 %v650_v11 }
  0x23   :  { %598 = vmatprep.mubr.bf16.mxu0 %v645_v12  ;;  %610 = vmatprep.mubr.bf16.mxu1 %v651_v13 }
  0x2a   :  { %599 = vmatmul.mubr.bf16.gmra.mxu0 %v646_v14  ;;  %611 = vmatmul.mubr.bf16.gmra.mxu1 %v652_v15 }
  0x2b   :  { %602 = vmatprep.mubr.bf16.mxu0 %v647_v16  ;;  %614 = vmatprep.mubr.bf16.mxu1 %v653_v17 }
  0x32   :  { %603 = vmatmul.mubr.bf16.gmra.mxu0 %v648_v18  ;;  %615 = vmatmul.mubr.bf16.gmra.mxu1 %v654_v19 }
  0xe2   :  { %v596_v21 = vpop.f32.mrf.mxu0  ;;  %v747_v22 = vpop.f32.mrf.mxu1 }
  0xe3   :  { %389 = vst [vmem:[%s883_s2 + $0x10] sm:$0xff] %v596_v21  ;;  %401 = vst [vmem:[%s883_s2 + $0x70] sm:$0xff] %v747_v22  ;;  %v473_v36 = vmul.f32 %v596_v21, %v596_v21  ;;  %v485_v20 = vmul.f32 %v747_v22, %v747_v22 }
  0xe4   :  { %v268_v23 = vpop.f32.mrf.mxu0  ;;  %v749_v24 = vpop.f32.mrf.mxu1 }
  0xe5   :  { %387 = vst [vmem:[%s883_s2] sm:$0xff] %v268_v23  ;;  %399 = vst [vmem:[%s883_s2 + $0x60] sm:$0xff] %v749_v24  ;;  %v471_v31 = vmul.f32 %v268_v23, %v268_v23  ;;  %v483_v14 = vmul.f32 %v749_v24, %v749_v24 }
  0xe6   :  { %v597_v25 = vpop.f32.mrf.mxu0  ;;  %v758_v26 = vpop.f32.mrf.mxu1 }
  0xe7   :  { %390 = vst [vmem:[%s883_s2 + $0x18] sm:$0xff] %v597_v25  ;;  %402 = vst [vmem:[%s883_s2 + $0x78] sm:$0xff] %v758_v26  ;;  %v474_v41 = vmul.f32 %v597_v25, %v597_v25 }
  0xe8   :  { %v271_v27 = vpop.f32.mrf.mxu0  ;;  %v767_v28 = vpop.f32.mrf.mxu1 }
  0xe9   :  { %388 = vst [vmem:[%s883_s2 + $0x8] sm:$0xff] %v271_v27  ;;  %v439_v32 = vadd.f32 %v271_v27, %v268_v23  ;;  %v472_v33 = vmul.f32 %v271_v27, %v271_v27  ;;  %400 = vst [vmem:[%s883_s2 + $0x68] sm:$0xff] %v767_v28  ;;  %v484_v18 = vmul.f32 %v767_v28, %v767_v28 }
  0xea   :  { %v600_v29 = vpop.f32.mrf.mxu0  ;;  %v776_v30 = vpop.f32.mrf.mxu1 }
  0xeb   :  { %v440_v37 = vadd.f32 %v596_v21, %v439_v32  ;;  %v495_v38 = vadd.f32 %v472_v33, %v471_v31  ;;  %393 = vst [vmem:[%s883_s2 + $0x30] sm:$0xff] %v600_v29  ;;  %405 = vst [vmem:[%s883_s2 + $0x90] sm:$0xff] %v776_v30  ;;  %v477_v56 = vmul.f32 %v600_v29, %v600_v29 }
  0xec   :  { %v284_v34 = vpop.f32.mrf.mxu0  ;;  %v785_v35 = vpop.f32.mrf.mxu1 }
  0xed   :  { %v496_v42 = vadd.f32 %v495_v38, %v473_v36  ;;  %391 = vst [vmem:[%s883_s2 + $0x20] sm:$0xff] %v284_v34  ;;  %v441_v43 = vadd.f32 %v597_v25, %v440_v37  ;;  %403 = vst [vmem:[%s883_s2 + $0x80] sm:$0xff] %v785_v35  ;;  %v475_v47 = vmul.f32 %v284_v34, %v284_v34 }
  0xee   :  { %v601_v39 = vpop.f32.mrf.mxu0  ;;  %v794_v40 = vpop.f32.mrf.mxu1  ;;  %v486_v25 = vmul.f32 %v758_v26, %v758_v26  ;;  %v487_v31 = vmul.f32 %v785_v35, %v785_v35  ;;  %v489_v36 = vmul.f32 %v776_v30, %v776_v30 }
  0xef   :  { %v442_v46 = vadd.f32 %v441_v43, %v284_v34  ;;  %v497_v48 = vadd.f32 %v496_v42, %v474_v41  ;;  %394 = vst [vmem:[%s883_s2 + $0x38] sm:$0xff] %v601_v39  ;;  %406 = vst [vmem:[%s883_s2 + $0x98] sm:$0xff] %v794_v40  ;;  %v478_v61 = vmul.f32 %v601_v39, %v601_v39 }
  0xf0   :  { %v287_v44 = vpop.f32.mrf.mxu0  ;;  %v335_v45 = vpop.f32.mrf.mxu1  ;;  %v490_v38 = vmul.f32 %v794_v40, %v794_v40 }
  0xf1   :  { %v498_v51 = vadd.f32 %v497_v48, %v475_v47  ;;  %392 = vst [vmem:[%s883_s2 + $0x28] sm:$0xff] %v287_v44  ;;  %v443_v52 = vadd.f32 %v442_v46, %v287_v44  ;;  %v476_v53 = vmul.f32 %v287_v44, %v287_v44  ;;  %404 = vst [vmem:[%s883_s2 + $0x88] sm:$0xff] %v335_v45 }
  0xf2   :  { %v604_v49 = vpop.f32.mrf.mxu0  ;;  %v810_v50 = vpop.f32.mrf.mxu1  ;;  %v488_v34 = vmul.f32 %v335_v45, %v335_v45 }
  0xf3   :  { %v444_v57 = vadd.f32 %v600_v29, %v443_v52  ;;  %v499_v58 = vadd.f32 %v498_v51, %v476_v53  ;;  %397 = vst [vmem:[%s883_s2 + $0x50] sm:$0xff] %v604_v49  ;;  %409 = vst [vmem:[%s883_s2 + $0xb0] sm:$0xff] %v810_v50  ;;  %v481_v8 = vmul.f32 %v604_v49, %v604_v49 }
  0xf4   :  { %v300_v54 = vpop.f32.mrf.mxu0  ;;  %v348_v55 = vpop.f32.mrf.mxu1 }
  0xf5   :  { %v500_v62 = vadd.f32 %v499_v58, %v477_v56  ;;  %395 = vst [vmem:[%s883_s2 + $0x40] sm:$0xff] %v300_v54  ;;  %v445_v63 = vadd.f32 %v601_v39, %v444_v57  ;;  %407 = vst [vmem:[%s883_s2 + $0xa0] sm:$0xff] %v348_v55  ;;  %v479_v3 = vmul.f32 %v300_v54, %v300_v54 }
  0xf6   :  { %v605_v59 = vpop.f32.mrf.mxu0  ;;  %v617_v60 = vpop.f32.mrf.mxu1  ;;  %v491_v42 = vmul.f32 %v348_v55, %v348_v55 }
  0xf7   :  { %v446_v2 = vadd.f32 %v445_v63, %v300_v54  ;;  %v501_v4 = vadd.f32 %v500_v62, %v478_v61  ;;  %398 = vst [vmem:[%s883_s2 + $0x58] sm:$0xff] %v605_v59  ;;  %410 = vst [vmem:[%s883_s2 + $0xb8] sm:$0xff] %v617_v60  ;;  %v482_v11 = vmul.f32 %v605_v59, %v605_v59  ;;  %v438_v62 = vld [vmem:[%s881_s3] sm:$0x1] }
  0xf8   :  { %v303_v0 = vpop.f32.mrf.mxu0  ;;  %v351_v1 = vpop.f32.mrf.mxu1 }
  0xf9   :  { %v502_v5 = vadd.f32 %v501_v4, %v479_v3  ;;  %396 = vst [vmem:[%s883_s2 + $0x48] sm:$0xff] %v303_v0  ;;  %v447_v6 = vadd.f32 %v446_v2, %v303_v0  ;;  %v480_v7 = vmul.f32 %v303_v0, %v303_v0  ;;  %408 = vst [vmem:[%s883_s2 + $0xa8] sm:$0xff] %v351_v1 }
  0xfa   :  { %v492_v46 = vmul.f32 %v351_v1, %v351_v1 }
  0xfb   :  { %v448_v9 = vadd.f32 %v604_v49, %v447_v6  ;;  %v503_v10 = vadd.f32 %v502_v5, %v480_v7 }
  0xfd   :  { %v504_v12 = vadd.f32 %v503_v10, %v481_v8  ;;  %v449_v13 = vadd.f32 %v605_v59, %v448_v9 }
  0xff   :  { %v450_v15 = vadd.f32 %v449_v13, %v749_v24  ;;  %v505_v16 = vadd.f32 %v504_v12, %v482_v11 }
 0x101   :  { %v451_v17 = vadd.f32 %v450_v15, %v767_v28  ;;  %v506_v19 = vadd.f32 %v505_v16, %v483_v14 }
 0x103   :  { %v452_v21 = vadd.f32 %v747_v22, %v451_v17  ;;  %v507_v23 = vadd.f32 %v506_v19, %v484_v18 }
 0x105   :  { %v508_v27 = vadd.f32 %v507_v23, %v485_v20  ;;  %v453_v29 = vadd.f32 %v758_v26, %v452_v21 }
 0x107   :  { %v454_v24 = vadd.f32 %v453_v29, %v785_v35  ;;  %v509_v32 = vadd.f32 %v508_v27, %v486_v25 }
 0x109   :  { %v510_v28 = vadd.f32 %v509_v32, %v487_v31  ;;  %v455_v33 = vadd.f32 %v454_v24, %v335_v45  ;;  %v493_v45 = vmul.f32 %v810_v50, %v810_v50 }
 0x10b   :  { %v456_v22 = vadd.f32 %v776_v30, %v455_v33  ;;  %v511_v37 = vadd.f32 %v510_v28, %v488_v34  ;;  %v494_v30 = vmul.f32 %v617_v60, %v617_v60 }
 0x10d   :  { %v512_v39 = vadd.f32 %v511_v37, %v489_v36  ;;  %v457_v26 = vadd.f32 %v794_v40, %v456_v22 }
 0x10f   :  { %v458_v41 = vadd.f32 %v457_v26, %v348_v55  ;;  %v513_v43 = vadd.f32 %v512_v39, %v490_v38 }
 0x111   :  { %v514_v35 = vadd.f32 %v513_v43, %v491_v42  ;;  %v459_v44 = vadd.f32 %v458_v41, %v351_v1 }
 0x113   :  { %v460_v47 = vadd.f32 %v810_v50, %v459_v44  ;;  %v515_v48 = vadd.f32 %v514_v35, %v492_v46 }
 0x115   :  { %v461_v49 = vadd.f32 %v617_v60, %v460_v47  ;;  %v516_v51 = vadd.f32 %v515_v48, %v493_v45  ;;  %v470_v60 = vld [vmem:[%s882_s4] sm:$0x1] }
 0x117   :  { %v462_v52 = vrot.slane %v461_v49, 4  ;;  %v517_v53 = vadd.f32 %v516_v51, %v494_v30 }
 0x119   :  { %v463_v54 = vadd.f32 %v462_v52, %v461_v49  ;;  %v518_v56 = vrot.slane %v517_v53, 4 }
 0x11b   :  { %v464_v40 = vrot.slane %v463_v54, 2  ;;  %v519_v57 = vadd.f32 %v518_v56, %v517_v53 }
 0x11d   :  { %v465_v55 = vadd.f32 %v464_v40, %v463_v54  ;;  %v520_v58 = vrot.slane %v519_v57, 2 }
 0x11f   :  { %v466_v59 = vrot.slane %v465_v55, 1  ;;  %v521_v61 = vadd.f32 %v520_v58, %v519_v57 }
 0x121   :  { %v467_v63 = vadd.f32 %v466_v59, %v465_v55  ;;  %v522_v50 = vrot.slane %v521_v61, 1 }
 0x123   :  { %v468_v0 = vadd.f32 %v467_v63, %v438_v62  ;;  %v523_v1 = vadd.f32 %v522_v50, %v521_v61 }
 0x125   :  { %469 = vst [vmem:[%s881_s3] sm:$0x1] %v468_v0  ;;  %v524_v2 = vadd.f32 %v523_v1, %v470_v60 }
 0x127   :  { %525 = vst [vmem:[%s882_s4] sm:$0x1] %v524_v2 }

// kernel: resnet_generator_forward.68
= control target key start
LH: loop header
LB: loop body
LE: loop exit
PB: predicated region body
PF: predicated region fallthrough
CT: control target
= control target key end

     0   :  { %v847_v40 = vmov 0.0   ;;  %s1143_s1 = inlined_call_operand.vmem [shape: bf16[256,128], index: 1, kind: input, shape index: {}]   ;;  %s1144_s0 = inlined_call_operand.vmem [shape: bf16[192,256], index: 0, kind: input, shape index: {}]   ;;  %s1145_s3 = inlined_call_operand.vmem [shape: f32[1,128], index: 3, kind: output, shape index: {1}]   ;;  %s1146_s4 = inlined_call_operand.vmem [shape: f32[1,128], index: 4, kind: output, shape index: {2}]   ;;  %s1147_s2 = inlined_call_operand.vmem [shape: f32[192,128], index: 2, kind: output, shape index: {0}]  }
   0x1   :  { %v795_v0 = vld [vmem:[%s1143_s1 + $0x78] sm:$0xff]   ;;  %v797_v2 = vld [vmem:[%s1143_s1 + $0x70] sm:$0xff]   ;;  %v799_v4 = vld [vmem:[%s1143_s1 + $0x68] sm:$0xff]   ;;  %48 = vst [vmem:[%s1145_s3] sm:$0x1] %v847_v40 }
   0x2   :  { %v796_v1 = vld [vmem:[%s1143_s1 + $0x38] sm:$0xff]   ;;  %690 = vmatprep.subr.bf16.mxu0 %v795_v0  ;;  %778 = vmatprep.subr.bf16.mxu1 %v795_v0  ;;  %v798_v3 = vld [vmem:[%s1143_s1 + $0x30] sm:$0xff]   ;;  %v800_v5 = vld [vmem:[%s1143_s1 + $0x28] sm:$0xff]   ;;  %49 = vst [vmem:[%s1146_s4] sm:$0x1] %v847_v40 }
   0x3   :  { %691 = vmatpush3.bf16.msra.mxu0 %v796_v1  ;;  %786 = vmatpush3.bf16.msra.mxu1 %v796_v1  ;;  %v801_v6 = vld [vmem:[%s1143_s1 + $0x60] sm:$0xff]   ;;  %v803_v8 = vld [vmem:[%s1143_s1 + $0x58] sm:$0xff]   ;;  %v805_v10 = vld [vmem:[%s1143_s1 + $0x50] sm:$0xff]  }
   0x4   :  { %692 = vmatprep.subr.bf16.mxu0 %v797_v2  ;;  %779 = vmatprep.subr.bf16.mxu1 %v797_v2  ;;  %v802_v7 = vld [vmem:[%s1143_s1 + $0x20] sm:$0xff]   ;;  %v804_v9 = vld [vmem:[%s1143_s1 + $0x18] sm:$0xff]   ;;  %v806_v12 = vld [vmem:[%s1143_s1 + $0x10] sm:$0xff]  }
   0x5   :  { %v813_v11 = vld [vmem:[%s1144_s0 + $0x4] ss:$8 sps:$4 sm:$0xff]   ;;  %v811_v18 = vld [vmem:[%s1144_s0] ss:$8 sps:$4 sm:$0xff]   ;;  %v814_v19 = vld [vmem:[%s1144_s0 + $0x14] ss:$8 sps:$4 sm:$0xff]  }
   0x6   :  { %378 = vmatprep.mubr.bf16.mxu0 %v813_v11  ;;  %v807_v13 = vld [vmem:[%s1143_s1 + $0x48] sm:$0xff]   ;;  %v809_v16 = vld [vmem:[%s1143_s1 + $0x40] sm:$0xff]   ;;  %v826_v21 = vld [vmem:[%s1144_s0 + $0x74] ss:$8 sps:$4 sm:$0xff]  }
   0x7   :  { %693 = vmatpush3.bf16.msra.mxu0 %v798_v3  ;;  %787 = vmatpush3.bf16.msra.mxu1 %v798_v3  ;;  %v822_v14 = vld [vmem:[%s1144_s0 + $0x64] ss:$8 sps:$4 sm:$0xff]   ;;  %v820_v20 = vld [vmem:[%s1144_s0 + $0x60] ss:$8 sps:$4 sm:$0xff]   ;;  %v816_v22 = vld [vmem:[%s1144_s0 + $0x10] ss:$8 sps:$4 sm:$0xff]  }
   0x8   :  { %694 = vmatprep.subr.bf16.mxu0 %v799_v4  ;;  %780 = vmatprep.subr.bf16.mxu1 %v799_v4  ;;  %v808_v15 = vld [vmem:[%s1143_s1 + $0x8] sm:$0xff]   ;;  %v810_v17 = vld [vmem:[%s1143_s1] sm:$0xff]   ;;  %v828_v24 = vld [vmem:[%s1144_s0 + $0x70] ss:$8 sps:$4 sm:$0xff]  }
   0x9   :  { %426 = vmatprep.mubr.bf16.mxu1 %v822_v14  ;;  %v817_v23 = vld [vmem:[%s1144_s0 + $0x24] ss:$8 sps:$4 sm:$0xff]   ;;  %v819_v26 = vld [vmem:[%s1144_s0 + $0x20] ss:$8 sps:$4 sm:$0xff]   ;;  %v823_v27 = vld [vmem:[%s1144_s0 + $0x34] ss:$8 sps:$4 sm:$0xff]  }
   0xa   :  { %v832_v25 = vld [vmem:[%s1144_s0 + $0x84] ss:$8 sps:$4 sm:$0xff]   ;;  %v834_v28 = vld [vmem:[%s1144_s0 + $0x80] ss:$8 sps:$4 sm:$0xff]   ;;  %v838_v29 = vld [vmem:[%s1144_s0 + $0x94] ss:$8 sps:$4 sm:$0xff]  }
   0xb   :  { %695 = vmatpush3.bf16.msra.mxu0 %v800_v5  ;;  %788 = vmatpush3.bf16.msra.mxu1 %v800_v5  ;;  %v825_v30 = vld [vmem:[%s1144_s0 + $0x30] ss:$8 sps:$4 sm:$0xff]   ;;  %v829_v31 = vld [vmem:[%s1144_s0 + $0x44] ss:$8 sps:$4 sm:$0xff]   ;;  %v831_v34 = vld [vmem:[%s1144_s0 + $0x40] ss:$8 sps:$4 sm:$0xff]  }
   0xc   :  { %696 = vmatprep.subr.bf16.mxu0 %v801_v6  ;;  %781 = vmatprep.subr.bf16.mxu1 %v801_v6  ;;  %v840_v32 = vld [vmem:[%s1144_s0 + $0x90] ss:$8 sps:$4 sm:$0xff]   ;;  %v841_v33 = vld [vmem:[%s1144_s0 + $0xa4] ss:$8 sps:$4 sm:$0xff]   ;;  %v835_v35 = vld [vmem:[%s1144_s0 + $0x54] ss:$8 sps:$4 sm:$0xff]  }
   0xd   :  { %v843_v36 = vld [vmem:[%s1144_s0 + $0xa0] ss:$8 sps:$4 sm:$0xff]   ;;  %v844_v37 = vld [vmem:[%s1144_s0 + $0xb4] ss:$8 sps:$4 sm:$0xff]   ;;  %v837_v38 = vld [vmem:[%s1144_s0 + $0x50] ss:$8 sps:$4 sm:$0xff]  }
   0xe   :  { %v846_v39 = vld [vmem:[%s1144_s0 + $0xb0] ss:$8 sps:$4 sm:$0xff]  }
   0xf   :  { %697 = vmatpush3.bf16.msra.mxu0 %v802_v7  ;;  %789 = vmatpush3.bf16.msra.mxu1 %v802_v7 }
  0x10   :  { %698 = vmatprep.subr.bf16.mxu0 %v803_v8  ;;  %782 = vmatprep.subr.bf16.mxu1 %v803_v8 }
  0x13   :  { %699 = vmatpush3.bf16.msra.mxu0 %v804_v9  ;;  %790 = vmatpush3.bf16.msra.mxu1 %v804_v9 }
  0x14   :  { %700 = vmatprep.subr.bf16.mxu0 %v805_v10  ;;  %783 = vmatprep.subr.bf16.mxu1 %v805_v10 }
  0x17   :  { %701 = vmatpush3.bf16.msra.mxu0 %v806_v12  ;;  %791 = vmatpush3.bf16.msra.mxu1 %v806_v12 }
  0x18   :  { %702 = vmatprep.subr.bf16.mxu0 %v807_v13  ;;  %784 = vmatprep.subr.bf16.mxu1 %v807_v13 }
  0x1b   :  { %703 = vmatpush3.bf16.msra.mxu0 %v808_v15  ;;  %792 = vmatpush3.bf16.msra.mxu1 %v808_v15 }
  0x1c   :  { %704 = vmatprep.subr.bf16.mxu0 %v809_v16  ;;  %785 = vmatprep.subr.bf16.mxu1 %v809_v16 }
  0x1f   :  { %705 = vmatpush3.bf16.msra.mxu0 %v810_v17  ;;  %793 = vmatpush3.bf16.msra.mxu1 %v810_v17 }
  0x22   :  { %379 = vmatmul.mubr.bf16.vlgmr.msra.gmra.mxu0 %v811_v18  ;;  %427 = vmatmul.mubr.bf16.vlgmr.msra.gmra.mxu1 %v820_v20 }
  0x23   :  { %386 = vmatprep.mubr.bf16.mxu0 %v814_v19  ;;  %434 = vmatprep.mubr.bf16.mxu1 %v826_v21 }
  0x2a   :  { %387 = vmatmul.mubr.bf16.gmra.mxu0 %v816_v22  ;;  %435 = vmatmul.mubr.bf16.gmra.mxu1 %v828_v24 }
  0x2b   :  { %394 = vmatprep.mubr.bf16.mxu0 %v817_v23  ;;  %442 = vmatprep.mubr.bf16.mxu1 %v832_v25 }
  0x32   :  { %395 = vmatmul.mubr.bf16.gmra.mxu0 %v819_v26  ;;  %443 = vmatmul.mubr.bf16.gmra.mxu1 %v834_v28 }
  0x33   :  { %402 = vmatprep.mubr.bf16.mxu0 %v823_v27  ;;  %450 = vmatprep.mubr.bf16.mxu1 %v838_v29 }
  0x3a   :  { %403 = vmatmul.mubr.bf16.gmra.mxu0 %v825_v30  ;;  %451 = vmatmul.mubr.bf16.gmra.mxu1 %v840_v32 }
  0x3b   :  { %410 = vmatprep.mubr.bf16.mxu0 %v829_v31  ;;  %458 = vmatprep.mubr.bf16.mxu1 %v841_v33 }
  0x42   :  { %411 = vmatmul.mubr.bf16.gmra.mxu0 %v831_v34  ;;  %459 = vmatmul.mubr.bf16.gmra.mxu1 %v843_v36 }
  0x43   :  { %418 = vmatprep.mubr.bf16.mxu0 %v835_v35  ;;  %466 = vmatprep.mubr.bf16.mxu1 %v844_v37 }
  0x4a   :  { %419 = vmatmul.mubr.bf16.gmra.mxu0 %v837_v38  ;;  %467 = vmatmul.mubr.bf16.gmra.mxu1 %v846_v39 }
  0xe2   :  { %v706_v41 = vpop.f32.mrf.mxu0  ;;  %v742_v42 = vpop.f32.mrf.mxu1 }
  0xe4   :  { %v707_v43 = vpop.f32.mrf.mxu0  ;;  %v743_v45 = vpop.f32.mrf.mxu1 }
  0xe5   :  { %v708_v44 = vadd.f32 %v707_v43, %v706_v41  ;;  %v999_v47 = vadd.f32 %v743_v45, %v742_v42 }
  0xe6   :  { %v709_v46 = vpop.f32.mrf.mxu0  ;;  %v745_v48 = vpop.f32.mrf.mxu1 }
  0xe7   :  { %499 = vst [vmem:[%s1147_s2] sm:$0xff] %v708_v44  ;;  %511 = vst [vmem:[%s1147_s2 + $0x60] sm:$0xff] %v999_v47  ;;  %v583_v23 = vmul.f32 %v708_v44, %v708_v44 }
  0xe8   :  { %v710_v49 = vpop.f32.mrf.mxu0  ;;  %v746_v51 = vpop.f32.mrf.mxu1 }
  0xe9   :  { %v711_v50 = vadd.f32 %v710_v49, %v709_v46  ;;  %v1008_v53 = vadd.f32 %v746_v51, %v745_v48 }
  0xea   :  { %v712_v52 = vpop.f32.mrf.mxu0  ;;  %v748_v54 = vpop.f32.mrf.mxu1 }
  0xeb   :  { %500 = vst [vmem:[%s1147_s2 + $0x8] sm:$0xff] %v711_v50  ;;  %512 = vst [vmem:[%s1147_s2 + $0x68] sm:$0xff] %v1008_v53  ;;  %v584_v20 = vmul.f32 %v711_v50, %v711_v50  ;;  %v551_v24 = vadd.f32 %v711_v50, %v708_v44 }
  0xec   :  { %v713_v55 = vpop.f32.mrf.mxu0  ;;  %v749_v57 = vpop.f32.mrf.mxu1 }
  0xed   :  { %v714_v56 = vadd.f32 %v713_v55, %v712_v52  ;;  %v1017_v59 = vadd.f32 %v749_v57, %v748_v54  ;;  %v607_v30 = vadd.f32 %v584_v20, %v583_v23 }
  0xee   :  { %v715_v58 = vpop.f32.mrf.mxu0  ;;  %v751_v60 = vpop.f32.mrf.mxu1 }
  0xef   :  { %501 = vst [vmem:[%s1147_s2 + $0x10] sm:$0xff] %v714_v56  ;;  %513 = vst [vmem:[%s1147_s2 + $0x70] sm:$0xff] %v1017_v59  ;;  %v585_v25 = vmul.f32 %v714_v56, %v714_v56  ;;  %v552_v31 = vadd.f32 %v714_v56, %v551_v24 }
  0xf0   :  { %v716_v61 = vpop.f32.mrf.mxu0  ;;  %v752_v63 = vpop.f32.mrf.mxu1 }
  0xf1   :  { %v717_v62 = vadd.f32 %v716_v61, %v715_v58  ;;  %v1026_v1 = vadd.f32 %v752_v63, %v751_v60  ;;  %v608_v35 = vadd.f32 %v607_v30, %v585_v25  ;;  %v595_v25 = vmul.f32 %v999_v47, %v999_v47 }
  0xf2   :  { %v718_v0 = vpop.f32.mrf.mxu0  ;;  %v754_v2 = vpop.f32.mrf.mxu1 }
  0xf3   :  { %502 = vst [vmem:[%s1147_s2 + $0x18] sm:$0xff] %v717_v62  ;;  %514 = vst [vmem:[%s1147_s2 + $0x78] sm:$0xff] %v1026_v1  ;;  %v586_v32 = vmul.f32 %v717_v62, %v717_v62  ;;  %v553_v36 = vadd.f32 %v717_v62, %v552_v31 }
  0xf4   :  { %v719_v3 = vpop.f32.mrf.mxu0  ;;  %v755_v5 = vpop.f32.mrf.mxu1 }
  0xf5   :  { %v720_v4 = vadd.f32 %v719_v3, %v718_v0  ;;  %v1035_v7 = vadd.f32 %v755_v5, %v754_v2  ;;  %v609_v42 = vadd.f32 %v608_v35, %v586_v32  ;;  %v597_v32 = vmul.f32 %v1017_v59, %v1017_v59 }
  0xf6   :  { %v721_v6 = vpop.f32.mrf.mxu0  ;;  %v757_v8 = vpop.f32.mrf.mxu1  ;;  %v598_v35 = vmul.f32 %v1026_v1, %v1026_v1 }
  0xf7   :  { %503 = vst [vmem:[%s1147_s2 + $0x20] sm:$0xff] %v720_v4  ;;  %515 = vst [vmem:[%s1147_s2 + $0x80] sm:$0xff] %v1035_v7  ;;  %v587_v37 = vmul.f32 %v720_v4, %v720_v4  ;;  %v554_v43 = vadd.f32 %v720_v4, %v553_v36 }
  0xf8   :  { %v722_v9 = vpop.f32.mrf.mxu0  ;;  %v758_v11 = vpop.f32.mrf.mxu1 }
  0xf9   :  { %v723_v10 = vadd.f32 %v722_v9, %v721_v6  ;;  %v1044_v13 = vadd.f32 %v758_v11, %v757_v8  ;;  %v610_v48 = vadd.f32 %v609_v42, %v587_v37 }
  0xfa   :  { %v724_v12 = vpop.f32.mrf.mxu0  ;;  %v760_v14 = vpop.f32.mrf.mxu1 }
  0xfb   :  { %504 = vst [vmem:[%s1147_s2 + $0x28] sm:$0xff] %v723_v10  ;;  %516 = vst [vmem:[%s1147_s2 + $0x88] sm:$0xff] %v1044_v13  ;;  %v588_v44 = vmul.f32 %v723_v10, %v723_v10  ;;  %v555_v49 = vadd.f32 %v723_v10, %v554_v43 }
  0xfc   :  { %v725_v15 = vpop.f32.mrf.mxu0  ;;  %v761_v17 = vpop.f32.mrf.mxu1 }
  0xfd   :  { %v726_v16 = vadd.f32 %v725_v15, %v724_v12  ;;  %v1053_v19 = vadd.f32 %v761_v17, %v760_v14  ;;  %v611_v56 = vadd.f32 %v610_v48, %v588_v44 }
  0xfe   :  { %v727_v18 = vpop.f32.mrf.mxu0  ;;  %v763_v21 = vpop.f32.mrf.mxu1 }
  0xff   :  { %505 = vst [vmem:[%s1147_s2 + $0x30] sm:$0xff] %v726_v16  ;;  %517 = vst [vmem:[%s1147_s2 + $0x90] sm:$0xff] %v1053_v19  ;;  %v589_v50 = vmul.f32 %v726_v16, %v726_v16  ;;  %v556_v57 = vadd.f32 %v726_v16, %v555_v49 }
 0x100   :  { %v728_v22 = vpop.f32.mrf.mxu0  ;;  %v764_v27 = vpop.f32.mrf.mxu1 }
 0x101   :  { %v729_v26 = vadd.f32 %v728_v22, %v727_v18  ;;  %v1062_v29 = vadd.f32 %v764_v27, %v763_v21  ;;  %v612_v62 = vadd.f32 %v611_v56, %v589_v50 }
 0x102   :  { %v730_v28 = vpop.f32.mrf.mxu0  ;;  %v766_v33 = vpop.f32.mrf.mxu1 }
 0x103   :  { %506 = vst [vmem:[%s1147_s2 + $0x38] sm:$0xff] %v729_v26  ;;  %518 = vst [vmem:[%s1147_s2 + $0x98] sm:$0xff] %v1062_v29  ;;  %v590_v58 = vmul.f32 %v729_v26, %v729_v26  ;;  %v557_v63 = vadd.f32 %v729_v26, %v556_v57 }
 0x104   :  { %v731_v34 = vpop.f32.mrf.mxu0  ;;  %v767_v39 = vpop.f32.mrf.mxu1 }
 0x105   :  { %v732_v38 = vadd.f32 %v731_v34, %v730_v28  ;;  %v1071_v41 = vadd.f32 %v767_v39, %v766_v33  ;;  %v613_v6 = vadd.f32 %v612_v62, %v590_v58  ;;  %v596_v28 = vmul.f32 %v1008_v53, %v1008_v53 }
 0x106   :  { %v733_v40 = vpop.f32.mrf.mxu0  ;;  %v769_v45 = vpop.f32.mrf.mxu1 }
 0x107   :  { %507 = vst [vmem:[%s1147_s2 + $0x40] sm:$0xff] %v732_v38  ;;  %519 = vst [vmem:[%s1147_s2 + $0xa0] sm:$0xff] %v1071_v41  ;;  %v591_v0 = vmul.f32 %v732_v38, %v732_v38  ;;  %v558_v8 = vadd.f32 %v732_v38, %v557_v63  ;;  %v603_v49 = vmul.f32 %v1071_v41, %v1071_v41 }
 0x108   :  { %v734_v46 = vpop.f32.mrf.mxu0  ;;  %v770_v52 = vpop.f32.mrf.mxu1 }
 0x109   :  { %v735_v51 = vadd.f32 %v734_v46, %v733_v40  ;;  %v1080_v55 = vadd.f32 %v770_v52, %v769_v45  ;;  %v614_v12 = vadd.f32 %v613_v6, %v591_v0  ;;  %v602_v45 = vmul.f32 %v1062_v29, %v1062_v29 }
 0x10a   :  { %v736_v54 = vpop.f32.mrf.mxu0  ;;  %v772_v60 = vpop.f32.mrf.mxu1 }
 0x10b   :  { %508 = vst [vmem:[%s1147_s2 + $0x48] sm:$0xff] %v735_v51  ;;  %520 = vst [vmem:[%s1147_s2 + $0xa8] sm:$0xff] %v1080_v55  ;;  %v592_v9 = vmul.f32 %v735_v51, %v735_v51  ;;  %v559_v14 = vadd.f32 %v735_v51, %v558_v8  ;;  %v604_v51 = vmul.f32 %v1080_v55, %v1080_v55 }
 0x10c   :  { %v737_v61 = vpop.f32.mrf.mxu0  ;;  %v773_v3 = vpop.f32.mrf.mxu1 }
 0x10d   :  { %v738_v2 = vadd.f32 %v737_v61, %v736_v54  ;;  %v774_v5 = vadd.f32 %v773_v3, %v772_v60  ;;  %v615_v20 = vadd.f32 %v614_v12, %v592_v9 }
 0x10e   :  { %v739_v4 = vpop.f32.mrf.mxu0  ;;  %v775_v10 = vpop.f32.mrf.mxu1 }
 0x10f   :  { %509 = vst [vmem:[%s1147_s2 + $0x50] sm:$0xff] %v738_v2  ;;  %v593_v15 = vmul.f32 %v738_v2, %v738_v2  ;;  %521 = vst [vmem:[%s1147_s2 + $0xb0] sm:$0xff] %v774_v5  ;;  %v560_v21 = vadd.f32 %v738_v2, %v559_v14  ;;  %v605_v54 = vmul.f32 %v774_v5, %v774_v5 }
 0x110   :  { %v740_v11 = vpop.f32.mrf.mxu0  ;;  %v776_v17 = vpop.f32.mrf.mxu1 }
 0x111   :  { %v741_v16 = vadd.f32 %v740_v11, %v739_v4  ;;  %v777_v18 = vadd.f32 %v776_v17, %v775_v10  ;;  %v616_v22 = vadd.f32 %v615_v20, %v593_v15 }
 0x113   :  { %510 = vst [vmem:[%s1147_s2 + $0x58] sm:$0xff] %v741_v16  ;;  %v561_v23 = vadd.f32 %v741_v16, %v560_v21  ;;  %v594_v24 = vmul.f32 %v741_v16, %v741_v16  ;;  %522 = vst [vmem:[%s1147_s2 + $0xb8] sm:$0xff] %v777_v18  ;;  %v606_v58 = vmul.f32 %v777_v18, %v777_v18 }
 0x115   :  { %v562_v26 = vadd.f32 %v999_v47, %v561_v23  ;;  %v617_v27 = vadd.f32 %v616_v22, %v594_v24  ;;  %v599_v47 = vmul.f32 %v1035_v7, %v1035_v7 }
 0x117   :  { %v563_v30 = vadd.f32 %v1008_v53, %v562_v26  ;;  %v618_v31 = vadd.f32 %v617_v27, %v595_v25  ;;  %v600_v53 = vmul.f32 %v1044_v13, %v1044_v13 }
 0x119   :  { %v564_v33 = vadd.f32 %v1017_v59, %v563_v30  ;;  %v619_v34 = vadd.f32 %v618_v31, %v596_v28  ;;  %v601_v59 = vmul.f32 %v1053_v19, %v1053_v19 }
 0x11b   :  { %v620_v36 = vadd.f32 %v619_v34, %v597_v32  ;;  %v565_v37 = vadd.f32 %v1026_v1, %v564_v33 }
 0x11d   :  { %v566_v38 = vadd.f32 %v1035_v7, %v565_v37  ;;  %v621_v39 = vadd.f32 %v620_v36, %v598_v35 }
 0x11f   :  { %v567_v40 = vadd.f32 %v1044_v13, %v566_v38  ;;  %v622_v42 = vadd.f32 %v621_v39, %v599_v47 }
 0x121   :  { %v568_v43 = vadd.f32 %v1053_v19, %v567_v40  ;;  %v623_v44 = vadd.f32 %v622_v42, %v600_v53 }
 0x123   :  { %v569_v1 = vadd.f32 %v1062_v29, %v568_v43  ;;  %v624_v46 = vadd.f32 %v623_v44, %v601_v59 }
 0x125   :  { %v625_v7 = vadd.f32 %v624_v46, %v602_v45  ;;  %v570_v48 = vadd.f32 %v1071_v41, %v569_v1 }
 0x127   :  { %v626_v13 = vadd.f32 %v625_v7, %v603_v49  ;;  %v571_v50 = vadd.f32 %v1080_v55, %v570_v48  ;;  %v550_v55 = vld [vmem:[%s1145_s3] sm:$0x1] }
 0x129   :  { %v627_v19 = vadd.f32 %v626_v13, %v604_v51  ;;  %v572_v52 = vadd.f32 %v774_v5, %v571_v50  ;;  %v582_v5 = vld [vmem:[%s1146_s4] sm:$0x1] }
 0x12b   :  { %v628_v56 = vadd.f32 %v627_v19, %v605_v54  ;;  %v573_v57 = vadd.f32 %v777_v18, %v572_v52 }
 0x12d   :  { %v574_v29 = vrot.slane %v573_v57, 4  ;;  %v629_v60 = vadd.f32 %v628_v56, %v606_v58 }
 0x12f   :  { %v575_v61 = vadd.f32 %v574_v29, %v573_v57  ;;  %v630_v62 = vrot.slane %v629_v60, 4 }
 0x131   :  { %v576_v63 = vrot.slane %v575_v61, 2  ;;  %v631_v0 = vadd.f32 %v630_v62, %v629_v60 }
 0x133   :  { %v577_v2 = vadd.f32 %v576_v63, %v575_v61  ;;  %v632_v41 = vrot.slane %v631_v0, 2 }
 0x135   :  { %v578_v3 = vrot.slane %v577_v2, 1  ;;  %v633_v4 = vadd.f32 %v632_v41, %v631_v0 }
 0x137   :  { %v579_v6 = vadd.f32 %v578_v3, %v577_v2  ;;  %v634_v8 = vrot.slane %v633_v4, 1 }
 0x139   :  { %v580_v9 = vadd.f32 %v579_v6, %v550_v55  ;;  %v635_v10 = vadd.f32 %v634_v8, %v633_v4 }
 0x13b   :  { %581 = vst [vmem:[%s1145_s3] sm:$0x1] %v580_v9  ;;  %v636_v11 = vadd.f32 %v635_v10, %v582_v5 }
 0x13d   :  { %637 = vst [vmem:[%s1146_s4] sm:$0x1] %v636_v11 }

// kernel: resnet_generator_forward.76
= control target key start
LH: loop header
LB: loop body
LE: loop exit
PB: predicated region body
PF: predicated region fallthrough
CT: control target
= control target key end

     0   :  { %v59_v8 = vlaneseq  ;;  %s410_s1 = inlined_call_operand.vmem [shape: f32[1,128], index: 1, kind: input, shape index: {}]   ;;  %s411_s2 = inlined_call_operand.vmem [shape: f32[1,128], index: 2, kind: input, shape index: {}]   ;;  %s412_s3 = inlined_call_operand.vmem [shape: f32[1,128], index: 3, kind: input, shape index: {}]   ;;  %s413_s0 = inlined_call_operand.vmem [shape: f32[192,128], index: 0, kind: input, shape index: {}]   ;;  %s414_s4 = inlined_call_operand.vmem [shape: f32[1,128], index: 4, kind: input, shape index: {}]   ;;  %s415_s5 = inlined_call_operand.vmem [shape: f32[192,128], index: 5, kind: output, shape index: {}]  }
   0x1   :  { %v20_v0 = vld [vmem:[%s410_s1] sm:$0x1]  ;;  %v35_v16 = vld [vmem:[%s413_s0 + $0x8] sm:$0xff]  ;;  %v36_v17 = vld [vmem:[%s413_s0 + $0x10] sm:$0xff] }
   0x2   :  { %v22_v1 = vld [vmem:[%s411_s2] sm:$0x1]  ;;  %v21_v2 = vmul.f32 0.0006510417, %v20_v0  ;;  %v60_v9 = vshrl.u32 %v59_v8, 7  ;;  %v37_v18 = vld [vmem:[%s413_s0 + $0x18] sm:$0xff] }
   0x3   :  { %v23_v3 = vmul.f32 0.0006510417, %v22_v1  ;;  %v27_v10 = vld [vmem:[%s412_s3] sm:$0x1]  ;;  %v39_v22 = vld [vmem:[%s413_s0 + $0x28] sm:$0xff]  ;;  %v40_v23 = vld [vmem:[%s413_s0 + $0x30] sm:$0xff] }
   0x4   :  { %v24_v4 = vmul.f32 %v21_v2, %v21_v2  ;;  %v61_v11 = vsub.s32 0, %v60_v9  ;;  %v31_v14 = vld [vmem:[%s414_s4] sm:$0x1]  ;;  %v41_v24 = vld [vmem:[%s413_s0 + $0x38] sm:$0xff]  ;;  %v43_v26 = vld [vmem:[%s413_s0 + $0x48] sm:$0xff] }
   0x5   :  { %v34_v15 = vld [vmem:[%s413_s0] sm:$0xff]  ;;  %v44_v27 = vld [vmem:[%s413_s0 + $0x50] sm:$0xff]  ;;  %v45_v32 = vld [vmem:[%s413_s0 + $0x58] sm:$0xff] }
   0x6   :  { %v25_v5 = vsub.f32 %v23_v3, %v24_v4  ;;  %v38_v19 = vld [vmem:[%s413_s0 + $0x20] sm:$0xff]  ;;  %v47_v34 = vld [vmem:[%s413_s0 + $0x68] sm:$0xff]  ;;  %v48_v59 = vld [vmem:[%s413_s0 + $0x70] sm:$0xff] }
   0x7   :  { %v42_v25 = vld [vmem:[%s413_s0 + $0x40] sm:$0xff]  ;;  %v49_v60 = vld [vmem:[%s413_s0 + $0x78] sm:$0xff] }
   0x8   :  { %v26_v6 = vmax.f32 %v25_v5, 0.0  ;;  %v46_v33 = vld [vmem:[%s413_s0 + $0x60] sm:$0xff] }
   0x9   :  { %v50_v5 = vld [vmem:[%s413_s0 + $0x80] sm:$0xff] }
   0xa   :  { %v28_v7 = vadd.f32 1e-05, %v26_v6 }
   0xc   :  { %170 = vrsqrt.f32 %v28_v7 }
  0x19   :  { %v171_v12 = vpop.eup %170 }
  0x1a   :  { %v30_v13 = vmul.f32 %v171_v12, %v27_v10  ;;  %v51_v10 = vld [vmem:[%s413_s0 + $0x88] sm:$0xff]  ;;  %v53_v12 = vld [vmem:[%s413_s0 + $0x98] sm:$0xff] }
  0x1c   :  { %v32_v20 = vmul.f32 %v30_v13, %v21_v2  ;;  %v229_v21 = vrot.slane %v30_v13, %v61_v11 }
  0x1e   :  { %v33_v28 = vsub.f32 %v31_v14, %v32_v20  ;;  %v64_v29 = vmul.f32 %v229_v21, %v34_v15  ;;  %v65_v30 = vmul.f32 %v229_v21, %v35_v16  ;;  %v66_v31 = vmul.f32 %v229_v21, %v36_v17  ;;  %v54_v17 = vld [vmem:[%s413_s0 + $0xa0] sm:$0xff] }
  0x1f   :  { %v67_v35 = vmul.f32 %v229_v21, %v37_v18  ;;  %v68_v36 = vmul.f32 %v229_v21, %v38_v19  ;;  %v69_v37 = vmul.f32 %v229_v21, %v39_v22  ;;  %v70_v38 = vmul.f32 %v229_v21, %v40_v23  ;;  %v55_v18 = vld [vmem:[%s413_s0 + $0xa8] sm:$0xff] }
  0x20   :  { %v265_v39 = vrot.slane %v33_v28, %v61_v11  ;;  %v71_v40 = vmul.f32 %v229_v21, %v41_v24  ;;  %v72_v41 = vmul.f32 %v229_v21, %v42_v25  ;;  %v73_v42 = vmul.f32 %v229_v21, %v43_v26  ;;  %v52_v11 = vld [vmem:[%s413_s0 + $0x90] sm:$0xff] }
  0x21   :  { %v74_v43 = vmul.f32 %v229_v21, %v44_v27  ;;  %v75_v44 = vmul.f32 %v229_v21, %v45_v32  ;;  %v76_v45 = vmul.f32 %v229_v21, %v46_v33  ;;  %v77_v46 = vmul.f32 %v229_v21, %v47_v34  ;;  %v56_v28 = vld [vmem:[%s413_s0 + $0xb0] sm:$0xff] }
  0x22   :  { %v94_v47 = vadd.f32 %v265_v39, %v64_v29  ;;  %v95_v48 = vadd.f32 %v265_v39, %v65_v30  ;;  %v96_v49 = vadd.f32 %v265_v39, %v66_v31  ;;  %v97_v50 = vadd.f32 %v265_v39, %v67_v35  ;;  %v57_v29 = vld [vmem:[%s413_s0 + $0xb8] sm:$0xff] }
  0x23   :  { %v98_v51 = vadd.f32 %v265_v39, %v68_v36  ;;  %v99_v52 = vadd.f32 %v265_v39, %v69_v37  ;;  %v100_v53 = vadd.f32 %v265_v39, %v70_v38  ;;  %v101_v54 = vadd.f32 %v265_v39, %v71_v40 }
  0x24   :  { %v118_v55 = vmax.f32 %v94_v47, 0.0  ;;  %v119_v56 = vmax.f32 %v95_v48, 0.0  ;;  %v120_v57 = vmax.f32 %v96_v49, 0.0  ;;  %v121_v58 = vmax.f32 %v97_v50, 0.0 }
  0x25   :  { %v122_v61 = vmax.f32 %v98_v51, 0.0  ;;  %v123_v62 = vmax.f32 %v99_v52, 0.0  ;;  %v124_v63 = vmax.f32 %v100_v53, 0.0  ;;  %v125_v0 = vmax.f32 %v101_v54, 0.0 }
  0x26   :  { %142 = vst [vmem:[%s415_s5] sm:$0xff] %v118_v55  ;;  %143 = vst [vmem:[%s415_s5 + $0x8] sm:$0xff] %v119_v56  ;;  %v102_v1 = vadd.f32 %v265_v39, %v72_v41  ;;  %v103_v2 = vadd.f32 %v265_v39, %v73_v42  ;;  %v104_v3 = vadd.f32 %v265_v39, %v74_v43 }
  0x27   :  { %144 = vst [vmem:[%s415_s5 + $0x10] sm:$0xff] %v120_v57  ;;  %145 = vst [vmem:[%s415_s5 + $0x18] sm:$0xff] %v121_v58  ;;  %v105_v4 = vadd.f32 %v265_v39, %v75_v44  ;;  %v106_v6 = vadd.f32 %v265_v39, %v76_v45  ;;  %v107_v7 = vadd.f32 %v265_v39, %v77_v46 }
  0x28   :  { %146 = vst [vmem:[%s415_s5 + $0x20] sm:$0xff] %v122_v61  ;;  %147 = vst [vmem:[%s415_s5 + $0x28] sm:$0xff] %v123_v62  ;;  %v78_v8 = vmul.f32 %v229_v21, %v48_v59  ;;  %v79_v9 = vmul.f32 %v229_v21, %v49_v60  ;;  %v126_v13 = vmax.f32 %v102_v1, 0.0  ;;  %v127_v14 = vmax.f32 %v103_v2, 0.0 }
  0x29   :  { %148 = vst [vmem:[%s415_s5 + $0x30] sm:$0xff] %v124_v63  ;;  %149 = vst [vmem:[%s415_s5 + $0x38] sm:$0xff] %v125_v0  ;;  %v128_v15 = vmax.f32 %v104_v3, 0.0  ;;  %v129_v16 = vmax.f32 %v105_v4, 0.0  ;;  %v130_v19 = vmax.f32 %v106_v6, 0.0  ;;  %v131_v20 = vmax.f32 %v107_v7, 0.0 }
  0x2a   :  { %v108_v22 = vadd.f32 %v265_v39, %v78_v8  ;;  %v109_v23 = vadd.f32 %v265_v39, %v79_v9  ;;  %150 = vst [vmem:[%s415_s5 + $0x40] sm:$0xff] %v126_v13  ;;  %151 = vst [vmem:[%s415_s5 + $0x48] sm:$0xff] %v127_v14  ;;  %v80_v24 = vmul.f32 %v229_v21, %v50_v5 }
  0x2b   :  { %152 = vst [vmem:[%s415_s5 + $0x50] sm:$0xff] %v128_v15  ;;  %153 = vst [vmem:[%s415_s5 + $0x58] sm:$0xff] %v129_v16  ;;  %v81_v25 = vmul.f32 %v229_v21, %v51_v10  ;;  %v82_v26 = vmul.f32 %v229_v21, %v52_v11  ;;  %v83_v27 = vmul.f32 %v229_v21, %v53_v12 }
  0x2c   :  { %154 = vst [vmem:[%s415_s5 + $0x60] sm:$0xff] %v130_v19  ;;  %155 = vst [vmem:[%s415_s5 + $0x68] sm:$0xff] %v131_v20  ;;  %v132_v30 = vmax.f32 %v108_v22, 0.0  ;;  %v133_v31 = vmax.f32 %v109_v23, 0.0  ;;  %v84_v32 = vmul.f32 %v229_v21, %v54_v17  ;;  %v85_v33 = vmul.f32 %v229_v21, %v55_v18 }
  0x2d   :  { %v110_v34 = vadd.f32 %v265_v39, %v80_v24  ;;  %v111_v35 = vadd.f32 %v265_v39, %v81_v25  ;;  %v112_v36 = vadd.f32 %v265_v39, %v82_v26  ;;  %v113_v37 = vadd.f32 %v265_v39, %v83_v27 }
  0x2e   :  { %156 = vst [vmem:[%s415_s5 + $0x70] sm:$0xff] %v132_v30  ;;  %157 = vst [vmem:[%s415_s5 + $0x78] sm:$0xff] %v133_v31  ;;  %v114_v38 = vadd.f32 %v265_v39, %v84_v32  ;;  %v115_v40 = vadd.f32 %v265_v39, %v85_v33  ;;  %v86_v41 = vmul.f32 %v229_v21, %v56_v28 }
  0x2f   :  { %v87_v42 = vmul.f32 %v229_v21, %v57_v29  ;;  %v134_v43 = vmax.f32 %v110_v34, 0.0  ;;  %v135_v44 = vmax.f32 %v111_v35, 0.0  ;;  %v136_v45 = vmax.f32 %v112_v36, 0.0 }
  0x30   :  { %v137_v46 = vmax.f32 %v113_v37, 0.0  ;;  %v138_v47 = vmax.f32 %v114_v38, 0.0  ;;  %v139_v48 = vmax.f32 %v115_v40, 0.0  ;;  %v116_v49 = vadd.f32 %v265_v39, %v86_v41 }
  0x31   :  { %v117_v50 = vadd.f32 %v265_v39, %v87_v42  ;;  %158 = vst [vmem:[%s415_s5 + $0x80] sm:$0xff] %v134_v43  ;;  %159 = vst [vmem:[%s415_s5 + $0x88] sm:$0xff] %v135_v44 }
  0x32   :  { %160 = vst [vmem:[%s415_s5 + $0x90] sm:$0xff] %v136_v45  ;;  %161 = vst [vmem:[%s415_s5 + $0x98] sm:$0xff] %v137_v46  ;;  %v140_v21 = vmax.f32 %v116_v49, 0.0 }
  0x33   :  { %162 = vst [vmem:[%s415_s5 + $0xa0] sm:$0xff] %v138_v47  ;;  %163 = vst [vmem:[%s415_s5 + $0xa8] sm:$0xff] %v139_v48  ;;  %v141_v39 = vmax.f32 %v117_v50, 0.0 }
  0x34   :  { %164 = vst [vmem:[%s415_s5 + $0xb0] sm:$0xff] %v140_v21 }
  0x35   :  { %165 = vst [vmem:[%s415_s5 + $0xb8] sm:$0xff] %v141_v39 }

// kernel: resnet_generator_forward.80
= control target key start
LH: loop header
LB: loop body
LE: loop exit
PB: predicated region body
PF: predicated region fallthrough
CT: control target
= control target key end

     0   :  { %s1893_s15 = smov 0   ;;  %s1895_s16 = smov 0   ;;  %s2458_s0 = inlined_call_operand.vmem [shape: bf16[1536,128], index: 0, kind: input, shape index: {}]   ;;  %s2459_s1 = inlined_call_operand.vmem [shape: bf16[128,128], index: 1, kind: input, shape index: {}]   ;;  %s2460_s2 = inlined_call_operand.vmem [shape: f32[1536,128], index: 2, kind: output, shape index: {0}]   ;;  %s2461_s3 = inlined_call_operand.vmem [shape: f32[1,128], index: 3, kind: output, shape index: {1}]   ;;  %s2462_s4 = inlined_call_operand.vmem [shape: f32[1,128], index: 4, kind: output, shape index: {2}]  }
   0x1   :  { %s1897_s17 = smov 0  }
   0x2 LB: > { %s30_s18 = sadd.s32 1, %s1860_s16  ;;  %p1589_p0 = scmp.ge.s32.totalorder %s1864_s17, 1  ;;  %s1864_s17 = sphi %s1897_s17, %s15_s17   ;;  %s1860_s16 = sphi %s1895_s16, %s2464_s16   ;;  %s1856_s15 = sphi %s1893_s15, %s2463_s15  }
   0x3   : > { %p32_p1 = scmp.ge.s32.totalorder %s30_s18, 3  ;;  %p210_p2 = scmp.lt.s32.totalorder %s1864_s17, 4 }
   0x5   : > { %s2466_s18 = smov (%p32_p1, %s30_s18), 0  ;;  %p211_p3 = pnand %p1589_p0, %p210_p2 }
   0x6   : > { %s1590_s19 = sshll.u32 (!%p211_p3), %s1856_s15, 6  ;;  %p358_p4 = scmp.eq.s32.totalorder (!%p211_p3), %s1856_s15, 0 }
   0x7   : > { %214 = sbr.rel (%p211_p3) target bundleno = 424 (0x1a8), region = 28  ;;  %p257_p5 = scmp.lt.s32.totalorder (!%p211_p3), %s1590_s19, 191 }
   0xc   : > { %s2468_s19 = smov (!%p257_p5, %s1590_s19), 191  ;;  %v1866_v0 = vmov 0.0   ;;  %v1867_v1 = vmov (%p358_p4), 0.0  }
   0xd   : > { %s1591_s20 = sshll.u32 %s2468_s19, 2  ;;  %s1593_s21 = sshll.u32 %s2468_s19, 3  ;;  %363 = vst [vmem:[%s2461_s3] sm:$0x1] (%p358_p4), %v1867_v1  ;;  %364 = vst [vmem:[%s2462_s4] sm:$0x1] (%p358_p4), %v1867_v1 }
   0xe   : > { %s1918_s24 = scalar_lea.vmem %s2458_s0, %s1591_s20  ;;  %s1923_s27 = scalar_lea.vmem %s2460_s2, %s1593_s21 }
   0xf   : > { %294 = vst [vmem:[%s1923_s27] sm:$0xff] %v1866_v0  ;;  %295 = vst [vmem:[%s1923_s27 + $0x8] sm:$0xff] %v1866_v0 }
  0x10   : > { %296 = vst [vmem:[%s1923_s27 + $0x10] sm:$0xff] %v1866_v0  ;;  %297 = vst [vmem:[%s1923_s27 + $0x18] sm:$0xff] %v1866_v0 }
  0x11   : > { %298 = vst [vmem:[%s1923_s27 + $0x20] sm:$0xff] %v1866_v0  ;;  %299 = vst [vmem:[%s1923_s27 + $0x28] sm:$0xff] %v1866_v0 }
  0x12   : > { %300 = vst [vmem:[%s1923_s27 + $0x30] sm:$0xff] %v1866_v0  ;;  %301 = vst [vmem:[%s1923_s27 + $0x38] sm:$0xff] %v1866_v0 }
  0x13   : > { %302 = vst [vmem:[%s1923_s27 + $0x40] sm:$0xff] %v1866_v0  ;;  %303 = vst [vmem:[%s1923_s27 + $0x48] sm:$0xff] %v1866_v0 }
  0x14   : > { %304 = vst [vmem:[%s1923_s27 + $0x50] sm:$0xff] %v1866_v0  ;;  %305 = vst [vmem:[%s1923_s27 + $0x58] sm:$0xff] %v1866_v0 }
  0x15   : > { %306 = vst [vmem:[%s1923_s27 + $0x60] sm:$0xff] %v1866_v0  ;;  %307 = vst [vmem:[%s1923_s27 + $0x68] sm:$0xff] %v1866_v0 }
  0x16   : > { %308 = vst [vmem:[%s1923_s27 + $0x70] sm:$0xff] %v1866_v0  ;;  %309 = vst [vmem:[%s1923_s27 + $0x78] sm:$0xff] %v1866_v0 }
  0x17   : > { %310 = vst [vmem:[%s1923_s27 + $0x80] sm:$0xff] %v1866_v0  ;;  %311 = vst [vmem:[%s1923_s27 + $0x88] sm:$0xff] %v1866_v0 }
  0x18   : > { %312 = vst [vmem:[%s1923_s27 + $0x90] sm:$0xff] %v1866_v0  ;;  %313 = vst [vmem:[%s1923_s27 + $0x98] sm:$0xff] %v1866_v0 }
  0x19   : > { %314 = vst [vmem:[%s1923_s27 + $0xa0] sm:$0xff] %v1866_v0  ;;  %315 = vst [vmem:[%s1923_s27 + $0xa8] sm:$0xff] %v1866_v0 }
  0x1a   : > { %316 = vst [vmem:[%s1923_s27 + $0xb0] sm:$0xff] %v1866_v0  ;;  %317 = vst [vmem:[%s1923_s27 + $0xb8] sm:$0xff] %v1866_v0 }
  0x1b   : > { %318 = vst [vmem:[%s1923_s27 + $0xc0] sm:$0xff] %v1866_v0  ;;  %319 = vst [vmem:[%s1923_s27 + $0xc8] sm:$0xff] %v1866_v0 }
  0x1c   : > { %320 = vst [vmem:[%s1923_s27 + $0xd0] sm:$0xff] %v1866_v0  ;;  %321 = vst [vmem:[%s1923_s27 + $0xd8] sm:$0xff] %v1866_v0 }
  0x1d   : > { %322 = vst [vmem:[%s1923_s27 + $0xe0] sm:$0xff] %v1866_v0  ;;  %323 = vst [vmem:[%s1923_s27 + $0xe8] sm:$0xff] %v1866_v0 }
  0x1e   : > { %324 = vst [vmem:[%s1923_s27 + $0xf0] sm:$0xff] %v1866_v0  ;;  %325 = vst [vmem:[%s1923_s27 + $0xf8] sm:$0xff] %v1866_v0 }
  0x1f   : > { %326 = vst [vmem:[%s1923_s27 + $0x100] sm:$0xff] %v1866_v0  ;;  %327 = vst [vmem:[%s1923_s27 + $0x108] sm:$0xff] %v1866_v0 }
  0x20   : > { %328 = vst [vmem:[%s1923_s27 + $0x110] sm:$0xff] %v1866_v0  ;;  %329 = vst [vmem:[%s1923_s27 + $0x118] sm:$0xff] %v1866_v0 }
  0x21   : > { %330 = vst [vmem:[%s1923_s27 + $0x120] sm:$0xff] %v1866_v0  ;;  %331 = vst [vmem:[%s1923_s27 + $0x128] sm:$0xff] %v1866_v0 }
  0x22   : > { %332 = vst [vmem:[%s1923_s27 + $0x130] sm:$0xff] %v1866_v0  ;;  %333 = vst [vmem:[%s1923_s27 + $0x138] sm:$0xff] %v1866_v0 }
  0x23   : > { %334 = vst [vmem:[%s1923_s27 + $0x140] sm:$0xff] %v1866_v0  ;;  %335 = vst [vmem:[%s1923_s27 + $0x148] sm:$0xff] %v1866_v0 }
  0x24   : > { %336 = vst [vmem:[%s1923_s27 + $0x150] sm:$0xff] %v1866_v0  ;;  %337 = vst [vmem:[%s1923_s27 + $0x158] sm:$0xff] %v1866_v0 }
  0x25   : > { %338 = vst [vmem:[%s1923_s27 + $0x160] sm:$0xff] %v1866_v0  ;;  %339 = vst [vmem:[%s1923_s27 + $0x168] sm:$0xff] %v1866_v0 }
  0x26   : > { %340 = vst [vmem:[%s1923_s27 + $0x170] sm:$0xff] %v1866_v0  ;;  %341 = vst [vmem:[%s1923_s27 + $0x178] sm:$0xff] %v1866_v0 }
  0x27   : > { %342 = vst [vmem:[%s1923_s27 + $0x180] sm:$0xff] %v1866_v0  ;;  %343 = vst [vmem:[%s1923_s27 + $0x188] sm:$0xff] %v1866_v0 }
  0x28   : > { %344 = vst [vmem:[%s1923_s27 + $0x190] sm:$0xff] %v1866_v0  ;;  %345 = vst [vmem:[%s1923_s27 + $0x198] sm:$0xff] %v1866_v0 }
  0x29   : > { %346 = vst [vmem:[%s1923_s27 + $0x1a0] sm:$0xff] %v1866_v0  ;;  %347 = vst [vmem:[%s1923_s27 + $0x1a8] sm:$0xff] %v1866_v0 }
  0x2a   : > { %348 = vst [vmem:[%s1923_s27 + $0x1b0] sm:$0xff] %v1866_v0  ;;  %349 = vst [vmem:[%s1923_s27 + $0x1b8] sm:$0xff] %v1866_v0  ;;  %362 = sbr.rel (!%p358_p4) target bundleno = 47 (0x2f), region = 36 }
  0x2b   : > { %350 = vst [vmem:[%s1923_s27 + $0x1c0] sm:$0xff] %v1866_v0  ;;  %351 = vst [vmem:[%s1923_s27 + $0x1c8] sm:$0xff] %v1866_v0 }
  0x2c   : > { %352 = vst [vmem:[%s1923_s27 + $0x1d0] sm:$0xff] %v1866_v0  ;;  %353 = vst [vmem:[%s1923_s27 + $0x1d8] sm:$0xff] %v1866_v0 }
  0x2d   : > { %354 = vst [vmem:[%s1923_s27 + $0x1e0] sm:$0xff] %v1866_v0  ;;  %355 = vst [vmem:[%s1923_s27 + $0x1e8] sm:$0xff] %v1866_v0 }
  0x2e   : > { %356 = vst [vmem:[%s1923_s27 + $0x1f0] sm:$0xff] %v1866_v0  ;;  %357 = vst [vmem:[%s1923_s27 + $0x1f8] sm:$0xff] %v1866_v0 }
  0x2f PF: > { %v1802_v2 = vld [vmem:[%s2459_s1 + $0x38] sm:$0xff]   ;;  %v1803_v3 = vld [vmem:[%s2459_s1 + $0x30] sm:$0xff]   ;;  %v1804_v4 = vld [vmem:[%s2459_s1 + $0x28] sm:$0xff]  }
  0x30   : > { %1680 = vmatprep.subr.bf16.mxu0 %v1802_v2  ;;  %1760 = vmatprep.subr.bf16.mxu1 %v1802_v2  ;;  %v1805_v5 = vld [vmem:[%s2459_s1 + $0x20] sm:$0xff]   ;;  %v1806_v7 = vld [vmem:[%s2459_s1 + $0x18] sm:$0xff]   ;;  %v1807_v8 = vld [vmem:[%s2459_s1 + $0x10] sm:$0xff]  }
  0x31   : > { %1681 = vmatpush3.bf16.msra.mxu0 %v1802_v2  ;;  %1768 = vmatpush3.bf16.msra.mxu1 %v1802_v2  ;;  %v1810_v6 = vld [vmem:[%s1918_s24] sm:$0xff]   ;;  %v1808_v9 = vld [vmem:[%s2459_s1 + $0x8] sm:$0xff]   ;;  %v1812_v13 = vld [vmem:[%s1918_s24 + $0x10] sm:$0xff]  }
  0x32   : > { %1682 = vmatprep.subr.bf16.mxu0 %v1803_v3  ;;  %1761 = vmatprep.subr.bf16.mxu1 %v1803_v3  ;;  %v1809_v10 = vld [vmem:[%s2459_s1] sm:$0xff]   ;;  %v1811_v12 = vld [vmem:[%s1918_s24 + $0x8] sm:$0xff]   ;;  %v1828_v15 = vld [vmem:[%s1918_s24 + $0x90] sm:$0xff]  }
  0x33   : > { %1696 = vmatprep.mubr.bf16.mxu0 %v1810_v6  ;;  %v1826_v11 = vld [vmem:[%s1918_s24 + $0x80] sm:$0xff]   ;;  %v1827_v14 = vld [vmem:[%s1918_s24 + $0x88] sm:$0xff]   ;;  %v1813_v16 = vld [vmem:[%s1918_s24 + $0x18] sm:$0xff]  }
  0x34   : > { %1728 = vmatprep.mubr.bf16.mxu1 %v1826_v11  ;;  %v1814_v17 = vld [vmem:[%s1918_s24 + $0x20] sm:$0xff]   ;;  %v1829_v18 = vld [vmem:[%s1918_s24 + $0x98] sm:$0xff]   ;;  %v1815_v20 = vld [vmem:[%s1918_s24 + $0x28] sm:$0xff]  }
  0x35   : > { %1683 = vmatpush3.bf16.msra.mxu0 %v1803_v3  ;;  %1769 = vmatpush3.bf16.msra.mxu1 %v1803_v3  ;;  %v1830_v19 = vld [vmem:[%s1918_s24 + $0xa0] sm:$0xff]   ;;  %v1831_v21 = vld [vmem:[%s1918_s24 + $0xa8] sm:$0xff]   ;;  %v1816_v22 = vld [vmem:[%s1918_s24 + $0x30] sm:$0xff]  }
  0x36   : > { %1684 = vmatprep.subr.bf16.mxu0 %v1804_v4  ;;  %1762 = vmatprep.subr.bf16.mxu1 %v1804_v4  ;;  %v1832_v23 = vld [vmem:[%s1918_s24 + $0xb0] sm:$0xff]   ;;  %v1817_v24 = vld [vmem:[%s1918_s24 + $0x38] sm:$0xff]   ;;  %v1818_v26 = vld [vmem:[%s1918_s24 + $0x40] sm:$0xff]  }
  0x37   : > { %v1833_v25 = vld [vmem:[%s1918_s24 + $0xb8] sm:$0xff]   ;;  %v1834_v27 = vld [vmem:[%s1918_s24 + $0xc0] sm:$0xff]   ;;  %v1819_v28 = vld [vmem:[%s1918_s24 + $0x48] sm:$0xff]  }
  0x38   : > { %v1835_v29 = vld [vmem:[%s1918_s24 + $0xc8] sm:$0xff]   ;;  %v1820_v30 = vld [vmem:[%s1918_s24 + $0x50] sm:$0xff]   ;;  %v1821_v32 = vld [vmem:[%s1918_s24 + $0x58] sm:$0xff]  }
  0x39   : > { %1685 = vmatpush3.bf16.msra.mxu0 %v1804_v4  ;;  %1770 = vmatpush3.bf16.msra.mxu1 %v1804_v4  ;;  %v1836_v31 = vld [vmem:[%s1918_s24 + $0xd0] sm:$0xff]   ;;  %v1837_v33 = vld [vmem:[%s1918_s24 + $0xd8] sm:$0xff]   ;;  %v1822_v34 = vld [vmem:[%s1918_s24 + $0x60] sm:$0xff]  }
  0x3a   : > { %1686 = vmatprep.subr.bf16.mxu0 %v1805_v5  ;;  %1763 = vmatprep.subr.bf16.mxu1 %v1805_v5  ;;  %v1838_v35 = vld [vmem:[%s1918_s24 + $0xe0] sm:$0xff]   ;;  %v1823_v36 = vld [vmem:[%s1918_s24 + $0x68] sm:$0xff]   ;;  %v1824_v38 = vld [vmem:[%s1918_s24 + $0x70] sm:$0xff]  }
  0x3b   : > { %v1839_v37 = vld [vmem:[%s1918_s24 + $0xe8] sm:$0xff]   ;;  %v1840_v39 = vld [vmem:[%s1918_s24 + $0xf0] sm:$0xff]   ;;  %v1825_v40 = vld [vmem:[%s1918_s24 + $0x78] sm:$0xff]  }
  0x3c   : > { %v1841_v41 = vld [vmem:[%s1918_s24 + $0xf8] sm:$0xff]   ;;  %v367_v42 = vld [vmem:[%s1923_s27 + $0x10] sm:$0xff]  ;;  %v365_v45 = vld [vmem:[%s1923_s27] sm:$0xff] }
  0x3d   : > { %1687 = vmatpush3.bf16.msra.mxu0 %v1805_v5  ;;  %1771 = vmatpush3.bf16.msra.mxu1 %v1805_v5  ;;  %v399_v43 = vld [vmem:[%s1923_s27 + $0x110] sm:$0xff]  ;;  %v397_v47 = vld [vmem:[%s1923_s27 + $0x100] sm:$0xff]  ;;  %v368_v51 = vld [vmem:[%s1923_s27 + $0x18] sm:$0xff] }
  0x3e   : > { %1688 = vmatprep.subr.bf16.mxu0 %v1806_v7  ;;  %1764 = vmatprep.subr.bf16.mxu1 %v1806_v7  ;;  %v400_v53 = vld [vmem:[%s1923_s27 + $0x118] sm:$0xff]  ;;  %v366_v57 = vld [vmem:[%s1923_s27 + $0x8] sm:$0xff]  ;;  %v371_v63 = vld [vmem:[%s1923_s27 + $0x30] sm:$0xff] }
  0x3f   : > { %v398_v59 = vld [vmem:[%s1923_s27 + $0x108] sm:$0xff]  ;;  %v403_v3 = vld [vmem:[%s1923_s27 + $0x130] sm:$0xff]  ;;  %v369_v5 = vld [vmem:[%s1923_s27 + $0x20] sm:$0xff] }
  0x40   : > { %v401_v11 = vld [vmem:[%s1923_s27 + $0x120] sm:$0xff] }
  0x41   : > { %1689 = vmatpush3.bf16.msra.mxu0 %v1806_v7  ;;  %1772 = vmatpush3.bf16.msra.mxu1 %v1806_v7 }
  0x42   : > { %1690 = vmatprep.subr.bf16.mxu0 %v1807_v8  ;;  %1765 = vmatprep.subr.bf16.mxu1 %v1807_v8 }
  0x45   : > { %1691 = vmatpush3.bf16.msra.mxu0 %v1807_v8  ;;  %1773 = vmatpush3.bf16.msra.mxu1 %v1807_v8 }
  0x46   : > { %1692 = vmatprep.subr.bf16.mxu0 %v1808_v9  ;;  %1766 = vmatprep.subr.bf16.mxu1 %v1808_v9 }
  0x49   : > { %1693 = vmatpush3.bf16.msra.mxu0 %v1808_v9  ;;  %1774 = vmatpush3.bf16.msra.mxu1 %v1808_v9 }
  0x4a   : > { %1694 = vmatprep.subr.bf16.mxu0 %v1809_v10  ;;  %1767 = vmatprep.subr.bf16.mxu1 %v1809_v10 }
  0x4d   : > { %1695 = vmatpush3.bf16.msra.mxu0 %v1809_v10  ;;  %1775 = vmatpush3.bf16.msra.mxu1 %v1809_v10 }
  0x50   : > { %1697 = vmatmul.mubr.bf16.vlgmr.msra.gmra.mxu0 %v1811_v12  ;;  %1729 = vmatmul.mubr.bf16.vlgmr.msra.gmra.mxu1 %v1827_v14 }
  0x51   : > { %1700 = vmatprep.mubr.bf16.mxu0 %v1812_v13  ;;  %1732 = vmatprep.mubr.bf16.mxu1 %v1828_v15  ;;  %v372_v13 = vld [vmem:[%s1923_s27 + $0x38] sm:$0xff] }
  0x58   : > { %1701 = vmatmul.mubr.bf16.gmra.mxu0 %v1813_v16  ;;  %1733 = vmatmul.mubr.bf16.gmra.mxu1 %v1829_v18 }
  0x59   : > { %1704 = vmatprep.mubr.bf16.mxu0 %v1814_v17  ;;  %1736 = vmatprep.mubr.bf16.mxu1 %v1830_v19 }
  0x60   : > { %1705 = vmatmul.mubr.bf16.gmra.mxu0 %v1815_v20  ;;  %1737 = vmatmul.mubr.bf16.gmra.mxu1 %v1831_v21  ;;  %v404_v20 = vld [vmem:[%s1923_s27 + $0x138] sm:$0xff] }
  0x61   : > { %1708 = vmatprep.mubr.bf16.mxu0 %v1816_v22  ;;  %1740 = vmatprep.mubr.bf16.mxu1 %v1832_v23  ;;  %v370_v22 = vld [vmem:[%s1923_s27 + $0x28] sm:$0xff] }
  0x68   : > { %1709 = vmatmul.mubr.bf16.gmra.mxu0 %v1817_v24  ;;  %1741 = vmatmul.mubr.bf16.gmra.mxu1 %v1833_v25 }
  0x69   : > { %1712 = vmatprep.mubr.bf16.mxu0 %v1818_v26  ;;  %1744 = vmatprep.mubr.bf16.mxu1 %v1834_v27 }
  0x70   : > { %1713 = vmatmul.mubr.bf16.gmra.mxu0 %v1819_v28  ;;  %1745 = vmatmul.mubr.bf16.gmra.mxu1 %v1835_v29  ;;  %v402_v29 = vld [vmem:[%s1923_s27 + $0x128] sm:$0xff] }
  0x71   : > { %1716 = vmatprep.mubr.bf16.mxu0 %v1820_v30  ;;  %1748 = vmatprep.mubr.bf16.mxu1 %v1836_v31  ;;  %v375_v31 = vld [vmem:[%s1923_s27 + $0x50] sm:$0xff] }
  0x78   : > { %1717 = vmatmul.mubr.bf16.gmra.mxu0 %v1821_v32  ;;  %1749 = vmatmul.mubr.bf16.gmra.mxu1 %v1837_v33 }
  0x79   : > { %1720 = vmatprep.mubr.bf16.mxu0 %v1822_v34  ;;  %1752 = vmatprep.mubr.bf16.mxu1 %v1838_v35 }
  0x80   : > { %1721 = vmatmul.mubr.bf16.gmra.mxu0 %v1823_v36  ;;  %1753 = vmatmul.mubr.bf16.gmra.mxu1 %v1839_v37 }
  0x81   : > { %1724 = vmatprep.mubr.bf16.mxu0 %v1824_v38  ;;  %1756 = vmatprep.mubr.bf16.mxu1 %v1840_v39  ;;  %v407_v38 = vld [vmem:[%s1923_s27 + $0x150] sm:$0xff] }
  0x88   : > { %1725 = vmatmul.mubr.bf16.gmra.mxu0 %v1825_v40  ;;  %1757 = vmatmul.mubr.bf16.gmra.mxu1 %v1841_v41  ;;  %v373_v40 = vld [vmem:[%s1923_s27 + $0x40] sm:$0xff] }
 0x110   : > { %v1698_v44 = vpop.f32.mrf.mxu0  ;;  %v1730_v46 = vpop.f32.mrf.mxu1 }
 0x111   : > { %v1040_v48 = vadd.f32 %v1698_v44, %v367_v42  ;;  %v2121_v49 = vadd.f32 %v1730_v46, %v399_v43 }
 0x112   : > { %v783_v50 = vpop.f32.mrf.mxu0  ;;  %v911_v52 = vpop.f32.mrf.mxu1 }
 0x113   : > { %1104 = vst [vmem:[%s1923_s27 + $0x10] sm:$0xff] %v1040_v48  ;;  %v1038_v54 = vadd.f32 %v783_v50, %v365_v45  ;;  %1136 = vst [vmem:[%s1923_s27 + $0x110] sm:$0xff] %v2121_v49  ;;  %v2128_v55 = vadd.f32 %v911_v52, %v397_v47  ;;  %v1308_v16 = vmul.f32 %v1040_v48, %v1040_v48  ;;  %v405_v47 = vld [vmem:[%s1923_s27 + $0x140] sm:$0xff]  ;;  %v376_v50 = vld [vmem:[%s1923_s27 + $0x58] sm:$0xff] }
 0x114   : > { %v1699_v56 = vpop.f32.mrf.mxu0  ;;  %v1731_v58 = vpop.f32.mrf.mxu1 }
 0x115   : > { %1102 = vst [vmem:[%s1923_s27] sm:$0xff] %v1038_v54  ;;  %v1041_v60 = vadd.f32 %v1699_v56, %v368_v51  ;;  %1134 = vst [vmem:[%s1923_s27 + $0x100] sm:$0xff] %v2128_v55  ;;  %v2135_v61 = vadd.f32 %v1731_v58, %v400_v53  ;;  %v1306_v7 = vmul.f32 %v1038_v54, %v1038_v54  ;;  %v408_v58 = vld [vmem:[%s1923_s27 + $0x158] sm:$0xff] }
 0x116   : > { %v786_v62 = vpop.f32.mrf.mxu0  ;;  %v914_v0 = vpop.f32.mrf.mxu1 }
 0x117   : > { %1105 = vst [vmem:[%s1923_s27 + $0x18] sm:$0xff] %v1041_v60  ;;  %v1039_v1 = vadd.f32 %v786_v62, %v366_v57  ;;  %1137 = vst [vmem:[%s1923_s27 + $0x118] sm:$0xff] %v2135_v61  ;;  %v2141_v2 = vadd.f32 %v914_v0, %v398_v59  ;;  %v1309_v25 = vmul.f32 %v1041_v60, %v1041_v60 }
 0x118   : > { %v1702_v4 = vpop.f32.mrf.mxu0  ;;  %v1734_v6 = vpop.f32.mrf.mxu1 }
 0x119   : > { %1103 = vst [vmem:[%s1923_s27 + $0x8] sm:$0xff] %v1039_v1  ;;  %v1234_v8 = vadd.f32 %v1039_v1, %v1038_v54  ;;  %v1307_v9 = vmul.f32 %v1039_v1, %v1039_v1  ;;  %v1044_v10 = vadd.f32 %v1702_v4, %v371_v63  ;;  %1135 = vst [vmem:[%s1923_s27 + $0x108] sm:$0xff] %v2141_v2 }
 0x11a   : > { %v799_v12 = vpop.f32.mrf.mxu0  ;;  %v2150_v14 = vadd.f32 %v1734_v6, %v403_v3  ;;  %v927_v15 = vpop.f32.mrf.mxu1 }
 0x11b   : > { %v1235_v17 = vadd.f32 %v1234_v8, %v1040_v48  ;;  %v1370_v18 = vadd.f32 %v1307_v9, %v1306_v7  ;;  %1108 = vst [vmem:[%s1923_s27 + $0x30] sm:$0xff] %v1044_v10  ;;  %v1042_v19 = vadd.f32 %v799_v12, %v369_v5  ;;  %v2157_v23 = vadd.f32 %v927_v15, %v401_v11  ;;  %v406_v5 = vld [vmem:[%s1923_s27 + $0x148] sm:$0xff]  ;;  %v379_v7 = vld [vmem:[%s1923_s27 + $0x70] sm:$0xff] }
 0x11c   : > { %v1703_v21 = vpop.f32.mrf.mxu0  ;;  %1140 = vst [vmem:[%s1923_s27 + $0x130] sm:$0xff] %v2150_v14  ;;  %v1735_v24 = vpop.f32.mrf.mxu1  ;;  %v1312_v53 = vmul.f32 %v1044_v10, %v1044_v10  ;;  %v411_v15 = vld [vmem:[%s1923_s27 + $0x170] sm:$0xff] }
 0x11d   : > { %v1371_v26 = vadd.f32 %v1370_v18, %v1308_v16  ;;  %1106 = vst [vmem:[%s1923_s27 + $0x20] sm:$0xff] %v1042_v19  ;;  %v1236_v27 = vadd.f32 %v1235_v17, %v1041_v60  ;;  %v1045_v28 = vadd.f32 %v1703_v21, %v372_v13  ;;  %1138 = vst [vmem:[%s1923_s27 + $0x120] sm:$0xff] %v2157_v23  ;;  %v374_v60 = vld [vmem:[%s1923_s27 + $0x48] sm:$0xff]  ;;  %v377_v17 = vld [vmem:[%s1923_s27 + $0x60] sm:$0xff] }
 0x11e   : > { %v802_v30 = vpop.f32.mrf.mxu0  ;;  %v2164_v32 = vadd.f32 %v1735_v24, %v404_v20  ;;  %v930_v33 = vpop.f32.mrf.mxu1  ;;  %v1310_v35 = vmul.f32 %v1042_v19, %v1042_v19 }
 0x11f   : > { %v1237_v34 = vadd.f32 %v1236_v27, %v1042_v19  ;;  %v1372_v36 = vadd.f32 %v1371_v26, %v1309_v25  ;;  %1109 = vst [vmem:[%s1923_s27 + $0x38] sm:$0xff] %v1045_v28  ;;  %v1043_v37 = vadd.f32 %v802_v30, %v370_v22  ;;  %v2171_v41 = vadd.f32 %v930_v33, %v402_v29  ;;  %v409_v25 = vld [vmem:[%s1923_s27 + $0x160] sm:$0xff]  ;;  %v380_v27 = vld [vmem:[%s1923_s27 + $0x78] sm:$0xff] }
 0x120   : > { %v1706_v39 = vpop.f32.mrf.mxu0  ;;  %1141 = vst [vmem:[%s1923_s27 + $0x138] sm:$0xff] %v2164_v32  ;;  %v1738_v42 = vpop.f32.mrf.mxu1  ;;  %v1313_v0 = vmul.f32 %v1045_v28, %v1045_v28 }
 0x121   : > { %v1373_v43 = vadd.f32 %v1372_v36, %v1310_v35  ;;  %1107 = vst [vmem:[%s1923_s27 + $0x28] sm:$0xff] %v1043_v37  ;;  %v1238_v44 = vadd.f32 %v1237_v34, %v1043_v37  ;;  %v1311_v45 = vmul.f32 %v1043_v37, %v1043_v37  ;;  %v1048_v46 = vadd.f32 %v1706_v39, %v375_v31  ;;  %v412_v35 = vld [vmem:[%s1923_s27 + $0x178] sm:$0xff]  ;;  %v378_v37 = vld [vmem:[%s1923_s27 + $0x68] sm:$0xff] }
 0x122   : > { %v815_v48 = vpop.f32.mrf.mxu0  ;;  %1139 = vst [vmem:[%s1923_s27 + $0x128] sm:$0xff] %v2171_v41  ;;  %v2178_v51 = vadd.f32 %v1738_v42, %v407_v38  ;;  %v943_v52 = vpop.f32.mrf.mxu1 }
 0x123   : > { %v1239_v54 = vadd.f32 %v1238_v44, %v1044_v10  ;;  %v1374_v56 = vadd.f32 %v1373_v43, %v1311_v45  ;;  %1112 = vst [vmem:[%s1923_s27 + $0x50] sm:$0xff] %v1048_v46  ;;  %v1046_v57 = vadd.f32 %v815_v48, %v373_v40  ;;  %v2185_v62 = vadd.f32 %v943_v52, %v405_v47  ;;  %v410_v45 = vld [vmem:[%s1923_s27 + $0x168] sm:$0xff]  ;;  %v383_v47 = vld [vmem:[%s1923_s27 + $0x90] sm:$0xff] }
 0x124   : > { %v1707_v59 = vpop.f32.mrf.mxu0  ;;  %1144 = vst [vmem:[%s1923_s27 + $0x150] sm:$0xff] %v2178_v51  ;;  %v1739_v63 = vpop.f32.mrf.mxu1  ;;  %v1316_v30 = vmul.f32 %v1048_v46, %v1048_v46 }
 0x125   : > { %v1375_v1 = vadd.f32 %v1374_v56, %v1312_v53  ;;  %1110 = vst [vmem:[%s1923_s27 + $0x40] sm:$0xff] %v1046_v57  ;;  %v1240_v3 = vadd.f32 %v1239_v54, %v1045_v28  ;;  %v1049_v4 = vadd.f32 %v1707_v59, %v376_v50  ;;  %1142 = vst [vmem:[%s1923_s27 + $0x140] sm:$0xff] %v2185_v62  ;;  %v381_v59 = vld [vmem:[%s1923_s27 + $0x80] sm:$0xff] }
 0x126   : > { %v818_v6 = vpop.f32.mrf.mxu0  ;;  %v2192_v8 = vadd.f32 %v1739_v63, %v408_v58  ;;  %v946_v9 = vpop.f32.mrf.mxu1  ;;  %v1314_v11 = vmul.f32 %v1046_v57, %v1046_v57 }
 0x127   : > { %v1241_v10 = vadd.f32 %v1240_v3, %v1046_v57  ;;  %v1376_v12 = vadd.f32 %v1375_v1, %v1313_v0  ;;  %1113 = vst [vmem:[%s1923_s27 + $0x58] sm:$0xff] %v1049_v4  ;;  %v1047_v13 = vadd.f32 %v818_v6, %v374_v60  ;;  %v2199_v18 = vadd.f32 %v946_v9, %v406_v5  ;;  %v415_v57 = vld [vmem:[%s1923_s27 + $0x190] sm:$0xff]  ;;  %v413_v5 = vld [vmem:[%s1923_s27 + $0x180] sm:$0xff] }
 0x128   : > { %v1710_v16 = vpop.f32.mrf.mxu0  ;;  %1145 = vst [vmem:[%s1923_s27 + $0x158] sm:$0xff] %v2192_v8  ;;  %v1742_v19 = vpop.f32.mrf.mxu1  ;;  %v1317_v40 = vmul.f32 %v1049_v4, %v1049_v4 }
 0x129   : > { %v1377_v20 = vadd.f32 %v1376_v12, %v1314_v11  ;;  %1111 = vst [vmem:[%s1923_s27 + $0x48] sm:$0xff] %v1047_v13  ;;  %v1242_v21 = vadd.f32 %v1241_v10, %v1047_v13  ;;  %v1315_v22 = vmul.f32 %v1047_v13, %v1047_v13  ;;  %v1052_v24 = vadd.f32 %v1710_v16, %v379_v7  ;;  %v384_v7 = vld [vmem:[%s1923_s27 + $0x98] sm:$0xff] }
 0x12a   : > { %v831_v26 = vpop.f32.mrf.mxu0  ;;  %1143 = vst [vmem:[%s1923_s27 + $0x148] sm:$0xff] %v2199_v18  ;;  %v2206_v28 = vadd.f32 %v1742_v19, %v411_v15  ;;  %v959_v29 = vpop.f32.mrf.mxu1  ;;  %v416_v16 = vld [vmem:[%s1923_s27 + $0x198] sm:$0xff]  ;;  %v382_v19 = vld [vmem:[%s1923_s27 + $0x88] sm:$0xff] }
 0x12b   : > { %v1243_v31 = vadd.f32 %v1242_v21, %v1048_v46  ;;  %v1378_v33 = vadd.f32 %v1377_v20, %v1315_v22  ;;  %1116 = vst [vmem:[%s1923_s27 + $0x70] sm:$0xff] %v1052_v24  ;;  %v1050_v34 = vadd.f32 %v831_v26, %v377_v17  ;;  %v2213_v38 = vadd.f32 %v959_v29, %v409_v25 }
 0x12c   : > { %v1711_v36 = vpop.f32.mrf.mxu0  ;;  %1148 = vst [vmem:[%s1923_s27 + $0x170] sm:$0xff] %v2206_v28  ;;  %v1743_v39 = vpop.f32.mrf.mxu1  ;;  %v1320_v11 = vmul.f32 %v1052_v24, %v1052_v24 }
 0x12d   : > { %v1379_v42 = vadd.f32 %v1378_v33, %v1316_v30  ;;  %1114 = vst [vmem:[%s1923_s27 + $0x60] sm:$0xff] %v1050_v34  ;;  %v1244_v43 = vadd.f32 %v1243_v31, %v1049_v4  ;;  %v1053_v44 = vadd.f32 %v1711_v36, %v380_v27  ;;  %1146 = vst [vmem:[%s1923_s27 + $0x160] sm:$0xff] %v2213_v38  ;;  %v414_v27 = vld [vmem:[%s1923_s27 + $0x188] sm:$0xff]  ;;  %v387_v30 = vld [vmem:[%s1923_s27 + $0xb0] sm:$0xff] }
 0x12e   : > { %v834_v46 = vpop.f32.mrf.mxu0  ;;  %v2220_v48 = vadd.f32 %v1743_v39, %v412_v35  ;;  %v962_v50 = vpop.f32.mrf.mxu1  ;;  %v1318_v53 = vmul.f32 %v1050_v34, %v1050_v34  ;;  %v419_v39 = vld [vmem:[%s1923_s27 + $0x1b0] sm:$0xff] }
 0x12f   : > { %v1245_v52 = vadd.f32 %v1244_v43, %v1050_v34  ;;  %v1380_v54 = vadd.f32 %v1379_v42, %v1317_v40  ;;  %1117 = vst [vmem:[%s1923_s27 + $0x78] sm:$0xff] %v1053_v44  ;;  %v1051_v56 = vadd.f32 %v834_v46, %v378_v37  ;;  %v2227_v60 = vadd.f32 %v962_v50, %v410_v45  ;;  %v385_v42 = vld [vmem:[%s1923_s27 + $0xa0] sm:$0xff] }
 0x130   : > { %v1714_v58 = vpop.f32.mrf.mxu0  ;;  %1149 = vst [vmem:[%s1923_s27 + $0x178] sm:$0xff] %v2220_v48  ;;  %v1746_v63 = vpop.f32.mrf.mxu1  ;;  %v1321_v22 = vmul.f32 %v1053_v44, %v1053_v44 }
 0x131   : > { %v1381_v0 = vadd.f32 %v1380_v54, %v1318_v53  ;;  %1115 = vst [vmem:[%s1923_s27 + $0x68] sm:$0xff] %v1051_v56  ;;  %v1246_v1 = vadd.f32 %v1245_v52, %v1051_v56  ;;  %v1319_v3 = vmul.f32 %v1051_v56, %v1051_v56  ;;  %v1056_v4 = vadd.f32 %v1714_v58, %v383_v47  ;;  %v417_v52 = vld [vmem:[%s1923_s27 + $0x1a0] sm:$0xff]  ;;  %v388_v54 = vld [vmem:[%s1923_s27 + $0xb8] sm:$0xff] }
 0x132   : > { %v847_v6 = vpop.f32.mrf.mxu0  ;;  %1147 = vst [vmem:[%s1923_s27 + $0x168] sm:$0xff] %v2227_v60  ;;  %v2234_v9 = vadd.f32 %v1746_v63, %v415_v57  ;;  %v975_v10 = vpop.f32.mrf.mxu1 }
 0x133   : > { %v1247_v12 = vadd.f32 %v1246_v1, %v1052_v24  ;;  %v1382_v13 = vadd.f32 %v1381_v0, %v1319_v3  ;;  %1120 = vst [vmem:[%s1923_s27 + $0x90] sm:$0xff] %v1056_v4  ;;  %v1054_v15 = vadd.f32 %v847_v6, %v381_v59  ;;  %v2241_v20 = vadd.f32 %v975_v10, %v413_v5  ;;  %v420_v1 = vld [vmem:[%s1923_s27 + $0x1b8] sm:$0xff]  ;;  %v386_v5 = vld [vmem:[%s1923_s27 + $0xa8] sm:$0xff] }
 0x134   : > { %v1715_v17 = vpop.f32.mrf.mxu0  ;;  %1152 = vst [vmem:[%s1923_s27 + $0x190] sm:$0xff] %v2234_v9  ;;  %v1747_v21 = vpop.f32.mrf.mxu1  ;;  %v1324_v58 = vmul.f32 %v1056_v4, %v1056_v4 }
 0x135   : > { %v1383_v25 = vadd.f32 %v1382_v13, %v1320_v11  ;;  %1118 = vst [vmem:[%s1923_s27 + $0x80] sm:$0xff] %v1054_v15  ;;  %v1248_v24 = vadd.f32 %v1247_v12, %v1053_v44  ;;  %v1057_v26 = vadd.f32 %v1715_v17, %v384_v7  ;;  %1150 = vst [vmem:[%s1923_s27 + $0x180] sm:$0xff] %v2241_v20  ;;  %v418_v13 = vld [vmem:[%s1923_s27 + $0x1a8] sm:$0xff] }
 0x136   : > { %v850_v29 = vpop.f32.mrf.mxu0  ;;  %v2248_v31 = vadd.f32 %v1747_v21, %v416_v16  ;;  %v978_v33 = vpop.f32.mrf.mxu1  ;;  %v1322_v35 = vmul.f32 %v1054_v15, %v1054_v15  ;;  %v391_v16 = vld [vmem:[%s1923_s27 + $0xd0] sm:$0xff] }
 0x137   : > { %v1249_v34 = vadd.f32 %v1248_v24, %v1054_v15  ;;  %v1384_v36 = vadd.f32 %v1383_v25, %v1321_v22  ;;  %1121 = vst [vmem:[%s1923_s27 + $0x98] sm:$0xff] %v1057_v26  ;;  %v1055_v37 = vadd.f32 %v850_v29, %v382_v19  ;;  %v2255_v43 = vadd.f32 %v978_v33, %v414_v27  ;;  %v389_v29 = vld [vmem:[%s1923_s27 + $0xc0] sm:$0xff] }
 0x138   : > { %v1718_v40 = vpop.f32.mrf.mxu0  ;;  %1153 = vst [vmem:[%s1923_s27 + $0x198] sm:$0xff] %v2248_v31  ;;  %v1750_v44 = vpop.f32.mrf.mxu1  ;;  %v1325_v10 = vmul.f32 %v1057_v26, %v1057_v26 }
 0x139   : > { %v1385_v45 = vadd.f32 %v1384_v36, %v1322_v35  ;;  %1119 = vst [vmem:[%s1923_s27 + $0x88] sm:$0xff] %v1055_v37  ;;  %v1250_v46 = vadd.f32 %v1249_v34, %v1055_v37  ;;  %v1323_v47 = vmul.f32 %v1055_v37, %v1055_v37  ;;  %v1060_v50 = vadd.f32 %v1718_v40, %v387_v30 }
 0x13a   : > { %v863_v53 = vpop.f32.mrf.mxu0  ;;  %1151 = vst [vmem:[%s1923_s27 + $0x188] sm:$0xff] %v2255_v43  ;;  %v2262_v56 = vadd.f32 %v1750_v44, %v419_v39  ;;  %v991_v57 = vpop.f32.mrf.mxu1  ;;  %v421_v39 = vld [vmem:[%s1923_s27 + $0x1c0] sm:$0xff] }
 0x13b   : > { %v1251_v59 = vadd.f32 %v1250_v46, %v1056_v4  ;;  %v1386_v63 = vadd.f32 %v1385_v45, %v1323_v47  ;;  %1124 = vst [vmem:[%s1923_s27 + $0xb0] sm:$0xff] %v1060_v50  ;;  %v1058_v0 = vadd.f32 %v863_v53, %v385_v42  ;;  %v2269_v6 = vadd.f32 %v991_v57, %v417_v52  ;;  %v392_v42 = vld [vmem:[%s1923_s27 + $0xd8] sm:$0xff] }
 0x13c   : > { %v1719_v3 = vpop.f32.mrf.mxu0  ;;  %1156 = vst [vmem:[%s1923_s27 + $0x1b0] sm:$0xff] %v2262_v56  ;;  %v1751_v7 = vpop.f32.mrf.mxu1  ;;  %v1328_v46 = vmul.f32 %v1060_v50, %v1060_v50 }
 0x13d   : > { %v1387_v11 = vadd.f32 %v1386_v63, %v1324_v58  ;;  %1122 = vst [vmem:[%s1923_s27 + $0xa0] sm:$0xff] %v1058_v0  ;;  %v1252_v4 = vadd.f32 %v1251_v59, %v1057_v26  ;;  %v1061_v12 = vadd.f32 %v1719_v3, %v388_v54  ;;  %1154 = vst [vmem:[%s1923_s27 + $0x1a0] sm:$0xff] %v2269_v6  ;;  %v423_v26 = vld [vmem:[%s1923_s27 + $0x1d0] sm:$0xff]  ;;  %v424_v54 = vld [vmem:[%s1923_s27 + $0x1d8] sm:$0xff] }
 0x13e   : > { %v866_v15 = vpop.f32.mrf.mxu0  ;;  %v2276_v17 = vadd.f32 %v1751_v7, %v420_v1  ;;  %v994_v19 = vpop.f32.mrf.mxu1  ;;  %v1326_v22 = vmul.f32 %v1058_v0, %v1058_v0  ;;  %v390_v58 = vld [vmem:[%s1923_s27 + $0xc8] sm:$0xff] }
 0x13f   : > { %v1253_v21 = vadd.f32 %v1252_v4, %v1058_v0  ;;  %v1388_v25 = vadd.f32 %v1387_v11, %v1325_v10  ;;  %1125 = vst [vmem:[%s1923_s27 + $0xb8] sm:$0xff] %v1061_v12  ;;  %v1059_v24 = vadd.f32 %v866_v15, %v386_v5  ;;  %v2283_v30 = vadd.f32 %v994_v19, %v418_v13  ;;  %v422_v5 = vld [vmem:[%s1923_s27 + $0x1c8] sm:$0xff]  ;;  %v395_v10 = vld [vmem:[%s1923_s27 + $0xf0] sm:$0xff] }
 0x140   : > { %v1722_v27 = vpop.f32.mrf.mxu0  ;;  %1157 = vst [vmem:[%s1923_s27 + $0x1b8] sm:$0xff] %v2276_v17  ;;  %v1754_v33 = vpop.f32.mrf.mxu1  ;;  %v1329_v0 = vmul.f32 %v1061_v12, %v1061_v12 }
 0x141   : > { %v1389_v34 = vadd.f32 %v1388_v25, %v1326_v22  ;;  %1123 = vst [vmem:[%s1923_s27 + $0xa8] sm:$0xff] %v1059_v24  ;;  %v1254_v35 = vadd.f32 %v1253_v21, %v1059_v24  ;;  %v1327_v36 = vmul.f32 %v1059_v24, %v1059_v24  ;;  %v1064_v37 = vadd.f32 %v1722_v27, %v391_v16  ;;  %v393_v22 = vld [vmem:[%s1923_s27 + $0xe0] sm:$0xff] }
 0x142   : > { %v879_v40 = vpop.f32.mrf.mxu0  ;;  %1155 = vst [vmem:[%s1923_s27 + $0x1a8] sm:$0xff] %v2283_v30  ;;  %v2290_v44 = vadd.f32 %v1754_v33, %v423_v26  ;;  %v1007_v45 = vpop.f32.mrf.mxu1 }
 0x143   : > { %v1255_v47 = vadd.f32 %v1254_v35, %v1060_v50  ;;  %v1390_v52 = vadd.f32 %v1389_v34, %v1327_v36  ;;  %1128 = vst [vmem:[%s1923_s27 + $0xd0] sm:$0xff] %v1064_v37  ;;  %v1062_v53 = vadd.f32 %v879_v40, %v389_v29  ;;  %v2297_v59 = vadd.f32 %v1007_v45, %v421_v39  ;;  %v425_v34 = vld [vmem:[%s1923_s27 + $0x1e0] sm:$0xff]  ;;  %v396_v36 = vld [vmem:[%s1923_s27 + $0xf8] sm:$0xff] }
 0x144   : > { %v1723_v57 = vpop.f32.mrf.mxu0  ;;  %1160 = vst [vmem:[%s1923_s27 + $0x1d0] sm:$0xff] %v2290_v44  ;;  %v1755_v63 = vpop.f32.mrf.mxu1 }
 0x145   : > { %v1391_v1 = vadd.f32 %v1390_v52, %v1328_v46  ;;  %1126 = vst [vmem:[%s1923_s27 + $0xc0] sm:$0xff] %v1062_v53  ;;  %v1256_v50 = vadd.f32 %v1255_v47, %v1061_v12  ;;  %v1065_v3 = vadd.f32 %v1723_v57, %v392_v42  ;;  %1158 = vst [vmem:[%s1923_s27 + $0x1c0] sm:$0xff] %v2297_v59  ;;  %v427_v12 = vld [vmem:[%s1923_s27 + $0x1f0] sm:$0xff]  ;;  %v428_v52 = vld [vmem:[%s1923_s27 + $0x1f8] sm:$0xff] }
 0x146   : > { %v882_v7 = vpop.f32.mrf.mxu0  ;;  %v2304_v11 = vadd.f32 %v1755_v63, %v424_v54  ;;  %v1010_v4 = vpop.f32.mrf.mxu1  ;;  %v1330_v15 = vmul.f32 %v1062_v53, %v1062_v53  ;;  %v1332_v42 = vmul.f32 %v1064_v37, %v1064_v37  ;;  %v394_v54 = vld [vmem:[%s1923_s27 + $0xe8] sm:$0xff] }
 0x147   : > { %v1257_v13 = vadd.f32 %v1256_v50, %v1062_v53  ;;  %v1392_v16 = vadd.f32 %v1391_v1, %v1329_v0  ;;  %1129 = vst [vmem:[%s1923_s27 + $0xd8] sm:$0xff] %v1065_v3  ;;  %v1063_v19 = vadd.f32 %v882_v7, %v390_v58  ;;  %v2311_v25 = vadd.f32 %v1010_v4, %v422_v5  ;;  %v426_v50 = vld [vmem:[%s1923_s27 + $0x1e8] sm:$0xff] }
 0x148   : > { %v1726_v21 = vpop.f32.mrf.mxu0  ;;  %1161 = vst [vmem:[%s1923_s27 + $0x1d8] sm:$0xff] %v2304_v11  ;;  %v1758_v24 = vpop.f32.mrf.mxu1  ;;  %v1333_v63 = vmul.f32 %v1065_v3, %v1065_v3 }
 0x149   : > { %v1393_v26 = vadd.f32 %v1392_v16, %v1330_v15  ;;  %1127 = vst [vmem:[%s1923_s27 + $0xc8] sm:$0xff] %v1063_v19  ;;  %v1258_v27 = vadd.f32 %v1257_v13, %v1063_v19  ;;  %v1331_v29 = vmul.f32 %v1063_v19, %v1063_v19  ;;  %v1068_v33 = vadd.f32 %v1726_v21, %v395_v10 }
 0x14a   : > { %v895_v35 = vpop.f32.mrf.mxu0  ;;  %1159 = vst [vmem:[%s1923_s27 + $0x1c8] sm:$0xff] %v2311_v25  ;;  %v2318_v39 = vadd.f32 %v1758_v24, %v427_v12  ;;  %v1023_v40 = vpop.f32.mrf.mxu1 }
 0x14b   : > { %v1259_v45 = vadd.f32 %v1258_v27, %v1064_v37  ;;  %v1394_v46 = vadd.f32 %v1393_v26, %v1331_v29  ;;  %1132 = vst [vmem:[%s1923_s27 + $0xf0] sm:$0xff] %v1068_v33  ;;  %v1066_v47 = vadd.f32 %v895_v35, %v393_v22  ;;  %v2325_v57 = vadd.f32 %v1023_v40, %v425_v34 }
 0x14c   : > { %v1727_v53 = vpop.f32.mrf.mxu0  ;;  %1164 = vst [vmem:[%s1923_s27 + $0x1f0] sm:$0xff] %v2318_v39  ;;  %v1759_v58 = vpop.f32.mrf.mxu1  ;;  %v1336_v22 = vmul.f32 %v1068_v33, %v1068_v33  ;;  %v1338_v35 = vmul.f32 %v2128_v55, %v2128_v55 }
 0x14d   : > { %v1395_v0 = vadd.f32 %v1394_v46, %v1332_v42  ;;  %1130 = vst [vmem:[%s1923_s27 + $0xe0] sm:$0xff] %v1066_v47  ;;  %v1260_v1 = vadd.f32 %v1259_v45, %v1065_v3  ;;  %v1069_v37 = vadd.f32 %v1727_v53, %v396_v36  ;;  %1162 = vst [vmem:[%s1923_s27 + $0x1e0] sm:$0xff] %v2325_v57 }
 0x14e   : > { %v898_v5 = vpop.f32.mrf.mxu0  ;;  %v2331_v7 = vadd.f32 %v1759_v58, %v428_v52  ;;  %v1026_v10 = vpop.f32.mrf.mxu1  ;;  %v1334_v13 = vmul.f32 %v1066_v47, %v1066_v47  ;;  %v1339_v45 = vmul.f32 %v2141_v2, %v2141_v2  ;;  %v1341_v53 = vmul.f32 %v2135_v61, %v2135_v61 }
 0x14f   : > { %v1261_v4 = vadd.f32 %v1260_v1, %v1066_v47  ;;  %v1396_v15 = vadd.f32 %v1395_v0, %v1333_v63  ;;  %1133 = vst [vmem:[%s1923_s27 + $0xf8] sm:$0xff] %v1069_v37  ;;  %v1067_v16 = vadd.f32 %v898_v5, %v394_v54  ;;  %v2336_v19 = vadd.f32 %v1026_v10, %v426_v50 }
 0x150   : > { %1165 = vst [vmem:[%s1923_s27 + $0x1f8] sm:$0xff] %v2331_v7  ;;  %v1337_v27 = vmul.f32 %v1069_v37, %v1069_v37  ;;  %v1340_v47 = vmul.f32 %v2121_v49, %v2121_v49  ;;  %v1342_v63 = vmul.f32 %v2157_v23, %v2157_v23 }
 0x151   : > { %v1397_v12 = vadd.f32 %v1396_v15, %v1334_v13  ;;  %1131 = vst [vmem:[%s1923_s27 + $0xe8] sm:$0xff] %v1067_v16  ;;  %v1262_v3 = vadd.f32 %v1261_v4, %v1067_v16  ;;  %v1335_v21 = vmul.f32 %v1067_v16, %v1067_v16  ;;  %1163 = vst [vmem:[%s1923_s27 + $0x1e8] sm:$0xff] %v2336_v19 }
 0x152   : > { %v1346_v13 = vmul.f32 %v2185_v62, %v2185_v62 }
 0x153   : > { %v1263_v24 = vadd.f32 %v1262_v3, %v1068_v33  ;;  %v1398_v26 = vadd.f32 %v1397_v12, %v1335_v21  ;;  %v1347_v12 = vmul.f32 %v2199_v18, %v2199_v18 }
 0x155   : > { %v1399_v29 = vadd.f32 %v1398_v26, %v1336_v22  ;;  %v1264_v34 = vadd.f32 %v1263_v24, %v1069_v37  ;;  %v1343_v37 = vmul.f32 %v2171_v41, %v2171_v41  ;;  %v1350_v26 = vmul.f32 %v2213_v38, %v2213_v38 }
 0x157   : > { %v1265_v36 = vadd.f32 %v1264_v34, %v2128_v55  ;;  %v1400_v40 = vadd.f32 %v1399_v29, %v1337_v27  ;;  %v1351_v34 = vmul.f32 %v2227_v60, %v2227_v60 }
 0x159   : > { %v1266_v42 = vadd.f32 %v1265_v36, %v2141_v2  ;;  %v1401_v46 = vadd.f32 %v1400_v40, %v1338_v35 }
 0x15b   : > { %v1267_v33 = vadd.f32 %v1266_v42, %v2121_v49  ;;  %v1402_v52 = vadd.f32 %v1401_v46, %v1339_v45  ;;  %v1344_v49 = vmul.f32 %v2150_v14, %v2150_v14  ;;  %v1354_v45 = vmul.f32 %v2241_v20, %v2241_v20 }
 0x15d   : > { %v1403_v54 = vadd.f32 %v1402_v52, %v1340_v47  ;;  %v1268_v58 = vadd.f32 %v1267_v33, %v2135_v61  ;;  %v1345_v61 = vmul.f32 %v2164_v32, %v2164_v32  ;;  %v1355_v33 = vmul.f32 %v2255_v43, %v2255_v43 }
 0x15f   : > { %v1269_v55 = vadd.f32 %v1268_v58, %v2157_v23  ;;  %v1404_v0 = vadd.f32 %v1403_v54, %v1341_v53 }
 0x161   : > { %v1405_v2 = vadd.f32 %v1404_v0, %v1342_v63  ;;  %v1270_v1 = vadd.f32 %v1269_v55, %v2171_v41  ;;  %v1358_v55 = vmul.f32 %v2269_v6, %v2269_v6 }
 0x163   : > { %v1271_v50 = vadd.f32 %v1270_v1, %v2150_v14  ;;  %v1406_v5 = vadd.f32 %v1405_v2, %v1343_v37  ;;  %v1348_v14 = vmul.f32 %v2178_v51, %v2178_v51  ;;  %v1359_v2 = vmul.f32 %v2283_v30, %v2283_v30 }
 0x165   : > { %v1407_v10 = vadd.f32 %v1406_v5, %v1344_v49  ;;  %v1272_v4 = vadd.f32 %v1271_v50, %v2164_v32  ;;  %v1349_v32 = vmul.f32 %v2192_v8, %v2192_v8  ;;  %v1362_v5 = vmul.f32 %v2297_v59, %v2297_v59 }
 0x167   : > { %v1273_v23 = vadd.f32 %v1272_v4, %v2185_v62  ;;  %v1408_v15 = vadd.f32 %v1407_v10, %v1345_v61  ;;  %v1363_v4 = vmul.f32 %v2311_v25, %v2311_v25 }
 0x169   : > { %v1409_v16 = vadd.f32 %v1408_v15, %v1346_v13  ;;  %v1274_v41 = vadd.f32 %v1273_v23, %v2199_v18 }
 0x16b   : > { %v1275_v3 = vadd.f32 %v1274_v41, %v2178_v51  ;;  %v1410_v21 = vadd.f32 %v1409_v16, %v1347_v12  ;;  %v1352_v51 = vmul.f32 %v2206_v28, %v2206_v28  ;;  %v1366_v41 = vmul.f32 %v2325_v57, %v2325_v57 }
 0x16d   : > { %v1411_v22 = vadd.f32 %v1410_v21, %v1348_v14  ;;  %v1276_v24 = vadd.f32 %v1275_v3, %v2192_v8  ;;  %v1353_v8 = vmul.f32 %v2220_v48, %v2220_v48  ;;  %v1367_v3 = vmul.f32 %v2336_v19, %v2336_v19 }
 0x16f   : > { %v1277_v62 = vadd.f32 %v1276_v24, %v2213_v38  ;;  %v1412_v27 = vadd.f32 %v1411_v22, %v1349_v32 }
 0x171   : > { %v1413_v29 = vadd.f32 %v1412_v27, %v1350_v26  ;;  %v1278_v18 = vadd.f32 %v1277_v62, %v2227_v60 }
 0x173   : > { %v1279_v35 = vadd.f32 %v1278_v18, %v2206_v28  ;;  %v1414_v36 = vadd.f32 %v1413_v29, %v1351_v34  ;;  %v1356_v28 = vmul.f32 %v2234_v9, %v2234_v9 }
 0x175   : > { %v1415_v40 = vadd.f32 %v1414_v36, %v1352_v51  ;;  %v1280_v42 = vadd.f32 %v1279_v35, %v2220_v48  ;;  %v1357_v48 = vmul.f32 %v2248_v31, %v2248_v31 }
 0x177   : > { %v1281_v38 = vadd.f32 %v1280_v42, %v2241_v20  ;;  %v1416_v46 = vadd.f32 %v1415_v40, %v1353_v8 }
 0x179   : > { %v1417_v47 = vadd.f32 %v1416_v46, %v1354_v45  ;;  %v1282_v60 = vadd.f32 %v1281_v38, %v2255_v43 }
 0x17b   : > { %v1283_v52 = vadd.f32 %v1282_v60, %v2234_v9  ;;  %v1418_v53 = vadd.f32 %v1417_v47, %v1355_v33  ;;  %v1360_v9 = vmul.f32 %v2262_v56, %v2262_v56 }
 0x17d   : > { %v1419_v54 = vadd.f32 %v1418_v53, %v1356_v28  ;;  %v1284_v58 = vadd.f32 %v1283_v52, %v2248_v31  ;;  %v1361_v31 = vmul.f32 %v2276_v17, %v2276_v17 }
 0x17f   : > { %v1285_v20 = vadd.f32 %v1284_v58, %v2269_v6  ;;  %v1420_v63 = vadd.f32 %v1419_v54, %v1357_v48 }
 0x181   : > { %v1421_v0 = vadd.f32 %v1420_v63, %v1358_v55  ;;  %v1286_v43 = vadd.f32 %v1285_v20, %v2283_v30 }
 0x183   : > { %v1287_v1 = vadd.f32 %v1286_v43, %v2262_v56  ;;  %v1422_v37 = vadd.f32 %v1421_v0, %v1359_v2  ;;  %v1364_v56 = vmul.f32 %v2290_v44, %v2290_v44 }
 0x185   : > { %v1423_v49 = vadd.f32 %v1422_v37, %v1360_v9  ;;  %v1288_v50 = vadd.f32 %v1287_v1, %v2276_v17  ;;  %v1365_v17 = vmul.f32 %v2304_v11, %v2304_v11 }
 0x187   : > { %v1289_v6 = vadd.f32 %v1288_v50, %v2297_v59  ;;  %v1424_v61 = vadd.f32 %v1423_v49, %v1361_v31 }
 0x189   : > { %v1425_v10 = vadd.f32 %v1424_v61, %v1362_v5  ;;  %v1290_v30 = vadd.f32 %v1289_v6, %v2311_v25 }
 0x18b   : > { %v1291_v23 = vadd.f32 %v1290_v30, %v2290_v44  ;;  %v1426_v13 = vadd.f32 %v1425_v10, %v1363_v4  ;;  %v1368_v44 = vmul.f32 %v2318_v39, %v2318_v39 }
 0x18d   : > { %v1427_v15 = vadd.f32 %v1426_v13, %v1364_v56  ;;  %v1292_v16 = vadd.f32 %v1291_v23, %v2304_v11  ;;  %v1369_v11 = vmul.f32 %v2331_v7, %v2331_v7 }
 0x18f   : > { %v1293_v59 = vadd.f32 %v1292_v16, %v2325_v57  ;;  %v1428_v12 = vadd.f32 %v1427_v15, %v1365_v17 }
 0x191   : > { %v1429_v14 = vadd.f32 %v1428_v12, %v1366_v41  ;;  %v1294_v25 = vadd.f32 %v1293_v59, %v2336_v19 }
 0x193   : > { %v1295_v21 = vadd.f32 %v1294_v25, %v2318_v39  ;;  %v1430_v32 = vadd.f32 %v1429_v14, %v1367_v3  ;;  %v1233_v39 = vld [vmem:[%s2461_s3] sm:$0x1] }
 0x195   : > { %v1296_v22 = vadd.f32 %v1295_v21, %v2331_v7  ;;  %v1431_v24 = vadd.f32 %v1430_v32, %v1368_v44  ;;  %v1305_v7 = vld [vmem:[%s2462_s4] sm:$0x1] }
 0x197   : > { %v1297_v57 = vrot.slane %v1296_v22, 4  ;;  %v1432_v62 = vadd.f32 %v1431_v24, %v1369_v11 }
 0x199   : > { %v1298_v26 = vadd.f32 %v1297_v57, %v1296_v22  ;;  %v1433_v27 = vrot.slane %v1432_v62, 4 }
 0x19b   : > { %v1299_v29 = vrot.slane %v1298_v26, 2  ;;  %v1434_v18 = vadd.f32 %v1433_v27, %v1432_v62 }
 0x19d   : > { %v1300_v34 = vadd.f32 %v1299_v29, %v1298_v26  ;;  %v1435_v19 = vrot.slane %v1434_v18, 2 }
 0x19f   : > { %v1301_v51 = vrot.slane %v1300_v34, 1  ;;  %v1436_v35 = vadd.f32 %v1435_v19, %v1434_v18 }
 0x1a1   : > { %v1302_v36 = vadd.f32 %v1301_v51, %v1300_v34  ;;  %v1437_v8 = vrot.slane %v1436_v35, 1 }
 0x1a3   : > { %v1303_v40 = vadd.f32 %v1302_v36, %v1233_v39  ;;  %v1438_v42 = vadd.f32 %v1437_v8, %v1436_v35 }
 0x1a5   : > { %1304 = vst [vmem:[%s2461_s3] sm:$0x1] %v1303_v40  ;;  %v1439_v38 = vadd.f32 %v1438_v42, %v1305_v7 }
 0x1a7   : > { %1440 = vst [vmem:[%s2462_s4] sm:$0x1] %v1439_v38 }
 0x1a8 PF: > { %s15_s17 = sadd.s32 1, %s1864_s17   ;;  %s2463_s15 = smov %s1860_s16 }
 0x1a9   : > { %p12_p6 = scmp.ge.s32.totalorder %s15_s17, 5   ;;  %s2464_s16 = smov %s2466_s18 }
 0x1ab   :  { %14 = sbr.rel (!%p12_p6) target bundleno = 2 (0x2), region = 97 }

// kernel: resnet_generator_forward.92
= control target key start
LH: loop header
LB: loop body
LE: loop exit
PB: predicated region body
PF: predicated region fallthrough
CT: control target
= control target key end

     0   :  { %s689_s18 = smov 0   ;;  %s989_s0 = inlined_call_operand.vmem [shape: f32[1536,128], index: 0, kind: input, shape index: {}]   ;;  %s990_s1 = inlined_call_operand.vmem [shape: f32[1,128], index: 1, kind: input, shape index: {}]   ;;  %s991_s2 = inlined_call_operand.vmem [shape: f32[1,128], index: 2, kind: input, shape index: {}]   ;;  %s992_s3 = inlined_call_operand.vmem [shape: f32[1,128], index: 3, kind: input, shape index: {}]   ;;  %s993_s4 = inlined_call_operand.vmem [shape: f32[1,128], index: 4, kind: input, shape index: {}]   ;;  %s994_s5 = inlined_call_operand.vmem [shape: f32[1536,128], index: 5, kind: output, shape index: {}]  }
   0x1 LB: > { %s630_s19 = sadd.s32 4294967295, %s657_s18   ;;  %p634_p0 = scmp.ge.s32.totalorder %s657_s18, 1  ;;  %s657_s18 = sphi %s689_s18, %s15_s18  }
   0x2   : > { %p188_p1 = scmp.lt.s32.totalorder %s657_s18, 4 }
   0x4   : > { %p189_p2 = pnand %p634_p0, %p188_p1 }
   0x5   : > { %s635_s24 = sshll.u32 (!%p189_p2), %s630_s19, 6 }
   0x6   : > { %192 = sbr.rel (%p189_p2) target bundleno = 94 (0x5e), region = 40  ;;  %p217_p3 = scmp.lt.s32.totalorder (!%p189_p2), %s635_s24, 191 }
   0xb   : > { %v228_v0 = vld [vmem:[%s990_s1] sm:$0x1]  ;;  %s996_s24 = smov (!%p217_p3, %s635_s24), 191  ;;  %v307_v8 = vlaneseq }
   0xc   : > { %v230_v1 = vld [vmem:[%s991_s2] sm:$0x1]  ;;  %v229_v2 = vmul.f32 8.138021e-05, %v228_v0  ;;  %s636_s25 = sshll.u32 %s996_s24, 3 }
   0xd   : > { %v231_v3 = vmul.f32 8.138021e-05, %v230_v1  ;;  %v308_v9 = vshrl.u32 %v307_v8, 7  ;;  %s711_s28 = scalar_lea.vmem %s989_s0, %s636_s25  ;;  %v235_v10 = vld [vmem:[%s992_s3] sm:$0x1]  ;;  %s760_s10 = scalar_lea.vmem %s994_s5, %s636_s25 }
   0xe   : > { %v232_v4 = vmul.f32 %v229_v2, %v229_v2  ;;  %v239_v14 = vld [vmem:[%s993_s4] sm:$0x1]  ;;  %v243_v16 = vld [vmem:[%s711_s28 + $0x8] sm:$0xff]  ;;  %v244_v17 = vld [vmem:[%s711_s28 + $0x10] sm:$0xff] }
   0xf   : > { %v309_v11 = vsub.s32 0, %v308_v9  ;;  %v242_v15 = vld [vmem:[%s711_s28] sm:$0xff]  ;;  %v245_v18 = vld [vmem:[%s711_s28 + $0x18] sm:$0xff]  ;;  %v247_v22 = vld [vmem:[%s711_s28 + $0x28] sm:$0xff] }
  0x10   : > { %v233_v5 = vsub.f32 %v231_v3, %v232_v4  ;;  %v246_v19 = vld [vmem:[%s711_s28 + $0x20] sm:$0xff]  ;;  %v248_v23 = vld [vmem:[%s711_s28 + $0x30] sm:$0xff]  ;;  %v249_v24 = vld [vmem:[%s711_s28 + $0x38] sm:$0xff] }
  0x11   : > { %v250_v25 = vld [vmem:[%s711_s28 + $0x40] sm:$0xff]  ;;  %v251_v26 = vld [vmem:[%s711_s28 + $0x48] sm:$0xff]  ;;  %v252_v27 = vld [vmem:[%s711_s28 + $0x50] sm:$0xff] }
  0x12   : > { %v234_v6 = vmax.f32 %v233_v5, 0.0  ;;  %v253_v32 = vld [vmem:[%s711_s28 + $0x58] sm:$0xff]  ;;  %v254_v33 = vld [vmem:[%s711_s28 + $0x60] sm:$0xff]  ;;  %v255_v34 = vld [vmem:[%s711_s28 + $0x68] sm:$0xff] }
  0x13   : > { %v256_v59 = vld [vmem:[%s711_s28 + $0x70] sm:$0xff]  ;;  %v257_v60 = vld [vmem:[%s711_s28 + $0x78] sm:$0xff]  ;;  %v258_v5 = vld [vmem:[%s711_s28 + $0x80] sm:$0xff] }
  0x14   : > { %v236_v7 = vadd.f32 1e-05, %v234_v6 }
  0x16   : > { %649 = vrsqrt.f32 %v236_v7 }
  0x23   : > { %v650_v12 = vpop.eup %649 }
  0x24   : > { %v238_v13 = vmul.f32 %v650_v12, %v235_v10  ;;  %v259_v10 = vld [vmem:[%s711_s28 + $0x88] sm:$0xff]  ;;  %v261_v12 = vld [vmem:[%s711_s28 + $0x98] sm:$0xff] }
  0x26   : > { %v240_v20 = vmul.f32 %v238_v13, %v229_v2  ;;  %v724_v21 = vrot.slane %v238_v13, %v309_v11 }
  0x28   : > { %v241_v28 = vsub.f32 %v239_v14, %v240_v20  ;;  %v312_v29 = vmul.f32 %v724_v21, %v242_v15  ;;  %v313_v30 = vmul.f32 %v724_v21, %v243_v16  ;;  %v314_v31 = vmul.f32 %v724_v21, %v244_v17  ;;  %v262_v17 = vld [vmem:[%s711_s28 + $0xa0] sm:$0xff] }
  0x29   : > { %v315_v35 = vmul.f32 %v724_v21, %v245_v18  ;;  %v316_v36 = vmul.f32 %v724_v21, %v246_v19  ;;  %v317_v37 = vmul.f32 %v724_v21, %v247_v22  ;;  %v318_v38 = vmul.f32 %v724_v21, %v248_v23  ;;  %v263_v18 = vld [vmem:[%s711_s28 + $0xa8] sm:$0xff] }
  0x2a   : > { %v742_v39 = vrot.slane %v241_v28, %v309_v11  ;;  %v319_v40 = vmul.f32 %v724_v21, %v249_v24  ;;  %v320_v41 = vmul.f32 %v724_v21, %v250_v25  ;;  %v321_v42 = vmul.f32 %v724_v21, %v251_v26  ;;  %v260_v11 = vld [vmem:[%s711_s28 + $0x90] sm:$0xff] }
  0x2b   : > { %v322_v43 = vmul.f32 %v724_v21, %v252_v27  ;;  %v323_v44 = vmul.f32 %v724_v21, %v253_v32  ;;  %v324_v45 = vmul.f32 %v724_v21, %v254_v33  ;;  %v325_v46 = vmul.f32 %v724_v21, %v255_v34  ;;  %v264_v28 = vld [vmem:[%s711_s28 + $0xb0] sm:$0xff] }
  0x2c   : > { %v382_v47 = vadd.f32 %v742_v39, %v312_v29  ;;  %v383_v48 = vadd.f32 %v742_v39, %v313_v30  ;;  %v384_v49 = vadd.f32 %v742_v39, %v314_v31  ;;  %v385_v50 = vadd.f32 %v742_v39, %v315_v35  ;;  %v265_v29 = vld [vmem:[%s711_s28 + $0xb8] sm:$0xff] }
  0x2d   : > { %v386_v51 = vadd.f32 %v742_v39, %v316_v36  ;;  %v387_v52 = vadd.f32 %v742_v39, %v317_v37  ;;  %v388_v53 = vadd.f32 %v742_v39, %v318_v38  ;;  %v389_v54 = vadd.f32 %v742_v39, %v319_v40  ;;  %v266_v38 = vld [vmem:[%s711_s28 + $0xc0] sm:$0xff] }
  0x2e   : > { %v446_v55 = vmax.f32 %v382_v47, 0.0  ;;  %v447_v56 = vmax.f32 %v383_v48, 0.0  ;;  %v448_v57 = vmax.f32 %v384_v49, 0.0  ;;  %v449_v58 = vmax.f32 %v385_v50, 0.0 }
  0x2f   : > { %v450_v61 = vmax.f32 %v386_v51, 0.0  ;;  %v451_v62 = vmax.f32 %v387_v52, 0.0  ;;  %v452_v63 = vmax.f32 %v388_v53, 0.0  ;;  %v453_v0 = vmax.f32 %v389_v54, 0.0  ;;  %v270_v51 = vld [vmem:[%s711_s28 + $0xe0] sm:$0xff]  ;;  %v271_v52 = vld [vmem:[%s711_s28 + $0xe8] sm:$0xff] }
  0x30   : > { %510 = vst [vmem:[%s760_s10] sm:$0xff] %v446_v55  ;;  %511 = vst [vmem:[%s760_s10 + $0x8] sm:$0xff] %v447_v56  ;;  %v390_v1 = vadd.f32 %v742_v39, %v320_v41  ;;  %v391_v2 = vadd.f32 %v742_v39, %v321_v42  ;;  %v392_v3 = vadd.f32 %v742_v39, %v322_v43 }
  0x31   : > { %512 = vst [vmem:[%s760_s10 + $0x10] sm:$0xff] %v448_v57  ;;  %513 = vst [vmem:[%s760_s10 + $0x18] sm:$0xff] %v449_v58  ;;  %v393_v4 = vadd.f32 %v742_v39, %v323_v44  ;;  %v394_v6 = vadd.f32 %v742_v39, %v324_v45  ;;  %v395_v7 = vadd.f32 %v742_v39, %v325_v46  ;;  %v267_v44 = vld [vmem:[%s711_s28 + $0xc8] sm:$0xff]  ;;  %v268_v45 = vld [vmem:[%s711_s28 + $0xd0] sm:$0xff] }
  0x32   : > { %514 = vst [vmem:[%s760_s10 + $0x20] sm:$0xff] %v450_v61  ;;  %515 = vst [vmem:[%s760_s10 + $0x28] sm:$0xff] %v451_v62  ;;  %v326_v8 = vmul.f32 %v724_v21, %v256_v59  ;;  %v327_v9 = vmul.f32 %v724_v21, %v257_v60  ;;  %v454_v13 = vmax.f32 %v390_v1, 0.0  ;;  %v455_v14 = vmax.f32 %v391_v2, 0.0  ;;  %v269_v46 = vld [vmem:[%s711_s28 + $0xd8] sm:$0xff]  ;;  %v272_v61 = vld [vmem:[%s711_s28 + $0xf0] sm:$0xff] }
  0x33   : > { %516 = vst [vmem:[%s760_s10 + $0x30] sm:$0xff] %v452_v63  ;;  %517 = vst [vmem:[%s760_s10 + $0x38] sm:$0xff] %v453_v0  ;;  %v456_v15 = vmax.f32 %v392_v3, 0.0  ;;  %v457_v16 = vmax.f32 %v393_v4, 0.0  ;;  %v458_v19 = vmax.f32 %v394_v6, 0.0  ;;  %v459_v20 = vmax.f32 %v395_v7, 0.0 }
  0x34   : > { %v396_v22 = vadd.f32 %v742_v39, %v326_v8  ;;  %v397_v23 = vadd.f32 %v742_v39, %v327_v9  ;;  %518 = vst [vmem:[%s760_s10 + $0x40] sm:$0xff] %v454_v13  ;;  %519 = vst [vmem:[%s760_s10 + $0x48] sm:$0xff] %v455_v14  ;;  %v328_v24 = vmul.f32 %v724_v21, %v258_v5  ;;  %v273_v62 = vld [vmem:[%s711_s28 + $0xf8] sm:$0xff]  ;;  %v274_v7 = vld [vmem:[%s711_s28 + $0x100] sm:$0xff] }
  0x35   : > { %520 = vst [vmem:[%s760_s10 + $0x50] sm:$0xff] %v456_v15  ;;  %521 = vst [vmem:[%s760_s10 + $0x58] sm:$0xff] %v457_v16  ;;  %v329_v25 = vmul.f32 %v724_v21, %v259_v10  ;;  %v330_v26 = vmul.f32 %v724_v21, %v260_v11  ;;  %v331_v27 = vmul.f32 %v724_v21, %v261_v12  ;;  %v275_v12 = vld [vmem:[%s711_s28 + $0x108] sm:$0xff]  ;;  %v276_v13 = vld [vmem:[%s711_s28 + $0x110] sm:$0xff] }
  0x36   : > { %522 = vst [vmem:[%s760_s10 + $0x60] sm:$0xff] %v458_v19  ;;  %523 = vst [vmem:[%s760_s10 + $0x68] sm:$0xff] %v459_v20  ;;  %v460_v30 = vmax.f32 %v396_v22, 0.0  ;;  %v461_v31 = vmax.f32 %v397_v23, 0.0  ;;  %v332_v32 = vmul.f32 %v724_v21, %v262_v17  ;;  %v333_v33 = vmul.f32 %v724_v21, %v263_v18  ;;  %v277_v14 = vld [vmem:[%s711_s28 + $0x118] sm:$0xff]  ;;  %v278_v19 = vld [vmem:[%s711_s28 + $0x120] sm:$0xff] }
  0x37   : > { %v398_v34 = vadd.f32 %v742_v39, %v328_v24  ;;  %v399_v35 = vadd.f32 %v742_v39, %v329_v25  ;;  %v400_v36 = vadd.f32 %v742_v39, %v330_v26  ;;  %v401_v37 = vadd.f32 %v742_v39, %v331_v27  ;;  %v279_v20 = vld [vmem:[%s711_s28 + $0x128] sm:$0xff] }
  0x38   : > { %524 = vst [vmem:[%s760_s10 + $0x70] sm:$0xff] %v460_v30  ;;  %525 = vst [vmem:[%s760_s10 + $0x78] sm:$0xff] %v461_v31  ;;  %v402_v40 = vadd.f32 %v742_v39, %v332_v32  ;;  %v403_v41 = vadd.f32 %v742_v39, %v333_v33  ;;  %v334_v42 = vmul.f32 %v724_v21, %v264_v28  ;;  %v280_v30 = vld [vmem:[%s711_s28 + $0x130] sm:$0xff]  ;;  %v281_v31 = vld [vmem:[%s711_s28 + $0x138] sm:$0xff] }
  0x39   : > { %v335_v43 = vmul.f32 %v724_v21, %v265_v29  ;;  %v462_v47 = vmax.f32 %v398_v34, 0.0  ;;  %v463_v48 = vmax.f32 %v399_v35, 0.0  ;;  %v464_v49 = vmax.f32 %v400_v36, 0.0 }
  0x3a   : > { %v465_v50 = vmax.f32 %v401_v37, 0.0  ;;  %v466_v53 = vmax.f32 %v402_v40, 0.0  ;;  %v467_v54 = vmax.f32 %v403_v41, 0.0  ;;  %v404_v55 = vadd.f32 %v742_v39, %v334_v42  ;;  %v282_v41 = vld [vmem:[%s711_s28 + $0x140] sm:$0xff] }
  0x3b   : > { %v405_v56 = vadd.f32 %v742_v39, %v335_v43  ;;  %526 = vst [vmem:[%s760_s10 + $0x80] sm:$0xff] %v462_v47  ;;  %527 = vst [vmem:[%s760_s10 + $0x88] sm:$0xff] %v463_v48  ;;  %v336_v57 = vmul.f32 %v724_v21, %v266_v38  ;;  %v337_v58 = vmul.f32 %v724_v21, %v267_v44  ;;  %v284_v47 = vld [vmem:[%s711_s28 + $0x150] sm:$0xff]  ;;  %v285_v48 = vld [vmem:[%s711_s28 + $0x158] sm:$0xff] }
  0x3c   : > { %528 = vst [vmem:[%s760_s10 + $0x90] sm:$0xff] %v464_v49  ;;  %529 = vst [vmem:[%s760_s10 + $0x98] sm:$0xff] %v465_v50  ;;  %v338_v59 = vmul.f32 %v724_v21, %v268_v45  ;;  %v339_v60 = vmul.f32 %v724_v21, %v269_v46  ;;  %v468_v63 = vmax.f32 %v404_v55, 0.0  ;;  %v340_v1 = vmul.f32 %v724_v21, %v270_v51  ;;  %v283_v46 = vld [vmem:[%s711_s28 + $0x148] sm:$0xff] }
  0x3d   : > { %530 = vst [vmem:[%s760_s10 + $0xa0] sm:$0xff] %v466_v53  ;;  %531 = vst [vmem:[%s760_s10 + $0xa8] sm:$0xff] %v467_v54  ;;  %v469_v0 = vmax.f32 %v405_v56, 0.0  ;;  %v341_v2 = vmul.f32 %v724_v21, %v271_v52  ;;  %v406_v3 = vadd.f32 %v742_v39, %v336_v57  ;;  %v407_v4 = vadd.f32 %v742_v39, %v337_v58  ;;  %v286_v53 = vld [vmem:[%s711_s28 + $0x160] sm:$0xff]  ;;  %v287_v54 = vld [vmem:[%s711_s28 + $0x168] sm:$0xff] }
  0x3e   : > { %v408_v5 = vadd.f32 %v742_v39, %v338_v59  ;;  %v409_v6 = vadd.f32 %v742_v39, %v339_v60  ;;  %532 = vst [vmem:[%s760_s10 + $0xb0] sm:$0xff] %v468_v63  ;;  %v410_v8 = vadd.f32 %v742_v39, %v340_v1  ;;  %v342_v10 = vmul.f32 %v724_v21, %v272_v61  ;;  %v288_v63 = vld [vmem:[%s711_s28 + $0x170] sm:$0xff] }
  0x3f   : > { %533 = vst [vmem:[%s760_s10 + $0xb8] sm:$0xff] %v469_v0  ;;  %v411_v9 = vadd.f32 %v742_v39, %v341_v2  ;;  %v343_v11 = vmul.f32 %v724_v21, %v273_v62  ;;  %v470_v15 = vmax.f32 %v406_v3, 0.0  ;;  %v471_v16 = vmax.f32 %v407_v4, 0.0  ;;  %v289_v0 = vld [vmem:[%s711_s28 + $0x178] sm:$0xff] }
  0x40   : > { %v472_v17 = vmax.f32 %v408_v5, 0.0  ;;  %v473_v18 = vmax.f32 %v409_v6, 0.0  ;;  %v474_v22 = vmax.f32 %v410_v8, 0.0  ;;  %v412_v24 = vadd.f32 %v742_v39, %v342_v10 }
  0x41   : > { %v475_v23 = vmax.f32 %v411_v9, 0.0  ;;  %v413_v25 = vadd.f32 %v742_v39, %v343_v11  ;;  %534 = vst [vmem:[%s760_s10 + $0xc0] sm:$0xff] %v470_v15  ;;  %535 = vst [vmem:[%s760_s10 + $0xc8] sm:$0xff] %v471_v16  ;;  %v344_v26 = vmul.f32 %v724_v21, %v274_v7  ;;  %v345_v27 = vmul.f32 %v724_v21, %v275_v12  ;;  %v290_v9 = vld [vmem:[%s711_s28 + $0x180] sm:$0xff]  ;;  %v292_v15 = vld [vmem:[%s711_s28 + $0x190] sm:$0xff] }
  0x42   : > { %536 = vst [vmem:[%s760_s10 + $0xd0] sm:$0xff] %v472_v17  ;;  %537 = vst [vmem:[%s760_s10 + $0xd8] sm:$0xff] %v473_v18  ;;  %v346_v28 = vmul.f32 %v724_v21, %v276_v13  ;;  %v347_v29 = vmul.f32 %v724_v21, %v277_v14  ;;  %v476_v32 = vmax.f32 %v412_v24, 0.0  ;;  %v348_v34 = vmul.f32 %v724_v21, %v278_v19  ;;  %v291_v14 = vld [vmem:[%s711_s28 + $0x188] sm:$0xff]  ;;  %v293_v16 = vld [vmem:[%s711_s28 + $0x198] sm:$0xff] }
  0x43   : > { %538 = vst [vmem:[%s760_s10 + $0xe0] sm:$0xff] %v474_v22  ;;  %539 = vst [vmem:[%s760_s10 + $0xe8] sm:$0xff] %v475_v23  ;;  %v477_v33 = vmax.f32 %v413_v25, 0.0  ;;  %v349_v35 = vmul.f32 %v724_v21, %v279_v20  ;;  %v414_v36 = vadd.f32 %v742_v39, %v344_v26  ;;  %v415_v37 = vadd.f32 %v742_v39, %v345_v27  ;;  %v294_v22 = vld [vmem:[%s711_s28 + $0x1a0] sm:$0xff]  ;;  %v295_v23 = vld [vmem:[%s711_s28 + $0x1a8] sm:$0xff] }
  0x44   : > { %v416_v38 = vadd.f32 %v742_v39, %v346_v28  ;;  %v417_v40 = vadd.f32 %v742_v39, %v347_v29  ;;  %540 = vst [vmem:[%s760_s10 + $0xf0] sm:$0xff] %v476_v32  ;;  %v418_v42 = vadd.f32 %v742_v39, %v348_v34  ;;  %v350_v44 = vmul.f32 %v724_v21, %v280_v30  ;;  %v296_v32 = vld [vmem:[%s711_s28 + $0x1b0] sm:$0xff] }
  0x45   : > { %541 = vst [vmem:[%s760_s10 + $0xf8] sm:$0xff] %v477_v33  ;;  %v419_v43 = vadd.f32 %v742_v39, %v349_v35  ;;  %v351_v45 = vmul.f32 %v724_v21, %v281_v31  ;;  %v478_v49 = vmax.f32 %v414_v36, 0.0  ;;  %v479_v50 = vmax.f32 %v415_v37, 0.0  ;;  %v297_v33 = vld [vmem:[%s711_s28 + $0x1b8] sm:$0xff] }
  0x46   : > { %v480_v51 = vmax.f32 %v416_v38, 0.0  ;;  %v481_v52 = vmax.f32 %v417_v40, 0.0  ;;  %v482_v55 = vmax.f32 %v418_v42, 0.0  ;;  %v420_v57 = vadd.f32 %v742_v39, %v350_v44 }
  0x47   : > { %v483_v56 = vmax.f32 %v419_v43, 0.0  ;;  %v421_v58 = vadd.f32 %v742_v39, %v351_v45  ;;  %542 = vst [vmem:[%s760_s10 + $0x100] sm:$0xff] %v478_v49  ;;  %543 = vst [vmem:[%s760_s10 + $0x108] sm:$0xff] %v479_v50  ;;  %v352_v59 = vmul.f32 %v724_v21, %v282_v41  ;;  %v353_v60 = vmul.f32 %v724_v21, %v283_v46  ;;  %v298_v43 = vld [vmem:[%s711_s28 + $0x1c0] sm:$0xff]  ;;  %v300_v49 = vld [vmem:[%s711_s28 + $0x1d0] sm:$0xff] }
  0x48   : > { %544 = vst [vmem:[%s760_s10 + $0x110] sm:$0xff] %v480_v51  ;;  %545 = vst [vmem:[%s760_s10 + $0x118] sm:$0xff] %v481_v52  ;;  %v354_v61 = vmul.f32 %v724_v21, %v284_v47  ;;  %v355_v62 = vmul.f32 %v724_v21, %v285_v48  ;;  %v484_v1 = vmax.f32 %v420_v57, 0.0  ;;  %v356_v3 = vmul.f32 %v724_v21, %v286_v53  ;;  %v299_v48 = vld [vmem:[%s711_s28 + $0x1c8] sm:$0xff]  ;;  %v301_v50 = vld [vmem:[%s711_s28 + $0x1d8] sm:$0xff] }
  0x49   : > { %546 = vst [vmem:[%s760_s10 + $0x120] sm:$0xff] %v482_v55  ;;  %547 = vst [vmem:[%s760_s10 + $0x128] sm:$0xff] %v483_v56  ;;  %v485_v2 = vmax.f32 %v421_v58, 0.0  ;;  %v357_v4 = vmul.f32 %v724_v21, %v287_v54  ;;  %v422_v5 = vadd.f32 %v742_v39, %v352_v59  ;;  %v423_v6 = vadd.f32 %v742_v39, %v353_v60  ;;  %v302_v55 = vld [vmem:[%s711_s28 + $0x1e0] sm:$0xff]  ;;  %v303_v56 = vld [vmem:[%s711_s28 + $0x1e8] sm:$0xff] }
  0x4a   : > { %v424_v7 = vadd.f32 %v742_v39, %v354_v61  ;;  %v425_v8 = vadd.f32 %v742_v39, %v355_v62  ;;  %548 = vst [vmem:[%s760_s10 + $0x130] sm:$0xff] %v484_v1  ;;  %v426_v10 = vadd.f32 %v742_v39, %v356_v3  ;;  %v358_v12 = vmul.f32 %v724_v21, %v288_v63  ;;  %v304_v1 = vld [vmem:[%s711_s28 + $0x1f0] sm:$0xff] }
  0x4b   : > { %549 = vst [vmem:[%s760_s10 + $0x138] sm:$0xff] %v485_v2  ;;  %v427_v11 = vadd.f32 %v742_v39, %v357_v4  ;;  %v359_v13 = vmul.f32 %v724_v21, %v289_v0  ;;  %v486_v17 = vmax.f32 %v422_v5, 0.0  ;;  %v487_v18 = vmax.f32 %v423_v6, 0.0  ;;  %v305_v2 = vld [vmem:[%s711_s28 + $0x1f8] sm:$0xff] }
  0x4c   : > { %v488_v19 = vmax.f32 %v424_v7, 0.0  ;;  %v489_v20 = vmax.f32 %v425_v8, 0.0  ;;  %v490_v24 = vmax.f32 %v426_v10, 0.0  ;;  %v428_v26 = vadd.f32 %v742_v39, %v358_v12 }
  0x4d   : > { %v491_v25 = vmax.f32 %v427_v11, 0.0  ;;  %v429_v27 = vadd.f32 %v742_v39, %v359_v13  ;;  %550 = vst [vmem:[%s760_s10 + $0x140] sm:$0xff] %v486_v17  ;;  %551 = vst [vmem:[%s760_s10 + $0x148] sm:$0xff] %v487_v18  ;;  %v360_v28 = vmul.f32 %v724_v21, %v290_v9  ;;  %v361_v29 = vmul.f32 %v724_v21, %v291_v14 }
  0x4e   : > { %552 = vst [vmem:[%s760_s10 + $0x150] sm:$0xff] %v488_v19  ;;  %553 = vst [vmem:[%s760_s10 + $0x158] sm:$0xff] %v489_v20  ;;  %v362_v30 = vmul.f32 %v724_v21, %v292_v15  ;;  %v363_v31 = vmul.f32 %v724_v21, %v293_v16  ;;  %v492_v34 = vmax.f32 %v428_v26, 0.0  ;;  %v364_v36 = vmul.f32 %v724_v21, %v294_v22 }
  0x4f   : > { %554 = vst [vmem:[%s760_s10 + $0x160] sm:$0xff] %v490_v24  ;;  %555 = vst [vmem:[%s760_s10 + $0x168] sm:$0xff] %v491_v25  ;;  %v493_v35 = vmax.f32 %v429_v27, 0.0  ;;  %v365_v37 = vmul.f32 %v724_v21, %v295_v23  ;;  %v430_v38 = vadd.f32 %v742_v39, %v360_v28  ;;  %v431_v40 = vadd.f32 %v742_v39, %v361_v29 }
  0x50   : > { %v432_v41 = vadd.f32 %v742_v39, %v362_v30  ;;  %v433_v42 = vadd.f32 %v742_v39, %v363_v31  ;;  %556 = vst [vmem:[%s760_s10 + $0x170] sm:$0xff] %v492_v34  ;;  %v434_v44 = vadd.f32 %v742_v39, %v364_v36  ;;  %v366_v46 = vmul.f32 %v724_v21, %v296_v32 }
  0x51   : > { %557 = vst [vmem:[%s760_s10 + $0x178] sm:$0xff] %v493_v35  ;;  %v435_v45 = vadd.f32 %v742_v39, %v365_v37  ;;  %v367_v47 = vmul.f32 %v724_v21, %v297_v33  ;;  %v494_v51 = vmax.f32 %v430_v38, 0.0  ;;  %v495_v52 = vmax.f32 %v431_v40, 0.0 }
  0x52   : > { %v496_v53 = vmax.f32 %v432_v41, 0.0  ;;  %v497_v54 = vmax.f32 %v433_v42, 0.0  ;;  %v498_v57 = vmax.f32 %v434_v44, 0.0  ;;  %v436_v59 = vadd.f32 %v742_v39, %v366_v46 }
  0x53   : > { %v499_v58 = vmax.f32 %v435_v45, 0.0  ;;  %v437_v60 = vadd.f32 %v742_v39, %v367_v47  ;;  %558 = vst [vmem:[%s760_s10 + $0x180] sm:$0xff] %v494_v51  ;;  %559 = vst [vmem:[%s760_s10 + $0x188] sm:$0xff] %v495_v52  ;;  %v368_v61 = vmul.f32 %v724_v21, %v298_v43  ;;  %v369_v62 = vmul.f32 %v724_v21, %v299_v48 }
  0x54   : > { %560 = vst [vmem:[%s760_s10 + $0x190] sm:$0xff] %v496_v53  ;;  %561 = vst [vmem:[%s760_s10 + $0x198] sm:$0xff] %v497_v54  ;;  %v370_v63 = vmul.f32 %v724_v21, %v300_v49  ;;  %v371_v0 = vmul.f32 %v724_v21, %v301_v50  ;;  %v500_v3 = vmax.f32 %v436_v59, 0.0  ;;  %v372_v5 = vmul.f32 %v724_v21, %v302_v55 }
  0x55   : > { %562 = vst [vmem:[%s760_s10 + $0x1a0] sm:$0xff] %v498_v57  ;;  %563 = vst [vmem:[%s760_s10 + $0x1a8] sm:$0xff] %v499_v58  ;;  %v501_v4 = vmax.f32 %v437_v60, 0.0  ;;  %v373_v6 = vmul.f32 %v724_v21, %v303_v56  ;;  %v438_v7 = vadd.f32 %v742_v39, %v368_v61  ;;  %v439_v8 = vadd.f32 %v742_v39, %v369_v62 }
  0x56   : > { %v440_v9 = vadd.f32 %v742_v39, %v370_v63  ;;  %v441_v10 = vadd.f32 %v742_v39, %v371_v0  ;;  %564 = vst [vmem:[%s760_s10 + $0x1b0] sm:$0xff] %v500_v3  ;;  %v442_v11 = vadd.f32 %v742_v39, %v372_v5  ;;  %v374_v13 = vmul.f32 %v724_v21, %v304_v1 }
  0x57   : > { %565 = vst [vmem:[%s760_s10 + $0x1b8] sm:$0xff] %v501_v4  ;;  %v443_v12 = vadd.f32 %v742_v39, %v373_v6  ;;  %v375_v14 = vmul.f32 %v724_v21, %v305_v2  ;;  %v502_v15 = vmax.f32 %v438_v7, 0.0  ;;  %v503_v16 = vmax.f32 %v439_v8, 0.0 }
  0x58   : > { %v504_v17 = vmax.f32 %v440_v9, 0.0  ;;  %v505_v18 = vmax.f32 %v441_v10, 0.0  ;;  %v506_v19 = vmax.f32 %v442_v11, 0.0  ;;  %v444_v22 = vadd.f32 %v742_v39, %v374_v13 }
  0x59   : > { %v507_v20 = vmax.f32 %v443_v12, 0.0  ;;  %v445_v23 = vadd.f32 %v742_v39, %v375_v14  ;;  %566 = vst [vmem:[%s760_s10 + $0x1c0] sm:$0xff] %v502_v15  ;;  %567 = vst [vmem:[%s760_s10 + $0x1c8] sm:$0xff] %v503_v16 }
  0x5a   : > { %568 = vst [vmem:[%s760_s10 + $0x1d0] sm:$0xff] %v504_v17  ;;  %569 = vst [vmem:[%s760_s10 + $0x1d8] sm:$0xff] %v505_v18  ;;  %v508_v24 = vmax.f32 %v444_v22, 0.0 }
  0x5b   : > { %570 = vst [vmem:[%s760_s10 + $0x1e0] sm:$0xff] %v506_v19  ;;  %571 = vst [vmem:[%s760_s10 + $0x1e8] sm:$0xff] %v507_v20  ;;  %v509_v21 = vmax.f32 %v445_v23, 0.0 }
  0x5c   : > { %572 = vst [vmem:[%s760_s10 + $0x1f0] sm:$0xff] %v508_v24 }
  0x5d   : > { %573 = vst [vmem:[%s760_s10 + $0x1f8] sm:$0xff] %v509_v21 }
  0x5e PF: > { %s15_s18 = sadd.s32 1, %s657_s18  }
  0x5f   : > { %p12_p4 = scmp.ge.s32.totalorder %s15_s18, 5  }
  0x61   :  { %14 = sbr.rel (!%p12_p4) target bundleno = 1 (0x1), region = 70 }

// kernel: resnet_generator_forward.93
= control target key start
LH: loop header
LB: loop body
LE: loop exit
PB: predicated region body
PF: predicated region fallthrough
CT: control target
= control target key end

     0   :  { %s2605_s12 = smov 0   ;;  %s2607_s13 = smov 0   ;;  %s3015_s0 = inlined_call_operand.vmem [shape: bf16[2,30,256,512], index: 0, kind: input, shape index: {}]   ;;  %s3016_s1 = inlined_call_operand.vmem [shape: bf16[7,512,128], index: 1, kind: input, shape index: {}]   ;;  %s3017_s2 = inlined_call_operand.vmem [shape: f32[1,128], index: 2, kind: input, shape index: {}]   ;;  %s3018_s3 = inlined_call_operand.vmem [shape: f32[2,24,256,128], index: 3, kind: output, shape index: {}]  }
   0x1   :  { %s2609_s14 = smov 0   ;;  %s2611_s15 = smov 0  }
   0x2   :  { %s2613_s16 = smov 0   ;;  %s2615_s17 = smov 0  }
   0x3   :  { %s2617_s18 = smov 0  }
   0x4 LB: > { %s25_s19 = sadd.s32 1, %s2570_s15  ;;  %s28_s20 = sadd.s32 1, %s2574_s16  ;;  %s2582_s18 = sphi %s2617_s18, %s13_s18   ;;  %s2578_s17 = sphi %s2615_s17, %s3024_s17   ;;  %s2574_s16 = sphi %s2613_s16, %s3023_s16   ;;  %s2570_s15 = sphi %s2611_s15, %s3022_s15   ;;  %s2566_s14 = sphi %s2609_s14, %s3021_s14   ;;  %s2562_s13 = sphi %s2607_s13, %s3020_s13   ;;  %s2558_s12 = sphi %s2605_s12, %s3019_s12  }
   0x5   : > { %p26_p0 = scmp.ge.s32.totalorder %s25_s19, 7  ;;  %p1848_p1 = scmp.ge.s32.totalorder %s2582_s18, 1 }
   0x6   : > { %p178_p2 = scmp.lt.s32.totalorder %s2582_s18, 337  ;;  %s32_s21 = sadd.s32 1, %s2578_s17 }
   0x7   : > { %s3026_s19 = smov (%p26_p0, %s25_s19), 0  ;;  %s3028_s20 = smov (!%p26_p0, %s28_s20), %s2574_s16 }
   0x8   : > { %p179_p3 = pnand %p1848_p1, %p178_p2  ;;  %p30_p4 = scmp.ge.s32.totalorder %s3028_s20, 24 }
   0x9   : > { %s216_s22 = sadd.s32 (!%p179_p3), %s2558_s12, %s2562_s13  ;;  %p217_p6 = scmp.lt.s32.totalorder (!%p179_p3), %s2566_s14, 1 }
   0xa   : > { %s3030_s20 = smov (%p30_p4, %s3028_s20), 0  ;;  %s3032_s21 = smov (!%p30_p4, %s32_s21), %s2578_s17 }
   0xb   : > { %p34_p5 = scmp.ge.s32.totalorder %s3032_s21, 2  ;;  %182 = sbr.rel (%p179_p3) target bundleno = 513 (0x201), region = 32 }
   0xc   : > { %p219_p7 = scmp.lt.s32.totalorder (!%p179_p3), %s216_s22, 29  ;;  %p227_p8 = scmp.lt.s32.totalorder (!%p179_p3), %s2558_s12, 6 }
   0xd   : > { %s3034_s21 = smov (%p34_p5, %s3032_s21), 0  ;;  %p234_p9 = scmp.lt.s32.totalorder (!%p179_p3), %s2562_s13, 23 }
   0xe   : > { %p1855_p10 = scmp.ne.s32.totalorder (!%p179_p3), %s2558_s12, 0 }
  0x10   : > { %s3036_s14 = smov (!%p217_p6, %s2566_s14), 1  ;;  %s3038_s22 = smov (!%p219_p7, %s216_s22), 29 }
  0x11   : > { %s2213_s23 = smul.u32 3840, %s3036_s14  ;;  %s1849_s24 = sshll.u32 %s3038_s22, 7 }
  0x12   : > { %s2214_s30 = smul.u32 768, %s3036_s14  ;;  %s3040_s13 = smov (!%p234_p9, %s2562_s13), 23 }
  0x13   : > { %s223_s25 = sadd.s32 %s2213_s23, %s1849_s24  ;;  %s1853_s9 = sshll.u32 %s3040_s13, 5 }
  0x14   : > { %s1850_s26 = sshll.u32 %s223_s25, 2  ;;  %s238_s10 = sadd.s32 %s2214_s30, %s1853_s9 }
  0x15   : > { %s2658_s29 = scalar_lea.vmem %s3015_s0, %s1850_s26  ;;  %s1854_s11 = sshll.u32 %s238_s10, 3 }
  0x16   : > { %s228_s4 = scalar_select %p227_p8, %s2558_s12, 6 }
  0x17   : > { %s2670_s24 = scalar_lea.vmem %s3018_s3, %s1854_s11  ;;  %245 = sbr.rel (%p1855_p10) target bundleno = 45 (0x2d), region = 36 }
  0x18   : > { %s1988_s5 = sshll.u32 %s228_s4, 8 }
  0x19   : > { %s2665_s8 = scalar_lea.vmem %s3016_s1, %s1988_s5 }
  0x1c   : > { %v2584_v0 = vmov 0.0  }
  0x1d   : > { %246 = vst [vmem:[%s2670_s24] sm:$0xff] %v2584_v0  ;;  %247 = vst [vmem:[%s2670_s24 + $0x8] sm:$0xff] %v2584_v0 }
  0x1e   : > { %248 = vst [vmem:[%s2670_s24 + $0x10] sm:$0xff] %v2584_v0  ;;  %249 = vst [vmem:[%s2670_s24 + $0x18] sm:$0xff] %v2584_v0 }
  0x1f   : > { %250 = vst [vmem:[%s2670_s24 + $0x20] sm:$0xff] %v2584_v0  ;;  %251 = vst [vmem:[%s2670_s24 + $0x28] sm:$0xff] %v2584_v0 }
  0x20   : > { %252 = vst [vmem:[%s2670_s24 + $0x30] sm:$0xff] %v2584_v0  ;;  %253 = vst [vmem:[%s2670_s24 + $0x38] sm:$0xff] %v2584_v0 }
  0x21   : > { %254 = vst [vmem:[%s2670_s24 + $0x40] sm:$0xff] %v2584_v0  ;;  %255 = vst [vmem:[%s2670_s24 + $0x48] sm:$0xff] %v2584_v0 }
  0x22   : > { %256 = vst [vmem:[%s2670_s24 + $0x50] sm:$0xff] %v2584_v0  ;;  %257 = vst [vmem:[%s2670_s24 + $0x58] sm:$0xff] %v2584_v0 }
  0x23   : > { %258 = vst [vmem:[%s2670_s24 + $0x60] sm:$0xff] %v2584_v0  ;;  %259 = vst [vmem:[%s2670_s24 + $0x68] sm:$0xff] %v2584_v0 }
  0x24   : > { %260 = vst [vmem:[%s2670_s24 + $0x70] sm:$0xff] %v2584_v0  ;;  %261 = vst [vmem:[%s2670_s24 + $0x78] sm:$0xff] %v2584_v0 }
  0x25   : > { %262 = vst [vmem:[%s2670_s24 + $0x80] sm:$0xff] %v2584_v0  ;;  %263 = vst [vmem:[%s2670_s24 + $0x88] sm:$0xff] %v2584_v0 }
  0x26   : > { %264 = vst [vmem:[%s2670_s24 + $0x90] sm:$0xff] %v2584_v0  ;;  %265 = vst [vmem:[%s2670_s24 + $0x98] sm:$0xff] %v2584_v0 }
  0x27   : > { %266 = vst [vmem:[%s2670_s24 + $0xa0] sm:$0xff] %v2584_v0  ;;  %267 = vst [vmem:[%s2670_s24 + $0xa8] sm:$0xff] %v2584_v0 }
  0x28   : > { %268 = vst [vmem:[%s2670_s24 + $0xb0] sm:$0xff] %v2584_v0  ;;  %269 = vst [vmem:[%s2670_s24 + $0xb8] sm:$0xff] %v2584_v0 }
  0x29   : > { %270 = vst [vmem:[%s2670_s24 + $0xc0] sm:$0xff] %v2584_v0  ;;  %271 = vst [vmem:[%s2670_s24 + $0xc8] sm:$0xff] %v2584_v0 }
  0x2a   : > { %272 = vst [vmem:[%s2670_s24 + $0xd0] sm:$0xff] %v2584_v0  ;;  %273 = vst [vmem:[%s2670_s24 + $0xd8] sm:$0xff] %v2584_v0 }
  0x2b   : > { %274 = vst [vmem:[%s2670_s24 + $0xe0] sm:$0xff] %v2584_v0  ;;  %275 = vst [vmem:[%s2670_s24 + $0xe8] sm:$0xff] %v2584_v0 }
  0x2c   : > { %276 = vst [vmem:[%s2670_s24 + $0xf0] sm:$0xff] %v2584_v0  ;;  %277 = vst [vmem:[%s2670_s24 + $0xf8] sm:$0xff] %v2584_v0 }
  0x2d PF: > { %v2272_v1 = vld [vmem:[%s2665_s8 + $0x78] sm:$0xff]   ;;  %v2276_v5 = vld [vmem:[%s2665_s8 + $0x70] sm:$0xff]   ;;  %v2280_v9 = vld [vmem:[%s2665_s8 + $0x68] sm:$0xff]   ;;  %p1952_p11 = scmp.ne.s32.totalorder %s2558_s12, 6 }
  0x2e   : > { %v2273_v2 = vld [vmem:[%s2665_s8 + $0xf8] sm:$0xff]   ;;  %1989 = vmatprep.subr.bf16.mxu0 %v2272_v1  ;;  %v2277_v6 = vld [vmem:[%s2665_s8 + $0xf0] sm:$0xff]   ;;  %v2281_v10 = vld [vmem:[%s2665_s8 + $0xe8] sm:$0xff]  }
  0x2f   : > { %v2274_v3 = vld [vmem:[%s2665_s8 + $0x38] sm:$0xff]   ;;  %2101 = vmatprep.subr.bf16.mxu1 %v2273_v2  ;;  %v2278_v7 = vld [vmem:[%s2665_s8 + $0x30] sm:$0xff]   ;;  %v2282_v11 = vld [vmem:[%s2665_s8 + $0x28] sm:$0xff]  }
  0x30   : > { %v2275_v4 = vld [vmem:[%s2665_s8 + $0xb8] sm:$0xff]   ;;  %1990 = vmatpush3.bf16.msra.mxu0 %v2274_v3  ;;  %v2279_v8 = vld [vmem:[%s2665_s8 + $0xb0] sm:$0xff]   ;;  %v2283_v12 = vld [vmem:[%s2665_s8 + $0xa8] sm:$0xff]  }
  0x31   : > { %2102 = vmatpush3.bf16.msra.mxu1 %v2275_v4  ;;  %1991 = vmatprep.subr.bf16.mxu0 %v2276_v5  ;;  %v2284_v13 = vld [vmem:[%s2665_s8 + $0x60] sm:$0xff]   ;;  %v2288_v17 = vld [vmem:[%s2665_s8 + $0x58] sm:$0xff]   ;;  %v2292_v21 = vld [vmem:[%s2665_s8 + $0x50] sm:$0xff]  }
  0x32   : > { %2103 = vmatprep.subr.bf16.mxu1 %v2277_v6  ;;  %v2285_v14 = vld [vmem:[%s2665_s8 + $0xe0] sm:$0xff]   ;;  %v2289_v18 = vld [vmem:[%s2665_s8 + $0xd8] sm:$0xff]   ;;  %v2293_v22 = vld [vmem:[%s2665_s8 + $0xd0] sm:$0xff]  }
  0x33   : > { %v2286_v15 = vld [vmem:[%s2665_s8 + $0x20] sm:$0xff]   ;;  %v2290_v19 = vld [vmem:[%s2665_s8 + $0x18] sm:$0xff]   ;;  %v2294_v23 = vld [vmem:[%s2665_s8 + $0x10] sm:$0xff]  }
  0x34   : > { %1992 = vmatpush3.bf16.msra.mxu0 %v2278_v7  ;;  %v2287_v16 = vld [vmem:[%s2665_s8 + $0xa0] sm:$0xff]   ;;  %v2291_v20 = vld [vmem:[%s2665_s8 + $0x98] sm:$0xff]   ;;  %v2295_v24 = vld [vmem:[%s2665_s8 + $0x90] sm:$0xff]  }
  0x35   : > { %2104 = vmatpush3.bf16.msra.mxu1 %v2279_v8  ;;  %1993 = vmatprep.subr.bf16.mxu0 %v2280_v9  ;;  %v2296_v25 = vld [vmem:[%s2665_s8 + $0x48] sm:$0xff]   ;;  %v2300_v29 = vld [vmem:[%s2665_s8 + $0x40] sm:$0xff]  }
  0x36   : > { %2105 = vmatprep.subr.bf16.mxu1 %v2281_v10  ;;  %v2297_v26 = vld [vmem:[%s2665_s8 + $0xc8] sm:$0xff]   ;;  %v2301_v30 = vld [vmem:[%s2665_s8 + $0xc0] sm:$0xff]  }
  0x37   : > { %v2298_v27 = vld [vmem:[%s2665_s8 + $0x8] sm:$0xff]   ;;  %v2302_v31 = vld [vmem:[%s2665_s8] sm:$0xff]  }
  0x38   : > { %1994 = vmatpush3.bf16.msra.mxu0 %v2282_v11  ;;  %v2299_v28 = vld [vmem:[%s2665_s8 + $0x88] sm:$0xff]   ;;  %v2303_v32 = vld [vmem:[%s2665_s8 + $0x80] sm:$0xff]  }
  0x39   : > { %2106 = vmatpush3.bf16.msra.mxu1 %v2283_v12  ;;  %1995 = vmatprep.subr.bf16.mxu0 %v2284_v13  ;;  %v2304_v33 = vld [vmem:[%s2658_s29] ss:$16 sps:$4 sm:$0xff]   ;;  %v2306_v34 = vld [vmem:[%s2658_s29 + $0x4] ss:$16 sps:$4 sm:$0xff]   ;;  %v2307_v35 = vld [vmem:[%s2658_s29 + $0x8] ss:$16 sps:$4 sm:$0xff]  }
  0x3a   : > { %2107 = vmatprep.subr.bf16.mxu1 %v2285_v14  ;;  %v2309_v36 = vld [vmem:[%s2658_s29 + $0xc] ss:$16 sps:$4 sm:$0xff]   ;;  %982 = vmatprep.mubr.bf16.mxu0 %v2306_v34  ;;  %v2310_v37 = vld [vmem:[%s2658_s29 + $0x24] ss:$16 sps:$4 sm:$0xff]   ;;  %v2314_v39 = vld [vmem:[%s2658_s29 + $0x20] ss:$16 sps:$4 sm:$0xff]  }
  0x3b   : > { %1143 = vmatprep.mubr.bf16.mxu1 %v2309_v36  ;;  %v2312_v38 = vld [vmem:[%s2658_s29 + $0x2c] ss:$16 sps:$4 sm:$0xff]   ;;  %v2315_v40 = vld [vmem:[%s2658_s29 + $0x28] ss:$16 sps:$4 sm:$0xff]   ;;  %v2316_v41 = vld [vmem:[%s2658_s29 + $0x44] ss:$16 sps:$4 sm:$0xff]  }
  0x3c   : > { %1996 = vmatpush3.bf16.msra.mxu0 %v2286_v15  ;;  %v2318_v42 = vld [vmem:[%s2658_s29 + $0x4c] ss:$16 sps:$4 sm:$0xff]   ;;  %v2320_v43 = vld [vmem:[%s2658_s29 + $0x40] ss:$16 sps:$4 sm:$0xff]   ;;  %v2321_v44 = vld [vmem:[%s2658_s29 + $0x48] ss:$16 sps:$4 sm:$0xff]  }
  0x3d   : > { %2108 = vmatpush3.bf16.msra.mxu1 %v2287_v16  ;;  %1997 = vmatprep.subr.bf16.mxu0 %v2288_v17  ;;  %v2322_v45 = vld [vmem:[%s2658_s29 + $0x64] ss:$16 sps:$4 sm:$0xff]   ;;  %v2324_v46 = vld [vmem:[%s2658_s29 + $0x6c] ss:$16 sps:$4 sm:$0xff]   ;;  %v2326_v47 = vld [vmem:[%s2658_s29 + $0x60] ss:$16 sps:$4 sm:$0xff]  }
  0x3e   : > { %2109 = vmatprep.subr.bf16.mxu1 %v2289_v18  ;;  %v2327_v48 = vld [vmem:[%s2658_s29 + $0x68] ss:$16 sps:$4 sm:$0xff]   ;;  %v2328_v49 = vld [vmem:[%s2658_s29 + $0x84] ss:$16 sps:$4 sm:$0xff]   ;;  %v2330_v50 = vld [vmem:[%s2658_s29 + $0x8c] ss:$16 sps:$4 sm:$0xff]  }
  0x3f   : > { %v2332_v51 = vld [vmem:[%s2658_s29 + $0x80] ss:$16 sps:$4 sm:$0xff]   ;;  %v2333_v52 = vld [vmem:[%s2658_s29 + $0x88] ss:$16 sps:$4 sm:$0xff]   ;;  %v2334_v53 = vld [vmem:[%s2658_s29 + $0xa4] ss:$16 sps:$4 sm:$0xff]  }
  0x40   : > { %1998 = vmatpush3.bf16.msra.mxu0 %v2290_v19  ;;  %v2336_v54 = vld [vmem:[%s2658_s29 + $0xac] ss:$16 sps:$4 sm:$0xff]   ;;  %v2338_v55 = vld [vmem:[%s2658_s29 + $0xa0] ss:$16 sps:$4 sm:$0xff]   ;;  %v2339_v56 = vld [vmem:[%s2658_s29 + $0xa8] ss:$16 sps:$4 sm:$0xff]  }
  0x41   : > { %2110 = vmatpush3.bf16.msra.mxu1 %v2291_v20  ;;  %1999 = vmatprep.subr.bf16.mxu0 %v2292_v21  ;;  %v2340_v57 = vld [vmem:[%s2658_s29 + $0xc4] ss:$16 sps:$4 sm:$0xff]   ;;  %v2342_v58 = vld [vmem:[%s2658_s29 + $0xcc] ss:$16 sps:$4 sm:$0xff]   ;;  %v2344_v59 = vld [vmem:[%s2658_s29 + $0xc0] ss:$16 sps:$4 sm:$0xff]  }
  0x42   : > { %2111 = vmatprep.subr.bf16.mxu1 %v2293_v22  ;;  %v2345_v60 = vld [vmem:[%s2658_s29 + $0xc8] ss:$16 sps:$4 sm:$0xff]   ;;  %v2346_v61 = vld [vmem:[%s2658_s29 + $0xe4] ss:$16 sps:$4 sm:$0xff]   ;;  %v2348_v62 = vld [vmem:[%s2658_s29 + $0xec] ss:$16 sps:$4 sm:$0xff]  }
  0x43   : > { %v2350_v63 = vld [vmem:[%s2658_s29 + $0xe0] ss:$16 sps:$4 sm:$0xff]   ;;  %v2351_v0 = vld [vmem:[%s2658_s29 + $0xe8] ss:$16 sps:$4 sm:$0xff]   ;;  %v2352_v1 = vld [vmem:[%s2658_s29 + $0x104] ss:$16 sps:$4 sm:$0xff]  }
  0x44   : > { %2000 = vmatpush3.bf16.msra.mxu0 %v2294_v23  ;;  %v2354_v2 = vld [vmem:[%s2658_s29 + $0x10c] ss:$16 sps:$4 sm:$0xff]   ;;  %v2356_v3 = vld [vmem:[%s2658_s29 + $0x100] ss:$16 sps:$4 sm:$0xff]   ;;  %v2357_v4 = vld [vmem:[%s2658_s29 + $0x108] ss:$16 sps:$4 sm:$0xff]  }
  0x45   : > { %2112 = vmatpush3.bf16.msra.mxu1 %v2295_v24  ;;  %2001 = vmatprep.subr.bf16.mxu0 %v2296_v25  ;;  %v2358_v5 = vld [vmem:[%s2658_s29 + $0x124] ss:$16 sps:$4 sm:$0xff]   ;;  %v2360_v6 = vld [vmem:[%s2658_s29 + $0x12c] ss:$16 sps:$4 sm:$0xff]   ;;  %v2362_v7 = vld [vmem:[%s2658_s29 + $0x120] ss:$16 sps:$4 sm:$0xff]  }
  0x46   : > { %2113 = vmatprep.subr.bf16.mxu1 %v2297_v26  ;;  %v2363_v8 = vld [vmem:[%s2658_s29 + $0x128] ss:$16 sps:$4 sm:$0xff]   ;;  %v2364_v9 = vld [vmem:[%s2658_s29 + $0x144] ss:$16 sps:$4 sm:$0xff]   ;;  %v2366_v10 = vld [vmem:[%s2658_s29 + $0x14c] ss:$16 sps:$4 sm:$0xff]  }
  0x47   : > { %v2368_v11 = vld [vmem:[%s2658_s29 + $0x140] ss:$16 sps:$4 sm:$0xff]   ;;  %v2369_v12 = vld [vmem:[%s2658_s29 + $0x148] ss:$16 sps:$4 sm:$0xff]   ;;  %v2370_v13 = vld [vmem:[%s2658_s29 + $0x164] ss:$16 sps:$4 sm:$0xff]  }
  0x48   : > { %2002 = vmatpush3.bf16.msra.mxu0 %v2298_v27  ;;  %v2372_v14 = vld [vmem:[%s2658_s29 + $0x16c] ss:$16 sps:$4 sm:$0xff]   ;;  %v2374_v15 = vld [vmem:[%s2658_s29 + $0x160] ss:$16 sps:$4 sm:$0xff]   ;;  %v2375_v16 = vld [vmem:[%s2658_s29 + $0x168] ss:$16 sps:$4 sm:$0xff]  }
  0x49   : > { %2114 = vmatpush3.bf16.msra.mxu1 %v2299_v28  ;;  %2003 = vmatprep.subr.bf16.mxu0 %v2300_v29  ;;  %v2376_v17 = vld [vmem:[%s2658_s29 + $0x184] ss:$16 sps:$4 sm:$0xff]   ;;  %v2378_v18 = vld [vmem:[%s2658_s29 + $0x18c] ss:$16 sps:$4 sm:$0xff]   ;;  %v2380_v19 = vld [vmem:[%s2658_s29 + $0x180] ss:$16 sps:$4 sm:$0xff]  }
  0x4a   : > { %2115 = vmatprep.subr.bf16.mxu1 %v2301_v30  ;;  %v2381_v20 = vld [vmem:[%s2658_s29 + $0x188] ss:$16 sps:$4 sm:$0xff]   ;;  %v2382_v21 = vld [vmem:[%s2658_s29 + $0x1a4] ss:$16 sps:$4 sm:$0xff]   ;;  %v2384_v22 = vld [vmem:[%s2658_s29 + $0x1ac] ss:$16 sps:$4 sm:$0xff]  }
  0x4b   : > { %v2386_v23 = vld [vmem:[%s2658_s29 + $0x1a0] ss:$16 sps:$4 sm:$0xff]   ;;  %v2387_v24 = vld [vmem:[%s2658_s29 + $0x1a8] ss:$16 sps:$4 sm:$0xff]   ;;  %v2388_v25 = vld [vmem:[%s2658_s29 + $0x1c4] ss:$16 sps:$4 sm:$0xff]  }
  0x4c   : > { %2004 = vmatpush3.bf16.msra.mxu0 %v2302_v31  ;;  %v2390_v26 = vld [vmem:[%s2658_s29 + $0x1cc] ss:$16 sps:$4 sm:$0xff]   ;;  %v2392_v27 = vld [vmem:[%s2658_s29 + $0x1c0] ss:$16 sps:$4 sm:$0xff]   ;;  %v2393_v28 = vld [vmem:[%s2658_s29 + $0x1c8] ss:$16 sps:$4 sm:$0xff]  }
  0x4d   : > { %2116 = vmatpush3.bf16.msra.mxu1 %v2303_v32  ;;  %v2394_v29 = vld [vmem:[%s2658_s29 + $0x1e4] ss:$16 sps:$4 sm:$0xff]   ;;  %v2396_v30 = vld [vmem:[%s2658_s29 + $0x1ec] ss:$16 sps:$4 sm:$0xff]   ;;  %v2398_v31 = vld [vmem:[%s2658_s29 + $0x1e0] ss:$16 sps:$4 sm:$0xff]  }
  0x4e   : > { %v2399_v32 = vld [vmem:[%s2658_s29 + $0x1e8] ss:$16 sps:$4 sm:$0xff]  }
  0x4f   : > { %983 = vmatmul.mubr.bf16.vlgmr.msra.gmra.mxu0 %v2304_v33 }
  0x50   : > { %1144 = vmatmul.mubr.bf16.vlgmr.msra.gmra.mxu1 %v2307_v35  ;;  %990 = vmatprep.mubr.bf16.mxu0 %v2310_v37 }
  0x51   : > { %1151 = vmatprep.mubr.bf16.mxu1 %v2312_v38 }
  0x57   : > { %991 = vmatmul.mubr.bf16.gmra.mxu0 %v2314_v39 }
  0x58   : > { %1152 = vmatmul.mubr.bf16.gmra.mxu1 %v2315_v40  ;;  %998 = vmatprep.mubr.bf16.mxu0 %v2316_v41  ;;  %v278_v40 = vld [vmem:[%s2670_s24] sm:$0xff] }
  0x59   : > { %1159 = vmatprep.mubr.bf16.mxu1 %v2318_v42 }
  0x5f   : > { %999 = vmatmul.mubr.bf16.gmra.mxu0 %v2320_v43 }
  0x60   : > { %1160 = vmatmul.mubr.bf16.gmra.mxu1 %v2321_v44  ;;  %1006 = vmatprep.mubr.bf16.mxu0 %v2322_v45 }
  0x61   : > { %1167 = vmatprep.mubr.bf16.mxu1 %v2324_v46 }
  0x67   : > { %1007 = vmatmul.mubr.bf16.gmra.mxu0 %v2326_v47 }
  0x68   : > { %1168 = vmatmul.mubr.bf16.gmra.mxu1 %v2327_v48  ;;  %1014 = vmatprep.mubr.bf16.mxu0 %v2328_v49  ;;  %v279_v49 = vld [vmem:[%s2670_s24 + $0x8] sm:$0xff] }
  0x69   : > { %1175 = vmatprep.mubr.bf16.mxu1 %v2330_v50 }
  0x6f   : > { %1015 = vmatmul.mubr.bf16.gmra.mxu0 %v2332_v51 }
  0x70   : > { %1176 = vmatmul.mubr.bf16.gmra.mxu1 %v2333_v52  ;;  %1022 = vmatprep.mubr.bf16.mxu0 %v2334_v53 }
  0x71   : > { %1183 = vmatprep.mubr.bf16.mxu1 %v2336_v54 }
  0x77   : > { %1023 = vmatmul.mubr.bf16.gmra.mxu0 %v2338_v55 }
  0x78   : > { %1184 = vmatmul.mubr.bf16.gmra.mxu1 %v2339_v56  ;;  %1030 = vmatprep.mubr.bf16.mxu0 %v2340_v57 }
  0x79   : > { %1191 = vmatprep.mubr.bf16.mxu1 %v2342_v58  ;;  %v280_v58 = vld [vmem:[%s2670_s24 + $0x10] sm:$0xff] }
  0x7f   : > { %1031 = vmatmul.mubr.bf16.gmra.mxu0 %v2344_v59 }
  0x80   : > { %1192 = vmatmul.mubr.bf16.gmra.mxu1 %v2345_v60  ;;  %1038 = vmatprep.mubr.bf16.mxu0 %v2346_v61 }
  0x81   : > { %1199 = vmatprep.mubr.bf16.mxu1 %v2348_v62 }
  0x87   : > { %1039 = vmatmul.mubr.bf16.gmra.mxu0 %v2350_v63 }
  0x88   : > { %1200 = vmatmul.mubr.bf16.gmra.mxu1 %v2351_v0  ;;  %1046 = vmatprep.mubr.bf16.mxu0 %v2352_v1 }
  0x89   : > { %1207 = vmatprep.mubr.bf16.mxu1 %v2354_v2 }
  0x8f   : > { %1047 = vmatmul.mubr.bf16.gmra.mxu0 %v2356_v3  ;;  %v281_v3 = vld [vmem:[%s2670_s24 + $0x18] sm:$0xff] }
  0x90   : > { %1208 = vmatmul.mubr.bf16.gmra.mxu1 %v2357_v4  ;;  %1054 = vmatprep.mubr.bf16.mxu0 %v2358_v5 }
  0x91   : > { %1215 = vmatprep.mubr.bf16.mxu1 %v2360_v6 }
  0x97   : > { %1055 = vmatmul.mubr.bf16.gmra.mxu0 %v2362_v7 }
  0x98   : > { %1216 = vmatmul.mubr.bf16.gmra.mxu1 %v2363_v8  ;;  %1062 = vmatprep.mubr.bf16.mxu0 %v2364_v9 }
  0x99   : > { %1223 = vmatprep.mubr.bf16.mxu1 %v2366_v10 }
  0x9f   : > { %1063 = vmatmul.mubr.bf16.gmra.mxu0 %v2368_v11 }
  0xa0   : > { %1224 = vmatmul.mubr.bf16.gmra.mxu1 %v2369_v12  ;;  %1070 = vmatprep.mubr.bf16.mxu0 %v2370_v13  ;;  %v282_v12 = vld [vmem:[%s2670_s24 + $0x20] sm:$0xff] }
  0xa1   : > { %1231 = vmatprep.mubr.bf16.mxu1 %v2372_v14 }
  0xa7   : > { %1071 = vmatmul.mubr.bf16.gmra.mxu0 %v2374_v15 }
  0xa8   : > { %1232 = vmatmul.mubr.bf16.gmra.mxu1 %v2375_v16  ;;  %1078 = vmatprep.mubr.bf16.mxu0 %v2376_v17 }
  0xa9   : > { %1239 = vmatprep.mubr.bf16.mxu1 %v2378_v18 }
  0xaf   : > { %1079 = vmatmul.mubr.bf16.gmra.mxu0 %v2380_v19 }
  0xb0   : > { %1240 = vmatmul.mubr.bf16.gmra.mxu1 %v2381_v20  ;;  %1086 = vmatprep.mubr.bf16.mxu0 %v2382_v21  ;;  %v283_v21 = vld [vmem:[%s2670_s24 + $0x28] sm:$0xff] }
  0xb1   : > { %1247 = vmatprep.mubr.bf16.mxu1 %v2384_v22 }
  0xb7   : > { %1087 = vmatmul.mubr.bf16.gmra.mxu0 %v2386_v23 }
  0xb8   : > { %1248 = vmatmul.mubr.bf16.gmra.mxu1 %v2387_v24  ;;  %1094 = vmatprep.mubr.bf16.mxu0 %v2388_v25 }
  0xb9   : > { %1255 = vmatprep.mubr.bf16.mxu1 %v2390_v26 }
  0xbf   : > { %1095 = vmatmul.mubr.bf16.gmra.mxu0 %v2392_v27 }
  0xc0   : > { %1256 = vmatmul.mubr.bf16.gmra.mxu1 %v2393_v28  ;;  %1102 = vmatprep.mubr.bf16.mxu0 %v2394_v29 }
  0xc1   : > { %1263 = vmatprep.mubr.bf16.mxu1 %v2396_v30  ;;  %v284_v30 = vld [vmem:[%s2670_s24 + $0x30] sm:$0xff] }
  0xc7   : > { %1103 = vmatmul.mubr.bf16.gmra.mxu0 %v2398_v31 }
  0xc8   : > { %1264 = vmatmul.mubr.bf16.gmra.mxu1 %v2399_v32 }
 0x10f   : > { %v2005_v33 = vpop.f32.mrf.mxu0 }
 0x110   : > { %v2117_v34 = vpop.f32.mrf.mxu1 }
 0x111   : > { %v2006_v35 = vpop.f32.mrf.mxu0 }
 0x112   : > { %v2007_v36 = vadd.f32 %v2006_v35, %v2005_v33  ;;  %v2118_v37 = vpop.f32.mrf.mxu1 }
 0x113   : > { %v2119_v38 = vadd.f32 %v2118_v37, %v2117_v34  ;;  %v2008_v39 = vpop.f32.mrf.mxu0 }
 0x114   : > { %v2120_v41 = vpop.f32.mrf.mxu1 }
 0x115   : > { %v1146_v42 = vadd.f32 %v2119_v38, %v2007_v36  ;;  %v2009_v43 = vpop.f32.mrf.mxu0 }
 0x116   : > { %v2010_v44 = vadd.f32 %v2009_v43, %v2008_v39  ;;  %v2121_v45 = vpop.f32.mrf.mxu1  ;;  %v285_v39 = vld [vmem:[%s2670_s24 + $0x38] sm:$0xff] }
 0x117   : > { %v1272_v46 = vadd.f32 %v1146_v42, %v278_v40  ;;  %v2122_v47 = vadd.f32 %v2121_v45, %v2120_v41  ;;  %v2011_v48 = vpop.f32.mrf.mxu0 }
 0x118   : > { %v2123_v50 = vpop.f32.mrf.mxu1 }
 0x119   : > { %1304 = vst [vmem:[%s2670_s24] sm:$0xff] %v1272_v46  ;;  %v1149_v51 = vadd.f32 %v2122_v47, %v2010_v44  ;;  %v2012_v52 = vpop.f32.mrf.mxu0 }
 0x11a   : > { %v2013_v53 = vadd.f32 %v2012_v52, %v2011_v48  ;;  %v2124_v54 = vpop.f32.mrf.mxu1  ;;  %v286_v48 = vld [vmem:[%s2670_s24 + $0x40] sm:$0xff] }
 0x11b   : > { %v1273_v55 = vadd.f32 %v1149_v51, %v279_v49  ;;  %v2125_v56 = vadd.f32 %v2124_v54, %v2123_v50  ;;  %v2014_v57 = vpop.f32.mrf.mxu0 }
 0x11c   : > { %v2126_v59 = vpop.f32.mrf.mxu1 }
 0x11d   : > { %1305 = vst [vmem:[%s2670_s24 + $0x8] sm:$0xff] %v1273_v55  ;;  %v1154_v60 = vadd.f32 %v2125_v56, %v2013_v53  ;;  %v2015_v61 = vpop.f32.mrf.mxu0 }
 0x11e   : > { %v2016_v62 = vadd.f32 %v2015_v61, %v2014_v57  ;;  %v2127_v63 = vpop.f32.mrf.mxu1  ;;  %v287_v57 = vld [vmem:[%s2670_s24 + $0x48] sm:$0xff] }
 0x11f   : > { %v1274_v0 = vadd.f32 %v1154_v60, %v280_v58  ;;  %v2128_v1 = vadd.f32 %v2127_v63, %v2126_v59  ;;  %v2017_v2 = vpop.f32.mrf.mxu0 }
 0x120   : > { %v2129_v4 = vpop.f32.mrf.mxu1 }
 0x121   : > { %1306 = vst [vmem:[%s2670_s24 + $0x10] sm:$0xff] %v1274_v0  ;;  %v1157_v5 = vadd.f32 %v2128_v1, %v2016_v62  ;;  %v2018_v6 = vpop.f32.mrf.mxu0 }
 0x122   : > { %v2019_v7 = vadd.f32 %v2018_v6, %v2017_v2  ;;  %v2130_v8 = vpop.f32.mrf.mxu1  ;;  %v288_v2 = vld [vmem:[%s2670_s24 + $0x50] sm:$0xff] }
 0x123   : > { %v1275_v9 = vadd.f32 %v1157_v5, %v281_v3  ;;  %v2131_v10 = vadd.f32 %v2130_v8, %v2129_v4  ;;  %v2020_v11 = vpop.f32.mrf.mxu0 }
 0x124   : > { %v2132_v13 = vpop.f32.mrf.mxu1 }
 0x125   : > { %1307 = vst [vmem:[%s2670_s24 + $0x18] sm:$0xff] %v1275_v9  ;;  %v1162_v14 = vadd.f32 %v2131_v10, %v2019_v7  ;;  %v2021_v15 = vpop.f32.mrf.mxu0 }
 0x126   : > { %v2022_v16 = vadd.f32 %v2021_v15, %v2020_v11  ;;  %v2133_v17 = vpop.f32.mrf.mxu1  ;;  %v289_v11 = vld [vmem:[%s2670_s24 + $0x58] sm:$0xff] }
 0x127   : > { %v1276_v18 = vadd.f32 %v1162_v14, %v282_v12  ;;  %v2134_v19 = vadd.f32 %v2133_v17, %v2132_v13  ;;  %v2023_v20 = vpop.f32.mrf.mxu0 }
 0x128   : > { %v2135_v22 = vpop.f32.mrf.mxu1 }
 0x129   : > { %1308 = vst [vmem:[%s2670_s24 + $0x20] sm:$0xff] %v1276_v18  ;;  %v1165_v23 = vadd.f32 %v2134_v19, %v2022_v16  ;;  %v2024_v24 = vpop.f32.mrf.mxu0 }
 0x12a   : > { %v2025_v25 = vadd.f32 %v2024_v24, %v2023_v20  ;;  %v2136_v26 = vpop.f32.mrf.mxu1  ;;  %v290_v20 = vld [vmem:[%s2670_s24 + $0x60] sm:$0xff] }
 0x12b   : > { %v1277_v27 = vadd.f32 %v1165_v23, %v283_v21  ;;  %v2137_v28 = vadd.f32 %v2136_v26, %v2135_v22  ;;  %v2026_v29 = vpop.f32.mrf.mxu0 }
 0x12c   : > { %v2138_v31 = vpop.f32.mrf.mxu1 }
 0x12d   : > { %1309 = vst [vmem:[%s2670_s24 + $0x28] sm:$0xff] %v1277_v27  ;;  %v1170_v32 = vadd.f32 %v2137_v28, %v2025_v25  ;;  %v2027_v33 = vpop.f32.mrf.mxu0 }
 0x12e   : > { %v2028_v34 = vadd.f32 %v2027_v33, %v2026_v29  ;;  %v2139_v35 = vpop.f32.mrf.mxu1  ;;  %v291_v29 = vld [vmem:[%s2670_s24 + $0x68] sm:$0xff] }
 0x12f   : > { %v1278_v36 = vadd.f32 %v1170_v32, %v284_v30  ;;  %v2140_v37 = vadd.f32 %v2139_v35, %v2138_v31  ;;  %v2029_v38 = vpop.f32.mrf.mxu0 }
 0x130   : > { %v2141_v40 = vpop.f32.mrf.mxu1 }
 0x131   : > { %1310 = vst [vmem:[%s2670_s24 + $0x30] sm:$0xff] %v1278_v36  ;;  %v1173_v41 = vadd.f32 %v2140_v37, %v2028_v34  ;;  %v2030_v42 = vpop.f32.mrf.mxu0 }
 0x132   : > { %v2031_v43 = vadd.f32 %v2030_v42, %v2029_v38  ;;  %v2142_v44 = vpop.f32.mrf.mxu1  ;;  %v292_v38 = vld [vmem:[%s2670_s24 + $0x70] sm:$0xff] }
 0x133   : > { %v1279_v45 = vadd.f32 %v1173_v41, %v285_v39  ;;  %v2143_v46 = vadd.f32 %v2142_v44, %v2141_v40  ;;  %v2032_v47 = vpop.f32.mrf.mxu0 }
 0x134   : > { %v2144_v49 = vpop.f32.mrf.mxu1 }
 0x135   : > { %1311 = vst [vmem:[%s2670_s24 + $0x38] sm:$0xff] %v1279_v45  ;;  %v1178_v50 = vadd.f32 %v2143_v46, %v2031_v43  ;;  %v2033_v51 = vpop.f32.mrf.mxu0 }
 0x136   : > { %v2034_v52 = vadd.f32 %v2033_v51, %v2032_v47  ;;  %v2145_v53 = vpop.f32.mrf.mxu1  ;;  %v293_v47 = vld [vmem:[%s2670_s24 + $0x78] sm:$0xff] }
 0x137   : > { %v1280_v54 = vadd.f32 %v1178_v50, %v286_v48  ;;  %v2146_v55 = vadd.f32 %v2145_v53, %v2144_v49  ;;  %v2035_v56 = vpop.f32.mrf.mxu0 }
 0x138   : > { %v2147_v58 = vpop.f32.mrf.mxu1 }
 0x139   : > { %1312 = vst [vmem:[%s2670_s24 + $0x40] sm:$0xff] %v1280_v54  ;;  %v1181_v59 = vadd.f32 %v2146_v55, %v2034_v52  ;;  %v2036_v60 = vpop.f32.mrf.mxu0 }
 0x13a   : > { %v2037_v61 = vadd.f32 %v2036_v60, %v2035_v56  ;;  %v2148_v62 = vpop.f32.mrf.mxu1  ;;  %v294_v56 = vld [vmem:[%s2670_s24 + $0x80] sm:$0xff] }
 0x13b   : > { %v1281_v63 = vadd.f32 %v1181_v59, %v287_v57  ;;  %v2149_v0 = vadd.f32 %v2148_v62, %v2147_v58  ;;  %v2038_v1 = vpop.f32.mrf.mxu0 }
 0x13c   : > { %v2150_v3 = vpop.f32.mrf.mxu1 }
 0x13d   : > { %1313 = vst [vmem:[%s2670_s24 + $0x48] sm:$0xff] %v1281_v63  ;;  %v1186_v4 = vadd.f32 %v2149_v0, %v2037_v61  ;;  %v2039_v5 = vpop.f32.mrf.mxu0 }
 0x13e   : > { %v2040_v6 = vadd.f32 %v2039_v5, %v2038_v1  ;;  %v2151_v7 = vpop.f32.mrf.mxu1  ;;  %v295_v1 = vld [vmem:[%s2670_s24 + $0x88] sm:$0xff] }
 0x13f   : > { %v1282_v8 = vadd.f32 %v1186_v4, %v288_v2  ;;  %v2152_v9 = vadd.f32 %v2151_v7, %v2150_v3  ;;  %v2041_v10 = vpop.f32.mrf.mxu0 }
 0x140   : > { %v2153_v12 = vpop.f32.mrf.mxu1 }
 0x141   : > { %1314 = vst [vmem:[%s2670_s24 + $0x50] sm:$0xff] %v1282_v8  ;;  %v1189_v13 = vadd.f32 %v2152_v9, %v2040_v6  ;;  %v2042_v14 = vpop.f32.mrf.mxu0 }
 0x142   : > { %v2043_v15 = vadd.f32 %v2042_v14, %v2041_v10  ;;  %v2154_v16 = vpop.f32.mrf.mxu1  ;;  %v296_v10 = vld [vmem:[%s2670_s24 + $0x90] sm:$0xff] }
 0x143   : > { %v1283_v17 = vadd.f32 %v1189_v13, %v289_v11  ;;  %v2155_v18 = vadd.f32 %v2154_v16, %v2153_v12  ;;  %v2044_v19 = vpop.f32.mrf.mxu0 }
 0x144   : > { %v2156_v21 = vpop.f32.mrf.mxu1 }
 0x145   : > { %1315 = vst [vmem:[%s2670_s24 + $0x58] sm:$0xff] %v1283_v17  ;;  %v1194_v22 = vadd.f32 %v2155_v18, %v2043_v15  ;;  %v2045_v23 = vpop.f32.mrf.mxu0 }
 0x146   : > { %v2046_v24 = vadd.f32 %v2045_v23, %v2044_v19  ;;  %v2157_v25 = vpop.f32.mrf.mxu1  ;;  %v297_v19 = vld [vmem:[%s2670_s24 + $0x98] sm:$0xff] }
 0x147   : > { %v1284_v26 = vadd.f32 %v1194_v22, %v290_v20  ;;  %v2158_v27 = vadd.f32 %v2157_v25, %v2156_v21  ;;  %v2047_v28 = vpop.f32.mrf.mxu0 }
 0x148   : > { %v2159_v30 = vpop.f32.mrf.mxu1 }
 0x149   : > { %1316 = vst [vmem:[%s2670_s24 + $0x60] sm:$0xff] %v1284_v26  ;;  %v1197_v31 = vadd.f32 %v2158_v27, %v2046_v24  ;;  %v2048_v32 = vpop.f32.mrf.mxu0 }
 0x14a   : > { %v2049_v33 = vadd.f32 %v2048_v32, %v2047_v28  ;;  %v2160_v34 = vpop.f32.mrf.mxu1  ;;  %v298_v28 = vld [vmem:[%s2670_s24 + $0xa0] sm:$0xff] }
 0x14b   : > { %v1285_v35 = vadd.f32 %v1197_v31, %v291_v29  ;;  %v2161_v36 = vadd.f32 %v2160_v34, %v2159_v30  ;;  %v2050_v37 = vpop.f32.mrf.mxu0 }
 0x14c   : > { %v2162_v39 = vpop.f32.mrf.mxu1 }
 0x14d   : > { %1317 = vst [vmem:[%s2670_s24 + $0x68] sm:$0xff] %v1285_v35  ;;  %v1202_v40 = vadd.f32 %v2161_v36, %v2049_v33  ;;  %v2051_v41 = vpop.f32.mrf.mxu0 }
 0x14e   : > { %v2052_v42 = vadd.f32 %v2051_v41, %v2050_v37  ;;  %v2163_v43 = vpop.f32.mrf.mxu1  ;;  %v299_v37 = vld [vmem:[%s2670_s24 + $0xa8] sm:$0xff] }
 0x14f   : > { %v1286_v44 = vadd.f32 %v1202_v40, %v292_v38  ;;  %v2164_v45 = vadd.f32 %v2163_v43, %v2162_v39  ;;  %v2053_v46 = vpop.f32.mrf.mxu0 }
 0x150   : > { %v2165_v48 = vpop.f32.mrf.mxu1 }
 0x151   : > { %1318 = vst [vmem:[%s2670_s24 + $0x70] sm:$0xff] %v1286_v44  ;;  %v1205_v49 = vadd.f32 %v2164_v45, %v2052_v42  ;;  %v2054_v50 = vpop.f32.mrf.mxu0 }
 0x152   : > { %v2055_v51 = vadd.f32 %v2054_v50, %v2053_v46  ;;  %v2166_v52 = vpop.f32.mrf.mxu1  ;;  %v300_v46 = vld [vmem:[%s2670_s24 + $0xb0] sm:$0xff] }
 0x153   : > { %v1287_v53 = vadd.f32 %v1205_v49, %v293_v47  ;;  %v2167_v54 = vadd.f32 %v2166_v52, %v2165_v48  ;;  %v2056_v55 = vpop.f32.mrf.mxu0 }
 0x154   : > { %v2168_v57 = vpop.f32.mrf.mxu1 }
 0x155   : > { %1319 = vst [vmem:[%s2670_s24 + $0x78] sm:$0xff] %v1287_v53  ;;  %v1210_v58 = vadd.f32 %v2167_v54, %v2055_v51  ;;  %v2057_v59 = vpop.f32.mrf.mxu0 }
 0x156   : > { %v2058_v60 = vadd.f32 %v2057_v59, %v2056_v55  ;;  %v2169_v61 = vpop.f32.mrf.mxu1  ;;  %v301_v55 = vld [vmem:[%s2670_s24 + $0xb8] sm:$0xff] }
 0x157   : > { %v1288_v62 = vadd.f32 %v1210_v58, %v294_v56  ;;  %v2170_v63 = vadd.f32 %v2169_v61, %v2168_v57  ;;  %v2059_v0 = vpop.f32.mrf.mxu0 }
 0x158   : > { %v2171_v2 = vpop.f32.mrf.mxu1 }
 0x159   : > { %1320 = vst [vmem:[%s2670_s24 + $0x80] sm:$0xff] %v1288_v62  ;;  %v1213_v3 = vadd.f32 %v2170_v63, %v2058_v60  ;;  %v2060_v4 = vpop.f32.mrf.mxu0 }
 0x15a   : > { %v2061_v5 = vadd.f32 %v2060_v4, %v2059_v0  ;;  %v2172_v6 = vpop.f32.mrf.mxu1  ;;  %v302_v0 = vld [vmem:[%s2670_s24 + $0xc0] sm:$0xff] }
 0x15b   : > { %v1289_v7 = vadd.f32 %v1213_v3, %v295_v1  ;;  %v2173_v8 = vadd.f32 %v2172_v6, %v2171_v2  ;;  %v2062_v9 = vpop.f32.mrf.mxu0 }
 0x15c   : > { %v2174_v11 = vpop.f32.mrf.mxu1 }
 0x15d   : > { %1321 = vst [vmem:[%s2670_s24 + $0x88] sm:$0xff] %v1289_v7  ;;  %v1218_v12 = vadd.f32 %v2173_v8, %v2061_v5  ;;  %v2063_v13 = vpop.f32.mrf.mxu0 }
 0x15e   : > { %v2064_v14 = vadd.f32 %v2063_v13, %v2062_v9  ;;  %v2175_v15 = vpop.f32.mrf.mxu1  ;;  %v303_v9 = vld [vmem:[%s2670_s24 + $0xc8] sm:$0xff] }
 0x15f   : > { %v1290_v16 = vadd.f32 %v1218_v12, %v296_v10  ;;  %v2176_v17 = vadd.f32 %v2175_v15, %v2174_v11  ;;  %v2065_v18 = vpop.f32.mrf.mxu0 }
 0x160   : > { %v2177_v20 = vpop.f32.mrf.mxu1 }
 0x161   : > { %1322 = vst [vmem:[%s2670_s24 + $0x90] sm:$0xff] %v1290_v16  ;;  %v1221_v21 = vadd.f32 %v2176_v17, %v2064_v14  ;;  %v2066_v22 = vpop.f32.mrf.mxu0 }
 0x162   : > { %v2067_v23 = vadd.f32 %v2066_v22, %v2065_v18  ;;  %v2178_v24 = vpop.f32.mrf.mxu1  ;;  %v304_v18 = vld [vmem:[%s2670_s24 + $0xd0] sm:$0xff] }
 0x163   : > { %v1291_v25 = vadd.f32 %v1221_v21, %v297_v19  ;;  %v2179_v26 = vadd.f32 %v2178_v24, %v2177_v20  ;;  %v2068_v27 = vpop.f32.mrf.mxu0 }
 0x164   : > { %v2180_v29 = vpop.f32.mrf.mxu1 }
 0x165   : > { %1323 = vst [vmem:[%s2670_s24 + $0x98] sm:$0xff] %v1291_v25  ;;  %v1226_v30 = vadd.f32 %v2179_v26, %v2067_v23  ;;  %v2069_v31 = vpop.f32.mrf.mxu0 }
 0x166   : > { %v2070_v32 = vadd.f32 %v2069_v31, %v2068_v27  ;;  %v2181_v33 = vpop.f32.mrf.mxu1  ;;  %v305_v27 = vld [vmem:[%s2670_s24 + $0xd8] sm:$0xff] }
 0x167   : > { %v1292_v34 = vadd.f32 %v1226_v30, %v298_v28  ;;  %v2182_v35 = vadd.f32 %v2181_v33, %v2180_v29  ;;  %v2071_v36 = vpop.f32.mrf.mxu0 }
 0x168   : > { %v2183_v38 = vpop.f32.mrf.mxu1 }
 0x169   : > { %1324 = vst [vmem:[%s2670_s24 + $0xa0] sm:$0xff] %v1292_v34  ;;  %v1229_v39 = vadd.f32 %v2182_v35, %v2070_v32  ;;  %v2072_v40 = vpop.f32.mrf.mxu0 }
 0x16a   : > { %v2073_v41 = vadd.f32 %v2072_v40, %v2071_v36  ;;  %v2184_v42 = vpop.f32.mrf.mxu1  ;;  %v306_v36 = vld [vmem:[%s2670_s24 + $0xe0] sm:$0xff] }
 0x16b   : > { %v1293_v43 = vadd.f32 %v1229_v39, %v299_v37  ;;  %v2185_v44 = vadd.f32 %v2184_v42, %v2183_v38  ;;  %v2074_v45 = vpop.f32.mrf.mxu0 }
 0x16c   : > { %v2186_v47 = vpop.f32.mrf.mxu1 }
 0x16d   : > { %1325 = vst [vmem:[%s2670_s24 + $0xa8] sm:$0xff] %v1293_v43  ;;  %v1234_v48 = vadd.f32 %v2185_v44, %v2073_v41  ;;  %v2075_v49 = vpop.f32.mrf.mxu0 }
 0x16e   : > { %v2076_v50 = vadd.f32 %v2075_v49, %v2074_v45  ;;  %v2187_v51 = vpop.f32.mrf.mxu1  ;;  %v307_v45 = vld [vmem:[%s2670_s24 + $0xe8] sm:$0xff] }
 0x16f   : > { %v1294_v52 = vadd.f32 %v1234_v48, %v300_v46  ;;  %v2188_v53 = vadd.f32 %v2187_v51, %v2186_v47  ;;  %v2077_v54 = vpop.f32.mrf.mxu0 }
 0x170   : > { %v2189_v56 = vpop.f32.mrf.mxu1 }
 0x171   : > { %1326 = vst [vmem:[%s2670_s24 + $0xb0] sm:$0xff] %v1294_v52  ;;  %v1237_v57 = vadd.f32 %v2188_v53, %v2076_v50  ;;  %v2078_v58 = vpop.f32.mrf.mxu0 }
 0x172   : > { %v2079_v59 = vadd.f32 %v2078_v58, %v2077_v54  ;;  %v2190_v60 = vpop.f32.mrf.mxu1  ;;  %v308_v54 = vld [vmem:[%s2670_s24 + $0xf0] sm:$0xff] }
 0x173   : > { %v1295_v61 = vadd.f32 %v1237_v57, %v301_v55  ;;  %v2191_v62 = vadd.f32 %v2190_v60, %v2189_v56  ;;  %v2080_v63 = vpop.f32.mrf.mxu0 }
 0x174   : > { %v2192_v1 = vpop.f32.mrf.mxu1 }
 0x175   : > { %1327 = vst [vmem:[%s2670_s24 + $0xb8] sm:$0xff] %v1295_v61  ;;  %v1242_v2 = vadd.f32 %v2191_v62, %v2079_v59  ;;  %v2081_v3 = vpop.f32.mrf.mxu0  ;;  %v309_v62 = vld [vmem:[%s2670_s24 + $0xf8] sm:$0xff] }
 0x176   : > { %v2082_v4 = vadd.f32 %v2081_v3, %v2080_v63  ;;  %v2193_v5 = vpop.f32.mrf.mxu1 }
 0x177   : > { %v1296_v6 = vadd.f32 %v1242_v2, %v302_v0  ;;  %v2194_v7 = vadd.f32 %v2193_v5, %v2192_v1  ;;  %v2083_v8 = vpop.f32.mrf.mxu0 }
 0x178   : > { %v2195_v10 = vpop.f32.mrf.mxu1 }
 0x179   : > { %1328 = vst [vmem:[%s2670_s24 + $0xc0] sm:$0xff] %v1296_v6  ;;  %v1245_v11 = vadd.f32 %v2194_v7, %v2082_v4  ;;  %v2084_v12 = vpop.f32.mrf.mxu0 }
 0x17a   : > { %v2085_v13 = vadd.f32 %v2084_v12, %v2083_v8  ;;  %v2196_v14 = vpop.f32.mrf.mxu1 }
 0x17b   : > { %v1297_v15 = vadd.f32 %v1245_v11, %v303_v9  ;;  %v2197_v16 = vadd.f32 %v2196_v14, %v2195_v10  ;;  %v2086_v17 = vpop.f32.mrf.mxu0 }
 0x17c   : > { %v2198_v19 = vpop.f32.mrf.mxu1 }
 0x17d   : > { %1329 = vst [vmem:[%s2670_s24 + $0xc8] sm:$0xff] %v1297_v15  ;;  %v1250_v20 = vadd.f32 %v2197_v16, %v2085_v13  ;;  %v2087_v21 = vpop.f32.mrf.mxu0 }
 0x17e   : > { %v2088_v22 = vadd.f32 %v2087_v21, %v2086_v17  ;;  %v2199_v23 = vpop.f32.mrf.mxu1 }
 0x17f   : > { %v1298_v24 = vadd.f32 %v1250_v20, %v304_v18  ;;  %v2200_v25 = vadd.f32 %v2199_v23, %v2198_v19  ;;  %v2089_v26 = vpop.f32.mrf.mxu0 }
 0x180   : > { %v2201_v28 = vpop.f32.mrf.mxu1 }
 0x181   : > { %1330 = vst [vmem:[%s2670_s24 + $0xd0] sm:$0xff] %v1298_v24  ;;  %v1253_v29 = vadd.f32 %v2200_v25, %v2088_v22  ;;  %v2090_v30 = vpop.f32.mrf.mxu0 }
 0x182   : > { %v2091_v31 = vadd.f32 %v2090_v30, %v2089_v26  ;;  %v2202_v32 = vpop.f32.mrf.mxu1 }
 0x183   : > { %v1299_v33 = vadd.f32 %v1253_v29, %v305_v27  ;;  %v2203_v34 = vadd.f32 %v2202_v32, %v2201_v28  ;;  %v2092_v35 = vpop.f32.mrf.mxu0 }
 0x184   : > { %v2204_v37 = vpop.f32.mrf.mxu1 }
 0x185   : > { %1331 = vst [vmem:[%s2670_s24 + $0xd8] sm:$0xff] %v1299_v33  ;;  %v1258_v38 = vadd.f32 %v2203_v34, %v2091_v31  ;;  %v2093_v39 = vpop.f32.mrf.mxu0 }
 0x186   : > { %v2094_v40 = vadd.f32 %v2093_v39, %v2092_v35  ;;  %v2205_v41 = vpop.f32.mrf.mxu1 }
 0x187   : > { %v1300_v42 = vadd.f32 %v1258_v38, %v306_v36  ;;  %v2206_v43 = vadd.f32 %v2205_v41, %v2204_v37  ;;  %v2095_v44 = vpop.f32.mrf.mxu0 }
 0x188   : > { %v2207_v46 = vpop.f32.mrf.mxu1 }
 0x189   : > { %1332 = vst [vmem:[%s2670_s24 + $0xe0] sm:$0xff] %v1300_v42  ;;  %v1261_v47 = vadd.f32 %v2206_v43, %v2094_v40  ;;  %v2096_v48 = vpop.f32.mrf.mxu0 }
 0x18a   : > { %v2097_v49 = vadd.f32 %v2096_v48, %v2095_v44  ;;  %v2208_v50 = vpop.f32.mrf.mxu1 }
 0x18b   : > { %v1301_v51 = vadd.f32 %v1261_v47, %v307_v45  ;;  %v2209_v52 = vadd.f32 %v2208_v50, %v2207_v46  ;;  %v2098_v53 = vpop.f32.mrf.mxu0 }
 0x18c   : > { %v2210_v55 = vpop.f32.mrf.mxu1 }
 0x18d   : > { %1333 = vst [vmem:[%s2670_s24 + $0xe8] sm:$0xff] %v1301_v51  ;;  %v1266_v56 = vadd.f32 %v2209_v52, %v2097_v49  ;;  %v2099_v57 = vpop.f32.mrf.mxu0 }
 0x18e   : > { %v2100_v58 = vadd.f32 %v2099_v57, %v2098_v53  ;;  %v2211_v59 = vpop.f32.mrf.mxu1 }
 0x18f   : > { %v1302_v60 = vadd.f32 %v1266_v56, %v308_v54  ;;  %v2212_v61 = vadd.f32 %v2211_v59, %v2210_v55 }
 0x191   : > { %1334 = vst [vmem:[%s2670_s24 + $0xf0] sm:$0xff] %v1302_v60  ;;  %v1269_v63 = vadd.f32 %v2212_v61, %v2100_v58  ;;  %1339 = sbr.rel (%p1952_p11) target bundleno = 513 (0x201), region = 40 }
 0x193   : > { %v1303_v0 = vadd.f32 %v1269_v63, %v309_v62 }
 0x195   : > { %1335 = vst [vmem:[%s2670_s24 + $0xf8] sm:$0xff] %v1303_v0 }
 0x196   : > { %v1340_v1 = vld [vmem:[%s2670_s24] sm:$0xff]  ;;  %v1341_v3 = vld [vmem:[%s2670_s24 + $0x8] sm:$0xff]  ;;  %v1342_v6 = vld [vmem:[%s2670_s24 + $0x10] sm:$0xff] }
 0x197   : > { %v2870_v2 = vld [vmem:[%s3017_s2] ss:$0 sm:$0xff]  ;;  %v1343_v7 = vld [vmem:[%s2670_s24 + $0x18] sm:$0xff]  ;;  %v1345_v12 = vld [vmem:[%s2670_s24 + $0x28] sm:$0xff] }
 0x198   : > { %v1379_v4 = vadd.f32 %v2870_v2, %v1340_v1  ;;  %v1380_v5 = vadd.f32 %v2870_v2, %v1341_v3  ;;  %v1344_v8 = vld [vmem:[%s2670_s24 + $0x20] sm:$0xff]  ;;  %v1381_v9 = vadd.f32 %v2870_v2, %v1342_v6  ;;  %v1382_v10 = vadd.f32 %v2870_v2, %v1343_v7  ;;  %v1346_v13 = vld [vmem:[%s2670_s24 + $0x30] sm:$0xff]  ;;  %v1347_v14 = vld [vmem:[%s2670_s24 + $0x38] sm:$0xff] }
 0x199   : > { %v1383_v11 = vadd.f32 %v2870_v2, %v1344_v8  ;;  %v1384_v17 = vadd.f32 %v2870_v2, %v1345_v12  ;;  %v1385_v18 = vadd.f32 %v2870_v2, %v1346_v13  ;;  %v1386_v22 = vadd.f32 %v2870_v2, %v1347_v14  ;;  %v1348_v23 = vld [vmem:[%s2670_s24 + $0x40] sm:$0xff]  ;;  %v1349_v28 = vld [vmem:[%s2670_s24 + $0x48] sm:$0xff]  ;;  %v1350_v29 = vld [vmem:[%s2670_s24 + $0x50] sm:$0xff] }
 0x19a   : > { %v1954_v15 = vclamps-f32 %v1379_v4, 60.0  ;;  %v1955_v16 = vclamps-f32 %v1380_v5, 60.0  ;;  %v1956_v19 = vclamps-f32 %v1381_v9, 60.0  ;;  %v1957_v20 = vclamps-f32 %v1382_v10, 60.0  ;;  %v1351_v34 = vld [vmem:[%s2670_s24 + $0x58] sm:$0xff]  ;;  %v1352_v35 = vld [vmem:[%s2670_s24 + $0x60] sm:$0xff] }
 0x19b   : > { %v1958_v21 = vclamps-f32 %v1383_v11, 60.0  ;;  %v1959_v26 = vclamps-f32 %v1384_v17, 60.0  ;;  %v1960_v27 = vclamps-f32 %v1385_v18, 60.0  ;;  %v1961_v33 = vclamps-f32 %v1386_v22, 60.0  ;;  %v1353_v50 = vld [vmem:[%s2670_s24 + $0x68] sm:$0xff]  ;;  %v1354_v60 = vld [vmem:[%s2670_s24 + $0x70] sm:$0xff] }
 0x19c   : > { %v1475_v24 = vsub.f32 0.0, %v1954_v15  ;;  %v1476_v25 = vsub.f32 0.0, %v1955_v16  ;;  %v1477_v30 = vsub.f32 0.0, %v1956_v19  ;;  %v1478_v31 = vsub.f32 0.0, %v1957_v20  ;;  %v1355_v4 = vld [vmem:[%s2670_s24 + $0x78] sm:$0xff]  ;;  %v1356_v5 = vld [vmem:[%s2670_s24 + $0x80] sm:$0xff] }
 0x19d   : > { %v1479_v32 = vsub.f32 0.0, %v1958_v21  ;;  %v1480_v38 = vsub.f32 0.0, %v1959_v26  ;;  %v1481_v39 = vsub.f32 0.0, %v1960_v27  ;;  %v1387_v43 = vadd.f32 %v2870_v2, %v1348_v23  ;;  %v1357_v9 = vld [vmem:[%s2670_s24 + $0x88] sm:$0xff]  ;;  %v1358_v10 = vld [vmem:[%s2670_s24 + $0x90] sm:$0xff]  ;;  %v1359_v17 = vld [vmem:[%s2670_s24 + $0x98] sm:$0xff] }
 0x19e   : > { %v1507_v36 = vmul.f32 1.442695, %v1475_v24  ;;  %v1509_v37 = vmul.f32 1.442695, %v1476_v25  ;;  %v1511_v40 = vmul.f32 1.442695, %v1477_v30  ;;  %v1388_v48 = vadd.f32 %v2870_v2, %v1349_v28 }
 0x19f   : > { %v1513_v41 = vmul.f32 1.442695, %v1478_v31  ;;  %v1515_v42 = vmul.f32 1.442695, %v1479_v32  ;;  %v1517_v44 = vmul.f32 1.442695, %v1480_v38  ;;  %v1389_v49 = vadd.f32 %v2870_v2, %v1350_v29 }
 0x1a0   : > { %2400 = vpow2.f32 %v1507_v36  ;;  %v1519_v45 = vmul.f32 1.442695, %v1481_v39  ;;  %v1482_v46 = vsub.f32 0.0, %v1961_v33  ;;  %v1962_v47 = vclamps-f32 %v1387_v43, 60.0  ;;  %v1360_v36 = vld [vmem:[%s2670_s24 + $0xa0] sm:$0xff] }
 0x1a1   : > { %2402 = vpow2.f32 %v1509_v37  ;;  %v1390_v52 = vadd.f32 %v2870_v2, %v1351_v34  ;;  %v1391_v53 = vadd.f32 %v2870_v2, %v1352_v35  ;;  %v1963_v55 = vclamps-f32 %v1388_v48, 60.0  ;;  %v1361_v37 = vld [vmem:[%s2670_s24 + $0xa8] sm:$0xff] }
 0x1a2   : > { %2404 = vpow2.f32 %v1511_v40  ;;  %v1521_v51 = vmul.f32 1.442695, %v1482_v46  ;;  %v1483_v54 = vsub.f32 0.0, %v1962_v47  ;;  %v1964_v56 = vclamps-f32 %v1389_v49, 60.0 }
 0x1a3   : > { %2406 = vpow2.f32 %v1513_v41  ;;  %v1965_v57 = vclamps-f32 %v1390_v52, 60.0  ;;  %v1966_v58 = vclamps-f32 %v1391_v53, 60.0  ;;  %v1392_v59 = vadd.f32 %v2870_v2, %v1353_v50 }
 0x1a4   : > { %2408 = vpow2.f32 %v1515_v42  ;;  %v1523_v61 = vmul.f32 1.442695, %v1483_v54  ;;  %v1484_v62 = vsub.f32 0.0, %v1963_v55  ;;  %v1485_v63 = vsub.f32 0.0, %v1964_v56  ;;  %v1362_v42 = vld [vmem:[%s2670_s24 + $0xb0] sm:$0xff]  ;;  %v1363_v55 = vld [vmem:[%s2670_s24 + $0xb8] sm:$0xff] }
 0x1a5   : > { %2410 = vpow2.f32 %v1517_v44  ;;  %v1486_v0 = vsub.f32 0.0, %v1965_v57  ;;  %v1487_v1 = vsub.f32 0.0, %v1966_v58  ;;  %v1967_v3 = vclamps-f32 %v1392_v59, 60.0 }
 0x1a6   : > { %2412 = vpow2.f32 %v1519_v45  ;;  %v1525_v6 = vmul.f32 1.442695, %v1484_v62  ;;  %v1527_v7 = vmul.f32 1.442695, %v1485_v63  ;;  %v1393_v8 = vadd.f32 %v2870_v2, %v1354_v60 }
 0x1a7   : > { %2414 = vpow2.f32 %v1521_v51  ;;  %v1529_v11 = vmul.f32 1.442695, %v1486_v0  ;;  %v1531_v12 = vmul.f32 1.442695, %v1487_v1  ;;  %v1488_v13 = vsub.f32 0.0, %v1967_v3 }
 0x1a8   : > { %2416 = vpow2.f32 %v1523_v61  ;;  %v1968_v14 = vclamps-f32 %v1393_v8, 60.0  ;;  %v1394_v15 = vadd.f32 %v2870_v2, %v1355_v4  ;;  %v1395_v16 = vadd.f32 %v2870_v2, %v1356_v5 }
 0x1a9   : > { %2418 = vpow2.f32 %v1525_v6  ;;  %v1533_v18 = vmul.f32 1.442695, %v1488_v13  ;;  %v1396_v19 = vadd.f32 %v2870_v2, %v1357_v9  ;;  %v1397_v20 = vadd.f32 %v2870_v2, %v1358_v10  ;;  %v1364_v9 = vld [vmem:[%s2670_s24 + $0xc0] sm:$0xff] }
 0x1aa   : > { %2420 = vpow2.f32 %v1527_v7  ;;  %v1489_v21 = vsub.f32 0.0, %v1968_v14  ;;  %v1969_v22 = vclamps-f32 %v1394_v15, 60.0  ;;  %v1970_v23 = vclamps-f32 %v1395_v16, 60.0  ;;  %v1365_v14 = vld [vmem:[%s2670_s24 + $0xc8] sm:$0xff]  ;;  %v1366_v15 = vld [vmem:[%s2670_s24 + $0xd0] sm:$0xff] }
 0x1ab   : > { %2422 = vpow2.f32 %v1529_v11  ;;  %v1971_v24 = vclamps-f32 %v1396_v19, 60.0  ;;  %v1972_v25 = vclamps-f32 %v1397_v20, 60.0  ;;  %v1398_v26 = vadd.f32 %v2870_v2, %v1359_v17 }
 0x1ac   : > { %2424 = vpow2.f32 %v1531_v12  ;;  %v1535_v28 = vmul.f32 1.442695, %v1489_v21  ;;  %v1490_v29 = vsub.f32 0.0, %v1969_v22  ;;  %v1491_v30 = vsub.f32 0.0, %v1970_v23 }
 0x1ad   : > { %v2401_v27 = vpop.eup %2400  ;;  %2426 = vpow2.f32 %v1533_v18  ;;  %v1492_v33 = vsub.f32 0.0, %v1971_v24  ;;  %v1493_v34 = vsub.f32 0.0, %v1972_v25  ;;  %v1973_v35 = vclamps-f32 %v1398_v26, 60.0  ;;  %v1367_v24 = vld [vmem:[%s2670_s24 + $0xd8] sm:$0xff] }
 0x1ae   : > { %v2403_v31 = vpop.eup %2402  ;;  %v1571_v32 = vadd.f32 1.0, %v2401_v27  ;;  %2428 = vpow2.f32 %v1535_v28  ;;  %v2913_v40 = vmul.f32 1.442695, %v1490_v29  ;;  %v2915_v41 = vmul.f32 1.442695, %v1491_v30  ;;  %v1368_v29 = vld [vmem:[%s2670_s24 + $0xe0] sm:$0xff] }
 0x1af   : > { %v2405_v38 = vpop.eup %2404  ;;  %v1572_v39 = vadd.f32 1.0, %v2403_v31  ;;  %v2918_v45 = vmul.f32 1.442695, %v1492_v33  ;;  %v2920_v46 = vmul.f32 1.442695, %v1493_v34  ;;  %v1494_v49 = vsub.f32 0.0, %v1973_v35 }
 0x1b0   : > { %v2407_v43 = vpop.eup %2406  ;;  %2430 = vrcp.f32 %v1571_v32  ;;  %v1573_v44 = vadd.f32 1.0, %v2405_v38  ;;  %v1399_v50 = vadd.f32 %v2870_v2, %v1360_v36  ;;  %v1400_v53 = vadd.f32 %v2870_v2, %v1361_v37 }
 0x1b1   : > { %v2409_v47 = vpop.eup %2408  ;;  %2432 = vrcp.f32 %v1572_v39  ;;  %v1574_v48 = vadd.f32 1.0, %v2407_v43  ;;  %v1401_v54 = vadd.f32 %v2870_v2, %v1362_v42  ;;  %v2926_v58 = vmul.f32 1.442695, %v1494_v49 }
 0x1b2   : > { %v2411_v51 = vpop.eup %2410  ;;  %2434 = vrcp.f32 %v1573_v44  ;;  %v1575_v52 = vadd.f32 1.0, %v2409_v47  ;;  %v1974_v59 = vclamps-f32 %v1399_v50, 60.0  ;;  %v1975_v62 = vclamps-f32 %v1400_v53, 60.0 }
 0x1b3   : > { %v2413_v56 = vpop.eup %2412  ;;  %2436 = vrcp.f32 %v1574_v48  ;;  %v1576_v57 = vadd.f32 1.0, %v2411_v51  ;;  %v1976_v63 = vclamps-f32 %v1401_v54, 60.0  ;;  %v1402_v4 = vadd.f32 %v2870_v2, %v1363_v55 }
 0x1b4   : > { %v2415_v60 = vpop.eup %2414  ;;  %2438 = vrcp.f32 %v1575_v52  ;;  %v1577_v61 = vadd.f32 1.0, %v2413_v56  ;;  %v1495_v3 = vsub.f32 0.0, %v1974_v59  ;;  %v1496_v7 = vsub.f32 0.0, %v1975_v62 }
 0x1b5   : > { %v2417_v0 = vpop.eup %2416  ;;  %2440 = vrcp.f32 %v1576_v57  ;;  %v1578_v1 = vadd.f32 1.0, %v2415_v60  ;;  %v1497_v8 = vsub.f32 0.0, %v1976_v63  ;;  %v1977_v13 = vclamps-f32 %v1402_v4, 60.0 }
 0x1b6   : > { %v2419_v5 = vpop.eup %2418  ;;  %2442 = vrcp.f32 %v1577_v61  ;;  %v1579_v6 = vadd.f32 1.0, %v2417_v0  ;;  %v2930_v12 = vmul.f32 1.442695, %v1495_v3  ;;  %v2934_v18 = vmul.f32 1.442695, %v1496_v7 }
 0x1b7   : > { %v2421_v10 = vpop.eup %2420  ;;  %2444 = vrcp.f32 %v1578_v1  ;;  %v1580_v11 = vadd.f32 1.0, %v2419_v5  ;;  %v2936_v19 = vmul.f32 1.442695, %v1497_v8  ;;  %v1498_v22 = vsub.f32 0.0, %v1977_v13  ;;  %v1369_v5 = vld [vmem:[%s2670_s24 + $0xe8] sm:$0xff] }
 0x1b8   : > { %v2423_v16 = vpop.eup %2422  ;;  %2446 = vrcp.f32 %v1579_v6  ;;  %v1581_v17 = vadd.f32 1.0, %v2421_v10  ;;  %v1403_v23 = vadd.f32 %v2870_v2, %v1364_v9  ;;  %v1404_v27 = vadd.f32 %v2870_v2, %v1365_v14 }
 0x1b9   : > { %v2425_v20 = vpop.eup %2424  ;;  %2448 = vrcp.f32 %v1580_v11  ;;  %v1582_v21 = vadd.f32 1.0, %v2423_v16  ;;  %v1405_v28 = vadd.f32 %v2870_v2, %v1366_v15  ;;  %v2943_v31 = vmul.f32 1.442695, %v1498_v22 }
 0x1ba   : > { %v2427_v25 = vpop.eup %2426  ;;  %2450 = vrcp.f32 %v1581_v17  ;;  %v1583_v26 = vadd.f32 1.0, %v2425_v20  ;;  %v1978_v32 = vclamps-f32 %v1403_v23, 60.0  ;;  %v1979_v34 = vclamps-f32 %v1404_v27, 60.0 }
 0x1bb   : > { %2452 = vrcp.f32 %v1582_v21  ;;  %v1584_v30 = vadd.f32 1.0, %v2427_v25  ;;  %v2429_v33 = vpop.eup %2428  ;;  %v1980_v35 = vclamps-f32 %v1405_v28, 60.0  ;;  %v1406_v36 = vadd.f32 %v2870_v2, %v1367_v24 }
 0x1bc   : > { %2454 = vrcp.f32 %v1583_v26  ;;  %v1585_v38 = vadd.f32 1.0, %v2429_v33  ;;  %v1499_v39 = vsub.f32 0.0, %v1978_v32  ;;  %v1407_v42 = vadd.f32 %v2870_v2, %v1368_v29 }
 0x1bd   : > { %v2431_v37 = vpop.eup %2430  ;;  %2456 = vrcp.f32 %v1584_v30  ;;  %v1500_v47 = vsub.f32 0.0, %v1979_v34  ;;  %v1501_v48 = vsub.f32 0.0, %v1980_v35  ;;  %v1981_v52 = vclamps-f32 %v1406_v36, 60.0  ;;  %v1370_v30 = vld [vmem:[%s2670_s24 + $0xf0] sm:$0xff]  ;;  %v1371_v34 = vld [vmem:[%s2670_s24 + $0xf8] sm:$0xff] }
 0x1be   : > { %v2433_v43 = vpop.eup %2432  ;;  %v1635_v44 = vmax.f32 %v2431_v37, 0.0  ;;  %2458 = vpow2.f32 %v2913_v40  ;;  %v1555_v51 = vmul.f32 1.442695, %v1499_v39  ;;  %v1982_v4 = vclamps-f32 %v1407_v42, 60.0 }
 0x1bf   : > { %v2435_v49 = vpop.eup %2434  ;;  %v1636_v50 = vmax.f32 %v2433_v43, 0.0  ;;  %2460 = vrcp.f32 %v1585_v38  ;;  %v1557_v56 = vmul.f32 1.442695, %v1500_v47  ;;  %v1559_v40 = vmul.f32 1.442695, %v1501_v48 }
 0x1c0   : > { %v2437_v53 = vpop.eup %2436  ;;  %v1667_v54 = vmin.f32 %v1635_v44, 1.0  ;;  %v1637_v55 = vmax.f32 %v2435_v49, 0.0  ;;  %2462 = vpow2.f32 %v2915_v41  ;;  %v1502_v0 = vsub.f32 0.0, %v1981_v52 }
 0x1c1   : > { %v2439_v57 = vpop.eup %2438  ;;  %v1668_v59 = vmin.f32 %v1636_v50, 1.0  ;;  %v1638_v60 = vmax.f32 %v2437_v53, 0.0  ;;  %2464 = vpow2.f32 %v2918_v45  ;;  %v1503_v11 = vsub.f32 0.0, %v1982_v4 }
 0x1c2   : > { %v2441_v61 = vpop.eup %2440  ;;  %1699 = vst [vmem:[%s2670_s24] sm:$0xff] %v1667_v54  ;;  %v1669_v62 = vmin.f32 %v1637_v55, 1.0  ;;  %v1639_v63 = vmax.f32 %v2439_v57, 0.0  ;;  %2466 = vpow2.f32 %v2920_v46  ;;  %v1561_v8 = vmul.f32 1.442695, %v1502_v0 }
 0x1c3   : > { %v2443_v1 = vpop.eup %2442  ;;  %1700 = vst [vmem:[%s2670_s24 + $0x8] sm:$0xff] %v1668_v59  ;;  %v1670_v41 = vmin.f32 %v1638_v60, 1.0  ;;  %v1640_v3 = vmax.f32 %v2441_v61, 0.0  ;;  %2468 = vpow2.f32 %v2926_v58  ;;  %v1408_v15 = vadd.f32 %v2870_v2, %v1369_v5 }
 0x1c4   : > { %v2445_v45 = vpop.eup %2444  ;;  %1701 = vst [vmem:[%s2670_s24 + $0x10] sm:$0xff] %v1669_v62  ;;  %v1671_v6 = vmin.f32 %v1639_v63, 1.0  ;;  %v1641_v7 = vmax.f32 %v2443_v1, 0.0  ;;  %2470 = vpow2.f32 %v2930_v12  ;;  %v1563_v20 = vmul.f32 1.442695, %v1503_v11 }
 0x1c5   : > { %v2447_v46 = vpop.eup %2446  ;;  %1702 = vst [vmem:[%s2670_s24 + $0x18] sm:$0xff] %v1670_v41  ;;  %v1672_v9 = vmin.f32 %v1640_v3, 1.0  ;;  %v1642_v10 = vmax.f32 %v2445_v45, 0.0  ;;  %2472 = vpow2.f32 %v2934_v18  ;;  %v1983_v23 = vclamps-f32 %v1408_v15, 60.0 }
 0x1c6   : > { %v2449_v58 = vpop.eup %2448  ;;  %1703 = vst [vmem:[%s2670_s24 + $0x20] sm:$0xff] %v1671_v6  ;;  %v1673_v13 = vmin.f32 %v1641_v7, 1.0  ;;  %v1643_v14 = vmax.f32 %v2447_v46, 0.0  ;;  %2474 = vpow2.f32 %v2936_v19  ;;  %v1409_v44 = vadd.f32 %v2870_v2, %v1370_v30 }
 0x1c7   : > { %v2451_v16 = vpop.eup %2450  ;;  %1704 = vst [vmem:[%s2670_s24 + $0x28] sm:$0xff] %v1672_v9  ;;  %v1674_v12 = vmin.f32 %v1642_v10, 1.0  ;;  %v1644_v17 = vmax.f32 %v2449_v58, 0.0  ;;  %2476 = vpow2.f32 %v2943_v31  ;;  %v1504_v29 = vsub.f32 0.0, %v1983_v23 }
 0x1c8   : > { %v2453_v21 = vpop.eup %2452  ;;  %1705 = vst [vmem:[%s2670_s24 + $0x30] sm:$0xff] %v1673_v13  ;;  %v1675_v18 = vmin.f32 %v1643_v14, 1.0  ;;  %v1645_v22 = vmax.f32 %v2451_v16, 0.0  ;;  %2478 = vpow2.f32 %v1555_v51  ;;  %v1410_v49 = vadd.f32 %v2870_v2, %v1371_v34 }
 0x1c9   : > { %v2455_v24 = vpop.eup %2454  ;;  %1706 = vst [vmem:[%s2670_s24 + $0x38] sm:$0xff] %v1674_v12  ;;  %v1676_v19 = vmin.f32 %v1644_v17, 1.0  ;;  %v1646_v25 = vmax.f32 %v2453_v21, 0.0  ;;  %2480 = vpow2.f32 %v1557_v56  ;;  %v1565_v38 = vmul.f32 1.442695, %v1504_v29 }
 0x1ca   : > { %v2457_v26 = vpop.eup %2456  ;;  %1707 = vst [vmem:[%s2670_s24 + $0x40] sm:$0xff] %v1675_v18  ;;  %v1677_v27 = vmin.f32 %v1645_v22, 1.0  ;;  %v1647_v28 = vmax.f32 %v2455_v24, 0.0  ;;  %2482 = vpow2.f32 %v1559_v40  ;;  %v1984_v57 = vclamps-f32 %v1409_v44, 60.0 }
 0x1cb   : > { %v2459_v31 = vpop.eup %2458  ;;  %1708 = vst [vmem:[%s2670_s24 + $0x48] sm:$0xff] %v1676_v19  ;;  %v1678_v32 = vmin.f32 %v1646_v25, 1.0  ;;  %v1648_v33 = vmax.f32 %v2457_v26, 0.0  ;;  %2484 = vpow2.f32 %v1561_v8  ;;  %v1985_v40 = vclamps-f32 %v1410_v49, 60.0 }
 0x1cc   : > { %v2461_v35 = vpop.eup %2460  ;;  %1709 = vst [vmem:[%s2670_s24 + $0x50] sm:$0xff] %v1677_v27  ;;  %v1679_v36 = vmin.f32 %v1647_v28, 1.0  ;;  %v1586_v37 = vadd.f32 1.0, %v2459_v31  ;;  %2486 = vpow2.f32 %v1563_v20  ;;  %v1505_v41 = vsub.f32 0.0, %v1984_v57 }
 0x1cd   : > { %v2463_v39 = vpop.eup %2462  ;;  %1710 = vst [vmem:[%s2670_s24 + $0x58] sm:$0xff] %v1678_v32  ;;  %v1680_v42 = vmin.f32 %v1648_v33, 1.0  ;;  %v1649_v43 = vmax.f32 %v2461_v35, 0.0  ;;  %v1506_v5 = vsub.f32 0.0, %v1985_v40 }
 0x1ce   : > { %v2465_v47 = vpop.eup %2464  ;;  %1711 = vst [vmem:[%s2670_s24 + $0x60] sm:$0xff] %v1679_v36  ;;  %2488 = vrcp.f32 %v1586_v37  ;;  %v1587_v48 = vadd.f32 1.0, %v2463_v39  ;;  %v1567_v10 = vmul.f32 1.442695, %v1505_v41 }
 0x1cf   : > { %v2467_v50 = vpop.eup %2466  ;;  %1712 = vst [vmem:[%s2670_s24 + $0x68] sm:$0xff] %v1680_v42  ;;  %v1681_v51 = vmin.f32 %v1649_v43, 1.0  ;;  %v1588_v52 = vadd.f32 1.0, %v2465_v47  ;;  %2490 = vpow2.f32 %v1565_v38  ;;  %v1569_v58 = vmul.f32 1.442695, %v1506_v5 }
 0x1d0   : > { %v2469_v53 = vpop.eup %2468  ;;  %2492 = vrcp.f32 %v1587_v48  ;;  %v1589_v54 = vadd.f32 1.0, %v2467_v50 }
 0x1d1   : > { %v2471_v55 = vpop.eup %2470  ;;  %1713 = vst [vmem:[%s2670_s24 + $0x70] sm:$0xff] %v1681_v51  ;;  %2494 = vrcp.f32 %v1588_v52  ;;  %v1590_v56 = vadd.f32 1.0, %v2469_v53 }
 0x1d2   : > { %v2473_v59 = vpop.eup %2472  ;;  %2496 = vrcp.f32 %v1589_v54  ;;  %v1591_v60 = vadd.f32 1.0, %v2471_v55 }
 0x1d3   : > { %v2475_v61 = vpop.eup %2474  ;;  %2498 = vrcp.f32 %v1590_v56  ;;  %v1592_v2 = vadd.f32 1.0, %v2473_v59 }
 0x1d4   : > { %v2477_v62 = vpop.eup %2476  ;;  %2500 = vrcp.f32 %v1591_v60  ;;  %v1593_v63 = vadd.f32 1.0, %v2475_v61 }
 0x1d5   : > { %v2479_v0 = vpop.eup %2478  ;;  %2502 = vrcp.f32 %v1592_v2  ;;  %v1594_v1 = vadd.f32 1.0, %v2477_v62 }
 0x1d6   : > { %v2481_v3 = vpop.eup %2480  ;;  %2504 = vrcp.f32 %v1593_v63  ;;  %v1595_v4 = vadd.f32 1.0, %v2479_v0 }
 0x1d7   : > { %v2483_v45 = vpop.eup %2482  ;;  %2506 = vrcp.f32 %v1594_v1  ;;  %v1596_v6 = vadd.f32 1.0, %v2481_v3 }
 0x1d8   : > { %v2485_v7 = vpop.eup %2484  ;;  %2508 = vrcp.f32 %v1595_v4  ;;  %v1597_v8 = vadd.f32 1.0, %v2483_v45 }
 0x1d9   : > { %v2487_v46 = vpop.eup %2486  ;;  %2510 = vrcp.f32 %v1596_v6  ;;  %v1598_v9 = vadd.f32 1.0, %v2485_v7 }
 0x1da   : > { %2512 = vrcp.f32 %v1597_v8  ;;  %v1599_v11 = vadd.f32 1.0, %v2487_v46 }
 0x1db   : > { %v2489_v13 = vpop.eup %2488  ;;  %2514 = vrcp.f32 %v1598_v9 }
 0x1dc   : > { %v2491_v14 = vpop.eup %2490  ;;  %v1650_v15 = vmax.f32 %v2489_v13, 0.0  ;;  %2516 = vrcp.f32 %v1599_v11 }
 0x1dd   : > { %v2493_v16 = vpop.eup %2492  ;;  %v1600_v12 = vadd.f32 1.0, %v2491_v14  ;;  %2518 = vpow2.f32 %v1567_v10 }
 0x1de   : > { %v2495_v17 = vpop.eup %2494  ;;  %v1682_v20 = vmin.f32 %v1650_v15, 1.0  ;;  %v1651_v21 = vmax.f32 %v2493_v16, 0.0  ;;  %2520 = vpow2.f32 %v1569_v58 }
 0x1df   : > { %v2497_v18 = vpop.eup %2496  ;;  %v1652_v22 = vmax.f32 %v2495_v17, 0.0  ;;  %2522 = vrcp.f32 %v1600_v12 }
 0x1e0   : > { %v2499_v23 = vpop.eup %2498  ;;  %1714 = vst [vmem:[%s2670_s24 + $0x78] sm:$0xff] %v1682_v20  ;;  %v1683_v24 = vmin.f32 %v1651_v21, 1.0  ;;  %v1653_v19 = vmax.f32 %v2497_v18, 0.0 }
 0x1e1   : > { %v2501_v25 = vpop.eup %2500  ;;  %v1684_v26 = vmin.f32 %v1652_v22, 1.0  ;;  %v1654_v27 = vmax.f32 %v2499_v23, 0.0 }
 0x1e2   : > { %v2503_v28 = vpop.eup %2502  ;;  %1715 = vst [vmem:[%s2670_s24 + $0x80] sm:$0xff] %v1683_v24  ;;  %v1685_v29 = vmin.f32 %v1653_v19, 1.0  ;;  %v1655_v30 = vmax.f32 %v2501_v25, 0.0 }
 0x1e3   : > { %v2505_v31 = vpop.eup %2504  ;;  %1716 = vst [vmem:[%s2670_s24 + $0x88] sm:$0xff] %v1684_v26  ;;  %v1686_v32 = vmin.f32 %v1654_v27, 1.0  ;;  %v1656_v33 = vmax.f32 %v2503_v28, 0.0 }
 0x1e4   : > { %v2507_v34 = vpop.eup %2506  ;;  %1717 = vst [vmem:[%s2670_s24 + $0x90] sm:$0xff] %v1685_v29  ;;  %v1687_v35 = vmin.f32 %v1655_v30, 1.0  ;;  %v1657_v36 = vmax.f32 %v2505_v31, 0.0 }
 0x1e5   : > { %v2509_v37 = vpop.eup %2508  ;;  %1718 = vst [vmem:[%s2670_s24 + $0x98] sm:$0xff] %v1686_v32  ;;  %v1688_v38 = vmin.f32 %v1656_v33, 1.0  ;;  %v1658_v39 = vmax.f32 %v2507_v34, 0.0 }
 0x1e6   : > { %v2511_v42 = vpop.eup %2510  ;;  %1719 = vst [vmem:[%s2670_s24 + $0xa0] sm:$0xff] %v1687_v35  ;;  %v1689_v43 = vmin.f32 %v1657_v36, 1.0  ;;  %v1659_v44 = vmax.f32 %v2509_v37, 0.0 }
 0x1e7   : > { %v2513_v47 = vpop.eup %2512  ;;  %1720 = vst [vmem:[%s2670_s24 + $0xa8] sm:$0xff] %v1688_v38  ;;  %v1690_v48 = vmin.f32 %v1658_v39, 1.0  ;;  %v1660_v49 = vmax.f32 %v2511_v42, 0.0 }
 0x1e8   : > { %v2515_v50 = vpop.eup %2514  ;;  %1721 = vst [vmem:[%s2670_s24 + $0xb0] sm:$0xff] %v1689_v43  ;;  %v1691_v51 = vmin.f32 %v1659_v44, 1.0  ;;  %v1661_v52 = vmax.f32 %v2513_v47, 0.0 }
 0x1e9   : > { %v2517_v53 = vpop.eup %2516  ;;  %1722 = vst [vmem:[%s2670_s24 + $0xb8] sm:$0xff] %v1690_v48  ;;  %v1692_v54 = vmin.f32 %v1660_v49, 1.0  ;;  %v1662_v55 = vmax.f32 %v2515_v50, 0.0 }
 0x1ea   : > { %v2519_v56 = vpop.eup %2518  ;;  %1723 = vst [vmem:[%s2670_s24 + $0xc0] sm:$0xff] %v1691_v51  ;;  %v1693_v57 = vmin.f32 %v1661_v52, 1.0  ;;  %v1663_v59 = vmax.f32 %v2517_v53, 0.0 }
 0x1eb   : > { %v2521_v60 = vpop.eup %2520  ;;  %1724 = vst [vmem:[%s2670_s24 + $0xc8] sm:$0xff] %v1692_v54  ;;  %v1694_v40 = vmin.f32 %v1662_v55, 1.0  ;;  %v1601_v61 = vadd.f32 1.0, %v2519_v56 }
 0x1ec   : > { %v2523_v2 = vpop.eup %2522  ;;  %1725 = vst [vmem:[%s2670_s24 + $0xd0] sm:$0xff] %v1693_v57  ;;  %v1695_v62 = vmin.f32 %v1663_v59, 1.0  ;;  %v1602_v63 = vadd.f32 1.0, %v2521_v60 }
 0x1ed   : > { %1726 = vst [vmem:[%s2670_s24 + $0xd8] sm:$0xff] %v1694_v40  ;;  %v1664_v0 = vmax.f32 %v2523_v2, 0.0  ;;  %2524 = vrcp.f32 %v1601_v61 }
 0x1ee   : > { %1727 = vst [vmem:[%s2670_s24 + $0xe0] sm:$0xff] %v1695_v62  ;;  %2526 = vrcp.f32 %v1602_v63 }
 0x1ef   : > { %v1696_v1 = vmin.f32 %v1664_v0, 1.0 }
 0x1f1   : > { %1728 = vst [vmem:[%s2670_s24 + $0xe8] sm:$0xff] %v1696_v1 }
 0x1fa   : > { %v2525_v41 = vpop.eup %2524 }
 0x1fb   : > { %v2527_v3 = vpop.eup %2526  ;;  %v1665_v4 = vmax.f32 %v2525_v41, 0.0 }
 0x1fc   : > { %v1666_v5 = vmax.f32 %v2527_v3, 0.0 }
 0x1fd   : > { %v1697_v45 = vmin.f32 %v1665_v4, 1.0 }
 0x1fe   : > { %v1698_v6 = vmin.f32 %v1666_v5, 1.0 }
 0x1ff   : > { %1729 = vst [vmem:[%s2670_s24 + $0xf0] sm:$0xff] %v1697_v45 }
 0x200   : > { %1730 = vst [vmem:[%s2670_s24 + $0xf8] sm:$0xff] %v1698_v6 }
 0x201 PF: > { %s13_s18 = sadd.s32 1, %s2582_s18   ;;  %s3019_s12 = smov %s2570_s15 }
 0x202   : > { %p10_p12 = scmp.ge.s32.totalorder %s13_s18, 338   ;;  %s3020_s13 = smov %s2574_s16 }
 0x203   : > { %s3021_s14 = smov %s2578_s17  ;;  %s3022_s15 = smov %s3026_s19 }
 0x204   : > { %s3023_s16 = smov %s3030_s20  ;;  %s3024_s17 = smov %s3034_s21 }
 0x205   :  { %12 = sbr.rel (!%p10_p12) target bundleno = 4 (0x4), region = 73 }

</bundles_post_ra>
